<compile_context>
chip_gen: v7x
topology: tpu7x:2x2x1
jax: 0.10.0
libtpu: 0.0.40
codegen_flags: <defaults>
</compile_context>

<pallas_src>
import jax
import jax.numpy as jnp
from jax.experimental import pallas as pl
from jax.experimental.pallas import tpu as pltpu


# ----------------------------------------------------------------------------
# Fused kernel: base GRU + all subgroup GRUs + per-timestep W0 combine, whole
# sequence, single invocation.
# ----------------------------------------------------------------------------
def fused_seq_kernel(emb_ref, trg_ref, w_ih_ref, b_ih_ref, w_hh_ref, b_hh_ref,
                     w_out_ref, b_out_ref, h0_ref, vt_ref, cent_ref,
                     pred_ref, gi_scr):
    T, B, O = trg_ref.shape
    GH = w_hh_ref.shape[1]          # (G+1) * H
    GO = w_out_ref.shape[1]         # (G+1) * O
    G = cent_ref.shape[0]           # number of subgroups

    # ---- hoisted input-to-hidden projections for ALL timesteps (M = T*B) ----
    # gate-major: gi_scr[gate] = emb @ W_ih[gate] + b_ih[gate]   (f32 accumulate)
    emb = emb_ref[...]                                            # (T*B, E) bf16
    for gate in range(3):
        gi_scr[gate] = (jnp.dot(emb, w_ih_ref[gate],
                                preferred_element_type=jnp.float32)
                        + b_ih_ref[gate])                         # (T*B, GH) f32

    # ---- loop-invariant values hoisted above the serial recurrence ----
    b_hh_r = jnp.broadcast_to(b_hh_ref[0], (B, GH))
    b_hh_z = jnp.broadcast_to(b_hh_ref[1], (B, GH))
    b_hh_n = jnp.broadcast_to(b_hh_ref[2], (B, GH))
    b_out_b = jnp.broadcast_to(b_out_ref[...], (B, GO))
    vt = vt_ref[...]                                              # (O, K) SVD proj
    cent = cent_ref[...]                                          # (G, K) kmeans centers

    def step(t, carry):
        h, p_prev = carry                       # h: (B, GH) f32, p_prev: sigmoid(base[t-1])

        row = pl.multiple_of(t * B, B)
        gi_r = gi_scr[0, pl.ds(row, B), :]
        gi_z = gi_scr[1, pl.ds(row, B), :]
        gi_n = gi_scr[2, pl.ds(row, B), :]

        # one GRU step for all G+1 GRUs at once (block-diagonal, gate-major W_hh)
        h_bf = h.astype(jnp.bfloat16)
        gh_r = jnp.dot(h_bf, w_hh_ref[0], preferred_element_type=jnp.float32) + b_hh_r
        gh_z = jnp.dot(h_bf, w_hh_ref[1], preferred_element_type=jnp.float32) + b_hh_z
        gh_n = jnp.dot(h_bf, w_hh_ref[2], preferred_element_type=jnp.float32) + b_hh_n

        r = jax.nn.sigmoid(gi_r + gh_r)
        z = jax.nn.sigmoid(gi_z + gh_z)
        n = jnp.tanh(gi_n + r * gh_n)
        h_new = (1.0 - z) * n + z * h                             # (B, GH)

        # all G+1 output projections in one block-diagonal dot
        logits = (jnp.dot(h_new.astype(jnp.bfloat16), w_out_ref[...],
                          preferred_element_type=jnp.float32) + b_out_b)     # (B, GO)
        sig_all = jax.nn.sigmoid(logits)
        base_sig = sig_all[:, 0:O]                                # base GRU prediction

        # --- forward_V1 / test / W0 combine for this timestep (t > 0) ---
        # BCE(sigmoid(base[t-1]), trg[t-1]) with torch's log clamp at -100.
        y_prev = trg_ref[jnp.maximum(t - 1, 0)]                   # unused result at t==0
        log_p = jnp.maximum(jnp.log(p_prev), -100.0)
        log_1p = jnp.maximum(jnp.log(1.0 - p_prev), -100.0)
        err = -(y_prev * log_p + (1.0 - y_prev) * log_1p)         # (B, O)
        e = jnp.dot(err, vt, preferred_element_type=jnp.float32)  # (B, K) SVD embedding

        # weights = softmax(exp(-d^2)) (as in the reference); direct (e-c)^2 on the VPU.
        num = jnp.zeros((B, O), jnp.float32)
        den = jnp.zeros((B, 1), jnp.float32)
        for g in range(G):                                        # static, G is tiny
            d2 = jnp.sum((e - cent[g:g + 1, :]) ** 2, axis=-1, keepdims=True)   # (B, 1)
            s = jnp.exp(jnp.exp(-d2))            # exp(-d2) in (0,1] -> numerically stable
            den = den + s
            num = num + s * sig_all[:, (g + 1) * O:(g + 2) * O]
        adapt = num / den                                         # convex combination

        pred_ref[t] = jnp.where(t == 0, base_sig, adapt)
        return h_new, base_sig

    jax.lax.fori_loop(0, T, step,
                      (h0_ref[...], jnp.zeros((B, O), jnp.float32)),
                      unroll=True)


# ----------------------------------------------------------------------------
# Wrapper: weight packing (gate-major / block-diagonal, bf16) + one pallas_call.
# ----------------------------------------------------------------------------
def subgroup_grus_forward(inp_seq, trg_seq, params):
    """inp_seq: (B, T, Din), trg_seq: (B, T, O). Returns (train_loss, pred (B, T, O))."""
    B, T, _ = inp_seq.shape
    O = trg_seq.shape[2]

    w_emb_t = params["w_emb_t"]        # (Din, E)  shared input embedding (no bias)
    w_ih = params["w_ih"]              # (G+1, E, 3H)  columns [r | z | n] (PyTorch order)
    w_hh = params["w_hh"]              # (G+1, H, 3H)
    b_ih = params["b_ih"]              # (G+1, 3H)
    b_hh = params["b_hh"]              # (G+1, 3H)
    w_out = params["w_out"]            # (G+1, H, O)
    b_out = params["b_out"]            # (G+1, O)
    h0 = params["h0"]                  # (G+1, B, H)
    vt = params["vt"]                  # (O, K)   synthesized SVD components^T
    centers = params["centers"]        # (G, K)   synthesized kmeans centers

    G1, E, H3 = w_ih.shape
    H = H3 // 3
    K = vt.shape[1]
    G = centers.shape[0]
    GH = G1 * H
    GO = G1 * O

    eye = jnp.eye(G1, dtype=jnp.float32)

    def gate_block(w, g):              # (G1, X, 3H) -> (G1, X, H)
        return w[:, :, g * H:(g + 1) * H]

    def blk_diag(blocks):              # (G1, H, Ho) -> block-diag (G1*H, G1*Ho)
        g1, h_, ho = blocks.shape
        return jnp.einsum('mij,mn->minj', blocks, eye).reshape(g1 * h_, g1 * ho)

    # input-to-hidden: shared embedding -> dense concat across models, gate-major, bf16
    w_ih_g = jnp.stack(
        [jnp.transpose(gate_block(w_ih, g), (1, 0, 2)).reshape(E, GH) for g in range(3)],
        axis=0).astype(jnp.bfloat16)                               # (3, E, GH)
    # hidden-to-hidden: block-diagonal per gate, bf16
    w_hh_g = jnp.stack([blk_diag(gate_block(w_hh, g)) for g in range(3)],
                       axis=0).astype(jnp.bfloat16)                # (3, GH, GH)
    b_ih_g = jnp.stack([b_ih[:, g * H:(g + 1) * H].reshape(GH) for g in range(3)],
                       axis=0).reshape(3, 1, GH).astype(jnp.float32)
    b_hh_g = jnp.stack([b_hh[:, g * H:(g + 1) * H].reshape(GH) for g in range(3)],
                       axis=0).reshape(3, 1, GH).astype(jnp.float32)
    w_out_blk = blk_diag(w_out).astype(jnp.bfloat16)               # (GH, GO)
    b_out_c = b_out.reshape(1, GO).astype(jnp.float32)
    h0_slab = jnp.transpose(h0, (1, 0, 2)).reshape(B, GH).astype(jnp.float32)

    # shared input embedding hoisted to one big XLA matmul (M = T*B), streamed as bf16
    emb = jnp.einsum('btd,de->tbe', inp_seq, w_emb_t).reshape(T * B, E).astype(jnp.bfloat16)
    trg_tm = jnp.transpose(trg_seq, (1, 0, 2)).astype(jnp.float32)  # (T, B, O)

    pred_tm = pl.pallas_call(
        fused_seq_kernel,
        out_shape=jax.ShapeDtypeStruct((T, B, O), jnp.float32),
        grid_spec=pltpu.PrefetchScalarGridSpec(
            num_scalar_prefetch=0,
            grid=(1,),                                   # single step; time loop in-kernel
            in_specs=[
                pl.BlockSpec((T * B, E), lambda i: (0, 0)),
                pl.BlockSpec((T, B, O), lambda i: (0, 0, 0)),
                pl.BlockSpec((3, E, GH), lambda i: (0, 0, 0)),
                pl.BlockSpec((3, 1, GH), lambda i: (0, 0, 0)),
                pl.BlockSpec((3, GH, GH), lambda i: (0, 0, 0)),
                pl.BlockSpec((3, 1, GH), lambda i: (0, 0, 0)),
                pl.BlockSpec((GH, GO), lambda i: (0, 0)),
                pl.BlockSpec((1, GO), lambda i: (0, 0)),
                pl.BlockSpec((B, GH), lambda i: (0, 0)),
                pl.BlockSpec((O, K), lambda i: (0, 0)),
                pl.BlockSpec((G, K), lambda i: (0, 0)),
            ],
            out_specs=pl.BlockSpec((T, B, O), lambda i: (0, 0, 0)),
            scratch_shapes=[
                pltpu.VMEM((3, T * B, GH), jnp.float32),   # hoisted gi projections
            ],
        ),
        compiler_params=pltpu.CompilerParams(
            dimension_semantics=("arbitrary",)),
    )(emb, trg_tm, w_ih_g, b_ih_g, w_hh_g, b_hh_g, w_out_blk, b_out_c,
      h0_slab, vt, centers)

    train_loss = jnp.float32(0.0)      # mode='test' path returns 0 train loss
    return train_loss, jnp.transpose(pred_tm, (1, 0, 2))           # (B, T, O)


# ----------------------------------------------------------------------------
# Main: deterministic parameters, small shapes, run the full forward pass.
# ----------------------------------------------------------------------------
if __name__ == "__main__":
    B, T = 8, 8                         # batch = 8 fills all vreg sublanes
    INPUT_DIM, EMBED_DIM, HIDDEN_DIM, OUTPUT_DIM = 16, 16, 32, 16
    NUM_GROUP, SVD_K = 4, 8
    G1 = NUM_GROUP + 1                  # base GRU + NUM_GROUP subgroup GRUs

    key = jax.random.PRNGKey(0)
    keys = iter(jax.random.split(key, 16))

    def u(shape, scale):
        return jax.random.uniform(next(keys), shape, jnp.float32, -scale, scale)

    s = float(1.0 / (HIDDEN_DIM ** 0.5))
    params = dict(
        # torch Linear weight is (E, Din); stored pre-transposed. Shared by all GRUs.
        w_emb_t=u((INPUT_DIM, EMBED_DIM), 0.25),
        # fused gate layout along the last dim: [r | z | n] (PyTorch GRU order)
        w_ih=u((G1, EMBED_DIM, 3 * HIDDEN_DIM), s),
        w_hh=u((G1, HIDDEN_DIM, 3 * HIDDEN_DIM), s),
        b_ih=u((G1, 3 * HIDDEN_DIM), s),
        b_hh=u((G1, 3 * HIDDEN_DIM), s),
        w_out=u((G1, HIDDEN_DIM, OUTPUT_DIM), s),
        b_out=u((G1, OUTPUT_DIM), s),
        # initial hidden states: uniform(-0.1, 0.1), as in GRUPredictor.init_hidden
        h0=u((G1, B, HIDDEN_DIM), 0.1),
        # Synthetic "fitted" SVD components^T (O, K) and kmeans centers (G, K).
        vt=u((OUTPUT_DIM, SVD_K), 0.5),
        centers=u((NUM_GROUP, SVD_K), 0.5),
    )

    inp_seq = jax.random.normal(next(keys), (B, T, INPUT_DIM), jnp.float32)
    trg_seq = jax.random.uniform(next(keys), (B, T, OUTPUT_DIM), jnp.float32)

    fwd = jax.jit(subgroup_grus_forward)
    train_loss, pred = fwd(inp_seq, trg_seq, params)
    jax.block_until_ready(pred)

    assert pred.shape == (B, T, OUTPUT_DIM)
    assert bool(jnp.all(jnp.isfinite(pred)))
    # t==0 rows are sigmoids, t>0 rows are convex combinations of sigmoids -> in [0, 1]
    assert bool(jnp.all(pred >= 0.0)) and bool(jnp.all(pred <= 1.0 + 1e-5))
    print("KERNEL_OK")
</pallas_src>

<mosaic_0001>
module attributes {stable_mosaic.version = 11 : i64} {
  func.func @fused_seq_kernel(%arg0: i32, %arg1: memref<64x16xbf16, #tpu.memory_space<vmem>>, %arg2: memref<8x8x16xf32, #tpu.memory_space<vmem>>, %arg3: memref<3x16x160xbf16, #tpu.memory_space<vmem>>, %arg4: memref<3x1x160xf32, #tpu.memory_space<vmem>>, %arg5: memref<3x160x160xbf16, #tpu.memory_space<vmem>>, %arg6: memref<3x1x160xf32, #tpu.memory_space<vmem>>, %arg7: memref<160x80xbf16, #tpu.memory_space<vmem>>, %arg8: memref<1x80xf32, #tpu.memory_space<vmem>>, %arg9: memref<8x160xf32, #tpu.memory_space<vmem>>, %arg10: memref<16x8xf32, #tpu.memory_space<vmem>>, %arg11: memref<4x8xf32, #tpu.memory_space<vmem>>, %arg12: memref<8x8x16xf32, #tpu.memory_space<vmem>>, %arg13: memref<3x64x160xf32, #tpu.memory_space<vmem>>) attributes {dimension_semantics = [#tpu.dimension_semantics<arbitrary>], iteration_bounds = array<i64: 1>, scalar_prefetch = 0 : i64, scratch_operands = 1 : i64, tpu.core_type = #tpu.core_type<tc>, window_params = [{pipeline_mode = #tpu.pipeline_mode<synchronous>, transform_indices = @transform_0, window_bounds = array<i64: 64, 16>}, {pipeline_mode = #tpu.pipeline_mode<synchronous>, transform_indices = @transform_1, window_bounds = array<i64: 8, 8, 16>}, {pipeline_mode = #tpu.pipeline_mode<synchronous>, transform_indices = @transform_2, window_bounds = array<i64: 3, 16, 160>}, {pipeline_mode = #tpu.pipeline_mode<synchronous>, transform_indices = @transform_3, window_bounds = array<i64: 3, 1, 160>}, {pipeline_mode = #tpu.pipeline_mode<synchronous>, transform_indices = @transform_4, window_bounds = array<i64: 3, 160, 160>}, {pipeline_mode = #tpu.pipeline_mode<synchronous>, transform_indices = @transform_5, window_bounds = array<i64: 3, 1, 160>}, {pipeline_mode = #tpu.pipeline_mode<synchronous>, transform_indices = @transform_6, window_bounds = array<i64: 160, 80>}, {pipeline_mode = #tpu.pipeline_mode<synchronous>, transform_indices = @transform_7, window_bounds = array<i64: 1, 80>}, {pipeline_mode = #tpu.pipeline_mode<synchronous>, transform_indices = @transform_8, window_bounds = array<i64: 8, 160>}, {pipeline_mode = #tpu.pipeline_mode<synchronous>, transform_indices = @transform_9, window_bounds = array<i64: 16, 8>}, {pipeline_mode = #tpu.pipeline_mode<synchronous>, transform_indices = @transform_10, window_bounds = array<i64: 4, 8>}, {pipeline_mode = #tpu.pipeline_mode<synchronous>, transform_indices = @transform_11, window_bounds = array<i64: 8, 8, 16>}]} {
    %c0 = arith.constant 0 : index
    %c0_0 = arith.constant 0 : index
    %0 = vector.load %arg1[%c0, %c0_0] : memref<64x16xbf16, #tpu.memory_space<vmem>>, vector<64x16xbf16>
    %c0_1 = arith.constant 0 : index
    %c0_2 = arith.constant 0 : index
    %c0_3 = arith.constant 0 : index
    %1 = vector.load %arg3[%c0_1, %c0_2, %c0_3] : memref<3x16x160xbf16, #tpu.memory_space<vmem>>, vector<1x16x160xbf16>
    %2 = vector.shape_cast %1 : vector<1x16x160xbf16> to vector<16x160xbf16>
    %cst = arith.constant dense<0.000000e+00> : vector<64x160xf32>
    %3 = tpu.matmul %0, %2, %cst {dimension_numbers = #tpu.dot_dimension_numbers<[1], [0], [0], [1], [0, 0, 1, 1], [], []>} : vector<64x16xbf16>, vector<16x160xbf16>, vector<64x160xf32> -> vector<64x160xf32>
    %c0_4 = arith.constant 0 : index
    %c0_5 = arith.constant 0 : index
    %c0_6 = arith.constant 0 : index
    %4 = vector.load %arg4[%c0_4, %c0_5, %c0_6] : memref<3x1x160xf32, #tpu.memory_space<vmem>>, vector<1x1x160xf32>
    %5 = vector.shape_cast %4 : vector<1x1x160xf32> to vector<1x160xf32>
    %6 = vector.broadcast %5 : vector<1x160xf32> to vector<64x160xf32>
    %7 = arith.addf %3, %6 : vector<64x160xf32>
    %c0_7 = arith.constant 0 : index
    %c0_8 = arith.constant 0 : index
    %c0_9 = arith.constant 0 : index
    %8 = vector.load %arg13[%c0_7, %c0_8, %c0_9] : memref<3x64x160xf32, #tpu.memory_space<vmem>>, vector<1x64x160xf32>
    %9 = vector.shape_cast %8 : vector<1x64x160xf32> to vector<64x160xf32>
    %10 = vector.shape_cast %7 : vector<64x160xf32> to vector<1x64x160xf32>
    tpu.vector_store %arg13[%c0_7, %c0_8, %c0_9], %10 {strides = array<i32>} : memref<3x64x160xf32, #tpu.memory_space<vmem>>, vector<1x64x160xf32>,
    %c1 = arith.constant 1 : index
    %c0_10 = arith.constant 0 : index
    %c0_11 = arith.constant 0 : index
    %11 = vector.load %arg3[%c1, %c0_10, %c0_11] : memref<3x16x160xbf16, #tpu.memory_space<vmem>>, vector<1x16x160xbf16>
    %12 = vector.shape_cast %11 : vector<1x16x160xbf16> to vector<16x160xbf16>
    %cst_12 = arith.constant dense<0.000000e+00> : vector<64x160xf32>
    %13 = tpu.matmul %0, %12, %cst_12 {dimension_numbers = #tpu.dot_dimension_numbers<[1], [0], [0], [1], [0, 0, 1, 1], [], []>} : vector<64x16xbf16>, vector<16x160xbf16>, vector<64x160xf32> -> vector<64x160xf32>
    %c1_13 = arith.constant 1 : index
    %c0_14 = arith.constant 0 : index
    %c0_15 = arith.constant 0 : index
    %14 = vector.load %arg4[%c1_13, %c0_14, %c0_15] : memref<3x1x160xf32, #tpu.memory_space<vmem>>, vector<1x1x160xf32>
    %15 = vector.shape_cast %14 : vector<1x1x160xf32> to vector<1x160xf32>
    %16 = vector.broadcast %15 : vector<1x160xf32> to vector<64x160xf32>
    %17 = arith.addf %13, %16 : vector<64x160xf32>
    %c1_16 = arith.constant 1 : index
    %c0_17 = arith.constant 0 : index
    %c0_18 = arith.constant 0 : index
    %18 = vector.load %arg13[%c1_16, %c0_17, %c0_18] : memref<3x64x160xf32, #tpu.memory_space<vmem>>, vector<1x64x160xf32>
    %19 = vector.shape_cast %18 : vector<1x64x160xf32> to vector<64x160xf32>
    %20 = vector.shape_cast %17 : vector<64x160xf32> to vector<1x64x160xf32>
    tpu.vector_store %arg13[%c1_16, %c0_17, %c0_18], %20 {strides = array<i32>} : memref<3x64x160xf32, #tpu.memory_space<vmem>>, vector<1x64x160xf32>,
    %c2 = arith.constant 2 : index
    %c0_19 = arith.constant 0 : index
    %c0_20 = arith.constant 0 : index
    %21 = vector.load %arg3[%c2, %c0_19, %c0_20] : memref<3x16x160xbf16, #tpu.memory_space<vmem>>, vector<1x16x160xbf16>
    %22 = vector.shape_cast %21 : vector<1x16x160xbf16> to vector<16x160xbf16>
    %cst_21 = arith.constant dense<0.000000e+00> : vector<64x160xf32>
    %23 = tpu.matmul %0, %22, %cst_21 {dimension_numbers = #tpu.dot_dimension_numbers<[1], [0], [0], [1], [0, 0, 1, 1], [], []>} : vector<64x16xbf16>, vector<16x160xbf16>, vector<64x160xf32> -> vector<64x160xf32>
    %c2_22 = arith.constant 2 : index
    %c0_23 = arith.constant 0 : index
    %c0_24 = arith.constant 0 : index
    %24 = vector.load %arg4[%c2_22, %c0_23, %c0_24] : memref<3x1x160xf32, #tpu.memory_space<vmem>>, vector<1x1x160xf32>
    %25 = vector.shape_cast %24 : vector<1x1x160xf32> to vector<1x160xf32>
    %26 = vector.broadcast %25 : vector<1x160xf32> to vector<64x160xf32>
    %27 = arith.addf %23, %26 : vector<64x160xf32>
    %c2_25 = arith.constant 2 : index
    %c0_26 = arith.constant 0 : index
    %c0_27 = arith.constant 0 : index
    %28 = vector.load %arg13[%c2_25, %c0_26, %c0_27] : memref<3x64x160xf32, #tpu.memory_space<vmem>>, vector<1x64x160xf32>
    %29 = vector.shape_cast %28 : vector<1x64x160xf32> to vector<64x160xf32>
    %30 = vector.shape_cast %27 : vector<64x160xf32> to vector<1x64x160xf32>
    tpu.vector_store %arg13[%c2_25, %c0_26, %c0_27], %30 {strides = array<i32>} : memref<3x64x160xf32, #tpu.memory_space<vmem>>, vector<1x64x160xf32>,
    %c0_28 = arith.constant 0 : index
    %c0_29 = arith.constant 0 : index
    %c0_30 = arith.constant 0 : index
    %31 = vector.load %arg6[%c0_28, %c0_29, %c0_30] : memref<3x1x160xf32, #tpu.memory_space<vmem>>, vector<1x1x160xf32>
    %32 = vector.shape_cast %31 : vector<1x1x160xf32> to vector<1x160xf32>
    %33 = vector.shape_cast %32 : vector<1x160xf32> to vector<1x160xf32>
    %34 = vector.broadcast %33 : vector<1x160xf32> to vector<8x160xf32>
    %c1_31 = arith.constant 1 : index
    %c0_32 = arith.constant 0 : index
    %c0_33 = arith.constant 0 : index
    %35 = vector.load %arg6[%c1_31, %c0_32, %c0_33] : memref<3x1x160xf32, #tpu.memory_space<vmem>>, vector<1x1x160xf32>
    %36 = vector.shape_cast %35 : vector<1x1x160xf32> to vector<1x160xf32>
    %37 = vector.shape_cast %36 : vector<1x160xf32> to vector<1x160xf32>
    %38 = vector.broadcast %37 : vector<1x160xf32> to vector<8x160xf32>
    %c2_34 = arith.constant 2 : index
    %c0_35 = arith.constant 0 : index
    %c0_36 = arith.constant 0 : index
    %39 = vector.load %arg6[%c2_34, %c0_35, %c0_36] : memref<3x1x160xf32, #tpu.memory_space<vmem>>, vector<1x1x160xf32>
    %40 = vector.shape_cast %39 : vector<1x1x160xf32> to vector<1x160xf32>
    %41 = vector.shape_cast %40 : vector<1x160xf32> to vector<1x160xf32>
    %42 = vector.broadcast %41 : vector<1x160xf32> to vector<8x160xf32>
    %c0_37 = arith.constant 0 : index
    %c0_38 = arith.constant 0 : index
    %43 = vector.load %arg8[%c0_37, %c0_38] : memref<1x80xf32, #tpu.memory_space<vmem>>, vector<1x80xf32>
    %44 = vector.shape_cast %43 : vector<1x80xf32> to vector<1x80xf32>
    %45 = vector.broadcast %44 : vector<1x80xf32> to vector<8x80xf32>
    %c0_39 = arith.constant 0 : index
    %c0_40 = arith.constant 0 : index
    %46 = vector.load %arg10[%c0_39, %c0_40] : memref<16x8xf32, #tpu.memory_space<vmem>>, vector<16x8xf32>
    %c0_41 = arith.constant 0 : index
    %c0_42 = arith.constant 0 : index
    %47 = vector.load %arg11[%c0_41, %c0_42] : memref<4x8xf32, #tpu.memory_space<vmem>>, vector<4x8xf32>
    %c0_43 = arith.constant 0 : index
    %c0_44 = arith.constant 0 : index
    %48 = vector.load %arg9[%c0_43, %c0_44] : memref<8x160xf32, #tpu.memory_space<vmem>>, vector<8x160xf32>
    %cst_45 = arith.constant 0.000000e+00 : f32
    %49 = vector.broadcast %cst_45 : f32 to vector<8x16xf32>
    %c0_i32 = arith.constant 0 : i32
    %c8_i32 = arith.constant 8 : i32
    %50 = arith.muli %c0_i32, %c8_i32 : i32
    %51 = tpu.assume_multiple %50, 8 : i32
    %c0_46 = arith.constant 0 : index
    %52 = arith.index_cast %51 : i32 to index
    %c0_47 = arith.constant 0 : index
    %53 = vector.load %arg13[%c0_46, %52, %c0_47] : memref<3x64x160xf32, #tpu.memory_space<vmem>>, vector<1x8x160xf32>
    %54 = vector.shape_cast %53 : vector<1x8x160xf32> to vector<8x160xf32>
    %c1_48 = arith.constant 1 : index
    %55 = arith.index_cast %51 : i32 to index
    %c0_49 = arith.constant 0 : index
    %56 = vector.load %arg13[%c1_48, %55, %c0_49] : memref<3x64x160xf32, #tpu.memory_space<vmem>>, vector<1x8x160xf32>
    %57 = vector.shape_cast %56 : vector<1x8x160xf32> to vector<8x160xf32>
    %c2_50 = arith.constant 2 : index
    %58 = arith.index_cast %51 : i32 to index
    %c0_51 = arith.constant 0 : index
    %59 = vector.load %arg13[%c2_50, %58, %c0_51] : memref<3x64x160xf32, #tpu.memory_space<vmem>>, vector<1x8x160xf32>
    %60 = vector.shape_cast %59 : vector<1x8x160xf32> to vector<8x160xf32>
    %61 = arith.truncf %48 : vector<8x160xf32> to vector<8x160xbf16>
    %c0_52 = arith.constant 0 : index
    %c0_53 = arith.constant 0 : index
    %c0_54 = arith.constant 0 : index
    %62 = vector.load %arg5[%c0_52, %c0_53, %c0_54] : memref<3x160x160xbf16, #tpu.memory_space<vmem>>, vector<1x160x160xbf16>
    %63 = vector.shape_cast %62 : vector<1x160x160xbf16> to vector<160x160xbf16>
    %cst_55 = arith.constant dense<0.000000e+00> : vector<8x160xf32>
    %64 = tpu.matmul %61, %63, %cst_55 {dimension_numbers = #tpu.dot_dimension_numbers<[1], [0], [0], [1], [0, 0, 1, 1], [], []>} : vector<8x160xbf16>, vector<160x160xbf16>, vector<8x160xf32> -> vector<8x160xf32>
    %65 = arith.addf %64, %34 : vector<8x160xf32>
    %c1_56 = arith.constant 1 : index
    %c0_57 = arith.constant 0 : index
    %c0_58 = arith.constant 0 : index
    %66 = vector.load %arg5[%c1_56, %c0_57, %c0_58] : memref<3x160x160xbf16, #tpu.memory_space<vmem>>, vector<1x160x160xbf16>
    %67 = vector.shape_cast %66 : vector<1x160x160xbf16> to vector<160x160xbf16>
    %cst_59 = arith.constant dense<0.000000e+00> : vector<8x160xf32>
    %68 = tpu.matmul %61, %67, %cst_59 {dimension_numbers = #tpu.dot_dimension_numbers<[1], [0], [0], [1], [0, 0, 1, 1], [], []>} : vector<8x160xbf16>, vector<160x160xbf16>, vector<8x160xf32> -> vector<8x160xf32>
    %69 = arith.addf %68, %38 : vector<8x160xf32>
    %c2_60 = arith.constant 2 : index
    %c0_61 = arith.constant 0 : index
    %c0_62 = arith.constant 0 : index
    %70 = vector.load %arg5[%c2_60, %c0_61, %c0_62] : memref<3x160x160xbf16, #tpu.memory_space<vmem>>, vector<1x160x160xbf16>
    %71 = vector.shape_cast %70 : vector<1x160x160xbf16> to vector<160x160xbf16>
    %cst_63 = arith.constant dense<0.000000e+00> : vector<8x160xf32>
    %72 = tpu.matmul %61, %71, %cst_63 {dimension_numbers = #tpu.dot_dimension_numbers<[1], [0], [0], [1], [0, 0, 1, 1], [], []>} : vector<8x160xbf16>, vector<160x160xbf16>, vector<8x160xf32> -> vector<8x160xf32>
    %73 = arith.addf %72, %42 : vector<8x160xf32>
    %74 = arith.addf %54, %65 : vector<8x160xf32>
    %75 = arith.negf %74 : vector<8x160xf32>
    %76 = math.exp %75 : vector<8x160xf32>
    %cst_64 = arith.constant 1.000000e+00 : f32
    %77 = vector.broadcast %cst_64 : f32 to vector<8x160xf32>
    %78 = arith.addf %77, %76 : vector<8x160xf32>
    %79 = arith.divf %77, %78 : vector<8x160xf32>
    %80 = arith.addf %57, %69 : vector<8x160xf32>
    %81 = arith.negf %80 : vector<8x160xf32>
    %82 = math.exp %81 : vector<8x160xf32>
    %cst_65 = arith.constant 1.000000e+00 : f32
    %83 = vector.broadcast %cst_65 : f32 to vector<8x160xf32>
    %84 = arith.addf %83, %82 : vector<8x160xf32>
    %85 = arith.divf %83, %84 : vector<8x160xf32>
    %86 = arith.mulf %79, %73 : vector<8x160xf32>
    %87 = arith.addf %60, %86 : vector<8x160xf32>
    %88 = math.tanh %87 : vector<8x160xf32>
    %cst_66 = arith.constant 1.000000e+00 : f32
    %89 = vector.broadcast %cst_66 : f32 to vector<8x160xf32>
    %90 = arith.subf %89, %85 : vector<8x160xf32>
    %91 = arith.mulf %90, %88 : vector<8x160xf32>
    %92 = arith.mulf %85, %48 : vector<8x160xf32>
    %93 = arith.addf %91, %92 : vector<8x160xf32>
    %94 = arith.truncf %93 : vector<8x160xf32> to vector<8x160xbf16>
    %c0_67 = arith.constant 0 : index
    %c0_68 = arith.constant 0 : index
    %95 = vector.load %arg7[%c0_67, %c0_68] : memref<160x80xbf16, #tpu.memory_space<vmem>>, vector<160x80xbf16>
    %cst_69 = arith.constant dense<0.000000e+00> : vector<8x80xf32>
    %96 = tpu.matmul %94, %95, %cst_69 {dimension_numbers = #tpu.dot_dimension_numbers<[1], [0], [0], [1], [0, 0, 1, 1], [], []>} : vector<8x160xbf16>, vector<160x80xbf16>, vector<8x80xf32> -> vector<8x80xf32>
    %97 = arith.addf %96, %45 : vector<8x80xf32>
    %98 = arith.negf %97 : vector<8x80xf32>
    %99 = math.exp %98 : vector<8x80xf32>
    %cst_70 = arith.constant 1.000000e+00 : f32
    %100 = vector.broadcast %cst_70 : f32 to vector<8x80xf32>
    %101 = arith.addf %100, %99 : vector<8x80xf32>
    %102 = arith.divf %100, %101 : vector<8x80xf32>
    %103 = vector.extract_strided_slice %102 {offsets = [0, 0], sizes = [8, 16], strides = [1, 1]} : vector<8x80xf32> to vector<8x16xf32>
    %c1_i32 = arith.constant 1 : i32
    %104 = arith.subi %c0_i32, %c1_i32 : i32
    %c0_i32_71 = arith.constant 0 : i32
    %105 = arith.maxsi %104, %c0_i32_71 : i32
    %106 = arith.index_cast %105 : i32 to index
    %c0_72 = arith.constant 0 : index
    %c0_73 = arith.constant 0 : index
    %107 = vector.load %arg2[%106, %c0_72, %c0_73] : memref<8x8x16xf32, #tpu.memory_space<vmem>>, vector<1x8x16xf32>
    %108 = vector.shape_cast %107 : vector<1x8x16xf32> to vector<8x16xf32>
    %109 = math.log %49 : vector<8x16xf32>
    %cst_74 = arith.constant -1.000000e+02 : f32
    %110 = vector.broadcast %cst_74 : f32 to vector<8x16xf32>
    %111 = arith.maximumf %109, %110 : vector<8x16xf32>
    %cst_75 = arith.constant 1.000000e+00 : f32
    %112 = vector.broadcast %cst_75 : f32 to vector<8x16xf32>
    %113 = arith.subf %112, %49 : vector<8x16xf32>
    %114 = math.log %113 : vector<8x16xf32>
    %cst_76 = arith.constant -1.000000e+02 : f32
    %115 = vector.broadcast %cst_76 : f32 to vector<8x16xf32>
    %116 = arith.maximumf %114, %115 : vector<8x16xf32>
    %117 = arith.mulf %108, %111 : vector<8x16xf32>
    %cst_77 = arith.constant 1.000000e+00 : f32
    %118 = vector.broadcast %cst_77 : f32 to vector<8x16xf32>
    %119 = arith.subf %118, %108 : vector<8x16xf32>
    %120 = arith.mulf %119, %116 : vector<8x16xf32>
    %121 = arith.addf %117, %120 : vector<8x16xf32>
    %cst_78 = arith.constant 0.000000e+00 : f32
    %122 = vector.broadcast %cst_78 : f32 to vector<8x16xf32>
    %123 = arith.subf %122, %121 : vector<8x16xf32>
    %cst_79 = arith.constant dense<0.000000e+00> : vector<8x8xf32>
    %124 = tpu.matmul %123, %46, %cst_79 {dimension_numbers = #tpu.dot_dimension_numbers<[1], [0], [0], [1], [0, 0, 1, 1], [], []>} : vector<8x16xf32>, vector<16x8xf32>, vector<8x8xf32> -> vector<8x8xf32>
    %cst_80 = arith.constant 0.000000e+00 : f32
    %125 = vector.broadcast %cst_80 : f32 to vector<8x16xf32>
    %cst_81 = arith.constant 0.000000e+00 : f32
    %126 = vector.broadcast %cst_81 : f32 to vector<8x1xf32>
    %127 = vector.extract_strided_slice %47 {offsets = [0, 0], sizes = [1, 8], strides = [1, 1]} : vector<4x8xf32> to vector<1x8xf32>
    %128 = vector.broadcast %127 : vector<1x8xf32> to vector<8x8xf32>
    %129 = arith.subf %124, %128 : vector<8x8xf32>
    %130 = arith.mulf %129, %129 : vector<8x8xf32>
    %cst_82 = arith.constant dense<0.000000e+00> : vector<8xf32>
    %131 = vector.multi_reduction <add>, %130, %cst_82 [1] : vector<8x8xf32> to vector<8xf32>
    %132 = vector.shape_cast %131 : vector<8xf32> to vector<8x1xf32>
    %cst_83 = arith.constant 0.000000e+00 : f32
    %133 = vector.broadcast %cst_83 : f32 to vector<8x1xf32>
    %134 = arith.subf %133, %132 : vector<8x1xf32>
    %135 = math.exp %134 : vector<8x1xf32>
    %136 = math.exp %135 : vector<8x1xf32>
    %137 = arith.addf %126, %136 : vector<8x1xf32>
    %138 = vector.extract_strided_slice %102 {offsets = [0, 16], sizes = [8, 16], strides = [1, 1]} : vector<8x80xf32> to vector<8x16xf32>
    %139 = vector.broadcast %136 : vector<8x1xf32> to vector<8x16xf32>
    %140 = arith.mulf %139, %138 : vector<8x16xf32>
    %141 = arith.addf %125, %140 : vector<8x16xf32>
    %142 = vector.extract_strided_slice %47 {offsets = [1, 0], sizes = [1, 8], strides = [1, 1]} : vector<4x8xf32> to vector<1x8xf32>
    %143 = vector.broadcast %142 : vector<1x8xf32> to vector<8x8xf32>
    %144 = arith.subf %124, %143 : vector<8x8xf32>
    %145 = arith.mulf %144, %144 : vector<8x8xf32>
    %cst_84 = arith.constant dense<0.000000e+00> : vector<8xf32>
    %146 = vector.multi_reduction <add>, %145, %cst_84 [1] : vector<8x8xf32> to vector<8xf32>
    %147 = vector.shape_cast %146 : vector<8xf32> to vector<8x1xf32>
    %cst_85 = arith.constant 0.000000e+00 : f32
    %148 = vector.broadcast %cst_85 : f32 to vector<8x1xf32>
    %149 = arith.subf %148, %147 : vector<8x1xf32>
    %150 = math.exp %149 : vector<8x1xf32>
    %151 = math.exp %150 : vector<8x1xf32>
    %152 = arith.addf %137, %151 : vector<8x1xf32>
    %153 = vector.extract_strided_slice %102 {offsets = [0, 32], sizes = [8, 16], strides = [1, 1]} : vector<8x80xf32> to vector<8x16xf32>
    %154 = vector.broadcast %151 : vector<8x1xf32> to vector<8x16xf32>
    %155 = arith.mulf %154, %153 : vector<8x16xf32>
    %156 = arith.addf %141, %155 : vector<8x16xf32>
    %157 = vector.extract_strided_slice %47 {offsets = [2, 0], sizes = [1, 8], strides = [1, 1]} : vector<4x8xf32> to vector<1x8xf32>
    %158 = vector.broadcast %157 : vector<1x8xf32> to vector<8x8xf32>
    %159 = arith.subf %124, %158 : vector<8x8xf32>
    %160 = arith.mulf %159, %159 : vector<8x8xf32>
    %cst_86 = arith.constant dense<0.000000e+00> : vector<8xf32>
    %161 = vector.multi_reduction <add>, %160, %cst_86 [1] : vector<8x8xf32> to vector<8xf32>
    %162 = vector.shape_cast %161 : vector<8xf32> to vector<8x1xf32>
    %cst_87 = arith.constant 0.000000e+00 : f32
    %163 = vector.broadcast %cst_87 : f32 to vector<8x1xf32>
    %164 = arith.subf %163, %162 : vector<8x1xf32>
    %165 = math.exp %164 : vector<8x1xf32>
    %166 = math.exp %165 : vector<8x1xf32>
    %167 = arith.addf %152, %166 : vector<8x1xf32>
    %168 = vector.extract_strided_slice %102 {offsets = [0, 48], sizes = [8, 16], strides = [1, 1]} : vector<8x80xf32> to vector<8x16xf32>
    %169 = vector.broadcast %166 : vector<8x1xf32> to vector<8x16xf32>
    %170 = arith.mulf %169, %168 : vector<8x16xf32>
    %171 = arith.addf %156, %170 : vector<8x16xf32>
    %172 = vector.extract_strided_slice %47 {offsets = [3, 0], sizes = [1, 8], strides = [1, 1]} : vector<4x8xf32> to vector<1x8xf32>
    %173 = vector.broadcast %172 : vector<1x8xf32> to vector<8x8xf32>
    %174 = arith.subf %124, %173 : vector<8x8xf32>
    %175 = arith.mulf %174, %174 : vector<8x8xf32>
    %cst_88 = arith.constant dense<0.000000e+00> : vector<8xf32>
    %176 = vector.multi_reduction <add>, %175, %cst_88 [1] : vector<8x8xf32> to vector<8xf32>
    %177 = vector.shape_cast %176 : vector<8xf32> to vector<8x1xf32>
    %cst_89 = arith.constant 0.000000e+00 : f32
    %178 = vector.broadcast %cst_89 : f32 to vector<8x1xf32>
    %179 = arith.subf %178, %177 : vector<8x1xf32>
    %180 = math.exp %179 : vector<8x1xf32>
    %181 = math.exp %180 : vector<8x1xf32>
    %182 = arith.addf %167, %181 : vector<8x1xf32>
    %183 = vector.extract_strided_slice %102 {offsets = [0, 64], sizes = [8, 16], strides = [1, 1]} : vector<8x80xf32> to vector<8x16xf32>
    %184 = vector.broadcast %181 : vector<8x1xf32> to vector<8x16xf32>
    %185 = arith.mulf %184, %183 : vector<8x16xf32>
    %186 = arith.addf %171, %185 : vector<8x16xf32>
    %187 = vector.broadcast %182 : vector<8x1xf32> to vector<8x16xf32>
    %188 = arith.divf %186, %187 : vector<8x16xf32>
    %c0_i32_90 = arith.constant 0 : i32
    %189 = arith.cmpi eq, %c0_i32, %c0_i32_90 : i32
    %190 = arith.select %189, %103, %188 : vector<8x16xf32>
    %191 = arith.index_cast %c0_i32 : i32 to index
    %c0_91 = arith.constant 0 : index
    %c0_92 = arith.constant 0 : index
    %192 = vector.load %arg12[%191, %c0_91, %c0_92] : memref<8x8x16xf32, #tpu.memory_space<vmem>>, vector<1x8x16xf32>
    %193 = vector.shape_cast %192 : vector<1x8x16xf32> to vector<8x16xf32>
    %194 = vector.shape_cast %190 : vector<8x16xf32> to vector<1x8x16xf32>
    tpu.vector_store %arg12[%191, %c0_91, %c0_92], %194 {strides = array<i32>} : memref<8x8x16xf32, #tpu.memory_space<vmem>>, vector<1x8x16xf32>,
    %c1_i32_93 = arith.constant 1 : i32
    %c8_i32_94 = arith.constant 8 : i32
    %195 = arith.muli %c1_i32_93, %c8_i32_94 : i32
    %196 = tpu.assume_multiple %195, 8 : i32
    %c0_95 = arith.constant 0 : index
    %197 = arith.index_cast %196 : i32 to index
    %c0_96 = arith.constant 0 : index
    %198 = vector.load %arg13[%c0_95, %197, %c0_96] : memref<3x64x160xf32, #tpu.memory_space<vmem>>, vector<1x8x160xf32>
    %199 = vector.shape_cast %198 : vector<1x8x160xf32> to vector<8x160xf32>
    %c1_97 = arith.constant 1 : index
    %200 = arith.index_cast %196 : i32 to index
    %c0_98 = arith.constant 0 : index
    %201 = vector.load %arg13[%c1_97, %200, %c0_98] : memref<3x64x160xf32, #tpu.memory_space<vmem>>, vector<1x8x160xf32>
    %202 = vector.shape_cast %201 : vector<1x8x160xf32> to vector<8x160xf32>
    %c2_99 = arith.constant 2 : index
    %203 = arith.index_cast %196 : i32 to index
    %c0_100 = arith.constant 0 : index
    %204 = vector.load %arg13[%c2_99, %203, %c0_100] : memref<3x64x160xf32, #tpu.memory_space<vmem>>, vector<1x8x160xf32>
    %205 = vector.shape_cast %204 : vector<1x8x160xf32> to vector<8x160xf32>
    %206 = arith.truncf %93 : vector<8x160xf32> to vector<8x160xbf16>
    %c0_101 = arith.constant 0 : index
    %c0_102 = arith.constant 0 : index
    %c0_103 = arith.constant 0 : index
    %207 = vector.load %arg5[%c0_101, %c0_102, %c0_103] : memref<3x160x160xbf16, #tpu.memory_space<vmem>>, vector<1x160x160xbf16>
    %208 = vector.shape_cast %207 : vector<1x160x160xbf16> to vector<160x160xbf16>
    %cst_104 = arith.constant dense<0.000000e+00> : vector<8x160xf32>
    %209 = tpu.matmul %206, %208, %cst_104 {dimension_numbers = #tpu.dot_dimension_numbers<[1], [0], [0], [1], [0, 0, 1, 1], [], []>} : vector<8x160xbf16>, vector<160x160xbf16>, vector<8x160xf32> -> vector<8x160xf32>
    %210 = arith.addf %209, %34 : vector<8x160xf32>
    %c1_105 = arith.constant 1 : index
    %c0_106 = arith.constant 0 : index
    %c0_107 = arith.constant 0 : index
    %211 = vector.load %arg5[%c1_105, %c0_106, %c0_107] : memref<3x160x160xbf16, #tpu.memory_space<vmem>>, vector<1x160x160xbf16>
    %212 = vector.shape_cast %211 : vector<1x160x160xbf16> to vector<160x160xbf16>
    %cst_108 = arith.constant dense<0.000000e+00> : vector<8x160xf32>
    %213 = tpu.matmul %206, %212, %cst_108 {dimension_numbers = #tpu.dot_dimension_numbers<[1], [0], [0], [1], [0, 0, 1, 1], [], []>} : vector<8x160xbf16>, vector<160x160xbf16>, vector<8x160xf32> -> vector<8x160xf32>
    %214 = arith.addf %213, %38 : vector<8x160xf32>
    %c2_109 = arith.constant 2 : index
    %c0_110 = arith.constant 0 : index
    %c0_111 = arith.constant 0 : index
    %215 = vector.load %arg5[%c2_109, %c0_110, %c0_111] : memref<3x160x160xbf16, #tpu.memory_space<vmem>>, vector<1x160x160xbf16>
    %216 = vector.shape_cast %215 : vector<1x160x160xbf16> to vector<160x160xbf16>
    %cst_112 = arith.constant dense<0.000000e+00> : vector<8x160xf32>
    %217 = tpu.matmul %206, %216, %cst_112 {dimension_numbers = #tpu.dot_dimension_numbers<[1], [0], [0], [1], [0, 0, 1, 1], [], []>} : vector<8x160xbf16>, vector<160x160xbf16>, vector<8x160xf32> -> vector<8x160xf32>
    %218 = arith.addf %217, %42 : vector<8x160xf32>
    %219 = arith.addf %199, %210 : vector<8x160xf32>
    %220 = arith.negf %219 : vector<8x160xf32>
    %221 = math.exp %220 : vector<8x160xf32>
    %cst_113 = arith.constant 1.000000e+00 : f32
    %222 = vector.broadcast %cst_113 : f32 to vector<8x160xf32>
    %223 = arith.addf %222, %221 : vector<8x160xf32>
    %224 = arith.divf %222, %223 : vector<8x160xf32>
    %225 = arith.addf %202, %214 : vector<8x160xf32>
    %226 = arith.negf %225 : vector<8x160xf32>
    %227 = math.exp %226 : vector<8x160xf32>
    %cst_114 = arith.constant 1.000000e+00 : f32
    %228 = vector.broadcast %cst_114 : f32 to vector<8x160xf32>
    %229 = arith.addf %228, %227 : vector<8x160xf32>
    %230 = arith.divf %228, %229 : vector<8x160xf32>
    %231 = arith.mulf %224, %218 : vector<8x160xf32>
    %232 = arith.addf %205, %231 : vector<8x160xf32>
    %233 = math.tanh %232 : vector<8x160xf32>
    %cst_115 = arith.constant 1.000000e+00 : f32
    %234 = vector.broadcast %cst_115 : f32 to vector<8x160xf32>
    %235 = arith.subf %234, %230 : vector<8x160xf32>
    %236 = arith.mulf %235, %233 : vector<8x160xf32>
    %237 = arith.mulf %230, %93 : vector<8x160xf32>
    %238 = arith.addf %236, %237 : vector<8x160xf32>
    %239 = arith.truncf %238 : vector<8x160xf32> to vector<8x160xbf16>
    %c0_116 = arith.constant 0 : index
    %c0_117 = arith.constant 0 : index
    %240 = vector.load %arg7[%c0_116, %c0_117] : memref<160x80xbf16, #tpu.memory_space<vmem>>, vector<160x80xbf16>
    %cst_118 = arith.constant dense<0.000000e+00> : vector<8x80xf32>
    %241 = tpu.matmul %239, %240, %cst_118 {dimension_numbers = #tpu.dot_dimension_numbers<[1], [0], [0], [1], [0, 0, 1, 1], [], []>} : vector<8x160xbf16>, vector<160x80xbf16>, vector<8x80xf32> -> vector<8x80xf32>
    %242 = arith.addf %241, %45 : vector<8x80xf32>
    %243 = arith.negf %242 : vector<8x80xf32>
    %244 = math.exp %243 : vector<8x80xf32>
    %cst_119 = arith.constant 1.000000e+00 : f32
    %245 = vector.broadcast %cst_119 : f32 to vector<8x80xf32>
    %246 = arith.addf %245, %244 : vector<8x80xf32>
    %247 = arith.divf %245, %246 : vector<8x80xf32>
    %248 = vector.extract_strided_slice %247 {offsets = [0, 0], sizes = [8, 16], strides = [1, 1]} : vector<8x80xf32> to vector<8x16xf32>
    %c1_i32_120 = arith.constant 1 : i32
    %249 = arith.subi %c1_i32_93, %c1_i32_120 : i32
    %c0_i32_121 = arith.constant 0 : i32
    %250 = arith.maxsi %249, %c0_i32_121 : i32
    %251 = arith.index_cast %250 : i32 to index
    %c0_122 = arith.constant 0 : index
    %c0_123 = arith.constant 0 : index
    %252 = vector.load %arg2[%251, %c0_122, %c0_123] : memref<8x8x16xf32, #tpu.memory_space<vmem>>, vector<1x8x16xf32>
    %253 = vector.shape_cast %252 : vector<1x8x16xf32> to vector<8x16xf32>
    %254 = math.log %103 : vector<8x16xf32>
    %cst_124 = arith.constant -1.000000e+02 : f32
    %255 = vector.broadcast %cst_124 : f32 to vector<8x16xf32>
    %256 = arith.maximumf %254, %255 : vector<8x16xf32>
    %cst_125 = arith.constant 1.000000e+00 : f32
    %257 = vector.broadcast %cst_125 : f32 to vector<8x16xf32>
    %258 = arith.subf %257, %103 : vector<8x16xf32>
    %259 = math.log %258 : vector<8x16xf32>
    %cst_126 = arith.constant -1.000000e+02 : f32
    %260 = vector.broadcast %cst_126 : f32 to vector<8x16xf32>
    %261 = arith.maximumf %259, %260 : vector<8x16xf32>
    %262 = arith.mulf %253, %256 : vector<8x16xf32>
    %cst_127 = arith.constant 1.000000e+00 : f32
    %263 = vector.broadcast %cst_127 : f32 to vector<8x16xf32>
    %264 = arith.subf %263, %253 : vector<8x16xf32>
    %265 = arith.mulf %264, %261 : vector<8x16xf32>
    %266 = arith.addf %262, %265 : vector<8x16xf32>
    %cst_128 = arith.constant 0.000000e+00 : f32
    %267 = vector.broadcast %cst_128 : f32 to vector<8x16xf32>
    %268 = arith.subf %267, %266 : vector<8x16xf32>
    %cst_129 = arith.constant dense<0.000000e+00> : vector<8x8xf32>
    %269 = tpu.matmul %268, %46, %cst_129 {dimension_numbers = #tpu.dot_dimension_numbers<[1], [0], [0], [1], [0, 0, 1, 1], [], []>} : vector<8x16xf32>, vector<16x8xf32>, vector<8x8xf32> -> vector<8x8xf32>
    %cst_130 = arith.constant 0.000000e+00 : f32
    %270 = vector.broadcast %cst_130 : f32 to vector<8x16xf32>
    %cst_131 = arith.constant 0.000000e+00 : f32
    %271 = vector.broadcast %cst_131 : f32 to vector<8x1xf32>
    %272 = vector.extract_strided_slice %47 {offsets = [0, 0], sizes = [1, 8], strides = [1, 1]} : vector<4x8xf32> to vector<1x8xf32>
    %273 = vector.broadcast %272 : vector<1x8xf32> to vector<8x8xf32>
    %274 = arith.subf %269, %273 : vector<8x8xf32>
    %275 = arith.mulf %274, %274 : vector<8x8xf32>
    %cst_132 = arith.constant dense<0.000000e+00> : vector<8xf32>
    %276 = vector.multi_reduction <add>, %275, %cst_132 [1] : vector<8x8xf32> to vector<8xf32>
    %277 = vector.shape_cast %276 : vector<8xf32> to vector<8x1xf32>
    %cst_133 = arith.constant 0.000000e+00 : f32
    %278 = vector.broadcast %cst_133 : f32 to vector<8x1xf32>
    %279 = arith.subf %278, %277 : vector<8x1xf32>
    %280 = math.exp %279 : vector<8x1xf32>
    %281 = math.exp %280 : vector<8x1xf32>
    %282 = arith.addf %271, %281 : vector<8x1xf32>
    %283 = vector.extract_strided_slice %247 {offsets = [0, 16], sizes = [8, 16], strides = [1, 1]} : vector<8x80xf32> to vector<8x16xf32>
    %284 = vector.broadcast %281 : vector<8x1xf32> to vector<8x16xf32>
    %285 = arith.mulf %284, %283 : vector<8x16xf32>
    %286 = arith.addf %270, %285 : vector<8x16xf32>
    %287 = vector.extract_strided_slice %47 {offsets = [1, 0], sizes = [1, 8], strides = [1, 1]} : vector<4x8xf32> to vector<1x8xf32>
    %288 = vector.broadcast %287 : vector<1x8xf32> to vector<8x8xf32>
    %289 = arith.subf %269, %288 : vector<8x8xf32>
    %290 = arith.mulf %289, %289 : vector<8x8xf32>
    %cst_134 = arith.constant dense<0.000000e+00> : vector<8xf32>
    %291 = vector.multi_reduction <add>, %290, %cst_134 [1] : vector<8x8xf32> to vector<8xf32>
    %292 = vector.shape_cast %291 : vector<8xf32> to vector<8x1xf32>
    %cst_135 = arith.constant 0.000000e+00 : f32
    %293 = vector.broadcast %cst_135 : f32 to vector<8x1xf32>
    %294 = arith.subf %293, %292 : vector<8x1xf32>
    %295 = math.exp %294 : vector<8x1xf32>
    %296 = math.exp %295 : vector<8x1xf32>
    %297 = arith.addf %282, %296 : vector<8x1xf32>
    %298 = vector.extract_strided_slice %247 {offsets = [0, 32], sizes = [8, 16], strides = [1, 1]} : vector<8x80xf32> to vector<8x16xf32>
    %299 = vector.broadcast %296 : vector<8x1xf32> to vector<8x16xf32>
    %300 = arith.mulf %299, %298 : vector<8x16xf32>
    %301 = arith.addf %286, %300 : vector<8x16xf32>
    %302 = vector.extract_strided_slice %47 {offsets = [2, 0], sizes = [1, 8], strides = [1, 1]} : vector<4x8xf32> to vector<1x8xf32>
    %303 = vector.broadcast %302 : vector<1x8xf32> to vector<8x8xf32>
    %304 = arith.subf %269, %303 : vector<8x8xf32>
    %305 = arith.mulf %304, %304 : vector<8x8xf32>
    %cst_136 = arith.constant dense<0.000000e+00> : vector<8xf32>
    %306 = vector.multi_reduction <add>, %305, %cst_136 [1] : vector<8x8xf32> to vector<8xf32>
    %307 = vector.shape_cast %306 : vector<8xf32> to vector<8x1xf32>
    %cst_137 = arith.constant 0.000000e+00 : f32
    %308 = vector.broadcast %cst_137 : f32 to vector<8x1xf32>
    %309 = arith.subf %308, %307 : vector<8x1xf32>
    %310 = math.exp %309 : vector<8x1xf32>
    %311 = math.exp %310 : vector<8x1xf32>
    %312 = arith.addf %297, %311 : vector<8x1xf32>
    %313 = vector.extract_strided_slice %247 {offsets = [0, 48], sizes = [8, 16], strides = [1, 1]} : vector<8x80xf32> to vector<8x16xf32>
    %314 = vector.broadcast %311 : vector<8x1xf32> to vector<8x16xf32>
    %315 = arith.mulf %314, %313 : vector<8x16xf32>
    %316 = arith.addf %301, %315 : vector<8x16xf32>
    %317 = vector.extract_strided_slice %47 {offsets = [3, 0], sizes = [1, 8], strides = [1, 1]} : vector<4x8xf32> to vector<1x8xf32>
    %318 = vector.broadcast %317 : vector<1x8xf32> to vector<8x8xf32>
    %319 = arith.subf %269, %318 : vector<8x8xf32>
    %320 = arith.mulf %319, %319 : vector<8x8xf32>
    %cst_138 = arith.constant dense<0.000000e+00> : vector<8xf32>
    %321 = vector.multi_reduction <add>, %320, %cst_138 [1] : vector<8x8xf32> to vector<8xf32>
    %322 = vector.shape_cast %321 : vector<8xf32> to vector<8x1xf32>
    %cst_139 = arith.constant 0.000000e+00 : f32
    %323 = vector.broadcast %cst_139 : f32 to vector<8x1xf32>
    %324 = arith.subf %323, %322 : vector<8x1xf32>
    %325 = math.exp %324 : vector<8x1xf32>
    %326 = math.exp %325 : vector<8x1xf32>
    %327 = arith.addf %312, %326 : vector<8x1xf32>
    %328 = vector.extract_strided_slice %247 {offsets = [0, 64], sizes = [8, 16], strides = [1, 1]} : vector<8x80xf32> to vector<8x16xf32>
    %329 = vector.broadcast %326 : vector<8x1xf32> to vector<8x16xf32>
    %330 = arith.mulf %329, %328 : vector<8x16xf32>
    %331 = arith.addf %316, %330 : vector<8x16xf32>
    %332 = vector.broadcast %327 : vector<8x1xf32> to vector<8x16xf32>
    %333 = arith.divf %331, %332 : vector<8x16xf32>
    %c0_i32_140 = arith.constant 0 : i32
    %334 = arith.cmpi eq, %c1_i32_93, %c0_i32_140 : i32
    %335 = arith.select %334, %248, %333 : vector<8x16xf32>
    %336 = arith.index_cast %c1_i32_93 : i32 to index
    %c0_141 = arith.constant 0 : index
    %c0_142 = arith.constant 0 : index
    %337 = vector.load %arg12[%336, %c0_141, %c0_142] : memref<8x8x16xf32, #tpu.memory_space<vmem>>, vector<1x8x16xf32>
    %338 = vector.shape_cast %337 : vector<1x8x16xf32> to vector<8x16xf32>
    %339 = vector.shape_cast %335 : vector<8x16xf32> to vector<1x8x16xf32>
    tpu.vector_store %arg12[%336, %c0_141, %c0_142], %339 {strides = array<i32>} : memref<8x8x16xf32, #tpu.memory_space<vmem>>, vector<1x8x16xf32>,
    %c2_i32 = arith.constant 2 : i32
    %c8_i32_143 = arith.constant 8 : i32
    %340 = arith.muli %c2_i32, %c8_i32_143 : i32
    %341 = tpu.assume_multiple %340, 8 : i32
    %c0_144 = arith.constant 0 : index
    %342 = arith.index_cast %341 : i32 to index
    %c0_145 = arith.constant 0 : index
    %343 = vector.load %arg13[%c0_144, %342, %c0_145] : memref<3x64x160xf32, #tpu.memory_space<vmem>>, vector<1x8x160xf32>
    %344 = vector.shape_cast %343 : vector<1x8x160xf32> to vector<8x160xf32>
    %c1_146 = arith.constant 1 : index
    %345 = arith.index_cast %341 : i32 to index
    %c0_147 = arith.constant 0 : index
    %346 = vector.load %arg13[%c1_146, %345, %c0_147] : memref<3x64x160xf32, #tpu.memory_space<vmem>>, vector<1x8x160xf32>
    %347 = vector.shape_cast %346 : vector<1x8x160xf32> to vector<8x160xf32>
    %c2_148 = arith.constant 2 : index
    %348 = arith.index_cast %341 : i32 to index
    %c0_149 = arith.constant 0 : index
    %349 = vector.load %arg13[%c2_148, %348, %c0_149] : memref<3x64x160xf32, #tpu.memory_space<vmem>>, vector<1x8x160xf32>
    %350 = vector.shape_cast %349 : vector<1x8x160xf32> to vector<8x160xf32>
    %351 = arith.truncf %238 : vector<8x160xf32> to vector<8x160xbf16>
    %c0_150 = arith.constant 0 : index
    %c0_151 = arith.constant 0 : index
    %c0_152 = arith.constant 0 : index
    %352 = vector.load %arg5[%c0_150, %c0_151, %c0_152] : memref<3x160x160xbf16, #tpu.memory_space<vmem>>, vector<1x160x160xbf16>
    %353 = vector.shape_cast %352 : vector<1x160x160xbf16> to vector<160x160xbf16>
    %cst_153 = arith.constant dense<0.000000e+00> : vector<8x160xf32>
    %354 = tpu.matmul %351, %353, %cst_153 {dimension_numbers = #tpu.dot_dimension_numbers<[1], [0], [0], [1], [0, 0, 1, 1], [], []>} : vector<8x160xbf16>, vector<160x160xbf16>, vector<8x160xf32> -> vector<8x160xf32>
    %355 = arith.addf %354, %34 : vector<8x160xf32>
    %c1_154 = arith.constant 1 : index
    %c0_155 = arith.constant 0 : index
    %c0_156 = arith.constant 0 : index
    %356 = vector.load %arg5[%c1_154, %c0_155, %c0_156] : memref<3x160x160xbf16, #tpu.memory_space<vmem>>, vector<1x160x160xbf16>
    %357 = vector.shape_cast %356 : vector<1x160x160xbf16> to vector<160x160xbf16>
    %cst_157 = arith.constant dense<0.000000e+00> : vector<8x160xf32>
    %358 = tpu.matmul %351, %357, %cst_157 {dimension_numbers = #tpu.dot_dimension_numbers<[1], [0], [0], [1], [0, 0, 1, 1], [], []>} : vector<8x160xbf16>, vector<160x160xbf16>, vector<8x160xf32> -> vector<8x160xf32>
    %359 = arith.addf %358, %38 : vector<8x160xf32>
    %c2_158 = arith.constant 2 : index
    %c0_159 = arith.constant 0 : index
    %c0_160 = arith.constant 0 : index
    %360 = vector.load %arg5[%c2_158, %c0_159, %c0_160] : memref<3x160x160xbf16, #tpu.memory_space<vmem>>, vector<1x160x160xbf16>
    %361 = vector.shape_cast %360 : vector<1x160x160xbf16> to vector<160x160xbf16>
    %cst_161 = arith.constant dense<0.000000e+00> : vector<8x160xf32>
    %362 = tpu.matmul %351, %361, %cst_161 {dimension_numbers = #tpu.dot_dimension_numbers<[1], [0], [0], [1], [0, 0, 1, 1], [], []>} : vector<8x160xbf16>, vector<160x160xbf16>, vector<8x160xf32> -> vector<8x160xf32>
    %363 = arith.addf %362, %42 : vector<8x160xf32>
    %364 = arith.addf %344, %355 : vector<8x160xf32>
    %365 = arith.negf %364 : vector<8x160xf32>
    %366 = math.exp %365 : vector<8x160xf32>
    %cst_162 = arith.constant 1.000000e+00 : f32
    %367 = vector.broadcast %cst_162 : f32 to vector<8x160xf32>
    %368 = arith.addf %367, %366 : vector<8x160xf32>
    %369 = arith.divf %367, %368 : vector<8x160xf32>
    %370 = arith.addf %347, %359 : vector<8x160xf32>
    %371 = arith.negf %370 : vector<8x160xf32>
    %372 = math.exp %371 : vector<8x160xf32>
    %cst_163 = arith.constant 1.000000e+00 : f32
    %373 = vector.broadcast %cst_163 : f32 to vector<8x160xf32>
    %374 = arith.addf %373, %372 : vector<8x160xf32>
    %375 = arith.divf %373, %374 : vector<8x160xf32>
    %376 = arith.mulf %369, %363 : vector<8x160xf32>
    %377 = arith.addf %350, %376 : vector<8x160xf32>
    %378 = math.tanh %377 : vector<8x160xf32>
    %cst_164 = arith.constant 1.000000e+00 : f32
    %379 = vector.broadcast %cst_164 : f32 to vector<8x160xf32>
    %380 = arith.subf %379, %375 : vector<8x160xf32>
    %381 = arith.mulf %380, %378 : vector<8x160xf32>
    %382 = arith.mulf %375, %238 : vector<8x160xf32>
    %383 = arith.addf %381, %382 : vector<8x160xf32>
    %384 = arith.truncf %383 : vector<8x160xf32> to vector<8x160xbf16>
    %c0_165 = arith.constant 0 : index
    %c0_166 = arith.constant 0 : index
    %385 = vector.load %arg7[%c0_165, %c0_166] : memref<160x80xbf16, #tpu.memory_space<vmem>>, vector<160x80xbf16>
    %cst_167 = arith.constant dense<0.000000e+00> : vector<8x80xf32>
    %386 = tpu.matmul %384, %385, %cst_167 {dimension_numbers = #tpu.dot_dimension_numbers<[1], [0], [0], [1], [0, 0, 1, 1], [], []>} : vector<8x160xbf16>, vector<160x80xbf16>, vector<8x80xf32> -> vector<8x80xf32>
    %387 = arith.addf %386, %45 : vector<8x80xf32>
    %388 = arith.negf %387 : vector<8x80xf32>
    %389 = math.exp %388 : vector<8x80xf32>
    %cst_168 = arith.constant 1.000000e+00 : f32
    %390 = vector.broadcast %cst_168 : f32 to vector<8x80xf32>
    %391 = arith.addf %390, %389 : vector<8x80xf32>
    %392 = arith.divf %390, %391 : vector<8x80xf32>
    %393 = vector.extract_strided_slice %392 {offsets = [0, 0], sizes = [8, 16], strides = [1, 1]} : vector<8x80xf32> to vector<8x16xf32>
    %c1_i32_169 = arith.constant 1 : i32
    %394 = arith.subi %c2_i32, %c1_i32_169 : i32
    %c0_i32_170 = arith.constant 0 : i32
    %395 = arith.maxsi %394, %c0_i32_170 : i32
    %396 = arith.index_cast %395 : i32 to index
    %c0_171 = arith.constant 0 : index
    %c0_172 = arith.constant 0 : index
    %397 = vector.load %arg2[%396, %c0_171, %c0_172] : memref<8x8x16xf32, #tpu.memory_space<vmem>>, vector<1x8x16xf32>
    %398 = vector.shape_cast %397 : vector<1x8x16xf32> to vector<8x16xf32>
    %399 = math.log %248 : vector<8x16xf32>
    %cst_173 = arith.constant -1.000000e+02 : f32
    %400 = vector.broadcast %cst_173 : f32 to vector<8x16xf32>
    %401 = arith.maximumf %399, %400 : vector<8x16xf32>
    %cst_174 = arith.constant 1.000000e+00 : f32
    %402 = vector.broadcast %cst_174 : f32 to vector<8x16xf32>
    %403 = arith.subf %402, %248 : vector<8x16xf32>
    %404 = math.log %403 : vector<8x16xf32>
    %cst_175 = arith.constant -1.000000e+02 : f32
    %405 = vector.broadcast %cst_175 : f32 to vector<8x16xf32>
    %406 = arith.maximumf %404, %405 : vector<8x16xf32>
    %407 = arith.mulf %398, %401 : vector<8x16xf32>
    %cst_176 = arith.constant 1.000000e+00 : f32
    %408 = vector.broadcast %cst_176 : f32 to vector<8x16xf32>
    %409 = arith.subf %408, %398 : vector<8x16xf32>
    %410 = arith.mulf %409, %406 : vector<8x16xf32>
    %411 = arith.addf %407, %410 : vector<8x16xf32>
    %cst_177 = arith.constant 0.000000e+00 : f32
    %412 = vector.broadcast %cst_177 : f32 to vector<8x16xf32>
    %413 = arith.subf %412, %411 : vector<8x16xf32>
    %cst_178 = arith.constant dense<0.000000e+00> : vector<8x8xf32>
    %414 = tpu.matmul %413, %46, %cst_178 {dimension_numbers = #tpu.dot_dimension_numbers<[1], [0], [0], [1], [0, 0, 1, 1], [], []>} : vector<8x16xf32>, vector<16x8xf32>, vector<8x8xf32> -> vector<8x8xf32>
    %cst_179 = arith.constant 0.000000e+00 : f32
    %415 = vector.broadcast %cst_179 : f32 to vector<8x16xf32>
    %cst_180 = arith.constant 0.000000e+00 : f32
    %416 = vector.broadcast %cst_180 : f32 to vector<8x1xf32>
    %417 = vector.extract_strided_slice %47 {offsets = [0, 0], sizes = [1, 8], strides = [1, 1]} : vector<4x8xf32> to vector<1x8xf32>
    %418 = vector.broadcast %417 : vector<1x8xf32> to vector<8x8xf32>
    %419 = arith.subf %414, %418 : vector<8x8xf32>
    %420 = arith.mulf %419, %419 : vector<8x8xf32>
    %cst_181 = arith.constant dense<0.000000e+00> : vector<8xf32>
    %421 = vector.multi_reduction <add>, %420, %cst_181 [1] : vector<8x8xf32> to vector<8xf32>
    %422 = vector.shape_cast %421 : vector<8xf32> to vector<8x1xf32>
    %cst_182 = arith.constant 0.000000e+00 : f32
    %423 = vector.broadcast %cst_182 : f32 to vector<8x1xf32>
    %424 = arith.subf %423, %422 : vector<8x1xf32>
    %425 = math.exp %424 : vector<8x1xf32>
    %426 = math.exp %425 : vector<8x1xf32>
    %427 = arith.addf %416, %426 : vector<8x1xf32>
    %428 = vector.extract_strided_slice %392 {offsets = [0, 16], sizes = [8, 16], strides = [1, 1]} : vector<8x80xf32> to vector<8x16xf32>
    %429 = vector.broadcast %426 : vector<8x1xf32> to vector<8x16xf32>
    %430 = arith.mulf %429, %428 : vector<8x16xf32>
    %431 = arith.addf %415, %430 : vector<8x16xf32>
    %432 = vector.extract_strided_slice %47 {offsets = [1, 0], sizes = [1, 8], strides = [1, 1]} : vector<4x8xf32> to vector<1x8xf32>
    %433 = vector.broadcast %432 : vector<1x8xf32> to vector<8x8xf32>
    %434 = arith.subf %414, %433 : vector<8x8xf32>
    %435 = arith.mulf %434, %434 : vector<8x8xf32>
    %cst_183 = arith.constant dense<0.000000e+00> : vector<8xf32>
    %436 = vector.multi_reduction <add>, %435, %cst_183 [1] : vector<8x8xf32> to vector<8xf32>
    %437 = vector.shape_cast %436 : vector<8xf32> to vector<8x1xf32>
    %cst_184 = arith.constant 0.000000e+00 : f32
    %438 = vector.broadcast %cst_184 : f32 to vector<8x1xf32>
    %439 = arith.subf %438, %437 : vector<8x1xf32>
    %440 = math.exp %439 : vector<8x1xf32>
    %441 = math.exp %440 : vector<8x1xf32>
    %442 = arith.addf %427, %441 : vector<8x1xf32>
    %443 = vector.extract_strided_slice %392 {offsets = [0, 32], sizes = [8, 16], strides = [1, 1]} : vector<8x80xf32> to vector<8x16xf32>
    %444 = vector.broadcast %441 : vector<8x1xf32> to vector<8x16xf32>
    %445 = arith.mulf %444, %443 : vector<8x16xf32>
    %446 = arith.addf %431, %445 : vector<8x16xf32>
    %447 = vector.extract_strided_slice %47 {offsets = [2, 0], sizes = [1, 8], strides = [1, 1]} : vector<4x8xf32> to vector<1x8xf32>
    %448 = vector.broadcast %447 : vector<1x8xf32> to vector<8x8xf32>
    %449 = arith.subf %414, %448 : vector<8x8xf32>
    %450 = arith.mulf %449, %449 : vector<8x8xf32>
    %cst_185 = arith.constant dense<0.000000e+00> : vector<8xf32>
    %451 = vector.multi_reduction <add>, %450, %cst_185 [1] : vector<8x8xf32> to vector<8xf32>
    %452 = vector.shape_cast %451 : vector<8xf32> to vector<8x1xf32>
    %cst_186 = arith.constant 0.000000e+00 : f32
    %453 = vector.broadcast %cst_186 : f32 to vector<8x1xf32>
    %454 = arith.subf %453, %452 : vector<8x1xf32>
    %455 = math.exp %454 : vector<8x1xf32>
    %456 = math.exp %455 : vector<8x1xf32>
    %457 = arith.addf %442, %456 : vector<8x1xf32>
    %458 = vector.extract_strided_slice %392 {offsets = [0, 48], sizes = [8, 16], strides = [1, 1]} : vector<8x80xf32> to vector<8x16xf32>
    %459 = vector.broadcast %456 : vector<8x1xf32> to vector<8x16xf32>
    %460 = arith.mulf %459, %458 : vector<8x16xf32>
    %461 = arith.addf %446, %460 : vector<8x16xf32>
    %462 = vector.extract_strided_slice %47 {offsets = [3, 0], sizes = [1, 8], strides = [1, 1]} : vector<4x8xf32> to vector<1x8xf32>
    %463 = vector.broadcast %462 : vector<1x8xf32> to vector<8x8xf32>
    %464 = arith.subf %414, %463 : vector<8x8xf32>
    %465 = arith.mulf %464, %464 : vector<8x8xf32>
    %cst_187 = arith.constant dense<0.000000e+00> : vector<8xf32>
    %466 = vector.multi_reduction <add>, %465, %cst_187 [1] : vector<8x8xf32> to vector<8xf32>
    %467 = vector.shape_cast %466 : vector<8xf32> to vector<8x1xf32>
    %cst_188 = arith.constant 0.000000e+00 : f32
    %468 = vector.broadcast %cst_188 : f32 to vector<8x1xf32>
    %469 = arith.subf %468, %467 : vector<8x1xf32>
    %470 = math.exp %469 : vector<8x1xf32>
    %471 = math.exp %470 : vector<8x1xf32>
    %472 = arith.addf %457, %471 : vector<8x1xf32>
    %473 = vector.extract_strided_slice %392 {offsets = [0, 64], sizes = [8, 16], strides = [1, 1]} : vector<8x80xf32> to vector<8x16xf32>
    %474 = vector.broadcast %471 : vector<8x1xf32> to vector<8x16xf32>
    %475 = arith.mulf %474, %473 : vector<8x16xf32>
    %476 = arith.addf %461, %475 : vector<8x16xf32>
    %477 = vector.broadcast %472 : vector<8x1xf32> to vector<8x16xf32>
    %478 = arith.divf %476, %477 : vector<8x16xf32>
    %c0_i32_189 = arith.constant 0 : i32
    %479 = arith.cmpi eq, %c2_i32, %c0_i32_189 : i32
    %480 = arith.select %479, %393, %478 : vector<8x16xf32>
    %481 = arith.index_cast %c2_i32 : i32 to index
    %c0_190 = arith.constant 0 : index
    %c0_191 = arith.constant 0 : index
    %482 = vector.load %arg12[%481, %c0_190, %c0_191] : memref<8x8x16xf32, #tpu.memory_space<vmem>>, vector<1x8x16xf32>
    %483 = vector.shape_cast %482 : vector<1x8x16xf32> to vector<8x16xf32>
    %484 = vector.shape_cast %480 : vector<8x16xf32> to vector<1x8x16xf32>
    tpu.vector_store %arg12[%481, %c0_190, %c0_191], %484 {strides = array<i32>} : memref<8x8x16xf32, #tpu.memory_space<vmem>>, vector<1x8x16xf32>,
    %c3_i32 = arith.constant 3 : i32
    %c8_i32_192 = arith.constant 8 : i32
    %485 = arith.muli %c3_i32, %c8_i32_192 : i32
    %486 = tpu.assume_multiple %485, 8 : i32
    %c0_193 = arith.constant 0 : index
    %487 = arith.index_cast %486 : i32 to index
    %c0_194 = arith.constant 0 : index
    %488 = vector.load %arg13[%c0_193, %487, %c0_194] : memref<3x64x160xf32, #tpu.memory_space<vmem>>, vector<1x8x160xf32>
    %489 = vector.shape_cast %488 : vector<1x8x160xf32> to vector<8x160xf32>
    %c1_195 = arith.constant 1 : index
    %490 = arith.index_cast %486 : i32 to index
    %c0_196 = arith.constant 0 : index
    %491 = vector.load %arg13[%c1_195, %490, %c0_196] : memref<3x64x160xf32, #tpu.memory_space<vmem>>, vector<1x8x160xf32>
    %492 = vector.shape_cast %491 : vector<1x8x160xf32> to vector<8x160xf32>
    %c2_197 = arith.constant 2 : index
    %493 = arith.index_cast %486 : i32 to index
    %c0_198 = arith.constant 0 : index
    %494 = vector.load %arg13[%c2_197, %493, %c0_198] : memref<3x64x160xf32, #tpu.memory_space<vmem>>, vector<1x8x160xf32>
    %495 = vector.shape_cast %494 : vector<1x8x160xf32> to vector<8x160xf32>
    %496 = arith.truncf %383 : vector<8x160xf32> to vector<8x160xbf16>
    %c0_199 = arith.constant 0 : index
    %c0_200 = arith.constant 0 : index
    %c0_201 = arith.constant 0 : index
    %497 = vector.load %arg5[%c0_199, %c0_200, %c0_201] : memref<3x160x160xbf16, #tpu.memory_space<vmem>>, vector<1x160x160xbf16>
    %498 = vector.shape_cast %497 : vector<1x160x160xbf16> to vector<160x160xbf16>
    %cst_202 = arith.constant dense<0.000000e+00> : vector<8x160xf32>
    %499 = tpu.matmul %496, %498, %cst_202 {dimension_numbers = #tpu.dot_dimension_numbers<[1], [0], [0], [1], [0, 0, 1, 1], [], []>} : vector<8x160xbf16>, vector<160x160xbf16>, vector<8x160xf32> -> vector<8x160xf32>
    %500 = arith.addf %499, %34 : vector<8x160xf32>
    %c1_203 = arith.constant 1 : index
    %c0_204 = arith.constant 0 : index
    %c0_205 = arith.constant 0 : index
    %501 = vector.load %arg5[%c1_203, %c0_204, %c0_205] : memref<3x160x160xbf16, #tpu.memory_space<vmem>>, vector<1x160x160xbf16>
    %502 = vector.shape_cast %501 : vector<1x160x160xbf16> to vector<160x160xbf16>
    %cst_206 = arith.constant dense<0.000000e+00> : vector<8x160xf32>
    %503 = tpu.matmul %496, %502, %cst_206 {dimension_numbers = #tpu.dot_dimension_numbers<[1], [0], [0], [1], [0, 0, 1, 1], [], []>} : vector<8x160xbf16>, vector<160x160xbf16>, vector<8x160xf32> -> vector<8x160xf32>
    %504 = arith.addf %503, %38 : vector<8x160xf32>
    %c2_207 = arith.constant 2 : index
    %c0_208 = arith.constant 0 : index
    %c0_209 = arith.constant 0 : index
    %505 = vector.load %arg5[%c2_207, %c0_208, %c0_209] : memref<3x160x160xbf16, #tpu.memory_space<vmem>>, vector<1x160x160xbf16>
    %506 = vector.shape_cast %505 : vector<1x160x160xbf16> to vector<160x160xbf16>
    %cst_210 = arith.constant dense<0.000000e+00> : vector<8x160xf32>
    %507 = tpu.matmul %496, %506, %cst_210 {dimension_numbers = #tpu.dot_dimension_numbers<[1], [0], [0], [1], [0, 0, 1, 1], [], []>} : vector<8x160xbf16>, vector<160x160xbf16>, vector<8x160xf32> -> vector<8x160xf32>
    %508 = arith.addf %507, %42 : vector<8x160xf32>
    %509 = arith.addf %489, %500 : vector<8x160xf32>
    %510 = arith.negf %509 : vector<8x160xf32>
    %511 = math.exp %510 : vector<8x160xf32>
    %cst_211 = arith.constant 1.000000e+00 : f32
    %512 = vector.broadcast %cst_211 : f32 to vector<8x160xf32>
    %513 = arith.addf %512, %511 : vector<8x160xf32>
    %514 = arith.divf %512, %513 : vector<8x160xf32>
    %515 = arith.addf %492, %504 : vector<8x160xf32>
    %516 = arith.negf %515 : vector<8x160xf32>
    %517 = math.exp %516 : vector<8x160xf32>
    %cst_212 = arith.constant 1.000000e+00 : f32
    %518 = vector.broadcast %cst_212 : f32 to vector<8x160xf32>
    %519 = arith.addf %518, %517 : vector<8x160xf32>
    %520 = arith.divf %518, %519 : vector<8x160xf32>
    %521 = arith.mulf %514, %508 : vector<8x160xf32>
    %522 = arith.addf %495, %521 : vector<8x160xf32>
    %523 = math.tanh %522 : vector<8x160xf32>
    %cst_213 = arith.constant 1.000000e+00 : f32
    %524 = vector.broadcast %cst_213 : f32 to vector<8x160xf32>
    %525 = arith.subf %524, %520 : vector<8x160xf32>
    %526 = arith.mulf %525, %523 : vector<8x160xf32>
    %527 = arith.mulf %520, %383 : vector<8x160xf32>
    %528 = arith.addf %526, %527 : vector<8x160xf32>
    %529 = arith.truncf %528 : vector<8x160xf32> to vector<8x160xbf16>
    %c0_214 = arith.constant 0 : index
    %c0_215 = arith.constant 0 : index
    %530 = vector.load %arg7[%c0_214, %c0_215] : memref<160x80xbf16, #tpu.memory_space<vmem>>, vector<160x80xbf16>
    %cst_216 = arith.constant dense<0.000000e+00> : vector<8x80xf32>
    %531 = tpu.matmul %529, %530, %cst_216 {dimension_numbers = #tpu.dot_dimension_numbers<[1], [0], [0], [1], [0, 0, 1, 1], [], []>} : vector<8x160xbf16>, vector<160x80xbf16>, vector<8x80xf32> -> vector<8x80xf32>
    %532 = arith.addf %531, %45 : vector<8x80xf32>
    %533 = arith.negf %532 : vector<8x80xf32>
    %534 = math.exp %533 : vector<8x80xf32>
    %cst_217 = arith.constant 1.000000e+00 : f32
    %535 = vector.broadcast %cst_217 : f32 to vector<8x80xf32>
    %536 = arith.addf %535, %534 : vector<8x80xf32>
    %537 = arith.divf %535, %536 : vector<8x80xf32>
    %538 = vector.extract_strided_slice %537 {offsets = [0, 0], sizes = [8, 16], strides = [1, 1]} : vector<8x80xf32> to vector<8x16xf32>
    %c1_i32_218 = arith.constant 1 : i32
    %539 = arith.subi %c3_i32, %c1_i32_218 : i32
    %c0_i32_219 = arith.constant 0 : i32
    %540 = arith.maxsi %539, %c0_i32_219 : i32
    %541 = arith.index_cast %540 : i32 to index
    %c0_220 = arith.constant 0 : index
    %c0_221 = arith.constant 0 : index
    %542 = vector.load %arg2[%541, %c0_220, %c0_221] : memref<8x8x16xf32, #tpu.memory_space<vmem>>, vector<1x8x16xf32>
    %543 = vector.shape_cast %542 : vector<1x8x16xf32> to vector<8x16xf32>
    %544 = math.log %393 : vector<8x16xf32>
    %cst_222 = arith.constant -1.000000e+02 : f32
    %545 = vector.broadcast %cst_222 : f32 to vector<8x16xf32>
    %546 = arith.maximumf %544, %545 : vector<8x16xf32>
    %cst_223 = arith.constant 1.000000e+00 : f32
    %547 = vector.broadcast %cst_223 : f32 to vector<8x16xf32>
    %548 = arith.subf %547, %393 : vector<8x16xf32>
    %549 = math.log %548 : vector<8x16xf32>
    %cst_224 = arith.constant -1.000000e+02 : f32
    %550 = vector.broadcast %cst_224 : f32 to vector<8x16xf32>
    %551 = arith.maximumf %549, %550 : vector<8x16xf32>
    %552 = arith.mulf %543, %546 : vector<8x16xf32>
    %cst_225 = arith.constant 1.000000e+00 : f32
    %553 = vector.broadcast %cst_225 : f32 to vector<8x16xf32>
    %554 = arith.subf %553, %543 : vector<8x16xf32>
    %555 = arith.mulf %554, %551 : vector<8x16xf32>
    %556 = arith.addf %552, %555 : vector<8x16xf32>
    %cst_226 = arith.constant 0.000000e+00 : f32
    %557 = vector.broadcast %cst_226 : f32 to vector<8x16xf32>
    %558 = arith.subf %557, %556 : vector<8x16xf32>
    %cst_227 = arith.constant dense<0.000000e+00> : vector<8x8xf32>
    %559 = tpu.matmul %558, %46, %cst_227 {dimension_numbers = #tpu.dot_dimension_numbers<[1], [0], [0], [1], [0, 0, 1, 1], [], []>} : vector<8x16xf32>, vector<16x8xf32>, vector<8x8xf32> -> vector<8x8xf32>
    %cst_228 = arith.constant 0.000000e+00 : f32
    %560 = vector.broadcast %cst_228 : f32 to vector<8x16xf32>
    %cst_229 = arith.constant 0.000000e+00 : f32
    %561 = vector.broadcast %cst_229 : f32 to vector<8x1xf32>
    %562 = vector.extract_strided_slice %47 {offsets = [0, 0], sizes = [1, 8], strides = [1, 1]} : vector<4x8xf32> to vector<1x8xf32>
    %563 = vector.broadcast %562 : vector<1x8xf32> to vector<8x8xf32>
    %564 = arith.subf %559, %563 : vector<8x8xf32>
    %565 = arith.mulf %564, %564 : vector<8x8xf32>
    %cst_230 = arith.constant dense<0.000000e+00> : vector<8xf32>
    %566 = vector.multi_reduction <add>, %565, %cst_230 [1] : vector<8x8xf32> to vector<8xf32>
    %567 = vector.shape_cast %566 : vector<8xf32> to vector<8x1xf32>
    %cst_231 = arith.constant 0.000000e+00 : f32
    %568 = vector.broadcast %cst_231 : f32 to vector<8x1xf32>
    %569 = arith.subf %568, %567 : vector<8x1xf32>
    %570 = math.exp %569 : vector<8x1xf32>
    %571 = math.exp %570 : vector<8x1xf32>
    %572 = arith.addf %561, %571 : vector<8x1xf32>
    %573 = vector.extract_strided_slice %537 {offsets = [0, 16], sizes = [8, 16], strides = [1, 1]} : vector<8x80xf32> to vector<8x16xf32>
    %574 = vector.broadcast %571 : vector<8x1xf32> to vector<8x16xf32>
    %575 = arith.mulf %574, %573 : vector<8x16xf32>
    %576 = arith.addf %560, %575 : vector<8x16xf32>
    %577 = vector.extract_strided_slice %47 {offsets = [1, 0], sizes = [1, 8], strides = [1, 1]} : vector<4x8xf32> to vector<1x8xf32>
    %578 = vector.broadcast %577 : vector<1x8xf32> to vector<8x8xf32>
    %579 = arith.subf %559, %578 : vector<8x8xf32>
    %580 = arith.mulf %579, %579 : vector<8x8xf32>
    %cst_232 = arith.constant dense<0.000000e+00> : vector<8xf32>
    %581 = vector.multi_reduction <add>, %580, %cst_232 [1] : vector<8x8xf32> to vector<8xf32>
    %582 = vector.shape_cast %581 : vector<8xf32> to vector<8x1xf32>
    %cst_233 = arith.constant 0.000000e+00 : f32
    %583 = vector.broadcast %cst_233 : f32 to vector<8x1xf32>
    %584 = arith.subf %583, %582 : vector<8x1xf32>
    %585 = math.exp %584 : vector<8x1xf32>
    %586 = math.exp %585 : vector<8x1xf32>
    %587 = arith.addf %572, %586 : vector<8x1xf32>
    %588 = vector.extract_strided_slice %537 {offsets = [0, 32], sizes = [8, 16], strides = [1, 1]} : vector<8x80xf32> to vector<8x16xf32>
    %589 = vector.broadcast %586 : vector<8x1xf32> to vector<8x16xf32>
    %590 = arith.mulf %589, %588 : vector<8x16xf32>
    %591 = arith.addf %576, %590 : vector<8x16xf32>
    %592 = vector.extract_strided_slice %47 {offsets = [2, 0], sizes = [1, 8], strides = [1, 1]} : vector<4x8xf32> to vector<1x8xf32>
    %593 = vector.broadcast %592 : vector<1x8xf32> to vector<8x8xf32>
    %594 = arith.subf %559, %593 : vector<8x8xf32>
    %595 = arith.mulf %594, %594 : vector<8x8xf32>
    %cst_234 = arith.constant dense<0.000000e+00> : vector<8xf32>
    %596 = vector.multi_reduction <add>, %595, %cst_234 [1] : vector<8x8xf32> to vector<8xf32>
    %597 = vector.shape_cast %596 : vector<8xf32> to vector<8x1xf32>
    %cst_235 = arith.constant 0.000000e+00 : f32
    %598 = vector.broadcast %cst_235 : f32 to vector<8x1xf32>
    %599 = arith.subf %598, %597 : vector<8x1xf32>
    %600 = math.exp %599 : vector<8x1xf32>
    %601 = math.exp %600 : vector<8x1xf32>
    %602 = arith.addf %587, %601 : vector<8x1xf32>
    %603 = vector.extract_strided_slice %537 {offsets = [0, 48], sizes = [8, 16], strides = [1, 1]} : vector<8x80xf32> to vector<8x16xf32>
    %604 = vector.broadcast %601 : vector<8x1xf32> to vector<8x16xf32>
    %605 = arith.mulf %604, %603 : vector<8x16xf32>
    %606 = arith.addf %591, %605 : vector<8x16xf32>
    %607 = vector.extract_strided_slice %47 {offsets = [3, 0], sizes = [1, 8], strides = [1, 1]} : vector<4x8xf32> to vector<1x8xf32>
    %608 = vector.broadcast %607 : vector<1x8xf32> to vector<8x8xf32>
    %609 = arith.subf %559, %608 : vector<8x8xf32>
    %610 = arith.mulf %609, %609 : vector<8x8xf32>
    %cst_236 = arith.constant dense<0.000000e+00> : vector<8xf32>
    %611 = vector.multi_reduction <add>, %610, %cst_236 [1] : vector<8x8xf32> to vector<8xf32>
    %612 = vector.shape_cast %611 : vector<8xf32> to vector<8x1xf32>
    %cst_237 = arith.constant 0.000000e+00 : f32
    %613 = vector.broadcast %cst_237 : f32 to vector<8x1xf32>
    %614 = arith.subf %613, %612 : vector<8x1xf32>
    %615 = math.exp %614 : vector<8x1xf32>
    %616 = math.exp %615 : vector<8x1xf32>
    %617 = arith.addf %602, %616 : vector<8x1xf32>
    %618 = vector.extract_strided_slice %537 {offsets = [0, 64], sizes = [8, 16], strides = [1, 1]} : vector<8x80xf32> to vector<8x16xf32>
    %619 = vector.broadcast %616 : vector<8x1xf32> to vector<8x16xf32>
    %620 = arith.mulf %619, %618 : vector<8x16xf32>
    %621 = arith.addf %606, %620 : vector<8x16xf32>
    %622 = vector.broadcast %617 : vector<8x1xf32> to vector<8x16xf32>
    %623 = arith.divf %621, %622 : vector<8x16xf32>
    %c0_i32_238 = arith.constant 0 : i32
    %624 = arith.cmpi eq, %c3_i32, %c0_i32_238 : i32
    %625 = arith.select %624, %538, %623 : vector<8x16xf32>
    %626 = arith.index_cast %c3_i32 : i32 to index
    %c0_239 = arith.constant 0 : index
    %c0_240 = arith.constant 0 : index
    %627 = vector.load %arg12[%626, %c0_239, %c0_240] : memref<8x8x16xf32, #tpu.memory_space<vmem>>, vector<1x8x16xf32>
    %628 = vector.shape_cast %627 : vector<1x8x16xf32> to vector<8x16xf32>
    %629 = vector.shape_cast %625 : vector<8x16xf32> to vector<1x8x16xf32>
    tpu.vector_store %arg12[%626, %c0_239, %c0_240], %629 {strides = array<i32>} : memref<8x8x16xf32, #tpu.memory_space<vmem>>, vector<1x8x16xf32>,
    %c4_i32 = arith.constant 4 : i32
    %c8_i32_241 = arith.constant 8 : i32
    %630 = arith.muli %c4_i32, %c8_i32_241 : i32
    %631 = tpu.assume_multiple %630, 8 : i32
    %c0_242 = arith.constant 0 : index
    %632 = arith.index_cast %631 : i32 to index
    %c0_243 = arith.constant 0 : index
    %633 = vector.load %arg13[%c0_242, %632, %c0_243] : memref<3x64x160xf32, #tpu.memory_space<vmem>>, vector<1x8x160xf32>
    %634 = vector.shape_cast %633 : vector<1x8x160xf32> to vector<8x160xf32>
    %c1_244 = arith.constant 1 : index
    %635 = arith.index_cast %631 : i32 to index
    %c0_245 = arith.constant 0 : index
    %636 = vector.load %arg13[%c1_244, %635, %c0_245] : memref<3x64x160xf32, #tpu.memory_space<vmem>>, vector<1x8x160xf32>
    %637 = vector.shape_cast %636 : vector<1x8x160xf32> to vector<8x160xf32>
    %c2_246 = arith.constant 2 : index
    %638 = arith.index_cast %631 : i32 to index
    %c0_247 = arith.constant 0 : index
    %639 = vector.load %arg13[%c2_246, %638, %c0_247] : memref<3x64x160xf32, #tpu.memory_space<vmem>>, vector<1x8x160xf32>
    %640 = vector.shape_cast %639 : vector<1x8x160xf32> to vector<8x160xf32>
    %641 = arith.truncf %528 : vector<8x160xf32> to vector<8x160xbf16>
    %c0_248 = arith.constant 0 : index
    %c0_249 = arith.constant 0 : index
    %c0_250 = arith.constant 0 : index
    %642 = vector.load %arg5[%c0_248, %c0_249, %c0_250] : memref<3x160x160xbf16, #tpu.memory_space<vmem>>, vector<1x160x160xbf16>
    %643 = vector.shape_cast %642 : vector<1x160x160xbf16> to vector<160x160xbf16>
    %cst_251 = arith.constant dense<0.000000e+00> : vector<8x160xf32>
    %644 = tpu.matmul %641, %643, %cst_251 {dimension_numbers = #tpu.dot_dimension_numbers<[1], [0], [0], [1], [0, 0, 1, 1], [], []>} : vector<8x160xbf16>, vector<160x160xbf16>, vector<8x160xf32> -> vector<8x160xf32>
    %645 = arith.addf %644, %34 : vector<8x160xf32>
    %c1_252 = arith.constant 1 : index
    %c0_253 = arith.constant 0 : index
    %c0_254 = arith.constant 0 : index
    %646 = vector.load %arg5[%c1_252, %c0_253, %c0_254] : memref<3x160x160xbf16, #tpu.memory_space<vmem>>, vector<1x160x160xbf16>
    %647 = vector.shape_cast %646 : vector<1x160x160xbf16> to vector<160x160xbf16>
    %cst_255 = arith.constant dense<0.000000e+00> : vector<8x160xf32>
    %648 = tpu.matmul %641, %647, %cst_255 {dimension_numbers = #tpu.dot_dimension_numbers<[1], [0], [0], [1], [0, 0, 1, 1], [], []>} : vector<8x160xbf16>, vector<160x160xbf16>, vector<8x160xf32> -> vector<8x160xf32>
    %649 = arith.addf %648, %38 : vector<8x160xf32>
    %c2_256 = arith.constant 2 : index
    %c0_257 = arith.constant 0 : index
    %c0_258 = arith.constant 0 : index
    %650 = vector.load %arg5[%c2_256, %c0_257, %c0_258] : memref<3x160x160xbf16, #tpu.memory_space<vmem>>, vector<1x160x160xbf16>
    %651 = vector.shape_cast %650 : vector<1x160x160xbf16> to vector<160x160xbf16>
    %cst_259 = arith.constant dense<0.000000e+00> : vector<8x160xf32>
    %652 = tpu.matmul %641, %651, %cst_259 {dimension_numbers = #tpu.dot_dimension_numbers<[1], [0], [0], [1], [0, 0, 1, 1], [], []>} : vector<8x160xbf16>, vector<160x160xbf16>, vector<8x160xf32> -> vector<8x160xf32>
    %653 = arith.addf %652, %42 : vector<8x160xf32>
    %654 = arith.addf %634, %645 : vector<8x160xf32>
    %655 = arith.negf %654 : vector<8x160xf32>
    %656 = math.exp %655 : vector<8x160xf32>
    %cst_260 = arith.constant 1.000000e+00 : f32
    %657 = vector.broadcast %cst_260 : f32 to vector<8x160xf32>
    %658 = arith.addf %657, %656 : vector<8x160xf32>
    %659 = arith.divf %657, %658 : vector<8x160xf32>
    %660 = arith.addf %637, %649 : vector<8x160xf32>
    %661 = arith.negf %660 : vector<8x160xf32>
    %662 = math.exp %661 : vector<8x160xf32>
    %cst_261 = arith.constant 1.000000e+00 : f32
    %663 = vector.broadcast %cst_261 : f32 to vector<8x160xf32>
    %664 = arith.addf %663, %662 : vector<8x160xf32>
    %665 = arith.divf %663, %664 : vector<8x160xf32>
    %666 = arith.mulf %659, %653 : vector<8x160xf32>
    %667 = arith.addf %640, %666 : vector<8x160xf32>
    %668 = math.tanh %667 : vector<8x160xf32>
    %cst_262 = arith.constant 1.000000e+00 : f32
    %669 = vector.broadcast %cst_262 : f32 to vector<8x160xf32>
    %670 = arith.subf %669, %665 : vector<8x160xf32>
    %671 = arith.mulf %670, %668 : vector<8x160xf32>
    %672 = arith.mulf %665, %528 : vector<8x160xf32>
    %673 = arith.addf %671, %672 : vector<8x160xf32>
    %674 = arith.truncf %673 : vector<8x160xf32> to vector<8x160xbf16>
    %c0_263 = arith.constant 0 : index
    %c0_264 = arith.constant 0 : index
    %675 = vector.load %arg7[%c0_263, %c0_264] : memref<160x80xbf16, #tpu.memory_space<vmem>>, vector<160x80xbf16>
    %cst_265 = arith.constant dense<0.000000e+00> : vector<8x80xf32>
    %676 = tpu.matmul %674, %675, %cst_265 {dimension_numbers = #tpu.dot_dimension_numbers<[1], [0], [0], [1], [0, 0, 1, 1], [], []>} : vector<8x160xbf16>, vector<160x80xbf16>, vector<8x80xf32> -> vector<8x80xf32>
    %677 = arith.addf %676, %45 : vector<8x80xf32>
    %678 = arith.negf %677 : vector<8x80xf32>
    %679 = math.exp %678 : vector<8x80xf32>
    %cst_266 = arith.constant 1.000000e+00 : f32
    %680 = vector.broadcast %cst_266 : f32 to vector<8x80xf32>
    %681 = arith.addf %680, %679 : vector<8x80xf32>
    %682 = arith.divf %680, %681 : vector<8x80xf32>
    %683 = vector.extract_strided_slice %682 {offsets = [0, 0], sizes = [8, 16], strides = [1, 1]} : vector<8x80xf32> to vector<8x16xf32>
    %c1_i32_267 = arith.constant 1 : i32
    %684 = arith.subi %c4_i32, %c1_i32_267 : i32
    %c0_i32_268 = arith.constant 0 : i32
    %685 = arith.maxsi %684, %c0_i32_268 : i32
    %686 = arith.index_cast %685 : i32 to index
    %c0_269 = arith.constant 0 : index
    %c0_270 = arith.constant 0 : index
    %687 = vector.load %arg2[%686, %c0_269, %c0_270] : memref<8x8x16xf32, #tpu.memory_space<vmem>>, vector<1x8x16xf32>
    %688 = vector.shape_cast %687 : vector<1x8x16xf32> to vector<8x16xf32>
    %689 = math.log %538 : vector<8x16xf32>
    %cst_271 = arith.constant -1.000000e+02 : f32
    %690 = vector.broadcast %cst_271 : f32 to vector<8x16xf32>
    %691 = arith.maximumf %689, %690 : vector<8x16xf32>
    %cst_272 = arith.constant 1.000000e+00 : f32
    %692 = vector.broadcast %cst_272 : f32 to vector<8x16xf32>
    %693 = arith.subf %692, %538 : vector<8x16xf32>
    %694 = math.log %693 : vector<8x16xf32>
    %cst_273 = arith.constant -1.000000e+02 : f32
    %695 = vector.broadcast %cst_273 : f32 to vector<8x16xf32>
    %696 = arith.maximumf %694, %695 : vector<8x16xf32>
    %697 = arith.mulf %688, %691 : vector<8x16xf32>
    %cst_274 = arith.constant 1.000000e+00 : f32
    %698 = vector.broadcast %cst_274 : f32 to vector<8x16xf32>
    %699 = arith.subf %698, %688 : vector<8x16xf32>
    %700 = arith.mulf %699, %696 : vector<8x16xf32>
    %701 = arith.addf %697, %700 : vector<8x16xf32>
    %cst_275 = arith.constant 0.000000e+00 : f32
    %702 = vector.broadcast %cst_275 : f32 to vector<8x16xf32>
    %703 = arith.subf %702, %701 : vector<8x16xf32>
    %cst_276 = arith.constant dense<0.000000e+00> : vector<8x8xf32>
    %704 = tpu.matmul %703, %46, %cst_276 {dimension_numbers = #tpu.dot_dimension_numbers<[1], [0], [0], [1], [0, 0, 1, 1], [], []>} : vector<8x16xf32>, vector<16x8xf32>, vector<8x8xf32> -> vector<8x8xf32>
    %cst_277 = arith.constant 0.000000e+00 : f32
    %705 = vector.broadcast %cst_277 : f32 to vector<8x16xf32>
    %cst_278 = arith.constant 0.000000e+00 : f32
    %706 = vector.broadcast %cst_278 : f32 to vector<8x1xf32>
    %707 = vector.extract_strided_slice %47 {offsets = [0, 0], sizes = [1, 8], strides = [1, 1]} : vector<4x8xf32> to vector<1x8xf32>
    %708 = vector.broadcast %707 : vector<1x8xf32> to vector<8x8xf32>
    %709 = arith.subf %704, %708 : vector<8x8xf32>
    %710 = arith.mulf %709, %709 : vector<8x8xf32>
    %cst_279 = arith.constant dense<0.000000e+00> : vector<8xf32>
    %711 = vector.multi_reduction <add>, %710, %cst_279 [1] : vector<8x8xf32> to vector<8xf32>
    %712 = vector.shape_cast %711 : vector<8xf32> to vector<8x1xf32>
    %cst_280 = arith.constant 0.000000e+00 : f32
    %713 = vector.broadcast %cst_280 : f32 to vector<8x1xf32>
    %714 = arith.subf %713, %712 : vector<8x1xf32>
    %715 = math.exp %714 : vector<8x1xf32>
    %716 = math.exp %715 : vector<8x1xf32>
    %717 = arith.addf %706, %716 : vector<8x1xf32>
    %718 = vector.extract_strided_slice %682 {offsets = [0, 16], sizes = [8, 16], strides = [1, 1]} : vector<8x80xf32> to vector<8x16xf32>
    %719 = vector.broadcast %716 : vector<8x1xf32> to vector<8x16xf32>
    %720 = arith.mulf %719, %718 : vector<8x16xf32>
    %721 = arith.addf %705, %720 : vector<8x16xf32>
    %722 = vector.extract_strided_slice %47 {offsets = [1, 0], sizes = [1, 8], strides = [1, 1]} : vector<4x8xf32> to vector<1x8xf32>
    %723 = vector.broadcast %722 : vector<1x8xf32> to vector<8x8xf32>
    %724 = arith.subf %704, %723 : vector<8x8xf32>
    %725 = arith.mulf %724, %724 : vector<8x8xf32>
    %cst_281 = arith.constant dense<0.000000e+00> : vector<8xf32>
    %726 = vector.multi_reduction <add>, %725, %cst_281 [1] : vector<8x8xf32> to vector<8xf32>
    %727 = vector.shape_cast %726 : vector<8xf32> to vector<8x1xf32>
    %cst_282 = arith.constant 0.000000e+00 : f32
    %728 = vector.broadcast %cst_282 : f32 to vector<8x1xf32>
    %729 = arith.subf %728, %727 : vector<8x1xf32>
    %730 = math.exp %729 : vector<8x1xf32>
    %731 = math.exp %730 : vector<8x1xf32>
    %732 = arith.addf %717, %731 : vector<8x1xf32>
    %733 = vector.extract_strided_slice %682 {offsets = [0, 32], sizes = [8, 16], strides = [1, 1]} : vector<8x80xf32> to vector<8x16xf32>
    %734 = vector.broadcast %731 : vector<8x1xf32> to vector<8x16xf32>
    %735 = arith.mulf %734, %733 : vector<8x16xf32>
    %736 = arith.addf %721, %735 : vector<8x16xf32>
    %737 = vector.extract_strided_slice %47 {offsets = [2, 0], sizes = [1, 8], strides = [1, 1]} : vector<4x8xf32> to vector<1x8xf32>
    %738 = vector.broadcast %737 : vector<1x8xf32> to vector<8x8xf32>
    %739 = arith.subf %704, %738 : vector<8x8xf32>
    %740 = arith.mulf %739, %739 : vector<8x8xf32>
    %cst_283 = arith.constant dense<0.000000e+00> : vector<8xf32>
    %741 = vector.multi_reduction <add>, %740, %cst_283 [1] : vector<8x8xf32> to vector<8xf32>
    %742 = vector.shape_cast %741 : vector<8xf32> to vector<8x1xf32>
    %cst_284 = arith.constant 0.000000e+00 : f32
    %743 = vector.broadcast %cst_284 : f32 to vector<8x1xf32>
    %744 = arith.subf %743, %742 : vector<8x1xf32>
    %745 = math.exp %744 : vector<8x1xf32>
    %746 = math.exp %745 : vector<8x1xf32>
    %747 = arith.addf %732, %746 : vector<8x1xf32>
    %748 = vector.extract_strided_slice %682 {offsets = [0, 48], sizes = [8, 16], strides = [1, 1]} : vector<8x80xf32> to vector<8x16xf32>
    %749 = vector.broadcast %746 : vector<8x1xf32> to vector<8x16xf32>
    %750 = arith.mulf %749, %748 : vector<8x16xf32>
    %751 = arith.addf %736, %750 : vector<8x16xf32>
    %752 = vector.extract_strided_slice %47 {offsets = [3, 0], sizes = [1, 8], strides = [1, 1]} : vector<4x8xf32> to vector<1x8xf32>
    %753 = vector.broadcast %752 : vector<1x8xf32> to vector<8x8xf32>
    %754 = arith.subf %704, %753 : vector<8x8xf32>
    %755 = arith.mulf %754, %754 : vector<8x8xf32>
    %cst_285 = arith.constant dense<0.000000e+00> : vector<8xf32>
    %756 = vector.multi_reduction <add>, %755, %cst_285 [1] : vector<8x8xf32> to vector<8xf32>
    %757 = vector.shape_cast %756 : vector<8xf32> to vector<8x1xf32>
    %cst_286 = arith.constant 0.000000e+00 : f32
    %758 = vector.broadcast %cst_286 : f32 to vector<8x1xf32>
    %759 = arith.subf %758, %757 : vector<8x1xf32>
    %760 = math.exp %759 : vector<8x1xf32>
    %761 = math.exp %760 : vector<8x1xf32>
    %762 = arith.addf %747, %761 : vector<8x1xf32>
    %763 = vector.extract_strided_slice %682 {offsets = [0, 64], sizes = [8, 16], strides = [1, 1]} : vector<8x80xf32> to vector<8x16xf32>
    %764 = vector.broadcast %761 : vector<8x1xf32> to vector<8x16xf32>
    %765 = arith.mulf %764, %763 : vector<8x16xf32>
    %766 = arith.addf %751, %765 : vector<8x16xf32>
    %767 = vector.broadcast %762 : vector<8x1xf32> to vector<8x16xf32>
    %768 = arith.divf %766, %767 : vector<8x16xf32>
    %c0_i32_287 = arith.constant 0 : i32
    %769 = arith.cmpi eq, %c4_i32, %c0_i32_287 : i32
    %770 = arith.select %769, %683, %768 : vector<8x16xf32>
    %771 = arith.index_cast %c4_i32 : i32 to index
    %c0_288 = arith.constant 0 : index
    %c0_289 = arith.constant 0 : index
    %772 = vector.load %arg12[%771, %c0_288, %c0_289] : memref<8x8x16xf32, #tpu.memory_space<vmem>>, vector<1x8x16xf32>
    %773 = vector.shape_cast %772 : vector<1x8x16xf32> to vector<8x16xf32>
    %774 = vector.shape_cast %770 : vector<8x16xf32> to vector<1x8x16xf32>
    tpu.vector_store %arg12[%771, %c0_288, %c0_289], %774 {strides = array<i32>} : memref<8x8x16xf32, #tpu.memory_space<vmem>>, vector<1x8x16xf32>,
    %c5_i32 = arith.constant 5 : i32
    %c8_i32_290 = arith.constant 8 : i32
    %775 = arith.muli %c5_i32, %c8_i32_290 : i32
    %776 = tpu.assume_multiple %775, 8 : i32
    %c0_291 = arith.constant 0 : index
    %777 = arith.index_cast %776 : i32 to index
    %c0_292 = arith.constant 0 : index
    %778 = vector.load %arg13[%c0_291, %777, %c0_292] : memref<3x64x160xf32, #tpu.memory_space<vmem>>, vector<1x8x160xf32>
    %779 = vector.shape_cast %778 : vector<1x8x160xf32> to vector<8x160xf32>
    %c1_293 = arith.constant 1 : index
    %780 = arith.index_cast %776 : i32 to index
    %c0_294 = arith.constant 0 : index
    %781 = vector.load %arg13[%c1_293, %780, %c0_294] : memref<3x64x160xf32, #tpu.memory_space<vmem>>, vector<1x8x160xf32>
    %782 = vector.shape_cast %781 : vector<1x8x160xf32> to vector<8x160xf32>
    %c2_295 = arith.constant 2 : index
    %783 = arith.index_cast %776 : i32 to index
    %c0_296 = arith.constant 0 : index
    %784 = vector.load %arg13[%c2_295, %783, %c0_296] : memref<3x64x160xf32, #tpu.memory_space<vmem>>, vector<1x8x160xf32>
    %785 = vector.shape_cast %784 : vector<1x8x160xf32> to vector<8x160xf32>
    %786 = arith.truncf %673 : vector<8x160xf32> to vector<8x160xbf16>
    %c0_297 = arith.constant 0 : index
    %c0_298 = arith.constant 0 : index
    %c0_299 = arith.constant 0 : index
    %787 = vector.load %arg5[%c0_297, %c0_298, %c0_299] : memref<3x160x160xbf16, #tpu.memory_space<vmem>>, vector<1x160x160xbf16>
    %788 = vector.shape_cast %787 : vector<1x160x160xbf16> to vector<160x160xbf16>
    %cst_300 = arith.constant dense<0.000000e+00> : vector<8x160xf32>
    %789 = tpu.matmul %786, %788, %cst_300 {dimension_numbers = #tpu.dot_dimension_numbers<[1], [0], [0], [1], [0, 0, 1, 1], [], []>} : vector<8x160xbf16>, vector<160x160xbf16>, vector<8x160xf32> -> vector<8x160xf32>
    %790 = arith.addf %789, %34 : vector<8x160xf32>
    %c1_301 = arith.constant 1 : index
    %c0_302 = arith.constant 0 : index
    %c0_303 = arith.constant 0 : index
    %791 = vector.load %arg5[%c1_301, %c0_302, %c0_303] : memref<3x160x160xbf16, #tpu.memory_space<vmem>>, vector<1x160x160xbf16>
    %792 = vector.shape_cast %791 : vector<1x160x160xbf16> to vector<160x160xbf16>
    %cst_304 = arith.constant dense<0.000000e+00> : vector<8x160xf32>
    %793 = tpu.matmul %786, %792, %cst_304 {dimension_numbers = #tpu.dot_dimension_numbers<[1], [0], [0], [1], [0, 0, 1, 1], [], []>} : vector<8x160xbf16>, vector<160x160xbf16>, vector<8x160xf32> -> vector<8x160xf32>
    %794 = arith.addf %793, %38 : vector<8x160xf32>
    %c2_305 = arith.constant 2 : index
    %c0_306 = arith.constant 0 : index
    %c0_307 = arith.constant 0 : index
    %795 = vector.load %arg5[%c2_305, %c0_306, %c0_307] : memref<3x160x160xbf16, #tpu.memory_space<vmem>>, vector<1x160x160xbf16>
    %796 = vector.shape_cast %795 : vector<1x160x160xbf16> to vector<160x160xbf16>
    %cst_308 = arith.constant dense<0.000000e+00> : vector<8x160xf32>
    %797 = tpu.matmul %786, %796, %cst_308 {dimension_numbers = #tpu.dot_dimension_numbers<[1], [0], [0], [1], [0, 0, 1, 1], [], []>} : vector<8x160xbf16>, vector<160x160xbf16>, vector<8x160xf32> -> vector<8x160xf32>
    %798 = arith.addf %797, %42 : vector<8x160xf32>
    %799 = arith.addf %779, %790 : vector<8x160xf32>
    %800 = arith.negf %799 : vector<8x160xf32>
    %801 = math.exp %800 : vector<8x160xf32>
    %cst_309 = arith.constant 1.000000e+00 : f32
    %802 = vector.broadcast %cst_309 : f32 to vector<8x160xf32>
    %803 = arith.addf %802, %801 : vector<8x160xf32>
    %804 = arith.divf %802, %803 : vector<8x160xf32>
    %805 = arith.addf %782, %794 : vector<8x160xf32>
    %806 = arith.negf %805 : vector<8x160xf32>
    %807 = math.exp %806 : vector<8x160xf32>
    %cst_310 = arith.constant 1.000000e+00 : f32
    %808 = vector.broadcast %cst_310 : f32 to vector<8x160xf32>
    %809 = arith.addf %808, %807 : vector<8x160xf32>
    %810 = arith.divf %808, %809 : vector<8x160xf32>
    %811 = arith.mulf %804, %798 : vector<8x160xf32>
    %812 = arith.addf %785, %811 : vector<8x160xf32>
    %813 = math.tanh %812 : vector<8x160xf32>
    %cst_311 = arith.constant 1.000000e+00 : f32
    %814 = vector.broadcast %cst_311 : f32 to vector<8x160xf32>
    %815 = arith.subf %814, %810 : vector<8x160xf32>
    %816 = arith.mulf %815, %813 : vector<8x160xf32>
    %817 = arith.mulf %810, %673 : vector<8x160xf32>
    %818 = arith.addf %816, %817 : vector<8x160xf32>
    %819 = arith.truncf %818 : vector<8x160xf32> to vector<8x160xbf16>
    %c0_312 = arith.constant 0 : index
    %c0_313 = arith.constant 0 : index
    %820 = vector.load %arg7[%c0_312, %c0_313] : memref<160x80xbf16, #tpu.memory_space<vmem>>, vector<160x80xbf16>
    %cst_314 = arith.constant dense<0.000000e+00> : vector<8x80xf32>
    %821 = tpu.matmul %819, %820, %cst_314 {dimension_numbers = #tpu.dot_dimension_numbers<[1], [0], [0], [1], [0, 0, 1, 1], [], []>} : vector<8x160xbf16>, vector<160x80xbf16>, vector<8x80xf32> -> vector<8x80xf32>
    %822 = arith.addf %821, %45 : vector<8x80xf32>
    %823 = arith.negf %822 : vector<8x80xf32>
    %824 = math.exp %823 : vector<8x80xf32>
    %cst_315 = arith.constant 1.000000e+00 : f32
    %825 = vector.broadcast %cst_315 : f32 to vector<8x80xf32>
    %826 = arith.addf %825, %824 : vector<8x80xf32>
    %827 = arith.divf %825, %826 : vector<8x80xf32>
    %828 = vector.extract_strided_slice %827 {offsets = [0, 0], sizes = [8, 16], strides = [1, 1]} : vector<8x80xf32> to vector<8x16xf32>
    %c1_i32_316 = arith.constant 1 : i32
    %829 = arith.subi %c5_i32, %c1_i32_316 : i32
    %c0_i32_317 = arith.constant 0 : i32
    %830 = arith.maxsi %829, %c0_i32_317 : i32
    %831 = arith.index_cast %830 : i32 to index
    %c0_318 = arith.constant 0 : index
    %c0_319 = arith.constant 0 : index
    %832 = vector.load %arg2[%831, %c0_318, %c0_319] : memref<8x8x16xf32, #tpu.memory_space<vmem>>, vector<1x8x16xf32>
    %833 = vector.shape_cast %832 : vector<1x8x16xf32> to vector<8x16xf32>
    %834 = math.log %683 : vector<8x16xf32>
    %cst_320 = arith.constant -1.000000e+02 : f32
    %835 = vector.broadcast %cst_320 : f32 to vector<8x16xf32>
    %836 = arith.maximumf %834, %835 : vector<8x16xf32>
    %cst_321 = arith.constant 1.000000e+00 : f32
    %837 = vector.broadcast %cst_321 : f32 to vector<8x16xf32>
    %838 = arith.subf %837, %683 : vector<8x16xf32>
    %839 = math.log %838 : vector<8x16xf32>
    %cst_322 = arith.constant -1.000000e+02 : f32
    %840 = vector.broadcast %cst_322 : f32 to vector<8x16xf32>
    %841 = arith.maximumf %839, %840 : vector<8x16xf32>
    %842 = arith.mulf %833, %836 : vector<8x16xf32>
    %cst_323 = arith.constant 1.000000e+00 : f32
    %843 = vector.broadcast %cst_323 : f32 to vector<8x16xf32>
    %844 = arith.subf %843, %833 : vector<8x16xf32>
    %845 = arith.mulf %844, %841 : vector<8x16xf32>
    %846 = arith.addf %842, %845 : vector<8x16xf32>
    %cst_324 = arith.constant 0.000000e+00 : f32
    %847 = vector.broadcast %cst_324 : f32 to vector<8x16xf32>
    %848 = arith.subf %847, %846 : vector<8x16xf32>
    %cst_325 = arith.constant dense<0.000000e+00> : vector<8x8xf32>
    %849 = tpu.matmul %848, %46, %cst_325 {dimension_numbers = #tpu.dot_dimension_numbers<[1], [0], [0], [1], [0, 0, 1, 1], [], []>} : vector<8x16xf32>, vector<16x8xf32>, vector<8x8xf32> -> vector<8x8xf32>
    %cst_326 = arith.constant 0.000000e+00 : f32
    %850 = vector.broadcast %cst_326 : f32 to vector<8x16xf32>
    %cst_327 = arith.constant 0.000000e+00 : f32
    %851 = vector.broadcast %cst_327 : f32 to vector<8x1xf32>
    %852 = vector.extract_strided_slice %47 {offsets = [0, 0], sizes = [1, 8], strides = [1, 1]} : vector<4x8xf32> to vector<1x8xf32>
    %853 = vector.broadcast %852 : vector<1x8xf32> to vector<8x8xf32>
    %854 = arith.subf %849, %853 : vector<8x8xf32>
    %855 = arith.mulf %854, %854 : vector<8x8xf32>
    %cst_328 = arith.constant dense<0.000000e+00> : vector<8xf32>
    %856 = vector.multi_reduction <add>, %855, %cst_328 [1] : vector<8x8xf32> to vector<8xf32>
    %857 = vector.shape_cast %856 : vector<8xf32> to vector<8x1xf32>
    %cst_329 = arith.constant 0.000000e+00 : f32
    %858 = vector.broadcast %cst_329 : f32 to vector<8x1xf32>
    %859 = arith.subf %858, %857 : vector<8x1xf32>
    %860 = math.exp %859 : vector<8x1xf32>
    %861 = math.exp %860 : vector<8x1xf32>
    %862 = arith.addf %851, %861 : vector<8x1xf32>
    %863 = vector.extract_strided_slice %827 {offsets = [0, 16], sizes = [8, 16], strides = [1, 1]} : vector<8x80xf32> to vector<8x16xf32>
    %864 = vector.broadcast %861 : vector<8x1xf32> to vector<8x16xf32>
    %865 = arith.mulf %864, %863 : vector<8x16xf32>
    %866 = arith.addf %850, %865 : vector<8x16xf32>
    %867 = vector.extract_strided_slice %47 {offsets = [1, 0], sizes = [1, 8], strides = [1, 1]} : vector<4x8xf32> to vector<1x8xf32>
    %868 = vector.broadcast %867 : vector<1x8xf32> to vector<8x8xf32>
    %869 = arith.subf %849, %868 : vector<8x8xf32>
    %870 = arith.mulf %869, %869 : vector<8x8xf32>
    %cst_330 = arith.constant dense<0.000000e+00> : vector<8xf32>
    %871 = vector.multi_reduction <add>, %870, %cst_330 [1] : vector<8x8xf32> to vector<8xf32>
    %872 = vector.shape_cast %871 : vector<8xf32> to vector<8x1xf32>
    %cst_331 = arith.constant 0.000000e+00 : f32
    %873 = vector.broadcast %cst_331 : f32 to vector<8x1xf32>
    %874 = arith.subf %873, %872 : vector<8x1xf32>
    %875 = math.exp %874 : vector<8x1xf32>
    %876 = math.exp %875 : vector<8x1xf32>
    %877 = arith.addf %862, %876 : vector<8x1xf32>
    %878 = vector.extract_strided_slice %827 {offsets = [0, 32], sizes = [8, 16], strides = [1, 1]} : vector<8x80xf32> to vector<8x16xf32>
    %879 = vector.broadcast %876 : vector<8x1xf32> to vector<8x16xf32>
    %880 = arith.mulf %879, %878 : vector<8x16xf32>
    %881 = arith.addf %866, %880 : vector<8x16xf32>
    %882 = vector.extract_strided_slice %47 {offsets = [2, 0], sizes = [1, 8], strides = [1, 1]} : vector<4x8xf32> to vector<1x8xf32>
    %883 = vector.broadcast %882 : vector<1x8xf32> to vector<8x8xf32>
    %884 = arith.subf %849, %883 : vector<8x8xf32>
    %885 = arith.mulf %884, %884 : vector<8x8xf32>
    %cst_332 = arith.constant dense<0.000000e+00> : vector<8xf32>
    %886 = vector.multi_reduction <add>, %885, %cst_332 [1] : vector<8x8xf32> to vector<8xf32>
    %887 = vector.shape_cast %886 : vector<8xf32> to vector<8x1xf32>
    %cst_333 = arith.constant 0.000000e+00 : f32
    %888 = vector.broadcast %cst_333 : f32 to vector<8x1xf32>
    %889 = arith.subf %888, %887 : vector<8x1xf32>
    %890 = math.exp %889 : vector<8x1xf32>
    %891 = math.exp %890 : vector<8x1xf32>
    %892 = arith.addf %877, %891 : vector<8x1xf32>
    %893 = vector.extract_strided_slice %827 {offsets = [0, 48], sizes = [8, 16], strides = [1, 1]} : vector<8x80xf32> to vector<8x16xf32>
    %894 = vector.broadcast %891 : vector<8x1xf32> to vector<8x16xf32>
    %895 = arith.mulf %894, %893 : vector<8x16xf32>
    %896 = arith.addf %881, %895 : vector<8x16xf32>
    %897 = vector.extract_strided_slice %47 {offsets = [3, 0], sizes = [1, 8], strides = [1, 1]} : vector<4x8xf32> to vector<1x8xf32>
    %898 = vector.broadcast %897 : vector<1x8xf32> to vector<8x8xf32>
    %899 = arith.subf %849, %898 : vector<8x8xf32>
    %900 = arith.mulf %899, %899 : vector<8x8xf32>
    %cst_334 = arith.constant dense<0.000000e+00> : vector<8xf32>
    %901 = vector.multi_reduction <add>, %900, %cst_334 [1] : vector<8x8xf32> to vector<8xf32>
    %902 = vector.shape_cast %901 : vector<8xf32> to vector<8x1xf32>
    %cst_335 = arith.constant 0.000000e+00 : f32
    %903 = vector.broadcast %cst_335 : f32 to vector<8x1xf32>
    %904 = arith.subf %903, %902 : vector<8x1xf32>
    %905 = math.exp %904 : vector<8x1xf32>
    %906 = math.exp %905 : vector<8x1xf32>
    %907 = arith.addf %892, %906 : vector<8x1xf32>
    %908 = vector.extract_strided_slice %827 {offsets = [0, 64], sizes = [8, 16], strides = [1, 1]} : vector<8x80xf32> to vector<8x16xf32>
    %909 = vector.broadcast %906 : vector<8x1xf32> to vector<8x16xf32>
    %910 = arith.mulf %909, %908 : vector<8x16xf32>
    %911 = arith.addf %896, %910 : vector<8x16xf32>
    %912 = vector.broadcast %907 : vector<8x1xf32> to vector<8x16xf32>
    %913 = arith.divf %911, %912 : vector<8x16xf32>
    %c0_i32_336 = arith.constant 0 : i32
    %914 = arith.cmpi eq, %c5_i32, %c0_i32_336 : i32
    %915 = arith.select %914, %828, %913 : vector<8x16xf32>
    %916 = arith.index_cast %c5_i32 : i32 to index
    %c0_337 = arith.constant 0 : index
    %c0_338 = arith.constant 0 : index
    %917 = vector.load %arg12[%916, %c0_337, %c0_338] : memref<8x8x16xf32, #tpu.memory_space<vmem>>, vector<1x8x16xf32>
    %918 = vector.shape_cast %917 : vector<1x8x16xf32> to vector<8x16xf32>
    %919 = vector.shape_cast %915 : vector<8x16xf32> to vector<1x8x16xf32>
    tpu.vector_store %arg12[%916, %c0_337, %c0_338], %919 {strides = array<i32>} : memref<8x8x16xf32, #tpu.memory_space<vmem>>, vector<1x8x16xf32>,
    %c6_i32 = arith.constant 6 : i32
    %c8_i32_339 = arith.constant 8 : i32
    %920 = arith.muli %c6_i32, %c8_i32_339 : i32
    %921 = tpu.assume_multiple %920, 8 : i32
    %c0_340 = arith.constant 0 : index
    %922 = arith.index_cast %921 : i32 to index
    %c0_341 = arith.constant 0 : index
    %923 = vector.load %arg13[%c0_340, %922, %c0_341] : memref<3x64x160xf32, #tpu.memory_space<vmem>>, vector<1x8x160xf32>
    %924 = vector.shape_cast %923 : vector<1x8x160xf32> to vector<8x160xf32>
    %c1_342 = arith.constant 1 : index
    %925 = arith.index_cast %921 : i32 to index
    %c0_343 = arith.constant 0 : index
    %926 = vector.load %arg13[%c1_342, %925, %c0_343] : memref<3x64x160xf32, #tpu.memory_space<vmem>>, vector<1x8x160xf32>
    %927 = vector.shape_cast %926 : vector<1x8x160xf32> to vector<8x160xf32>
    %c2_344 = arith.constant 2 : index
    %928 = arith.index_cast %921 : i32 to index
    %c0_345 = arith.constant 0 : index
    %929 = vector.load %arg13[%c2_344, %928, %c0_345] : memref<3x64x160xf32, #tpu.memory_space<vmem>>, vector<1x8x160xf32>
    %930 = vector.shape_cast %929 : vector<1x8x160xf32> to vector<8x160xf32>
    %931 = arith.truncf %818 : vector<8x160xf32> to vector<8x160xbf16>
    %c0_346 = arith.constant 0 : index
    %c0_347 = arith.constant 0 : index
    %c0_348 = arith.constant 0 : index
    %932 = vector.load %arg5[%c0_346, %c0_347, %c0_348] : memref<3x160x160xbf16, #tpu.memory_space<vmem>>, vector<1x160x160xbf16>
    %933 = vector.shape_cast %932 : vector<1x160x160xbf16> to vector<160x160xbf16>
    %cst_349 = arith.constant dense<0.000000e+00> : vector<8x160xf32>
    %934 = tpu.matmul %931, %933, %cst_349 {dimension_numbers = #tpu.dot_dimension_numbers<[1], [0], [0], [1], [0, 0, 1, 1], [], []>} : vector<8x160xbf16>, vector<160x160xbf16>, vector<8x160xf32> -> vector<8x160xf32>
    %935 = arith.addf %934, %34 : vector<8x160xf32>
    %c1_350 = arith.constant 1 : index
    %c0_351 = arith.constant 0 : index
    %c0_352 = arith.constant 0 : index
    %936 = vector.load %arg5[%c1_350, %c0_351, %c0_352] : memref<3x160x160xbf16, #tpu.memory_space<vmem>>, vector<1x160x160xbf16>
    %937 = vector.shape_cast %936 : vector<1x160x160xbf16> to vector<160x160xbf16>
    %cst_353 = arith.constant dense<0.000000e+00> : vector<8x160xf32>
    %938 = tpu.matmul %931, %937, %cst_353 {dimension_numbers = #tpu.dot_dimension_numbers<[1], [0], [0], [1], [0, 0, 1, 1], [], []>} : vector<8x160xbf16>, vector<160x160xbf16>, vector<8x160xf32> -> vector<8x160xf32>
    %939 = arith.addf %938, %38 : vector<8x160xf32>
    %c2_354 = arith.constant 2 : index
    %c0_355 = arith.constant 0 : index
    %c0_356 = arith.constant 0 : index
    %940 = vector.load %arg5[%c2_354, %c0_355, %c0_356] : memref<3x160x160xbf16, #tpu.memory_space<vmem>>, vector<1x160x160xbf16>
    %941 = vector.shape_cast %940 : vector<1x160x160xbf16> to vector<160x160xbf16>
    %cst_357 = arith.constant dense<0.000000e+00> : vector<8x160xf32>
    %942 = tpu.matmul %931, %941, %cst_357 {dimension_numbers = #tpu.dot_dimension_numbers<[1], [0], [0], [1], [0, 0, 1, 1], [], []>} : vector<8x160xbf16>, vector<160x160xbf16>, vector<8x160xf32> -> vector<8x160xf32>
    %943 = arith.addf %942, %42 : vector<8x160xf32>
    %944 = arith.addf %924, %935 : vector<8x160xf32>
    %945 = arith.negf %944 : vector<8x160xf32>
    %946 = math.exp %945 : vector<8x160xf32>
    %cst_358 = arith.constant 1.000000e+00 : f32
    %947 = vector.broadcast %cst_358 : f32 to vector<8x160xf32>
    %948 = arith.addf %947, %946 : vector<8x160xf32>
    %949 = arith.divf %947, %948 : vector<8x160xf32>
    %950 = arith.addf %927, %939 : vector<8x160xf32>
    %951 = arith.negf %950 : vector<8x160xf32>
    %952 = math.exp %951 : vector<8x160xf32>
    %cst_359 = arith.constant 1.000000e+00 : f32
    %953 = vector.broadcast %cst_359 : f32 to vector<8x160xf32>
    %954 = arith.addf %953, %952 : vector<8x160xf32>
    %955 = arith.divf %953, %954 : vector<8x160xf32>
    %956 = arith.mulf %949, %943 : vector<8x160xf32>
    %957 = arith.addf %930, %956 : vector<8x160xf32>
    %958 = math.tanh %957 : vector<8x160xf32>
    %cst_360 = arith.constant 1.000000e+00 : f32
    %959 = vector.broadcast %cst_360 : f32 to vector<8x160xf32>
    %960 = arith.subf %959, %955 : vector<8x160xf32>
    %961 = arith.mulf %960, %958 : vector<8x160xf32>
    %962 = arith.mulf %955, %818 : vector<8x160xf32>
    %963 = arith.addf %961, %962 : vector<8x160xf32>
    %964 = arith.truncf %963 : vector<8x160xf32> to vector<8x160xbf16>
    %c0_361 = arith.constant 0 : index
    %c0_362 = arith.constant 0 : index
    %965 = vector.load %arg7[%c0_361, %c0_362] : memref<160x80xbf16, #tpu.memory_space<vmem>>, vector<160x80xbf16>
    %cst_363 = arith.constant dense<0.000000e+00> : vector<8x80xf32>
    %966 = tpu.matmul %964, %965, %cst_363 {dimension_numbers = #tpu.dot_dimension_numbers<[1], [0], [0], [1], [0, 0, 1, 1], [], []>} : vector<8x160xbf16>, vector<160x80xbf16>, vector<8x80xf32> -> vector<8x80xf32>
    %967 = arith.addf %966, %45 : vector<8x80xf32>
    %968 = arith.negf %967 : vector<8x80xf32>
    %969 = math.exp %968 : vector<8x80xf32>
    %cst_364 = arith.constant 1.000000e+00 : f32
    %970 = vector.broadcast %cst_364 : f32 to vector<8x80xf32>
    %971 = arith.addf %970, %969 : vector<8x80xf32>
    %972 = arith.divf %970, %971 : vector<8x80xf32>
    %973 = vector.extract_strided_slice %972 {offsets = [0, 0], sizes = [8, 16], strides = [1, 1]} : vector<8x80xf32> to vector<8x16xf32>
    %c1_i32_365 = arith.constant 1 : i32
    %974 = arith.subi %c6_i32, %c1_i32_365 : i32
    %c0_i32_366 = arith.constant 0 : i32
    %975 = arith.maxsi %974, %c0_i32_366 : i32
    %976 = arith.index_cast %975 : i32 to index
    %c0_367 = arith.constant 0 : index
    %c0_368 = arith.constant 0 : index
    %977 = vector.load %arg2[%976, %c0_367, %c0_368] : memref<8x8x16xf32, #tpu.memory_space<vmem>>, vector<1x8x16xf32>
    %978 = vector.shape_cast %977 : vector<1x8x16xf32> to vector<8x16xf32>
    %979 = math.log %828 : vector<8x16xf32>
    %cst_369 = arith.constant -1.000000e+02 : f32
    %980 = vector.broadcast %cst_369 : f32 to vector<8x16xf32>
    %981 = arith.maximumf %979, %980 : vector<8x16xf32>
    %cst_370 = arith.constant 1.000000e+00 : f32
    %982 = vector.broadcast %cst_370 : f32 to vector<8x16xf32>
    %983 = arith.subf %982, %828 : vector<8x16xf32>
    %984 = math.log %983 : vector<8x16xf32>
    %cst_371 = arith.constant -1.000000e+02 : f32
    %985 = vector.broadcast %cst_371 : f32 to vector<8x16xf32>
    %986 = arith.maximumf %984, %985 : vector<8x16xf32>
    %987 = arith.mulf %978, %981 : vector<8x16xf32>
    %cst_372 = arith.constant 1.000000e+00 : f32
    %988 = vector.broadcast %cst_372 : f32 to vector<8x16xf32>
    %989 = arith.subf %988, %978 : vector<8x16xf32>
    %990 = arith.mulf %989, %986 : vector<8x16xf32>
    %991 = arith.addf %987, %990 : vector<8x16xf32>
    %cst_373 = arith.constant 0.000000e+00 : f32
    %992 = vector.broadcast %cst_373 : f32 to vector<8x16xf32>
    %993 = arith.subf %992, %991 : vector<8x16xf32>
    %cst_374 = arith.constant dense<0.000000e+00> : vector<8x8xf32>
    %994 = tpu.matmul %993, %46, %cst_374 {dimension_numbers = #tpu.dot_dimension_numbers<[1], [0], [0], [1], [0, 0, 1, 1], [], []>} : vector<8x16xf32>, vector<16x8xf32>, vector<8x8xf32> -> vector<8x8xf32>
    %cst_375 = arith.constant 0.000000e+00 : f32
    %995 = vector.broadcast %cst_375 : f32 to vector<8x16xf32>
    %cst_376 = arith.constant 0.000000e+00 : f32
    %996 = vector.broadcast %cst_376 : f32 to vector<8x1xf32>
    %997 = vector.extract_strided_slice %47 {offsets = [0, 0], sizes = [1, 8], strides = [1, 1]} : vector<4x8xf32> to vector<1x8xf32>
    %998 = vector.broadcast %997 : vector<1x8xf32> to vector<8x8xf32>
    %999 = arith.subf %994, %998 : vector<8x8xf32>
    %1000 = arith.mulf %999, %999 : vector<8x8xf32>
    %cst_377 = arith.constant dense<0.000000e+00> : vector<8xf32>
    %1001 = vector.multi_reduction <add>, %1000, %cst_377 [1] : vector<8x8xf32> to vector<8xf32>
    %1002 = vector.shape_cast %1001 : vector<8xf32> to vector<8x1xf32>
    %cst_378 = arith.constant 0.000000e+00 : f32
    %1003 = vector.broadcast %cst_378 : f32 to vector<8x1xf32>
    %1004 = arith.subf %1003, %1002 : vector<8x1xf32>
    %1005 = math.exp %1004 : vector<8x1xf32>
    %1006 = math.exp %1005 : vector<8x1xf32>
    %1007 = arith.addf %996, %1006 : vector<8x1xf32>
    %1008 = vector.extract_strided_slice %972 {offsets = [0, 16], sizes = [8, 16], strides = [1, 1]} : vector<8x80xf32> to vector<8x16xf32>
    %1009 = vector.broadcast %1006 : vector<8x1xf32> to vector<8x16xf32>
    %1010 = arith.mulf %1009, %1008 : vector<8x16xf32>
    %1011 = arith.addf %995, %1010 : vector<8x16xf32>
    %1012 = vector.extract_strided_slice %47 {offsets = [1, 0], sizes = [1, 8], strides = [1, 1]} : vector<4x8xf32> to vector<1x8xf32>
    %1013 = vector.broadcast %1012 : vector<1x8xf32> to vector<8x8xf32>
    %1014 = arith.subf %994, %1013 : vector<8x8xf32>
    %1015 = arith.mulf %1014, %1014 : vector<8x8xf32>
    %cst_379 = arith.constant dense<0.000000e+00> : vector<8xf32>
    %1016 = vector.multi_reduction <add>, %1015, %cst_379 [1] : vector<8x8xf32> to vector<8xf32>
    %1017 = vector.shape_cast %1016 : vector<8xf32> to vector<8x1xf32>
    %cst_380 = arith.constant 0.000000e+00 : f32
    %1018 = vector.broadcast %cst_380 : f32 to vector<8x1xf32>
    %1019 = arith.subf %1018, %1017 : vector<8x1xf32>
    %1020 = math.exp %1019 : vector<8x1xf32>
    %1021 = math.exp %1020 : vector<8x1xf32>
    %1022 = arith.addf %1007, %1021 : vector<8x1xf32>
    %1023 = vector.extract_strided_slice %972 {offsets = [0, 32], sizes = [8, 16], strides = [1, 1]} : vector<8x80xf32> to vector<8x16xf32>
    %1024 = vector.broadcast %1021 : vector<8x1xf32> to vector<8x16xf32>
    %1025 = arith.mulf %1024, %1023 : vector<8x16xf32>
    %1026 = arith.addf %1011, %1025 : vector<8x16xf32>
    %1027 = vector.extract_strided_slice %47 {offsets = [2, 0], sizes = [1, 8], strides = [1, 1]} : vector<4x8xf32> to vector<1x8xf32>
    %1028 = vector.broadcast %1027 : vector<1x8xf32> to vector<8x8xf32>
    %1029 = arith.subf %994, %1028 : vector<8x8xf32>
    %1030 = arith.mulf %1029, %1029 : vector<8x8xf32>
    %cst_381 = arith.constant dense<0.000000e+00> : vector<8xf32>
    %1031 = vector.multi_reduction <add>, %1030, %cst_381 [1] : vector<8x8xf32> to vector<8xf32>
    %1032 = vector.shape_cast %1031 : vector<8xf32> to vector<8x1xf32>
    %cst_382 = arith.constant 0.000000e+00 : f32
    %1033 = vector.broadcast %cst_382 : f32 to vector<8x1xf32>
    %1034 = arith.subf %1033, %1032 : vector<8x1xf32>
    %1035 = math.exp %1034 : vector<8x1xf32>
    %1036 = math.exp %1035 : vector<8x1xf32>
    %1037 = arith.addf %1022, %1036 : vector<8x1xf32>
    %1038 = vector.extract_strided_slice %972 {offsets = [0, 48], sizes = [8, 16], strides = [1, 1]} : vector<8x80xf32> to vector<8x16xf32>
    %1039 = vector.broadcast %1036 : vector<8x1xf32> to vector<8x16xf32>
    %1040 = arith.mulf %1039, %1038 : vector<8x16xf32>
    %1041 = arith.addf %1026, %1040 : vector<8x16xf32>
    %1042 = vector.extract_strided_slice %47 {offsets = [3, 0], sizes = [1, 8], strides = [1, 1]} : vector<4x8xf32> to vector<1x8xf32>
    %1043 = vector.broadcast %1042 : vector<1x8xf32> to vector<8x8xf32>
    %1044 = arith.subf %994, %1043 : vector<8x8xf32>
    %1045 = arith.mulf %1044, %1044 : vector<8x8xf32>
    %cst_383 = arith.constant dense<0.000000e+00> : vector<8xf32>
    %1046 = vector.multi_reduction <add>, %1045, %cst_383 [1] : vector<8x8xf32> to vector<8xf32>
    %1047 = vector.shape_cast %1046 : vector<8xf32> to vector<8x1xf32>
    %cst_384 = arith.constant 0.000000e+00 : f32
    %1048 = vector.broadcast %cst_384 : f32 to vector<8x1xf32>
    %1049 = arith.subf %1048, %1047 : vector<8x1xf32>
    %1050 = math.exp %1049 : vector<8x1xf32>
    %1051 = math.exp %1050 : vector<8x1xf32>
    %1052 = arith.addf %1037, %1051 : vector<8x1xf32>
    %1053 = vector.extract_strided_slice %972 {offsets = [0, 64], sizes = [8, 16], strides = [1, 1]} : vector<8x80xf32> to vector<8x16xf32>
    %1054 = vector.broadcast %1051 : vector<8x1xf32> to vector<8x16xf32>
    %1055 = arith.mulf %1054, %1053 : vector<8x16xf32>
    %1056 = arith.addf %1041, %1055 : vector<8x16xf32>
    %1057 = vector.broadcast %1052 : vector<8x1xf32> to vector<8x16xf32>
    %1058 = arith.divf %1056, %1057 : vector<8x16xf32>
    %c0_i32_385 = arith.constant 0 : i32
    %1059 = arith.cmpi eq, %c6_i32, %c0_i32_385 : i32
    %1060 = arith.select %1059, %973, %1058 : vector<8x16xf32>
    %1061 = arith.index_cast %c6_i32 : i32 to index
    %c0_386 = arith.constant 0 : index
    %c0_387 = arith.constant 0 : index
    %1062 = vector.load %arg12[%1061, %c0_386, %c0_387] : memref<8x8x16xf32, #tpu.memory_space<vmem>>, vector<1x8x16xf32>
    %1063 = vector.shape_cast %1062 : vector<1x8x16xf32> to vector<8x16xf32>
    %1064 = vector.shape_cast %1060 : vector<8x16xf32> to vector<1x8x16xf32>
    tpu.vector_store %arg12[%1061, %c0_386, %c0_387], %1064 {strides = array<i32>} : memref<8x8x16xf32, #tpu.memory_space<vmem>>, vector<1x8x16xf32>,
    %c7_i32 = arith.constant 7 : i32
    %c8_i32_388 = arith.constant 8 : i32
    %1065 = arith.muli %c7_i32, %c8_i32_388 : i32
    %1066 = tpu.assume_multiple %1065, 8 : i32
    %c0_389 = arith.constant 0 : index
    %1067 = arith.index_cast %1066 : i32 to index
    %c0_390 = arith.constant 0 : index
    %1068 = vector.load %arg13[%c0_389, %1067, %c0_390] : memref<3x64x160xf32, #tpu.memory_space<vmem>>, vector<1x8x160xf32>
    %1069 = vector.shape_cast %1068 : vector<1x8x160xf32> to vector<8x160xf32>
    %c1_391 = arith.constant 1 : index
    %1070 = arith.index_cast %1066 : i32 to index
    %c0_392 = arith.constant 0 : index
    %1071 = vector.load %arg13[%c1_391, %1070, %c0_392] : memref<3x64x160xf32, #tpu.memory_space<vmem>>, vector<1x8x160xf32>
    %1072 = vector.shape_cast %1071 : vector<1x8x160xf32> to vector<8x160xf32>
    %c2_393 = arith.constant 2 : index
    %1073 = arith.index_cast %1066 : i32 to index
    %c0_394 = arith.constant 0 : index
    %1074 = vector.load %arg13[%c2_393, %1073, %c0_394] : memref<3x64x160xf32, #tpu.memory_space<vmem>>, vector<1x8x160xf32>
    %1075 = vector.shape_cast %1074 : vector<1x8x160xf32> to vector<8x160xf32>
    %1076 = arith.truncf %963 : vector<8x160xf32> to vector<8x160xbf16>
    %c0_395 = arith.constant 0 : index
    %c0_396 = arith.constant 0 : index
    %c0_397 = arith.constant 0 : index
    %1077 = vector.load %arg5[%c0_395, %c0_396, %c0_397] : memref<3x160x160xbf16, #tpu.memory_space<vmem>>, vector<1x160x160xbf16>
    %1078 = vector.shape_cast %1077 : vector<1x160x160xbf16> to vector<160x160xbf16>
    %cst_398 = arith.constant dense<0.000000e+00> : vector<8x160xf32>
    %1079 = tpu.matmul %1076, %1078, %cst_398 {dimension_numbers = #tpu.dot_dimension_numbers<[1], [0], [0], [1], [0, 0, 1, 1], [], []>} : vector<8x160xbf16>, vector<160x160xbf16>, vector<8x160xf32> -> vector<8x160xf32>
    %1080 = arith.addf %1079, %34 : vector<8x160xf32>
    %c1_399 = arith.constant 1 : index
    %c0_400 = arith.constant 0 : index
    %c0_401 = arith.constant 0 : index
    %1081 = vector.load %arg5[%c1_399, %c0_400, %c0_401] : memref<3x160x160xbf16, #tpu.memory_space<vmem>>, vector<1x160x160xbf16>
    %1082 = vector.shape_cast %1081 : vector<1x160x160xbf16> to vector<160x160xbf16>
    %cst_402 = arith.constant dense<0.000000e+00> : vector<8x160xf32>
    %1083 = tpu.matmul %1076, %1082, %cst_402 {dimension_numbers = #tpu.dot_dimension_numbers<[1], [0], [0], [1], [0, 0, 1, 1], [], []>} : vector<8x160xbf16>, vector<160x160xbf16>, vector<8x160xf32> -> vector<8x160xf32>
    %1084 = arith.addf %1083, %38 : vector<8x160xf32>
    %c2_403 = arith.constant 2 : index
    %c0_404 = arith.constant 0 : index
    %c0_405 = arith.constant 0 : index
    %1085 = vector.load %arg5[%c2_403, %c0_404, %c0_405] : memref<3x160x160xbf16, #tpu.memory_space<vmem>>, vector<1x160x160xbf16>
    %1086 = vector.shape_cast %1085 : vector<1x160x160xbf16> to vector<160x160xbf16>
    %cst_406 = arith.constant dense<0.000000e+00> : vector<8x160xf32>
    %1087 = tpu.matmul %1076, %1086, %cst_406 {dimension_numbers = #tpu.dot_dimension_numbers<[1], [0], [0], [1], [0, 0, 1, 1], [], []>} : vector<8x160xbf16>, vector<160x160xbf16>, vector<8x160xf32> -> vector<8x160xf32>
    %1088 = arith.addf %1087, %42 : vector<8x160xf32>
    %1089 = arith.addf %1069, %1080 : vector<8x160xf32>
    %1090 = arith.negf %1089 : vector<8x160xf32>
    %1091 = math.exp %1090 : vector<8x160xf32>
    %cst_407 = arith.constant 1.000000e+00 : f32
    %1092 = vector.broadcast %cst_407 : f32 to vector<8x160xf32>
    %1093 = arith.addf %1092, %1091 : vector<8x160xf32>
    %1094 = arith.divf %1092, %1093 : vector<8x160xf32>
    %1095 = arith.addf %1072, %1084 : vector<8x160xf32>
    %1096 = arith.negf %1095 : vector<8x160xf32>
    %1097 = math.exp %1096 : vector<8x160xf32>
    %cst_408 = arith.constant 1.000000e+00 : f32
    %1098 = vector.broadcast %cst_408 : f32 to vector<8x160xf32>
    %1099 = arith.addf %1098, %1097 : vector<8x160xf32>
    %1100 = arith.divf %1098, %1099 : vector<8x160xf32>
    %1101 = arith.mulf %1094, %1088 : vector<8x160xf32>
    %1102 = arith.addf %1075, %1101 : vector<8x160xf32>
    %1103 = math.tanh %1102 : vector<8x160xf32>
    %cst_409 = arith.constant 1.000000e+00 : f32
    %1104 = vector.broadcast %cst_409 : f32 to vector<8x160xf32>
    %1105 = arith.subf %1104, %1100 : vector<8x160xf32>
    %1106 = arith.mulf %1105, %1103 : vector<8x160xf32>
    %1107 = arith.mulf %1100, %963 : vector<8x160xf32>
    %1108 = arith.addf %1106, %1107 : vector<8x160xf32>
    %1109 = arith.truncf %1108 : vector<8x160xf32> to vector<8x160xbf16>
    %c0_410 = arith.constant 0 : index
    %c0_411 = arith.constant 0 : index
    %1110 = vector.load %arg7[%c0_410, %c0_411] : memref<160x80xbf16, #tpu.memory_space<vmem>>, vector<160x80xbf16>
    %cst_412 = arith.constant dense<0.000000e+00> : vector<8x80xf32>
    %1111 = tpu.matmul %1109, %1110, %cst_412 {dimension_numbers = #tpu.dot_dimension_numbers<[1], [0], [0], [1], [0, 0, 1, 1], [], []>} : vector<8x160xbf16>, vector<160x80xbf16>, vector<8x80xf32> -> vector<8x80xf32>
    %1112 = arith.addf %1111, %45 : vector<8x80xf32>
    %1113 = arith.negf %1112 : vector<8x80xf32>
    %1114 = math.exp %1113 : vector<8x80xf32>
    %cst_413 = arith.constant 1.000000e+00 : f32
    %1115 = vector.broadcast %cst_413 : f32 to vector<8x80xf32>
    %1116 = arith.addf %1115, %1114 : vector<8x80xf32>
    %1117 = arith.divf %1115, %1116 : vector<8x80xf32>
    %1118 = vector.extract_strided_slice %1117 {offsets = [0, 0], sizes = [8, 16], strides = [1, 1]} : vector<8x80xf32> to vector<8x16xf32>
    %c1_i32_414 = arith.constant 1 : i32
    %1119 = arith.subi %c7_i32, %c1_i32_414 : i32
    %c0_i32_415 = arith.constant 0 : i32
    %1120 = arith.maxsi %1119, %c0_i32_415 : i32
    %1121 = arith.index_cast %1120 : i32 to index
    %c0_416 = arith.constant 0 : index
    %c0_417 = arith.constant 0 : index
    %1122 = vector.load %arg2[%1121, %c0_416, %c0_417] : memref<8x8x16xf32, #tpu.memory_space<vmem>>, vector<1x8x16xf32>
    %1123 = vector.shape_cast %1122 : vector<1x8x16xf32> to vector<8x16xf32>
    %1124 = math.log %973 : vector<8x16xf32>
    %cst_418 = arith.constant -1.000000e+02 : f32
    %1125 = vector.broadcast %cst_418 : f32 to vector<8x16xf32>
    %1126 = arith.maximumf %1124, %1125 : vector<8x16xf32>
    %cst_419 = arith.constant 1.000000e+00 : f32
    %1127 = vector.broadcast %cst_419 : f32 to vector<8x16xf32>
    %1128 = arith.subf %1127, %973 : vector<8x16xf32>
    %1129 = math.log %1128 : vector<8x16xf32>
    %cst_420 = arith.constant -1.000000e+02 : f32
    %1130 = vector.broadcast %cst_420 : f32 to vector<8x16xf32>
    %1131 = arith.maximumf %1129, %1130 : vector<8x16xf32>
    %1132 = arith.mulf %1123, %1126 : vector<8x16xf32>
    %cst_421 = arith.constant 1.000000e+00 : f32
    %1133 = vector.broadcast %cst_421 : f32 to vector<8x16xf32>
    %1134 = arith.subf %1133, %1123 : vector<8x16xf32>
    %1135 = arith.mulf %1134, %1131 : vector<8x16xf32>
    %1136 = arith.addf %1132, %1135 : vector<8x16xf32>
    %cst_422 = arith.constant 0.000000e+00 : f32
    %1137 = vector.broadcast %cst_422 : f32 to vector<8x16xf32>
    %1138 = arith.subf %1137, %1136 : vector<8x16xf32>
    %cst_423 = arith.constant dense<0.000000e+00> : vector<8x8xf32>
    %1139 = tpu.matmul %1138, %46, %cst_423 {dimension_numbers = #tpu.dot_dimension_numbers<[1], [0], [0], [1], [0, 0, 1, 1], [], []>} : vector<8x16xf32>, vector<16x8xf32>, vector<8x8xf32> -> vector<8x8xf32>
    %cst_424 = arith.constant 0.000000e+00 : f32
    %1140 = vector.broadcast %cst_424 : f32 to vector<8x16xf32>
    %cst_425 = arith.constant 0.000000e+00 : f32
    %1141 = vector.broadcast %cst_425 : f32 to vector<8x1xf32>
    %1142 = vector.extract_strided_slice %47 {offsets = [0, 0], sizes = [1, 8], strides = [1, 1]} : vector<4x8xf32> to vector<1x8xf32>
    %1143 = vector.broadcast %1142 : vector<1x8xf32> to vector<8x8xf32>
    %1144 = arith.subf %1139, %1143 : vector<8x8xf32>
    %1145 = arith.mulf %1144, %1144 : vector<8x8xf32>
    %cst_426 = arith.constant dense<0.000000e+00> : vector<8xf32>
    %1146 = vector.multi_reduction <add>, %1145, %cst_426 [1] : vector<8x8xf32> to vector<8xf32>
    %1147 = vector.shape_cast %1146 : vector<8xf32> to vector<8x1xf32>
    %cst_427 = arith.constant 0.000000e+00 : f32
    %1148 = vector.broadcast %cst_427 : f32 to vector<8x1xf32>
    %1149 = arith.subf %1148, %1147 : vector<8x1xf32>
    %1150 = math.exp %1149 : vector<8x1xf32>
    %1151 = math.exp %1150 : vector<8x1xf32>
    %1152 = arith.addf %1141, %1151 : vector<8x1xf32>
    %1153 = vector.extract_strided_slice %1117 {offsets = [0, 16], sizes = [8, 16], strides = [1, 1]} : vector<8x80xf32> to vector<8x16xf32>
    %1154 = vector.broadcast %1151 : vector<8x1xf32> to vector<8x16xf32>
    %1155 = arith.mulf %1154, %1153 : vector<8x16xf32>
    %1156 = arith.addf %1140, %1155 : vector<8x16xf32>
    %1157 = vector.extract_strided_slice %47 {offsets = [1, 0], sizes = [1, 8], strides = [1, 1]} : vector<4x8xf32> to vector<1x8xf32>
    %1158 = vector.broadcast %1157 : vector<1x8xf32> to vector<8x8xf32>
    %1159 = arith.subf %1139, %1158 : vector<8x8xf32>
    %1160 = arith.mulf %1159, %1159 : vector<8x8xf32>
    %cst_428 = arith.constant dense<0.000000e+00> : vector<8xf32>
    %1161 = vector.multi_reduction <add>, %1160, %cst_428 [1] : vector<8x8xf32> to vector<8xf32>
    %1162 = vector.shape_cast %1161 : vector<8xf32> to vector<8x1xf32>
    %cst_429 = arith.constant 0.000000e+00 : f32
    %1163 = vector.broadcast %cst_429 : f32 to vector<8x1xf32>
    %1164 = arith.subf %1163, %1162 : vector<8x1xf32>
    %1165 = math.exp %1164 : vector<8x1xf32>
    %1166 = math.exp %1165 : vector<8x1xf32>
    %1167 = arith.addf %1152, %1166 : vector<8x1xf32>
    %1168 = vector.extract_strided_slice %1117 {offsets = [0, 32], sizes = [8, 16], strides = [1, 1]} : vector<8x80xf32> to vector<8x16xf32>
    %1169 = vector.broadcast %1166 : vector<8x1xf32> to vector<8x16xf32>
    %1170 = arith.mulf %1169, %1168 : vector<8x16xf32>
    %1171 = arith.addf %1156, %1170 : vector<8x16xf32>
    %1172 = vector.extract_strided_slice %47 {offsets = [2, 0], sizes = [1, 8], strides = [1, 1]} : vector<4x8xf32> to vector<1x8xf32>
    %1173 = vector.broadcast %1172 : vector<1x8xf32> to vector<8x8xf32>
    %1174 = arith.subf %1139, %1173 : vector<8x8xf32>
    %1175 = arith.mulf %1174, %1174 : vector<8x8xf32>
    %cst_430 = arith.constant dense<0.000000e+00> : vector<8xf32>
    %1176 = vector.multi_reduction <add>, %1175, %cst_430 [1] : vector<8x8xf32> to vector<8xf32>
    %1177 = vector.shape_cast %1176 : vector<8xf32> to vector<8x1xf32>
    %cst_431 = arith.constant 0.000000e+00 : f32
    %1178 = vector.broadcast %cst_431 : f32 to vector<8x1xf32>
    %1179 = arith.subf %1178, %1177 : vector<8x1xf32>
    %1180 = math.exp %1179 : vector<8x1xf32>
    %1181 = math.exp %1180 : vector<8x1xf32>
    %1182 = arith.addf %1167, %1181 : vector<8x1xf32>
    %1183 = vector.extract_strided_slice %1117 {offsets = [0, 48], sizes = [8, 16], strides = [1, 1]} : vector<8x80xf32> to vector<8x16xf32>
    %1184 = vector.broadcast %1181 : vector<8x1xf32> to vector<8x16xf32>
    %1185 = arith.mulf %1184, %1183 : vector<8x16xf32>
    %1186 = arith.addf %1171, %1185 : vector<8x16xf32>
    %1187 = vector.extract_strided_slice %47 {offsets = [3, 0], sizes = [1, 8], strides = [1, 1]} : vector<4x8xf32> to vector<1x8xf32>
    %1188 = vector.broadcast %1187 : vector<1x8xf32> to vector<8x8xf32>
    %1189 = arith.subf %1139, %1188 : vector<8x8xf32>
    %1190 = arith.mulf %1189, %1189 : vector<8x8xf32>
    %cst_432 = arith.constant dense<0.000000e+00> : vector<8xf32>
    %1191 = vector.multi_reduction <add>, %1190, %cst_432 [1] : vector<8x8xf32> to vector<8xf32>
    %1192 = vector.shape_cast %1191 : vector<8xf32> to vector<8x1xf32>
    %cst_433 = arith.constant 0.000000e+00 : f32
    %1193 = vector.broadcast %cst_433 : f32 to vector<8x1xf32>
    %1194 = arith.subf %1193, %1192 : vector<8x1xf32>
    %1195 = math.exp %1194 : vector<8x1xf32>
    %1196 = math.exp %1195 : vector<8x1xf32>
    %1197 = arith.addf %1182, %1196 : vector<8x1xf32>
    %1198 = vector.extract_strided_slice %1117 {offsets = [0, 64], sizes = [8, 16], strides = [1, 1]} : vector<8x80xf32> to vector<8x16xf32>
    %1199 = vector.broadcast %1196 : vector<8x1xf32> to vector<8x16xf32>
    %1200 = arith.mulf %1199, %1198 : vector<8x16xf32>
    %1201 = arith.addf %1186, %1200 : vector<8x16xf32>
    %1202 = vector.broadcast %1197 : vector<8x1xf32> to vector<8x16xf32>
    %1203 = arith.divf %1201, %1202 : vector<8x16xf32>
    %c0_i32_434 = arith.constant 0 : i32
    %1204 = arith.cmpi eq, %c7_i32, %c0_i32_434 : i32
    %1205 = arith.select %1204, %1118, %1203 : vector<8x16xf32>
    %1206 = arith.index_cast %c7_i32 : i32 to index
    %c0_435 = arith.constant 0 : index
    %c0_436 = arith.constant 0 : index
    %1207 = vector.load %arg12[%1206, %c0_435, %c0_436] : memref<8x8x16xf32, #tpu.memory_space<vmem>>, vector<1x8x16xf32>
    %1208 = vector.shape_cast %1207 : vector<1x8x16xf32> to vector<8x16xf32>
    %1209 = vector.shape_cast %1205 : vector<8x16xf32> to vector<1x8x16xf32>
    tpu.vector_store %arg12[%1206, %c0_435, %c0_436], %1209 {strides = array<i32>} : memref<8x8x16xf32, #tpu.memory_space<vmem>>, vector<1x8x16xf32>,
    %c8_i32_437 = arith.constant 8 : i32
    return
  }
  func.func @transform_0(%arg0: i32) -> (i32, i32) {
    %c0_i32 = arith.constant 0 : i32
    %c0_i32_0 = arith.constant 0 : i32
    %c0_i32_1 = arith.constant 0 : i32
    return %c0_i32, %c0_i32_0 : i32, i32
  }
  func.func @transform_1(%arg0: i32) -> (i32, i32, i32) {
    %c0_i32 = arith.constant 0 : i32
    %c0_i32_0 = arith.constant 0 : i32
    %c0_i32_1 = arith.constant 0 : i32
    %c0_i32_2 = arith.constant 0 : i32
    return %c0_i32, %c0_i32_0, %c0_i32_1 : i32, i32, i32
  }
  func.func @transform_2(%arg0: i32) -> (i32, i32, i32) {
    %c0_i32 = arith.constant 0 : i32
    %c0_i32_0 = arith.constant 0 : i32
    %c0_i32_1 = arith.constant 0 : i32
    %c0_i32_2 = arith.constant 0 : i32
    return %c0_i32, %c0_i32_0, %c0_i32_1 : i32, i32, i32
  }
  func.func @transform_3(%arg0: i32) -> (i32, i32, i32) {
    %c0_i32 = arith.constant 0 : i32
    %c0_i32_0 = arith.constant 0 : i32
    %c0_i32_1 = arith.constant 0 : i32
    %c0_i32_2 = arith.constant 0 : i32
    return %c0_i32, %c0_i32_0, %c0_i32_1 : i32, i32, i32
  }
  func.func @transform_4(%arg0: i32) -> (i32, i32, i32) {
    %c0_i32 = arith.constant 0 : i32
    %c0_i32_0 = arith.constant 0 : i32
    %c0_i32_1 = arith.constant 0 : i32
    %c0_i32_2 = arith.constant 0 : i32
    return %c0_i32, %c0_i32_0, %c0_i32_1 : i32, i32, i32
  }
  func.func @transform_5(%arg0: i32) -> (i32, i32, i32) {
    %c0_i32 = arith.constant 0 : i32
    %c0_i32_0 = arith.constant 0 : i32
    %c0_i32_1 = arith.constant 0 : i32
    %c0_i32_2 = arith.constant 0 : i32
    return %c0_i32, %c0_i32_0, %c0_i32_1 : i32, i32, i32
  }
  func.func @transform_6(%arg0: i32) -> (i32, i32) {
    %c0_i32 = arith.constant 0 : i32
    %c0_i32_0 = arith.constant 0 : i32
    %c0_i32_1 = arith.constant 0 : i32
    return %c0_i32, %c0_i32_0 : i32, i32
  }
  func.func @transform_7(%arg0: i32) -> (i32, i32) {
    %c0_i32 = arith.constant 0 : i32
    %c0_i32_0 = arith.constant 0 : i32
    %c0_i32_1 = arith.constant 0 : i32
    return %c0_i32, %c0_i32_0 : i32, i32
  }
  func.func @transform_8(%arg0: i32) -> (i32, i32) {
    %c0_i32 = arith.constant 0 : i32
    %c0_i32_0 = arith.constant 0 : i32
    %c0_i32_1 = arith.constant 0 : i32
    return %c0_i32, %c0_i32_0 : i32, i32
  }
  func.func @transform_9(%arg0: i32) -> (i32, i32) {
    %c0_i32 = arith.constant 0 : i32
    %c0_i32_0 = arith.constant 0 : i32
    %c0_i32_1 = arith.constant 0 : i32
    return %c0_i32, %c0_i32_0 : i32, i32
  }
  func.func @transform_10(%arg0: i32) -> (i32, i32) {
    %c0_i32 = arith.constant 0 : i32
    %c0_i32_0 = arith.constant 0 : i32
    %c0_i32_1 = arith.constant 0 : i32
    return %c0_i32, %c0_i32_0 : i32, i32
  }
  func.func @transform_11(%arg0: i32) -> (i32, i32, i32) {
    %c0_i32 = arith.constant 0 : i32
    %c0_i32_0 = arith.constant 0 : i32
    %c0_i32_1 = arith.constant 0 : i32
    %c0_i32_2 = arith.constant 0 : i32
    return %c0_i32, %c0_i32_0, %c0_i32_1 : i32, i32, i32
  }
}

</mosaic_0001>

<bundles_post_ra>
// kernel: subgroup_grus_forward.1
= control target key start
LH: loop header
LB: loop body
LE: loop exit
PB: predicated region body
PF: predicated region fallthrough
CT: control target
= control target key end

     0   :  { %v11741_v1 = vmov 0   ;;  %vm91_vm0 = vcmask 130048   ;;  %vm178_vm1 = vcmask 261120   ;;  %vm8954_vm2 = vmmov 0   ;;  %s8956_s12 = smov 96   ;;  %s8957_s13 = smov 112   ;;  %s11725_s2 = inlined_call_operand.vmem [shape: bf16[3,16,160], index: 2, kind: input, shape index: {}]   ;;  %s11726_s0 = inlined_call_operand.vmem [shape: bf16[64,16], index: 0, kind: input, shape index: {}]   ;;  %s11727_s4 = inlined_call_operand.vmem [shape: bf16[3,160,160], index: 4, kind: input, shape index: {}]   ;;  %s11728_s8 = inlined_call_operand.vmem [shape: f32[8,160], index: 8, kind: input, shape index: {}]   ;;  %s11729_s6 = inlined_call_operand.vmem [shape: bf16[160,80], index: 6, kind: input, shape index: {}]   ;;  %s11730_s3 = inlined_call_operand.vmem [shape: f32[3,1,160], index: 3, kind: input, shape index: {}]   ;;  %s11731_s5 = inlined_call_operand.vmem [shape: f32[3,1,160], index: 5, kind: input, shape index: {}]   ;;  %s11732_s9 = inlined_call_operand.vmem [shape: f32[16,8], index: 9, kind: input, shape index: {}]   ;;  %s11733_s7 = inlined_call_operand.vmem [shape: f32[1,80], index: 7, kind: input, shape index: {}]   ;;  %s11734_s11 = inlined_call_operand.vmem [shape: f32[8,8,16], index: 11, kind: output, shape index: {}]   ;;  %s11735_s1 = inlined_call_operand.vmem [shape: f32[8,8,16], index: 1, kind: input, shape index: {}]   ;;  %s11736_s10 = inlined_call_operand.vmem [shape: f32[4,8], index: 10, kind: input, shape index: {}]  }
   0x1   :  { %v8109_v0 = vld [vmem:[%s11725_s2 + $0x4] ss:$8 sps:$4 sm:$0xff]   ;;  %136 = vmatprep.mubr.bf16.mxu0 %v11741_v1  ;;  %252 = vmatprep.mubr.bf16.mxu1 %v11741_v1  ;;  %v8111_v2 = vld [vmem:[%s11725_s2 + $0x14] ss:$8 sps:$4 sm:$0xff]   ;;  %v8113_v3 = vld [vmem:[%s11725_s2] ss:$8 sps:$4 sm:$0xff]  }
   0x2   :  { %104 = vmatprep.subr.bf16.mxu0 %v8109_v0  ;;  %v8114_v4 = vld [vmem:[%s11725_s2 + $0x10] ss:$8 sps:$4 sm:$0xff]   ;;  %220 = vmatprep.subr.bf16.mxu1 %v8111_v2  ;;  %v9036_v5 = vld [vmem:[%s11726_s0] sm:$0xff]   ;;  %v9061_v10 = vld [vmem:[%s11727_s4 + $0x14] ss:$8 sps:$4 sm:$0xff]   ;;  %vm1918_vm3 = vcmask 64512  }
   0x3   :  { %105 = vmatpush1.bf16.msra.mxu0 %v8113_v3  ;;  %221 = vmatpush1.bf16.msra.mxu1 %v8114_v4  ;;  %v8116_v6 = vld [vmem:[%s11725_s2 + $0x20] ss:$8 sps:$4 sm:$0xff]   ;;  %v8118_v7 = vld [vmem:[%s11725_s2 + $0x24] ss:$8 sps:$4 sm:$0xff]   ;;  %v9068_v11 = vld [vmem:[%s11727_s4 + $0x10] ss:$8 sps:$4 sm:$0xff]  }
   0x4   :  { %v9047_v8 = vld [vmem:[%s11727_s4] ss:$8 sps:$4 sm:$0xff]   ;;  %336 = vmatprep.subr.bf16.mxu0 %v8118_v7  ;;  %v9052_v9 = vld [vmem:[%s11727_s4 + $0x4] ss:$8 sps:$4 sm:$0xff]   ;;  %v9093_v15 = vld [vmem:[%s11727_s4 + $0x34] ss:$8 sps:$4 sm:$0xff]  }
   0x5   :  { %616 = vmatprep.subr.bf16.mxu1 %v9052_v9  ;;  %v9075_v12 = vld [vmem:[%s11727_s4 + $0x24] ss:$8 sps:$4 sm:$0xff]   ;;  %v9087_v14 = vld [vmem:[%s11727_s4 + $0x20] ss:$8 sps:$4 sm:$0xff]   ;;  %v9105_v16 = vld [vmem:[%s11727_s4 + $0x30] ss:$8 sps:$4 sm:$0xff]  }
   0x6   :  { %7014 = vmatmul.mubr.msk.bf16.vlgmr.msra.gmra.mrb[0].mxu0 %vm91_vm0, %v9036_v5  ;;  %7023 = vmatmul.mubr.msk.bf16.vlgmr.msra.gmra.mrb[0].mxu1 %vm91_vm0, %v9036_v5  ;;  %v9081_v13 = vld [vmem:[%s11726_s0 + $0x8] sm:$0xff]   ;;  %v9116_v18 = vld [vmem:[%s11726_s0 + $0x10] sm:$0xff]   ;;  %v9157_v25 = vld [vmem:[%s11726_s0 + $0x18] sm:$0xff]   ;;  %s8958_s14 = smov 80  }
   0x7   :  { %337 = vmatpush1.bf16.msra.mxu0 %v8116_v6  ;;  %617 = vmatpush1.bf16.msra.mxu1 %v9047_v8  ;;  %v9111_v17 = vld [vmem:[%s11727_s4 + $0x44] ss:$8 sps:$4 sm:$0xff]   ;;  %v9125_v20 = vld [vmem:[%s11727_s4 + $0x40] ss:$8 sps:$4 sm:$0xff]   ;;  %v9131_v21 = vld [vmem:[%s11727_s4 + $0x54] ss:$8 sps:$4 sm:$0xff]  }
   0x8   :  { %146 = vmatprep.mubr.bf16.mxu0 %v11741_v1  ;;  %618 = vmatprep.subr.bf16.mxu1 %v9061_v10  ;;  %v8148_v19 = vld [vmem:[%s11727_s4 + $0xa4] ss:$8 sps:$4 sm:$0xff]   ;;  %v9143_v22 = vld [vmem:[%s11727_s4 + $0x50] ss:$8 sps:$4 sm:$0xff]   ;;  %v9165_v27 = vld [vmem:[%s11727_s4 + $0x60] ss:$8 sps:$4 sm:$0xff]  }
   0x9   :  { %262 = vmatprep.mubr.bf16.mxu1 %v11741_v1  ;;  %778 = vmatprep.subr.bf16.mxu0 %v8148_v19  ;;  %v475_v23 = vld [vmem:[%s11728_s8 + $0x8] sm:$0xff]  ;;  %v9171_v28 = vld [vmem:[%s11727_s4 + $0x74] ss:$8 sps:$4 sm:$0xff]   ;;  %v9184_v29 = vld [vmem:[%s11727_s4 + $0x70] ss:$8 sps:$4 sm:$0xff]  }
   0xa   :  { %v9152_v24 = vld [vmem:[%s11727_s4 + $0x64] ss:$8 sps:$4 sm:$0xff]   ;;  %v9159_v26 = vpack.c.bf16 %v475_v23, %v475_v23  ;;  %v8146_v31 = vld [vmem:[%s11727_s4 + $0xa0] ss:$8 sps:$4 sm:$0xff]   ;;  %v8154_v33 = vld [vmem:[%s11727_s4 + $0xb4] ss:$8 sps:$4 sm:$0xff]  }
   0xb   :  { %619 = vmatpush1.bf16.msra.mxu1 %v9068_v11  ;;  %v9190_v30 = vld [vmem:[%s11727_s4 + $0x84] ss:$8 sps:$4 sm:$0xff]   ;;  %v9199_v32 = vld [vmem:[%s11727_s4 + $0x80] ss:$8 sps:$4 sm:$0xff]   ;;  %v9208_v34 = vld [vmem:[%s11727_s4 + $0x94] ss:$8 sps:$4 sm:$0xff]  }
   0xc   :  { %620 = vmatprep.subr.bf16.mxu1 %v9075_v12  ;;  %v8152_v35 = vld [vmem:[%s11727_s4 + $0xb0] ss:$8 sps:$4 sm:$0xff]   ;;  %v474_v37 = vld [vmem:[%s11728_s8] sm:$0xff]  ;;  %v8166_v43 = vld [vmem:[%s11727_s4 + $0xd4] ss:$8 sps:$4 sm:$0xff]  }
   0xd   :  { %v9218_v36 = vld [vmem:[%s11727_s4 + $0x90] ss:$8 sps:$4 sm:$0xff]   ;;  %v8160_v38 = vld [vmem:[%s11727_s4 + $0xc4] ss:$8 sps:$4 sm:$0xff]   ;;  %v9234_v40 = vpack.c.bf16 %v474_v37, %v474_v37  ;;  %v8158_v41 = vld [vmem:[%s11727_s4 + $0xc0] ss:$8 sps:$4 sm:$0xff]  }
   0xe   :  { %7015 = vmatmul.mubr.msk.bf16.gmra.mrb[4].mxu0 %vm91_vm0, %v9081_v13  ;;  %7024 = vmatmul.mubr.msk.bf16.gmra.mrb[4].mxu1 %vm91_vm0, %v9081_v13  ;;  %v9232_v39 = vld [vmem:[%s11727_s4 + $0x144] ss:$8 sps:$4 sm:$0xff]   ;;  %v8161_v42 = vld [vmem:[%s11727_s4 + $0x140] ss:$8 sps:$4 sm:$0xff]   ;;  %v8169_v44 = vld [vmem:[%s11727_s4 + $0x154] ss:$8 sps:$4 sm:$0xff]  }
   0xf   :  { %156 = vmatprep.mubr.bf16.mxu0 %v11741_v1  ;;  %272 = vmatprep.mubr.bf16.mxu1 %v11741_v1  ;;  %v8164_v45 = vld [vmem:[%s11727_s4 + $0xd0] ss:$8 sps:$4 sm:$0xff]   ;;  %v8172_v47 = vld [vmem:[%s11727_s4 + $0xe4] ss:$8 sps:$4 sm:$0xff]   ;;  %v8170_v49 = vld [vmem:[%s11727_s4 + $0xe0] ss:$8 sps:$4 sm:$0xff]  }
  0x10   :  { %621 = vmatpush1.bf16.msra.mxu1 %v9087_v14  ;;  %v8167_v46 = vld [vmem:[%s11727_s4 + $0x150] ss:$8 sps:$4 sm:$0xff]   ;;  %v8175_v48 = vld [vmem:[%s11727_s4 + $0x164] ss:$8 sps:$4 sm:$0xff]   ;;  %v8173_v50 = vld [vmem:[%s11727_s4 + $0x160] ss:$8 sps:$4 sm:$0xff]  }
  0x11   :  { %622 = vmatprep.subr.bf16.mxu1 %v9093_v15  ;;  %v8178_v51 = vld [vmem:[%s11727_s4 + $0xf4] ss:$8 sps:$4 sm:$0xff]   ;;  %v8176_v53 = vld [vmem:[%s11727_s4 + $0xf0] ss:$8 sps:$4 sm:$0xff]   ;;  %v8184_v55 = vld [vmem:[%s11727_s4 + $0x104] ss:$8 sps:$4 sm:$0xff]  }
  0x12   :  { %v8181_v52 = vld [vmem:[%s11727_s4 + $0x174] ss:$8 sps:$4 sm:$0xff]   ;;  %v8179_v54 = vld [vmem:[%s11727_s4 + $0x170] ss:$8 sps:$4 sm:$0xff]   ;;  %v8187_v56 = vld [vmem:[%s11727_s4 + $0x184] ss:$8 sps:$4 sm:$0xff]  }
  0x13   :  { %v8182_v57 = vld [vmem:[%s11727_s4 + $0x100] ss:$8 sps:$4 sm:$0xff]   ;;  %v8190_v59 = vld [vmem:[%s11727_s4 + $0x114] ss:$8 sps:$4 sm:$0xff]   ;;  %v8188_v61 = vld [vmem:[%s11727_s4 + $0x110] ss:$8 sps:$4 sm:$0xff]  }
  0x14   :  { %623 = vmatpush1.bf16.msra.mxu1 %v9105_v16  ;;  %v8185_v58 = vld [vmem:[%s11727_s4 + $0x180] ss:$8 sps:$4 sm:$0xff]   ;;  %v8193_v60 = vld [vmem:[%s11727_s4 + $0x194] ss:$8 sps:$4 sm:$0xff]   ;;  %v8191_v62 = vld [vmem:[%s11727_s4 + $0x190] ss:$8 sps:$4 sm:$0xff]  }
  0x15   :  { %624 = vmatprep.subr.bf16.mxu1 %v9111_v17  ;;  %v8196_v63 = vld [vmem:[%s11727_s4 + $0x124] ss:$8 sps:$4 sm:$0xff]   ;;  %v8194_v2 = vld [vmem:[%s11727_s4 + $0x120] ss:$8 sps:$4 sm:$0xff]   ;;  %v8202_v4 = vld [vmem:[%s11727_s4 + $0x134] ss:$8 sps:$4 sm:$0xff]  }
  0x16   :  { %7016 = vmatmul.mubr.msk.bf16.gmra.mrb[8].mxu0 %vm91_vm0, %v9116_v18  ;;  %7025 = vmatmul.mubr.msk.bf16.gmra.mrb[8].mxu1 %vm91_vm0, %v9116_v18  ;;  %v8199_v0 = vld [vmem:[%s11727_s4 + $0x1a4] ss:$8 sps:$4 sm:$0xff]   ;;  %v8197_v3 = vld [vmem:[%s11727_s4 + $0x1a0] ss:$8 sps:$4 sm:$0xff]   ;;  %v8200_v6 = vld [vmem:[%s11727_s4 + $0x130] ss:$8 sps:$4 sm:$0xff]  }
  0x17   :  { %166 = vmatprep.mubr.bf16.mxu0 %v11741_v1  ;;  %282 = vmatprep.mubr.bf16.mxu1 %v11741_v1  ;;  %v8203_v7 = vld [vmem:[%s11727_s4 + $0x1b0] ss:$8 sps:$4 sm:$0xff]   ;;  %v8211_v19 = vld [vmem:[%s11727_s4 + $0x1d4] ss:$8 sps:$4 sm:$0xff]  }
  0x18   :  { %625 = vmatpush1.bf16.msra.mxu1 %v9125_v20  ;;  %v8209_v23 = vld [vmem:[%s11727_s4 + $0x1d0] ss:$8 sps:$4 sm:$0xff]  }
  0x19   :  { %626 = vmatprep.subr.bf16.mxu1 %v9131_v21 }
  0x1c   :  { %627 = vmatpush1.bf16.msra.mxu1 %v9143_v22 }
  0x1d   :  { %628 = vmatprep.subr.bf16.mxu1 %v9152_v24 }
  0x1e   :  { %7017 = vmatmul.mubr.msk.bf16.gmra.mrb[12].mxu0 %vm91_vm0, %v9157_v25  ;;  %7026 = vmatmul.mubr.msk.bf16.gmra.mrb[12].mxu1 %vm91_vm0, %v9157_v25 }
  0x1f   :  { %368 = vmatprep.mubr.bf16.mxu0 %v11741_v1  ;;  %7059 = vmatprep.mubr.msk.bf16.mxu1 %vm178_vm1, %v9159_v26 }
  0x20   :  { %629 = vmatpush1.bf16.msra.mxu1 %v9165_v27 }
  0x21   :  { %630 = vmatprep.subr.bf16.mxu1 %v9171_v28 }
  0x24   :  { %631 = vmatpush1.bf16.msra.mxu1 %v9184_v29 }
  0x25   :  { %632 = vmatprep.subr.bf16.mxu1 %v9190_v30 }
  0x26   :  { %7032 = vmatmul.mubr.msk.bf16.vlgmr.msra.gmra.mrb[16].mxu0 %vm91_vm0, %v9036_v5  ;;  %v8205_v5 = vld [vmem:[%s11727_s4 + $0x1b4] ss:$8 sps:$4 sm:$0xff]  }
  0x27   :  { %779 = vmatpush1.bf16.msra.mxu0 %v8146_v31  ;;  %378 = vmatprep.mubr.bf16.mxu0 %v11741_v1 }
  0x28   :  { %633 = vmatpush1.bf16.msra.mxu1 %v9199_v32  ;;  %780 = vmatprep.subr.bf16.mxu0 %v8154_v33 }
  0x29   :  { %634 = vmatprep.subr.bf16.mxu1 %v9208_v34 }
  0x2b   :  { %781 = vmatpush1.bf16.msra.mxu0 %v8152_v35 }
  0x2c   :  { %635 = vmatpush1.bf16.msra.mxu1 %v9218_v36  ;;  %782 = vmatprep.subr.bf16.mxu0 %v8160_v38 }
  0x2d   :  { %940 = vmatprep.subr.bf16.mxu1 %v9232_v39 }
  0x2e   :  { %7033 = vmatmul.mubr.msk.bf16.gmra.mrb[20].mxu0 %vm91_vm0, %v9081_v13  ;;  %v8208_v13 = vld [vmem:[%s11727_s4 + $0x1c4] ss:$8 sps:$4 sm:$0xff]  }
  0x2f   :  { %649 = vmatmul.mubr.bf16.vlgmr.msra.gmra.mrb[16].mxu1 %v9234_v40  ;;  %783 = vmatpush1.bf16.msra.mxu0 %v8158_v41 }
  0x30   :  { %941 = vmatpush1.bf16.msra.mxu1 %v8161_v42  ;;  %784 = vmatprep.subr.bf16.mxu0 %v8166_v43 }
  0x31   :  { %942 = vmatprep.subr.bf16.mxu1 %v8169_v44  ;;  %388 = vmatprep.mubr.bf16.mxu0 %v11741_v1 }
  0x32   :  { %7141 = vmatprep.mubr.msk.bf16.mxu1 %vm178_vm1, %v9159_v26 }
  0x33   :  { %785 = vmatpush1.bf16.msra.mxu0 %v8164_v45 }
  0x34   :  { %943 = vmatpush1.bf16.msra.mxu1 %v8167_v46  ;;  %786 = vmatprep.subr.bf16.mxu0 %v8172_v47 }
  0x35   :  { %944 = vmatprep.subr.bf16.mxu1 %v8175_v48 }
  0x36   :  { %7034 = vmatmul.mubr.msk.bf16.gmra.mrb[24].mxu0 %vm91_vm0, %v9116_v18  ;;  %v8206_v18 = vld [vmem:[%s11727_s4 + $0x1c0] ss:$8 sps:$4 sm:$0xff]  }
  0x37   :  { %787 = vmatpush1.bf16.msra.mxu0 %v8170_v49  ;;  %398 = vmatprep.mubr.bf16.mxu0 %v11741_v1 }
  0x38   :  { %945 = vmatpush1.bf16.msra.mxu1 %v8173_v50  ;;  %788 = vmatprep.subr.bf16.mxu0 %v8178_v51 }
  0x39   :  { %946 = vmatprep.subr.bf16.mxu1 %v8181_v52 }
  0x3b   :  { %789 = vmatpush1.bf16.msra.mxu0 %v8176_v53 }
  0x3c   :  { %947 = vmatpush1.bf16.msra.mxu1 %v8179_v54  ;;  %790 = vmatprep.subr.bf16.mxu0 %v8184_v55 }
  0x3d   :  { %948 = vmatprep.subr.bf16.mxu1 %v8187_v56 }
  0x3e   :  { %7035 = vmatmul.mubr.msk.bf16.gmra.mrb[28].mxu0 %vm91_vm0, %v9157_v25  ;;  %v8221_v25 = vld [vmem:[%s11729_s6 + $0x48] sm:$0xff]  }
  0x3f   :  { %791 = vmatpush1.bf16.msra.mxu0 %v8182_v57  ;;  %7100 = vmatprep.mubr.msk.bf16.mxu0 %vm178_vm1, %v9159_v26  ;;  %v8908_v26 = vld [vmem:[%s11727_s4 + $0xa4] ss:$8 sps:$4 sm:$0xff]  }
  0x40   :  { %949 = vmatpush1.bf16.msra.mxu1 %v8185_v58  ;;  %792 = vmatprep.subr.bf16.mxu0 %v8190_v59 }
  0x41   :  { %950 = vmatprep.subr.bf16.mxu1 %v8193_v60 }
  0x43   :  { %793 = vmatpush1.bf16.msra.mxu0 %v8188_v61 }
  0x44   :  { %951 = vmatpush1.bf16.msra.mxu1 %v8191_v62  ;;  %794 = vmatprep.subr.bf16.mxu0 %v8196_v63 }
  0x45   :  { %952 = vmatprep.subr.bf16.mxu1 %v8199_v0 }
  0x47   :  { %795 = vmatpush1.bf16.msra.mxu0 %v8194_v2 }
  0x48   :  { %953 = vmatpush1.bf16.msra.mxu1 %v8197_v3  ;;  %796 = vmatprep.subr.bf16.mxu0 %v8202_v4 }
  0x49   :  { %954 = vmatprep.subr.bf16.mxu1 %v8205_v5 }
  0x4b   :  { %797 = vmatpush1.bf16.msra.mxu0 %v8200_v6 }
  0x4c   :  { %955 = vmatpush1.bf16.msra.mxu1 %v8203_v7  ;;  %1108 = vmatprep.subr.bf16.mxu0 %v11741_v1 }
  0x4d   :  { %956 = vmatprep.subr.bf16.mxu1 %v8208_v13 }
  0x4e   :  { %811 = vmatmul.mubr.bf16.vlgmr.msra.gmra.mrb[32].mxu0 %v9234_v40 }
  0x50   :  { %957 = vmatpush1.bf16.msra.mxu1 %v8206_v18 }
  0x51   :  { %958 = vmatprep.subr.bf16.mxu1 %v8211_v19 }
  0x54   :  { %959 = vmatpush1.bf16.msra.mxu1 %v8209_v23 }
  0x55   :  { %1290 = vmatprep.subr.bf16.mxu1 %v9052_v9  ;;  %v8213_v9 = vld [vmem:[%s11729_s6 + $0x8] sm:$0xff]  }
  0x57   :  { %973 = vmatmul.mubr.bf16.vlgmr.msra.gmra.mrb[20].mxu1 %v9234_v40 }
  0x58   :  { %1291 = vmatpush1.bf16.msra.mxu1 %v9047_v8  ;;  %v8212_v8 = vld [vmem:[%s11729_s6] sm:$0xff]  }
  0x59   :  { %1292 = vmatprep.subr.bf16.mxu1 %v9061_v10  ;;  %1109 = vmatpush1.bf16.msra.mxu0 %v8212_v8  ;;  %v8214_v10 = vld [vmem:[%s11729_s6 + $0x10] sm:$0xff]  }
  0x5a   :  { %1110 = vmatprep.subr.bf16.mxu0 %v11741_v1 }
  0x5c   :  { %1293 = vmatpush1.bf16.msra.mxu1 %v9068_v11  ;;  %v51_v11 = vlaneseq }
  0x5d   :  { %1294 = vmatprep.subr.bf16.mxu1 %v9075_v12  ;;  %1111 = vmatpush1.bf16.msra.mxu0 %v8213_v9  ;;  %v8215_v12 = vld [vmem:[%s11729_s6 + $0x18] sm:$0xff]  }
  0x5e   :  { %1112 = vmatprep.subr.bf16.mxu0 %v11741_v1 }
  0x60   :  { %1295 = vmatpush1.bf16.msra.mxu1 %v9087_v14  ;;  %v9393_v14 = vshrl.u32 %v51_v11, 7 }
  0x61   :  { %1296 = vmatprep.subr.bf16.mxu1 %v9093_v15  ;;  %1113 = vmatpush1.bf16.msra.mxu0 %v8214_v10  ;;  %v8216_v15 = vld [vmem:[%s11729_s6 + $0x20] sm:$0xff]  }
  0x62   :  { %1114 = vmatprep.subr.bf16.mxu0 %v11741_v1 }
  0x64   :  { %1297 = vmatpush1.bf16.msra.mxu1 %v9105_v16  ;;  %v8217_v16 = vld [vmem:[%s11729_s6 + $0x28] sm:$0xff]  }
  0x65   :  { %1298 = vmatprep.subr.bf16.mxu1 %v9111_v17  ;;  %1115 = vmatpush1.bf16.msra.mxu0 %v8215_v12  ;;  %v8218_v17 = vld [vmem:[%s11729_s6 + $0x30] sm:$0xff]  }
  0x66   :  { %1116 = vmatprep.subr.bf16.mxu0 %v11741_v1 }
  0x68   :  { %1299 = vmatpush1.bf16.msra.mxu1 %v9125_v20  ;;  %v9406_v20 = vsub.s32 0, %v9393_v14 }
  0x69   :  { %1300 = vmatprep.subr.bf16.mxu1 %v9131_v21  ;;  %1117 = vmatpush1.bf16.msra.mxu0 %v8216_v15  ;;  %v9409_v21 = vsub.s32 1, %v9393_v14 }
  0x6a   :  { %1118 = vmatprep.subr.bf16.mxu0 %v11741_v1 }
  0x6c   :  { %1301 = vmatpush1.bf16.msra.mxu1 %v9143_v22  ;;  %v8219_v22 = vld [vmem:[%s11729_s6 + $0x38] sm:$0xff]  }
  0x6d   :  { %1302 = vmatprep.subr.bf16.mxu1 %v9152_v24  ;;  %1119 = vmatpush1.bf16.msra.mxu0 %v8217_v16  ;;  %v8220_v24 = vld [vmem:[%s11729_s6 + $0x40] sm:$0xff]  }
  0x6e   :  { %1120 = vmatprep.subr.bf16.mxu0 %v11741_v1 }
  0x70   :  { %1303 = vmatpush1.bf16.msra.mxu1 %v9165_v27  ;;  %v49_v27 = vld [vmem:[%s11730_s3] sm:$0x3] }
  0x71   :  { %1304 = vmatprep.subr.bf16.mxu1 %v9171_v28  ;;  %1121 = vmatpush1.bf16.msra.mxu0 %v8218_v17  ;;  %v7020_v28 = vld [vmem:[%s11730_s3 + $0x2] sm:$0x3]  ;;  %v9440_v31 = vrot.slane %v49_v27, %v9409_v21 }
  0x72   :  { %1122 = vmatprep.subr.bf16.mxu0 %v11741_v1 }
  0x74   :  { %1305 = vmatpush1.bf16.msra.mxu1 %v9184_v29  ;;  %v9434_v29 = vrot.slane %v49_v27, %v9406_v20 }
  0x75   :  { %1306 = vmatprep.subr.bf16.mxu1 %v9190_v30  ;;  %1123 = vmatpush1.bf16.msra.mxu0 %v8219_v22  ;;  %v9437_v30 = vrot.slane %v7020_v28, %v9406_v20 }
  0x76   :  { %1124 = vmatprep.subr.bf16.mxu0 %v11741_v1 }
  0x78   :  { %1307 = vmatpush1.bf16.msra.mxu1 %v9199_v32  ;;  %v9443_v32 = vrot.slane %v7020_v28, %v9409_v21 }
  0x79   :  { %1308 = vmatprep.subr.bf16.mxu1 %v9208_v34  ;;  %1125 = vmatpush1.bf16.msra.mxu0 %v8220_v24 }
  0x7a   :  { %1126 = vmatprep.subr.bf16.mxu0 %v11741_v1 }
  0x7c   :  { %1309 = vmatpush1.bf16.msra.mxu1 %v9218_v36 }
  0x7d   :  { %1612 = vmatprep.subr.bf16.mxu1 %v9232_v39  ;;  %1127 = vmatpush1.bf16.msra.mxu0 %v8221_v25 }
  0x7e   :  { %1451 = vmatprep.subr.bf16.mxu0 %v8908_v26 }
  0xd9   :  { %v138_v33 = vpop.f32.mrb[0].mxu0  ;;  %v254_v34 = vpop.f32.mrb[0].mxu1 }
  0xda   :  { %v9446_v35 = vadd.f32 %v138_v33, %v9434_v29  ;;  %v140_v36 = vpop.f32.mrb[1].mxu0  ;;  %v9449_v37 = vadd.f32 %v254_v34, %v9437_v30  ;;  %v256_v38 = vpop.f32.mrb[1].mxu1  ;;  %v7029_v33 = vld [vmem:[%s11730_s3 + $0x4] sm:$0x3] }
  0xdb   :  { %v141_v39 = vadd.f32 %v140_v36, %v9440_v31  ;;  %v142_v40 = vpop.f32.mrb[2].mxu0  ;;  %v257_v41 = vadd.f32 %v256_v38, %v9443_v32  ;;  %v258_v42 = vpop.f32.mrb[2].mxu1 }
  0xdc   :  { %v9454_v43 = vadd.f32 %v142_v40, %v9434_v29  ;;  %v144_v44 = vpop.f32.mrb[3].mxu0  ;;  %v9457_v45 = vadd.f32 %v258_v42, %v9437_v30  ;;  %v260_v46 = vpop.f32.mrb[3].mxu1 }
  0xdd   :  { %179 = vst.msk [vmem:[#allocation2 + $0x8] sm:$0xff] %vm178_vm1, %v141_v39  ;;  %v145_v47 = vadd.f32 %v144_v44, %v9440_v31  ;;  %295 = vst.msk [vmem:[#allocation2 + $0x88] sm:$0xff] %vm178_vm1, %v257_v41  ;;  %v261_v48 = vadd.f32 %v260_v46, %v9443_v32  ;;  %v319_v46 = vrot.slane %v7029_v33, %v9406_v20 }
  0xdf   :  { %181 = vst.msk [vmem:[#allocation2 + $0x18] sm:$0xff] %vm178_vm1, %v145_v47  ;;  %297 = vst.msk [vmem:[#allocation2 + $0x98] sm:$0xff] %vm178_vm1, %v261_v48 }
  0xe1   :  { %v148_v49 = vpop.f32.mrb[4].mxu0  ;;  %v264_v50 = vpop.f32.mrb[4].mxu1 }
  0xe2   :  { %v149_v51 = vadd.f32 %v148_v49, %v9434_v29  ;;  %v150_v52 = vpop.f32.mrb[5].mxu0  ;;  %v265_v53 = vadd.f32 %v264_v50, %v9437_v30  ;;  %v266_v54 = vpop.f32.mrb[5].mxu1 }
  0xe3   :  { %v151_v55 = vadd.f32 %v150_v52, %v9440_v31  ;;  %v152_v56 = vpop.f32.mrb[6].mxu0  ;;  %v267_v57 = vadd.f32 %v266_v54, %v9443_v32  ;;  %v268_v58 = vpop.f32.mrb[6].mxu1 }
  0xe4   :  { %182 = vst [vmem:[#allocation2 + $0x20] sm:$0xff] %v149_v51  ;;  %v153_v59 = vadd.f32 %v152_v56, %v9434_v29  ;;  %v154_v60 = vpop.f32.mrb[7].mxu0  ;;  %298 = vst [vmem:[#allocation2 + $0xa0] sm:$0xff] %v265_v53  ;;  %v269_v61 = vadd.f32 %v268_v58, %v9437_v30  ;;  %v270_v62 = vpop.f32.mrb[7].mxu1 }
  0xe5   :  { %183 = vst.msk [vmem:[#allocation2 + $0x28] sm:$0xff] %vm178_vm1, %v151_v55  ;;  %v155_v63 = vadd.f32 %v154_v60, %v9440_v31  ;;  %299 = vst.msk [vmem:[#allocation2 + $0xa8] sm:$0xff] %vm178_vm1, %v267_v57  ;;  %v271_v0 = vadd.f32 %v270_v62, %v9443_v32 }
  0xe6   :  { %184 = vst [vmem:[#allocation2 + $0x30] sm:$0xff] %v153_v59  ;;  %300 = vst [vmem:[#allocation2 + $0xb0] sm:$0xff] %v269_v61 }
  0xe7   :  { %185 = vst.msk [vmem:[#allocation2 + $0x38] sm:$0xff] %vm178_vm1, %v155_v63  ;;  %301 = vst.msk [vmem:[#allocation2 + $0xb8] sm:$0xff] %vm178_vm1, %v271_v0 }
  0xe9   :  { %v158_v2 = vpop.f32.mrb[8].mxu0  ;;  %v274_v3 = vpop.f32.mrb[8].mxu1 }
  0xea   :  { %v159_v4 = vadd.f32 %v158_v2, %v9434_v29  ;;  %v160_v5 = vpop.f32.mrb[9].mxu0  ;;  %v275_v6 = vadd.f32 %v274_v3, %v9437_v30  ;;  %v276_v7 = vpop.f32.mrb[9].mxu1 }
  0xeb   :  { %v161_v13 = vadd.f32 %v160_v5, %v9440_v31  ;;  %v162_v18 = vpop.f32.mrb[10].mxu0  ;;  %v277_v19 = vadd.f32 %v276_v7, %v9443_v32  ;;  %v278_v23 = vpop.f32.mrb[10].mxu1  ;;  %v480_v7 = vld [vmem:[#allocation2 + $0x8] sm:$0xff] }
  0xec   :  { %186 = vst [vmem:[#allocation2 + $0x40] sm:$0xff] %v159_v4  ;;  %v163_v8 = vadd.f32 %v162_v18, %v9434_v29  ;;  %v164_v9 = vpop.f32.mrb[11].mxu0  ;;  %302 = vst [vmem:[#allocation2 + $0xc0] sm:$0xff] %v275_v6  ;;  %v279_v10 = vadd.f32 %v278_v23, %v9437_v30  ;;  %v280_v11 = vpop.f32.mrb[11].mxu1 }
  0xed   :  { %187 = vst.msk [vmem:[#allocation2 + $0x48] sm:$0xff] %vm178_vm1, %v161_v13  ;;  %v165_v12 = vadd.f32 %v164_v9, %v9440_v31  ;;  %303 = vst.msk [vmem:[#allocation2 + $0xc8] sm:$0xff] %vm178_vm1, %v277_v19  ;;  %v281_v15 = vadd.f32 %v280_v11, %v9443_v32 }
  0xee   :  { %188 = vst [vmem:[#allocation2 + $0x50] sm:$0xff] %v163_v8  ;;  %304 = vst [vmem:[#allocation2 + $0xd0] sm:$0xff] %v279_v10 }
  0xef   :  { %189 = vst.msk [vmem:[#allocation2 + $0x58] sm:$0xff] %vm178_vm1, %v165_v12  ;;  %305 = vst.msk [vmem:[#allocation2 + $0xd8] sm:$0xff] %vm178_vm1, %v281_v15 }
  0xf1   :  { %v168_v16 = vpop.f32.mrb[12].mxu0  ;;  %v284_v17 = vpop.f32.mrb[12].mxu1 }
  0xf2   :  { %v169_v22 = vadd.f32 %v168_v16, %v9434_v29  ;;  %v170_v24 = vpop.f32.mrb[13].mxu0  ;;  %v285_v25 = vadd.f32 %v284_v17, %v9437_v30  ;;  %v286_v26 = vpop.f32.mrb[13].mxu1 }
  0xf3   :  { %v171_v27 = vadd.f32 %v170_v24, %v9440_v31  ;;  %v172_v28 = vpop.f32.mrb[14].mxu0  ;;  %v287_v34 = vadd.f32 %v286_v26, %v9443_v32  ;;  %v288_v36 = vpop.f32.mrb[14].mxu1 }
  0xf4   :  { %190 = vst [vmem:[#allocation2 + $0x60] sm:$0xff] %v169_v22  ;;  %v173_v38 = vadd.f32 %v172_v28, %v9434_v29  ;;  %v174_v39 = vpop.f32.mrb[15].mxu0  ;;  %306 = vst [vmem:[#allocation2 + $0xe0] sm:$0xff] %v285_v25  ;;  %v289_v40 = vadd.f32 %v288_v36, %v9437_v30  ;;  %v290_v41 = vpop.f32.mrb[15].mxu1  ;;  %v323_v29 = vrot.slane %v7029_v33, %v9409_v21 }
  0xf5   :  { %191 = vst.msk [vmem:[#allocation2 + $0x68] sm:$0xff] %vm178_vm1, %v171_v27  ;;  %v175_v42 = vadd.f32 %v174_v39, %v9440_v31  ;;  %307 = vst.msk [vmem:[#allocation2 + $0xe8] sm:$0xff] %vm178_vm1, %v287_v34  ;;  %v291_v44 = vadd.f32 %v290_v41, %v9443_v32  ;;  %v426_v32 = vld [vmem:[%s11731_s5] sm:$0x3]  ;;  %v7036_v34 = vld [vmem:[%s11731_s5 + $0x2] sm:$0x3] }
  0xf6   :  { %192 = vst [vmem:[#allocation2 + $0x70] sm:$0xff] %v173_v38  ;;  %308 = vst [vmem:[#allocation2 + $0xf0] sm:$0xff] %v289_v40  ;;  %v9516_v53 = vrot.slane %v426_v32, %v9406_v20  ;;  %v9519_v56 = vrot.slane %v426_v32, %v9409_v21  ;;  %v9534_v39 = vrot.slane %v7036_v34, %v9406_v20 }
  0xf7   :  { %193 = vst.msk [vmem:[#allocation2 + $0x78] sm:$0xff] %vm178_vm1, %v175_v42  ;;  %309 = vst.msk [vmem:[#allocation2 + $0xf8] sm:$0xff] %vm178_vm1, %v291_v44  ;;  %v9537_v41 = vrot.slane %v7036_v34, %v9409_v21  ;;  %v8913_v34 = vld [vmem:[%s11727_s4 + $0xb4] ss:$8 sps:$4 sm:$0xff]  }
  0xf8   :  { %11856 = vst [vmem:[#allocation3_spill] sm:$0xff] %v9516_v53  ;;  %11857 = vst [vmem:[#allocation4_spill] sm:$0xff] %v9519_v56 }
  0xf9   :  { %v370_v30 = vpop.f32.mrb[16].mxu0  ;;  %11858 = vst [vmem:[#allocation5_spill] sm:$0xff] %v9534_v39 }
  0xfa   :  { %v9506_v47 = vadd.f32 %v370_v30, %v319_v46  ;;  %v372_v48 = vpop.f32.mrb[17].mxu0 }
  0xfb   :  { %v373_v49 = vadd.f32 %v372_v48, %v323_v29  ;;  %v374_v31 = vpop.f32.mrb[18].mxu0 }
  0xfc   :  { %v9508_v50 = vadd.f32 %v374_v31, %v319_v46  ;;  %v376_v51 = vpop.f32.mrb[19].mxu0 }
  0xfd   :  { %411 = vst.msk [vmem:[#allocation2 + $0x108] sm:$0xff] %vm178_vm1, %v373_v49  ;;  %v377_v52 = vadd.f32 %v376_v51, %v323_v29  ;;  %v485_v49 = vld [vmem:[#allocation2 + $0x88] sm:$0xff]  ;;  %v7037_v51 = vld [vmem:[%s11731_s5 + $0x4] sm:$0x3] }
  0xff   :  { %413 = vst.msk [vmem:[#allocation2 + $0x118] sm:$0xff] %vm178_vm1, %v377_v52 }
 0x101   :  { %v380_v54 = vpop.f32.mrb[20].mxu0 }
 0x102   :  { %v650_v55 = vpop.f32.mrb[16].mxu1  ;;  %v381_v57 = vadd.f32 %v380_v54, %v319_v46  ;;  %v382_v58 = vpop.f32.mrb[21].mxu0 }
 0x103   :  { %v651_v59 = vadd.f32 %v650_v55, %v9516_v53  ;;  %v652_v60 = vpop.f32.mrb[17].mxu1  ;;  %v383_v61 = vadd.f32 %v382_v58, %v323_v29  ;;  %v384_v62 = vpop.f32.mrb[22].mxu0  ;;  %v9546_v55 = vrot.slane %v7037_v51, %v9406_v20 }
 0x104   :  { %414 = vst [vmem:[#allocation2 + $0x120] sm:$0xff] %v381_v57  ;;  %v385_v63 = vadd.f32 %v384_v62, %v319_v46  ;;  %v654_v0 = vpop.f32.mrb[18].mxu1  ;;  %v386_v2 = vpop.f32.mrb[23].mxu0  ;;  %v653_v6 = vadd.f32 %v652_v60, %v9519_v56  ;;  %v9549_v57 = vrot.slane %v7037_v51, %v9409_v21  ;;  %v8925_v51 = vld [vmem:[%s11727_s4 + $0xe4] ss:$8 sps:$4 sm:$0xff]  }
 0x105   :  { %v981_v3 = vadd.f32 %v651_v59, %v9446_v35  ;;  %415 = vst.msk [vmem:[#allocation2 + $0x128] sm:$0xff] %vm178_vm1, %v383_v61  ;;  %v387_v4 = vadd.f32 %v386_v2, %v323_v29  ;;  %v655_v5 = vpop.f32.mrb[19].mxu1 }
 0x106   :  { %416 = vst [vmem:[#allocation2 + $0x130] sm:$0xff] %v385_v63  ;;  %v982_v18 = vadd.f32 %v653_v6, %v480_v7 }
 0x107   :  { %417 = vst.msk [vmem:[#allocation2 + $0x138] sm:$0xff] %vm178_vm1, %v387_v4  ;;  %v7142_v35 = vmul.f32 -1.442695, %v981_v3 }
 0x108   :  { %v7143_v15 = vmul.f32 -1.442695, %v982_v18 }
 0x109   :  { %v390_v13 = vpop.f32.mrb[24].mxu0  ;;  %8562 = vpow2.f32 %v7142_v35 }
 0x10a   :  { %v391_v19 = vadd.f32 %v390_v13, %v319_v46  ;;  %v392_v23 = vpop.f32.mrb[25].mxu0  ;;  %8564 = vpow2.f32 %v7143_v15  ;;  %v490_v13 = vld [vmem:[#allocation2 + $0x108] sm:$0xff] }
 0x10b   :  { %v393_v8 = vadd.f32 %v392_v23, %v323_v29  ;;  %v394_v9 = vpop.f32.mrb[26].mxu0 }
 0x10c   :  { %418 = vst [vmem:[#allocation2 + $0x140] sm:$0xff] %v391_v19  ;;  %v395_v10 = vadd.f32 %v394_v9, %v319_v46  ;;  %v396_v11 = vpop.f32.mrb[27].mxu0 }
 0x10d   :  { %419 = vst.msk [vmem:[#allocation2 + $0x148] sm:$0xff] %vm178_vm1, %v393_v8  ;;  %v397_v12 = vadd.f32 %v396_v11, %v323_v29 }
 0x10e   :  { %420 = vst [vmem:[#allocation2 + $0x150] sm:$0xff] %v395_v10 }
 0x10f   :  { %421 = vst.msk [vmem:[#allocation2 + $0x158] sm:$0xff] %vm178_vm1, %v397_v12 }
 0x111   :  { %v400_v16 = vpop.f32.mrb[28].mxu0 }
 0x112   :  { %v401_v17 = vadd.f32 %v400_v16, %v319_v46  ;;  %v402_v22 = vpop.f32.mrb[29].mxu0 }
 0x113   :  { %v403_v24 = vadd.f32 %v402_v22, %v323_v29  ;;  %v404_v25 = vpop.f32.mrb[30].mxu0  ;;  %v8563_v33 = vpop.eup %8562 }
 0x114   :  { %422 = vst [vmem:[#allocation2 + $0x160] sm:$0xff] %v401_v17  ;;  %v405_v26 = vadd.f32 %v404_v25, %v319_v46  ;;  %v406_v27 = vpop.f32.mrb[31].mxu0  ;;  %v8565_v36 = vpop.eup %8564  ;;  %v989_v38 = vadd.f32 1.0, %v8563_v33  ;;  %v8910_v17 = vld [vmem:[%s11728_s8 + $0x8] sm:$0xff] }
 0x115   :  { %423 = vst.msk [vmem:[#allocation2 + $0x168] sm:$0xff] %vm178_vm1, %v403_v24  ;;  %v407_v28 = vadd.f32 %v406_v27, %v323_v29  ;;  %v990_v40 = vadd.f32 1.0, %v8565_v36  ;;  %v8912_v33 = vld [vmem:[%s11727_s4 + $0x140] ss:$8 sps:$4 sm:$0xff]   ;;  %v8914_v36 = vld [vmem:[%s11727_s4 + $0x154] ss:$8 sps:$4 sm:$0xff]  }
 0x116   :  { %424 = vst [vmem:[#allocation2 + $0x170] sm:$0xff] %v405_v26  ;;  %8566 = vrcp.f32 %v989_v38  ;;  %v8915_v38 = vld [vmem:[%s11727_s4 + $0xb0] ss:$8 sps:$4 sm:$0xff]  }
 0x117   :  { %425 = vst.msk [vmem:[#allocation2 + $0x178] sm:$0xff] %vm178_vm1, %v407_v28  ;;  %8568 = vrcp.f32 %v990_v40  ;;  %v8911_v28 = vld [vmem:[%s11727_s4 + $0xa0] ss:$8 sps:$4 sm:$0xff]   ;;  %v8916_v40 = vld [vmem:[%s11727_s4 + $0x150] ss:$8 sps:$4 sm:$0xff]  }
 0x120   :  { %v8567_v60 = vpop.eup %8566 }
 0x121   :  { %v812_v42 = vpop.f32.mrb[32].mxu0  ;;  %v8569_v63 = vpop.eup %8568 }
 0x122   :  { %v813_v44 = vadd.f32 %v812_v42, %v9534_v39  ;;  %v814_v46 = vpop.f32.mrb[33].mxu0  ;;  %v8917_v42 = vld [vmem:[%s11727_s4 + $0xc4] ss:$8 sps:$4 sm:$0xff]  }
 0x123   :  { %v815_v29 = vadd.f32 %v814_v46, %v9537_v41  ;;  %v816_v30 = vpop.f32.mrb[34].mxu0  ;;  %v8919_v46 = vld [vmem:[%s11727_s4 + $0xc0] ss:$8 sps:$4 sm:$0xff]  }
 0x124   :  { %v995_v48 = vadd.f32 %v813_v44, %v9449_v37  ;;  %v817_v31 = vpop.f32.mrb[35].mxu0  ;;  %v8918_v44 = vld [vmem:[%s11727_s4 + $0x164] ss:$8 sps:$4 sm:$0xff]   ;;  %v8921_v30 = vld [vmem:[%s11727_s4 + $0xd4] ss:$8 sps:$4 sm:$0xff]  }
 0x125   :  { %v996_v32 = vadd.f32 %v815_v29, %v485_v49  ;;  %v8920_v29 = vld [vmem:[%s11727_s4 + $0x160] ss:$8 sps:$4 sm:$0xff]   ;;  %v8923_v49 = vld [vmem:[%s11727_s4 + $0xd0] ss:$8 sps:$4 sm:$0xff]  }
 0x126   :  { %v7144_v52 = vmul.f32 -1.442695, %v995_v48  ;;  %v8922_v48 = vld [vmem:[%s11727_s4 + $0x174] ss:$8 sps:$4 sm:$0xff]   ;;  %v8924_v31 = vld [vmem:[%s11727_s4 + $0x170] ss:$8 sps:$4 sm:$0xff]  }
 0x127   :  { %v7145_v54 = vmul.f32 -1.442695, %v996_v32  ;;  %v8926_v32 = vld [vmem:[%s11727_s4 + $0x184] ss:$8 sps:$4 sm:$0xff]  }
 0x128   :  { %8570 = vpow2.f32 %v7144_v52  ;;  %v8927_v52 = vld [vmem:[%s11727_s4 + $0xe0] ss:$8 sps:$4 sm:$0xff]  }
 0x129   :  { %8572 = vpow2.f32 %v7145_v54  ;;  %v8928_v54 = vld [vmem:[%s11727_s4 + $0x180] ss:$8 sps:$4 sm:$0xff]  }
 0x12a   :  { %v974_v58 = vpop.f32.mrb[20].mxu1 }
 0x12b   :  { %v975_v37 = vadd.f32 %v974_v58, %v9546_v55  ;;  %v976_v59 = vpop.f32.mrb[21].mxu1  ;;  %v8929_v58 = vld [vmem:[%s11727_s4 + $0xf4] ss:$8 sps:$4 sm:$0xff]  }
 0x12c   :  { %v977_v61 = vadd.f32 %v976_v59, %v9549_v57  ;;  %v978_v62 = vpop.f32.mrb[22].mxu1  ;;  %v8931_v59 = vld [vmem:[%s11727_s4 + $0xf0] ss:$8 sps:$4 sm:$0xff]  }
 0x12d   :  { %v1009_v0 = vmul.f32 %v8567_v60, %v975_v37  ;;  %v979_v2 = vpop.f32.mrb[23].mxu1  ;;  %v8930_v37 = vld [vmem:[%s11727_s4 + $0x194] ss:$8 sps:$4 sm:$0xff]   ;;  %v8932_v60 = vld [vmem:[%s11727_s4 + $0x190] ss:$8 sps:$4 sm:$0xff]  }
 0x12e   :  { %v1010_v3 = vmul.f32 %v8569_v63, %v977_v61  ;;  %v8933_v61 = vld [vmem:[%s11727_s4 + $0x104] ss:$8 sps:$4 sm:$0xff]   ;;  %v8935_v63 = vld [vmem:[%s11727_s4 + $0x100] ss:$8 sps:$4 sm:$0xff]   ;;  %v8937_v2 = vld [vmem:[%s11727_s4 + $0x114] ss:$8 sps:$4 sm:$0xff]  }
 0x12f   :  { %v1011_v4 = vadd.f32 %v1009_v0, %v9506_v47  ;;  %v8909_v47 = vld [vmem:[%s11728_s8] sm:$0xff] }
 0x130   :  { %v1012_v19 = vadd.f32 %v1010_v3, %v490_v13  ;;  %v8934_v62 = vld [vmem:[%s11727_s4 + $0x1a4] ss:$8 sps:$4 sm:$0xff]   ;;  %v8936_v0 = vld [vmem:[%s11727_s4 + $0x1a0] ss:$8 sps:$4 sm:$0xff]   ;;  %v8938_v3 = vld [vmem:[%s11727_s4 + $0x1b4] ss:$8 sps:$4 sm:$0xff]  }
 0x131   :  { %v8943_v13 = vld [vmem:[%s11727_s4 + $0x120] ss:$8 sps:$4 sm:$0xff]  }
 0x132   :  { %v8571_v5 = vpop.eup %8570 }
 0x133   :  { %v8573_v6 = vpop.eup %8572  ;;  %v1003_v7 = vadd.f32 1.0, %v8571_v5  ;;  %v8940_v5 = vld [vmem:[%s11727_s4 + $0x1b0] ss:$8 sps:$4 sm:$0xff]  }
 0x134   :  { %v1004_v18 = vadd.f32 1.0, %v8573_v6  ;;  %v8941_v6 = vld [vmem:[%s11727_s4 + $0x124] ss:$8 sps:$4 sm:$0xff]  }
 0x135   :  { %8574 = vrcp.f32 %v1003_v7  ;;  %v8942_v7 = vld [vmem:[%s11727_s4 + $0x1c4] ss:$8 sps:$4 sm:$0xff]  }
 0x136   :  { %8576 = vrcp.f32 %v1004_v18  ;;  %v8944_v18 = vld [vmem:[%s11727_s4 + $0x1c0] ss:$8 sps:$4 sm:$0xff]  }
 0x137   :  { %8578 = vtanh.f32 %v1011_v4  ;;  %v8939_v4 = vld [vmem:[%s11727_s4 + $0x110] ss:$8 sps:$4 sm:$0xff]  }
 0x138   :  { %8580 = vtanh.f32 %v1012_v19  ;;  %v8945_v19 = vld [vmem:[%s11727_s4 + $0x134] ss:$8 sps:$4 sm:$0xff]  }
 0x13f   :  { %v8575_v23 = vpop.eup %8574 }
 0x140   :  { %v8577_v8 = vpop.eup %8576  ;;  %v1015_v9 = vsub.f32 1.0, %v8575_v23  ;;  %v1019_v15 = vmul.f32 %v8909_v47, %v8575_v23  ;;  %v8946_v23 = vld [vmem:[%s11727_s4 + $0x1d4] ss:$8 sps:$4 sm:$0xff]  }
 0x141   :  { %v8579_v10 = vpop.eup %8578  ;;  %v1016_v11 = vsub.f32 1.0, %v8577_v8  ;;  %v1020_v22 = vmul.f32 %v8910_v17, %v8577_v8  ;;  %v8947_v8 = vld [vmem:[%s11727_s4 + $0x130] ss:$8 sps:$4 sm:$0xff]   ;;  %v9718_v17 = vld [vmem:[%s11727_s4 + $0x4] ss:$8 sps:$4 sm:$0xff]  }
 0x142   :  { %v8581_v35 = vpop.eup %8580  ;;  %v1017_v12 = vmul.f32 %v8579_v10, %v1015_v9  ;;  %v8948_v9 = vld [vmem:[%s11727_s4 + $0x1d0] ss:$8 sps:$4 sm:$0xff]   ;;  %v8222_v10 = vld [vmem:[%s11729_s6] sm:$0xff]  }
 0x143   :  { %v1018_v16 = vmul.f32 %v8581_v35, %v1016_v11  ;;  %v8223_v11 = vld [vmem:[%s11729_s6 + $0x8] sm:$0xff]   ;;  %v471_v35 = vld [vmem:[%s11732_s9] sm:$0xff]  ;;  %v8224_v47 = vld [vmem:[%s11729_s6 + $0x10] sm:$0xff]  }
 0x144   :  { %v9560_v24 = vadd.f32 %v1019_v15, %v1017_v12  ;;  %v472_v12 = vld [vmem:[%s11732_s9 + $0x8] sm:$0xff] }
 0x145   :  { %v9562_v25 = vadd.f32 %v1020_v22, %v1018_v16  ;;  %v9710_v15 = vpack.c.bf16 %v472_v12, %v471_v35  ;;  %v11739_v16 = vmov 0.0|0.0   ;;  %v8228_v22 = vld [vmem:[%s11729_s6 + $0x18] sm:$0xff]  }
 0x146   :  { %v9568_v27 = vpack.c.bf16 %v9560_v24, %v9560_v24 }
 0x147   :  { %v1024_v26 = vpack.c.bf16 %v9562_v25, %v9562_v25  ;;  %11859 = vst [vmem:[#allocation6_spill] sm:$0xff] %v9710_v15 }
 0x149   :  { %7156 = vmatprep.mubr.msk.bf16.mxu0 %vm178_vm1, %v1024_v26  ;;  %7178 = vmatprep.mubr.msk.bf16.mxu1 %vm178_vm1, %v1024_v26 }
 0x14a   :  { %1141 = vmatmul.mubr.bf16.vlgmr.msra.gmra.mrb[36].mxu0 %v9568_v27  ;;  %1323 = vmatmul.mubr.bf16.vlgmr.msra.gmra.mrb[24].mxu1 %v9568_v27 }
 0x14b   :  { %1452 = vmatpush1.bf16.msra.mxu0 %v8911_v28  ;;  %1613 = vmatpush1.bf16.msra.mxu1 %v8912_v33  ;;  %v8236_v28 = vld [vmem:[%s11729_s6 + $0x28] sm:$0xff]   ;;  %v8240_v33 = vld [vmem:[%s11729_s6 + $0x30] sm:$0xff]  }
 0x14c   :  { %7219 = vmatprep.mubr.msk.bf16.mxu0 %vm178_vm1, %v1024_v26  ;;  %7260 = vmatprep.mubr.msk.bf16.mxu1 %vm178_vm1, %v1024_v26  ;;  %v11737_v26 = vmov 0.0  }
 0x14d   :  { %1453 = vmatprep.subr.bf16.mxu0 %v8913_v34  ;;  %1614 = vmatprep.subr.bf16.mxu1 %v8914_v36  ;;  %v8244_v34 = vld [vmem:[%s11729_s6 + $0x38] sm:$0xff]   ;;  %v8248_v36 = vld [vmem:[%s11729_s6 + $0x40] sm:$0xff]  }
 0x14f   :  { %1454 = vmatpush1.bf16.msra.mxu0 %v8915_v38  ;;  %1615 = vmatpush1.bf16.msra.mxu1 %v8916_v40  ;;  %v8252_v38 = vld [vmem:[%s11729_s6 + $0x48] sm:$0xff]  }
 0x150   :  { %1455 = vmatprep.subr.bf16.mxu0 %v8917_v42  ;;  %1616 = vmatprep.subr.bf16.mxu1 %v8918_v44  ;;  %v9753_v40 = vld [vmem:[%s11727_s4 + $0xa4] ss:$8 sps:$4 sm:$0xff]   ;;  %v9759_v42 = vld [vmem:[%s11733_s7] ss:$0 sm:$0xff] }
 0x153   :  { %1456 = vmatpush1.bf16.msra.mxu0 %v8919_v46  ;;  %1617 = vmatpush1.bf16.msra.mxu1 %v8920_v29 }
 0x154   :  { %1457 = vmatprep.subr.bf16.mxu0 %v8921_v30  ;;  %1618 = vmatprep.subr.bf16.mxu1 %v8922_v48 }
 0x157   :  { %1458 = vmatpush1.bf16.msra.mxu0 %v8923_v49  ;;  %1619 = vmatpush1.bf16.msra.mxu1 %v8924_v31 }
 0x158   :  { %1459 = vmatprep.subr.bf16.mxu0 %v8925_v51  ;;  %1620 = vmatprep.subr.bf16.mxu1 %v8926_v32 }
 0x15b   :  { %1460 = vmatpush1.bf16.msra.mxu0 %v8927_v52  ;;  %1621 = vmatpush1.bf16.msra.mxu1 %v8928_v54 }
 0x15c   :  { %1461 = vmatprep.subr.bf16.mxu0 %v8929_v58  ;;  %1622 = vmatprep.subr.bf16.mxu1 %v8930_v37 }
 0x15f   :  { %1462 = vmatpush1.bf16.msra.mxu0 %v8931_v59  ;;  %1623 = vmatpush1.bf16.msra.mxu1 %v8932_v60  ;;  %v1159_v59 = vld [vmem:[#allocation2 + $0x18] sm:$0xff] }
 0x160   :  { %1463 = vmatprep.subr.bf16.mxu0 %v8933_v61  ;;  %1624 = vmatprep.subr.bf16.mxu1 %v8934_v62 }
 0x163   :  { %1464 = vmatpush1.bf16.msra.mxu0 %v8935_v63  ;;  %1625 = vmatpush1.bf16.msra.mxu1 %v8936_v0 }
 0x164   :  { %1465 = vmatprep.subr.bf16.mxu0 %v8937_v2  ;;  %1626 = vmatprep.subr.bf16.mxu1 %v8938_v3 }
 0x167   :  { %1466 = vmatpush1.bf16.msra.mxu0 %v8939_v4  ;;  %1627 = vmatpush1.bf16.msra.mxu1 %v8940_v5 }
 0x168   :  { %1467 = vmatprep.subr.bf16.mxu0 %v8941_v6  ;;  %1628 = vmatprep.subr.bf16.mxu1 %v8942_v7 }
 0x16b   :  { %1468 = vmatpush1.bf16.msra.mxu0 %v8943_v13  ;;  %1629 = vmatpush1.bf16.msra.mxu1 %v8944_v18 }
 0x16c   :  { %1469 = vmatprep.subr.bf16.mxu0 %v8945_v19  ;;  %1630 = vmatprep.subr.bf16.mxu1 %v8946_v23 }
 0x16f   :  { %1470 = vmatpush1.bf16.msra.mxu0 %v8947_v8  ;;  %1631 = vmatpush1.bf16.msra.mxu1 %v8948_v9 }
 0x170   :  { %1780 = vmatprep.subr.bf16.mxu0 %v11741_v1  ;;  %8081 = vmatprep.subr.bf16.mxu1 %v11739_v16  ;;  %v10073_v16 = vld [vmem:[%s11727_s4 + $0x190] ss:$8 sps:$4 sm:$0xff]  }
 0x171   :  { %11871 = vst [vmem:[#allocation18_spill] sm:$0xff] %v10073_v16 }
 0x172   :  { %1484 = vmatmul.mubr.bf16.vlgmr.msra.gmra.mrb[40].mxu0 %v9568_v27  ;;  %1645 = vmatmul.mubr.bf16.vlgmr.msra.gmra.mrb[28].mxu1 %v9568_v27  ;;  %v8232_v27 = vld [vmem:[%s11729_s6 + $0x20] sm:$0xff]  }
 0x173   :  { %1781 = vmatpush1.bf16.msra.mxu0 %v8222_v10  ;;  %8083 = vmatpush3.bf16.msra.mxu1 %v9710_v15 }
 0x174   :  { %1782 = vmatprep.subr.bf16.mxu0 %v11741_v1  ;;  %8036 = vmatprep.mubr.msk.f32.mxu1 %vm8954_vm2, %v11737_v26  ;;  %v10067_v26 = vld [vmem:[%s11727_s4 + $0x124] ss:$8 sps:$4 sm:$0xff]  }
 0x175   :  { %2136 = vmatprep.subr.bf16.mxu1 %v9718_v17  ;;  %11870 = vst [vmem:[#allocation17_spill] sm:$0xff] %v10067_v26 }
 0x177   :  { %1783 = vmatpush1.bf16.msra.mxu0 %v8223_v11 }
 0x178   :  { %1784 = vmatprep.subr.bf16.mxu0 %v11741_v1 }
 0x17b   :  { %1785 = vmatpush1.bf16.msra.mxu0 %v8224_v47 }
 0x17c   :  { %1786 = vmatprep.subr.bf16.mxu0 %v11741_v1 }
 0x17f   :  { %1787 = vmatpush1.bf16.msra.mxu0 %v8228_v22 }
 0x180   :  { %1788 = vmatprep.subr.bf16.mxu0 %v11741_v1 }
 0x183   :  { %1789 = vmatpush1.bf16.msra.mxu0 %v8232_v27 }
 0x184   :  { %1790 = vmatprep.subr.bf16.mxu0 %v11741_v1 }
 0x187   :  { %1791 = vmatpush1.bf16.msra.mxu0 %v8236_v28 }
 0x188   :  { %1792 = vmatprep.subr.bf16.mxu0 %v11741_v1 }
 0x18b   :  { %1793 = vmatpush1.bf16.msra.mxu0 %v8240_v33 }
 0x18c   :  { %1794 = vmatprep.subr.bf16.mxu0 %v11741_v1 }
 0x18f   :  { %1795 = vmatpush1.bf16.msra.mxu0 %v8244_v34 }
 0x190   :  { %1796 = vmatprep.subr.bf16.mxu0 %v11741_v1 }
 0x193   :  { %1797 = vmatpush1.bf16.msra.mxu0 %v8248_v36 }
 0x194   :  { %1798 = vmatprep.subr.bf16.mxu0 %v11741_v1  ;;  %v10079_v1 = vld [vmem:[%s11727_s4 + $0x120] ss:$8 sps:$4 sm:$0xff]  }
 0x195   :  { %11872 = vst [vmem:[#allocation19_spill] sm:$0xff] %v10079_v1 }
 0x197   :  { %1799 = vmatpush1.bf16.msra.mxu0 %v8252_v38 }
 0x198   :  { %2297 = vmatprep.subr.bf16.mxu0 %v9753_v40 }
 0x21d   :  { %v1142_v44 = vpop.f32.mrb[36].mxu0  ;;  %v1324_v46 = vpop.f32.mrb[24].mxu1 }
 0x21e   :  { %v1143_v29 = vadd.f32 %v9759_v42, %v1142_v44  ;;  %v1144_v30 = vpop.f32.mrb[37].mxu0  ;;  %v1326_v48 = vpop.f32.mrb[25].mxu1  ;;  %v1325_v32 = vadd.f32 %v1324_v46, %v9516_v53 }
 0x21f   :  { %v1145_v49 = vpop.f32.mrb[38].mxu0  ;;  %v1328_v31 = vpop.f32.mrb[26].mxu1  ;;  %v1327_v58 = vadd.f32 %v1326_v48, %v9519_v56 }
 0x220   :  { %v7157_v51 = vmul.f32 -1.442695, %v1143_v29  ;;  %v1146_v52 = vpop.f32.mrb[39].mxu0  ;;  %v1329_v54 = vpop.f32.mrb[27].mxu1  ;;  %v1653_v37 = vadd.f32 %v1325_v32, %v9454_v43  ;;  %v1826_v43 = vld [vmem:[%s11735_s1] sm:$0xff]  ;;  %v1164_v29 = vld [vmem:[#allocation2 + $0x98] sm:$0xff] }
 0x221   :  { %v1654_v60 = vadd.f32 %v1327_v58, %v1159_v59  ;;  %v1835_v12 = vsub.f32 1.0, %v1826_v43  ;;  %v9780_v59 = vld [vmem:[%s11727_s4] ss:$8 sps:$4 sm:$0xff]  }
 0x222   :  { %8582 = vpow2.f32 %v7157_v51  ;;  %v7261_v61 = vmul.f32 -1.442695, %v1653_v37 }
 0x223   :  { %v7262_v62 = vmul.f32 -1.442695, %v1654_v60  ;;  %v9785_v60 = vld [vmem:[%s11727_s4 + $0x14] ss:$8 sps:$4 sm:$0xff]  }
 0x224   :  { %8584 = vpow2.f32 %v7261_v61  ;;  %v9792_v61 = vld [vmem:[%s11727_s4 + $0x10] ss:$8 sps:$4 sm:$0xff]  }
 0x225   :  { %8586 = vpow2.f32 %v7262_v62  ;;  %v9798_v62 = vld [vmem:[%s11727_s4 + $0x24] ss:$8 sps:$4 sm:$0xff]  }
 0x22c   :  { %v8583_v63 = vpop.eup %8582 }
 0x22d   :  { %v1151_v0 = vadd.f32 1.0, %v8583_v63 }
 0x22e   :  { %v8585_v2 = vpop.eup %8584 }
 0x22f   :  { %8588 = vrcp.f32 %v1151_v0  ;;  %v8587_v3 = vpop.eup %8586  ;;  %v1661_v5 = vadd.f32 1.0, %v8585_v2  ;;  %v9805_v2 = vld [vmem:[%s11727_s4 + $0x20] ss:$8 sps:$4 sm:$0xff]  }
 0x230   :  { %v1662_v6 = vadd.f32 1.0, %v8587_v3 }
 0x239   :  { %v8589_v4 = vpop.eup %8588 }
 0x23a   :  { %8590 = vlog2.f32 %v8589_v4  ;;  %v1830_v7 = vsub.f32 1.0, %v8589_v4  ;;  %1154 = vst.msk [vmem:[%s11734_s11] sm:$0xff] %vm91_vm0, %v8589_v4  ;;  %v9811_v4 = vld [vmem:[%s11727_s4 + $0x34] ss:$8 sps:$4 sm:$0xff]  }
 0x23c   :  { %8592 = vlog2.f32 %v1830_v7 }
 0x23d   :  { %8594 = vrcp.f32 %v1661_v5 }
 0x23e   :  { %8596 = vrcp.f32 %v1662_v6  ;;  %v1169_v6 = vld [vmem:[#allocation2 + $0x118] sm:$0xff] }
 0x244   :  { %v8591_v13 = vpop.eup %8590 }
 0x245   :  { %v1485_v18 = vpop.f32.mrb[40].mxu0  ;;  %v1646_v19 = vpop.f32.mrb[28].mxu1  ;;  %v1828_v23 = vmul.f32 0.6931472, %v8591_v13  ;;  %v9823_v13 = vld [vmem:[%s11727_s4 + $0x44] ss:$8 sps:$4 sm:$0xff]  }
 0x246   :  { %v8593_v8 = vpop.eup %8592  ;;  %v1486_v9 = vadd.f32 %v1485_v18, %v9534_v39  ;;  %v1647_v10 = vadd.f32 %v1646_v19, %v9546_v55  ;;  %v1487_v11 = vpop.f32.mrb[41].mxu0  ;;  %v9829_v18 = vld [vmem:[%s11727_s4 + $0x40] ss:$8 sps:$4 sm:$0xff]   ;;  %v9835_v19 = vld [vmem:[%s11727_s4 + $0x54] ss:$8 sps:$4 sm:$0xff]  }
 0x247   :  { %v1648_v35 = vpop.f32.mrb[29].mxu1  ;;  %v8595_v47 = vpop.eup %8594  ;;  %v1488_v22 = vadd.f32 %v1487_v11, %v9537_v41  ;;  %v1829_v34 = vmax.f32 %v1828_v23, -100.0  ;;  %v1832_v36 = vmul.f32 0.6931472, %v8593_v8  ;;  %v9841_v23 = vld [vmem:[%s11727_s4 + $0x50] ss:$8 sps:$4 sm:$0xff]  }
 0x248   :  { %v1649_v27 = vadd.f32 %v1648_v35, %v9549_v57  ;;  %v1489_v28 = vpop.f32.mrb[42].mxu0  ;;  %v1650_v33 = vpop.f32.mrb[30].mxu1  ;;  %v1667_v44 = vadd.f32 %v1486_v9, %v9457_v45  ;;  %v1681_v46 = vmul.f32 %v8595_v47, %v1647_v10  ;;  %v9847_v9 = vld [vmem:[%s11727_s4 + $0x64] ss:$8 sps:$4 sm:$0xff]  }
 0x249   :  { %v8597_v38 = vpop.eup %8596  ;;  %v1490_v30 = vpop.f32.mrb[43].mxu0  ;;  %v1668_v49 = vadd.f32 %v1488_v22, %v1164_v29  ;;  %v1833_v51 = vmax.f32 %v1832_v36, -100.0  ;;  %v1834_v54 = vmul.f32 %v1829_v34, %v1826_v43  ;;  %v9817_v43 = vld [vmem:[%s11727_s4 + $0x30] ss:$8 sps:$4 sm:$0xff]   ;;  %v9860_v33 = vld [vmem:[%s11727_s4 + $0x74] ss:$8 sps:$4 sm:$0xff]  }
 0x24a   :  { %v1651_v48 = vpop.f32.mrb[31].mxu1  ;;  %v1682_v31 = vmul.f32 %v8597_v38, %v1649_v27  ;;  %v7263_v32 = vmul.f32 -1.442695, %v1667_v44  ;;  %v1683_v0 = vadd.f32 %v1681_v46, %v9508_v50  ;;  %v9888_v30 = vld [vmem:[%s11727_s4 + $0x84] ss:$8 sps:$4 sm:$0xff]  }
 0x24b   :  { %v7264_v52 = vmul.f32 -1.442695, %v1668_v49  ;;  %v1836_v58 = vmul.f32 %v1835_v12, %v1833_v51  ;;  %v9853_v12 = vld [vmem:[%s11727_s4 + $0x60] ss:$8 sps:$4 sm:$0xff]   ;;  %v9893_v48 = vld [vmem:[%s11727_s4 + $0xb4] ss:$8 sps:$4 sm:$0xff]  }
 0x24c   :  { %8598 = vpow2.f32 %v7263_v32  ;;  %v1684_v50 = vadd.f32 %v1682_v31, %v1169_v6  ;;  %v9902_v49 = vld [vmem:[%s11727_s4 + $0x80] ss:$8 sps:$4 sm:$0xff]   ;;  %v9909_v31 = vld [vmem:[%s11727_s4 + $0xb0] ss:$8 sps:$4 sm:$0xff]   ;;  %v9914_v51 = vld [vmem:[%s11727_s4 + $0x94] ss:$8 sps:$4 sm:$0xff]  }
 0x24d   :  { %v1837_v37 = vadd.f32 %v1836_v58, %v1834_v54  ;;  %8600 = vpow2.f32 %v7264_v52  ;;  %v9921_v32 = vld [vmem:[%s11727_s4 + $0xc4] ss:$8 sps:$4 sm:$0xff]   ;;  %v9927_v52 = vld [vmem:[%s11727_s4 + $0x90] ss:$8 sps:$4 sm:$0xff]   ;;  %v9934_v54 = vld [vmem:[%s11727_s4 + $0xc0] ss:$8 sps:$4 sm:$0xff]  }
 0x24e   :  { %v9939_v58 = vld [vmem:[%s11727_s4 + $0x144] ss:$8 sps:$4 sm:$0xff]   ;;  %v9983_v6 = vld [vmem:[%s11727_s4 + $0xe0] ss:$8 sps:$4 sm:$0xff]  }
 0x24f   :  { %v1838_v45 = vsub.f32 0.0, %v1837_v37  ;;  %v9945_v37 = vld [vmem:[%s11727_s4 + $0xd4] ss:$8 sps:$4 sm:$0xff]  }
 0x251   :  { %8037 = vmatmul.mubr.msk.f32.vlgmr.msra.gmra.mrb[32].mxu1 %vm91_vm0, %v1838_v45  ;;  %v9951_v45 = vld [vmem:[%s11727_s4 + $0x140] ss:$8 sps:$4 sm:$0xff]  }
 0x252   :  { %2137 = vmatpush1.bf16.msra.mxu1 %v9780_v59 }
 0x253   :  { %2138 = vmatprep.subr.bf16.mxu1 %v9785_v60 }
 0x256   :  { %v8599_v63 = vpop.eup %8598  ;;  %2139 = vmatpush1.bf16.msra.mxu1 %v9792_v61 }
 0x257   :  { %v1675_v3 = vadd.f32 1.0, %v8599_v63  ;;  %2140 = vmatprep.subr.bf16.mxu1 %v9798_v62  ;;  %v8601_v5 = vpop.eup %8600  ;;  %v9957_v63 = vld [vmem:[%s11727_s4 + $0xd0] ss:$8 sps:$4 sm:$0xff]  }
 0x258   :  { %v1676_v7 = vadd.f32 1.0, %v8601_v5  ;;  %v9977_v5 = vld [vmem:[%s11727_s4 + $0x150] ss:$8 sps:$4 sm:$0xff]  }
 0x259   :  { %8602 = vrcp.f32 %v1675_v3  ;;  %v9969_v3 = vld [vmem:[%s11727_s4 + $0xe4] ss:$8 sps:$4 sm:$0xff]  }
 0x25a   :  { %8604 = vtanh.f32 %v1683_v0  ;;  %2141 = vmatpush1.bf16.msra.mxu1 %v9805_v2  ;;  %v9963_v0 = vld [vmem:[%s11727_s4 + $0x154] ss:$8 sps:$4 sm:$0xff]  }
 0x25b   :  { %8606 = vrcp.f32 %v1676_v7  ;;  %2142 = vmatprep.subr.bf16.mxu1 %v9811_v4  ;;  %v9989_v7 = vld [vmem:[%s11727_s4 + $0x164] ss:$8 sps:$4 sm:$0xff]  }
 0x25c   :  { %8608 = vtanh.f32 %v1684_v50  ;;  %v9995_v50 = vld [vmem:[%s11727_s4 + $0xf4] ss:$8 sps:$4 sm:$0xff]  }
 0x25e   :  { %2143 = vmatpush1.bf16.msra.mxu1 %v9817_v43 }
 0x25f   :  { %2144 = vmatprep.subr.bf16.mxu1 %v9823_v13 }
 0x262   :  { %2145 = vmatpush1.bf16.msra.mxu1 %v9829_v18 }
 0x263   :  { %v8603_v8 = vpop.eup %8602  ;;  %2146 = vmatprep.subr.bf16.mxu1 %v9835_v19 }
 0x264   :  { %v8605_v10 = vpop.eup %8604  ;;  %v1687_v11 = vsub.f32 1.0, %v8603_v8  ;;  %v1691_v27 = vmul.f32 %v8603_v8, %v9560_v24  ;;  %v9871_v24 = vld [vmem:[%s11727_s4 + $0x70] ss:$8 sps:$4 sm:$0xff]   ;;  %v10001_v8 = vld [vmem:[%s11727_s4 + $0x160] ss:$8 sps:$4 sm:$0xff]  }
 0x265   :  { %v8607_v35 = vpop.eup %8606 }
 0x266   :  { %2147 = vmatpush1.bf16.msra.mxu1 %v9841_v23  ;;  %v1688_v47 = vsub.f32 1.0, %v8607_v35  ;;  %v1689_v22 = vmul.f32 %v8605_v10, %v1687_v11  ;;  %v8609_v28 = vpop.eup %8608  ;;  %v1692_v36 = vmul.f32 %v8607_v35, %v9562_v25  ;;  %v9879_v25 = vld [vmem:[%s11727_s4 + $0xa0] ss:$8 sps:$4 sm:$0xff]   ;;  %v10007_v10 = vld [vmem:[%s11727_s4 + $0xf0] ss:$8 sps:$4 sm:$0xff]  }
 0x267   :  { %2148 = vmatprep.subr.bf16.mxu1 %v9847_v9  ;;  %11860 = vst [vmem:[#allocation7_spill] sm:$0xff] %v10007_v10  ;;  %v10013_v11 = vld [vmem:[%s11727_s4 + $0x174] ss:$8 sps:$4 sm:$0xff]   ;;  %v10019_v35 = vld [vmem:[%s11727_s4 + $0x104] ss:$8 sps:$4 sm:$0xff]  }
 0x268   :  { %v1690_v34 = vmul.f32 %v8609_v28, %v1688_v47  ;;  %v9863_v38 = vadd.f32 %v1691_v27, %v1689_v22  ;;  %11861 = vst [vmem:[#allocation8_spill] sm:$0xff] %v10013_v11  ;;  %11862 = vst [vmem:[#allocation9_spill] sm:$0xff] %v10019_v35  ;;  %v10025_v47 = vld [vmem:[%s11727_s4 + $0x170] ss:$8 sps:$4 sm:$0xff]   ;;  %v10031_v22 = vld [vmem:[%s11727_s4 + $0x100] ss:$8 sps:$4 sm:$0xff]  }
 0x269   :  { %11863 = vst [vmem:[#allocation10_spill] sm:$0xff] %v10025_v47  ;;  %11864 = vst [vmem:[#allocation11_spill] sm:$0xff] %v10031_v22  ;;  %v10037_v27 = vld [vmem:[%s11727_s4 + $0x184] ss:$8 sps:$4 sm:$0xff]   ;;  %v10043_v28 = vld [vmem:[%s11727_s4 + $0x114] ss:$8 sps:$4 sm:$0xff]  }
 0x26a   :  { %2149 = vmatpush1.bf16.msra.mxu1 %v9853_v12  ;;  %v9866_v44 = vadd.f32 %v1692_v36, %v1690_v34  ;;  %v9883_v29 = vpack.c.bf16 %v9863_v38, %v9863_v38  ;;  %11865 = vst [vmem:[#allocation12_spill] sm:$0xff] %v10037_v27  ;;  %11866 = vst [vmem:[#allocation13_spill] sm:$0xff] %v10043_v28  ;;  %v10049_v34 = vld [vmem:[%s11727_s4 + $0x180] ss:$8 sps:$4 sm:$0xff]   ;;  %v10055_v36 = vld [vmem:[%s11727_s4 + $0x110] ss:$8 sps:$4 sm:$0xff]  }
 0x26b   :  { %2150 = vmatprep.subr.bf16.mxu1 %v9860_v33  ;;  %11867 = vst [vmem:[#allocation14_spill] sm:$0xff] %v10049_v34  ;;  %11868 = vst [vmem:[#allocation15_spill] sm:$0xff] %v10055_v36 }
 0x26c   :  { %v1696_v46 = vpack.c.bf16 %v9866_v44, %v9866_v44 }
 0x26e   :  { %7275 = vmatprep.mubr.msk.bf16.mxu0 %vm178_vm1, %v1696_v46  ;;  %7299 = vmatprep.mubr.msk.bf16.mxu1 %vm178_vm1, %v1696_v46 }
 0x26f   :  { %1813 = vmatmul.mubr.bf16.vlgmr.msra.gmra.mrb[44].mxu0 %v9883_v29  ;;  %2151 = vmatpush1.bf16.msra.mxu1 %v9871_v24 }
 0x270   :  { %2298 = vmatpush1.bf16.msra.mxu0 %v9879_v25  ;;  %7340 = vmatprep.mubr.msk.bf16.mxu0 %vm178_vm1, %v1696_v46 }
 0x271   :  { %2152 = vmatprep.subr.bf16.mxu1 %v9888_v30  ;;  %2299 = vmatprep.subr.bf16.mxu0 %v9893_v48 }
 0x273   :  { %2153 = vmatpush1.bf16.msra.mxu1 %v9902_v49 }
 0x274   :  { %2300 = vmatpush1.bf16.msra.mxu0 %v9909_v31  ;;  %2154 = vmatprep.subr.bf16.mxu1 %v9914_v51 }
 0x275   :  { %2301 = vmatprep.subr.bf16.mxu0 %v9921_v32 }
 0x277   :  { %2155 = vmatpush1.bf16.msra.mxu1 %v9927_v52 }
 0x278   :  { %2302 = vmatpush1.bf16.msra.mxu0 %v9934_v54  ;;  %2458 = vmatprep.subr.bf16.mxu1 %v9939_v58 }
 0x279   :  { %2303 = vmatprep.subr.bf16.mxu0 %v9945_v37 }
 0x27a   :  { %2169 = vmatmul.mubr.bf16.vlgmr.msra.gmra.mrb[36].mxu1 %v9883_v29 }
 0x27b   :  { %2459 = vmatpush1.bf16.msra.mxu1 %v9951_v45  ;;  %7381 = vmatprep.mubr.msk.bf16.mxu1 %vm178_vm1, %v1696_v46  ;;  %v10061_v46 = vld [vmem:[%s11727_s4 + $0x194] ss:$8 sps:$4 sm:$0xff]  }
 0x27c   :  { %2304 = vmatpush1.bf16.msra.mxu0 %v9957_v63  ;;  %2460 = vmatprep.subr.bf16.mxu1 %v9963_v0  ;;  %11869 = vst [vmem:[#allocation16_spill] sm:$0xff] %v10061_v46 }
 0x27d   :  { %2305 = vmatprep.subr.bf16.mxu0 %v9969_v3 }
 0x27f   :  { %2461 = vmatpush1.bf16.msra.mxu1 %v9977_v5 }
 0x280   :  { %2306 = vmatpush1.bf16.msra.mxu0 %v9983_v6  ;;  %2462 = vmatprep.subr.bf16.mxu1 %v9989_v7 }
 0x281   :  { %2307 = vmatprep.subr.bf16.mxu0 %v9995_v50 }
 0x283   :  { %2463 = vmatpush1.bf16.msra.mxu1 %v10001_v8 }
 0x284   :  { %2308 = vmatpush1.bf16.msra.mxu0 %v10007_v10  ;;  %2464 = vmatprep.subr.bf16.mxu1 %v10013_v11 }
 0x285   :  { %2309 = vmatprep.subr.bf16.mxu0 %v10019_v35 }
 0x287   :  { %2465 = vmatpush1.bf16.msra.mxu1 %v10025_v47 }
 0x288   :  { %2310 = vmatpush1.bf16.msra.mxu0 %v10031_v22  ;;  %2466 = vmatprep.subr.bf16.mxu1 %v10037_v27 }
 0x289   :  { %2311 = vmatprep.subr.bf16.mxu0 %v10043_v28  ;;  %v10085_v28 = vld [vmem:[%s11727_s4 + $0x1a4] ss:$8 sps:$4 sm:$0xff]  }
 0x28a   :  { %11873 = vst [vmem:[#allocation20_spill] sm:$0xff] %v10085_v28 }
 0x28b   :  { %2467 = vmatpush1.bf16.msra.mxu1 %v10049_v34  ;;  %v10091_v34 = vld [vmem:[%s11727_s4 + $0x134] ss:$8 sps:$4 sm:$0xff]  }
 0x28c   :  { %2312 = vmatpush1.bf16.msra.mxu0 %v10055_v36  ;;  %2468 = vmatprep.subr.bf16.mxu1 %v10061_v46  ;;  %11874 = vst [vmem:[#allocation21_spill] sm:$0xff] %v10091_v34  ;;  %v10097_v36 = vld [vmem:[%s11727_s4 + $0x1a0] ss:$8 sps:$4 sm:$0xff]   ;;  %v10103_v46 = vld [vmem:[%s11727_s4 + $0x130] ss:$8 sps:$4 sm:$0xff]  }
 0x28d   :  { %2313 = vmatprep.subr.bf16.mxu0 %v10067_v26  ;;  %11875 = vst [vmem:[#allocation22_spill] sm:$0xff] %v10097_v36  ;;  %11876 = vst [vmem:[#allocation23_spill] sm:$0xff] %v10103_v46  ;;  %v10109_v26 = vld [vmem:[%s11727_s4 + $0x1b4] ss:$8 sps:$4 sm:$0xff]  }
 0x28e   :  { %11877 = vst [vmem:[#allocation24_spill] sm:$0xff] %v10109_v26 }
 0x28f   :  { %2469 = vmatpush1.bf16.msra.mxu1 %v10073_v16  ;;  %v11880_v16 = vmov 0  }
 0x290   :  { %2314 = vmatpush1.bf16.msra.mxu0 %v10079_v1  ;;  %2470 = vmatprep.subr.bf16.mxu1 %v10085_v28  ;;  %v10116_v1 = vld [vmem:[%s11727_s4 + $0x1b0] ss:$8 sps:$4 sm:$0xff]   ;;  %v10123_v28 = vld [vmem:[%s11727_s4 + $0x1c4] ss:$8 sps:$4 sm:$0xff]  }
 0x291   :  { %2315 = vmatprep.subr.bf16.mxu0 %v10091_v34  ;;  %11878 = vst [vmem:[#allocation25_spill] sm:$0xff] %v10116_v1  ;;  %11879 = vst [vmem:[#allocation26_spill] sm:$0xff] %v10123_v28 }
 0x293   :  { %2471 = vmatpush1.bf16.msra.mxu1 %v10097_v36  ;;  %v10131_v36 = vld [vmem:[%s11727_s4 + $0x1c0] ss:$8 sps:$4 sm:$0xff]  }
 0x294   :  { %2316 = vmatpush1.bf16.msra.mxu0 %v10103_v46  ;;  %2472 = vmatprep.subr.bf16.mxu1 %v10109_v26  ;;  %11881 = vst [vmem:[#allocation27_spill] sm:$0xff] %v10131_v36  ;;  %v10137_v26 = vld [vmem:[%s11727_s4 + $0x1d4] ss:$8 sps:$4 sm:$0xff]   ;;  %v10143_v46 = vld [vmem:[%s11727_s4 + $0x1d0] ss:$8 sps:$4 sm:$0xff]  }
 0x295   :  { %2626 = vmatprep.subr.bf16.mxu0 %v11880_v16  ;;  %11882 = vst [vmem:[#allocation28_spill] sm:$0xff] %v10137_v26  ;;  %11883 = vst [vmem:[#allocation29_spill] sm:$0xff] %v10143_v46 }
 0x297   :  { %2330 = vmatmul.mubr.bf16.vlgmr.msra.gmra.mrb[48].mxu0 %v9883_v29  ;;  %2473 = vmatpush1.bf16.msra.mxu1 %v10116_v1  ;;  %v11884_v1 = vmov 0.0|0.0  }
 0x298   :  { %2474 = vmatprep.subr.bf16.mxu1 %v10123_v28  ;;  %v11885_v28 = vmov 0.0  }
 0x29b   :  { %2475 = vmatpush1.bf16.msra.mxu1 %v10131_v36  ;;  %v8322_v36 = vld [vmem:[%s11729_s6] sm:$0xff]  }
 0x29c   :  { %2476 = vmatprep.subr.bf16.mxu1 %v10137_v26  ;;  %2627 = vmatpush1.bf16.msra.mxu0 %v8322_v36  ;;  %v8327_v36 = vld [vmem:[%s11729_s6 + $0x28] sm:$0xff]  }
 0x29d   :  { %2628 = vmatprep.subr.bf16.mxu0 %v11880_v16 }
 0x29f   :  { %2477 = vmatpush1.bf16.msra.mxu1 %v10143_v46  ;;  %v1974_v46 = vsub.s32 3, %v9393_v14 }
 0x2a0   :  { %8084 = vmatprep.subr.bf16.mxu1 %v11884_v1  ;;  %v8323_v1 = vld [vmem:[%s11729_s6 + $0x8] sm:$0xff]  }
 0x2a1   :  { %2629 = vmatpush1.bf16.msra.mxu0 %v8323_v1  ;;  %v8326_v1 = vld [vmem:[%s11729_s6 + $0x20] sm:$0xff]  }
 0x2a2   :  { %2491 = vmatmul.mubr.bf16.vlgmr.msra.gmra.mrb[40].mxu1 %v9883_v29  ;;  %2630 = vmatprep.subr.bf16.mxu0 %v11880_v16  ;;  %v8324_v29 = vld [vmem:[%s11729_s6 + $0x10] sm:$0xff]  }
 0x2a3   :  { %8086 = vmatpush3.bf16.msra.mxu1 %v9710_v15  ;;  %8043 = vmatprep.mubr.msk.f32.mxu1 %vm8954_vm2, %v11885_v28 }
 0x2a4   :  { %2966 = vmatprep.subr.bf16.mxu1 %v9718_v17  ;;  %v8325_v17 = vld [vmem:[%s11729_s6 + $0x18] sm:$0xff]  }
 0x2a5   :  { %2631 = vmatpush1.bf16.msra.mxu0 %v8324_v29  ;;  %v8328_v29 = vld [vmem:[%s11729_s6 + $0x30] sm:$0xff]  }
 0x2a6   :  { %2632 = vmatprep.subr.bf16.mxu0 %v11880_v16 }
 0x2a9   :  { %2633 = vmatpush1.bf16.msra.mxu0 %v8325_v17  ;;  %v8329_v17 = vld [vmem:[%s11729_s6 + $0x38] sm:$0xff]  }
 0x2aa   :  { %2634 = vmatprep.subr.bf16.mxu0 %v11880_v16 }
 0x2ad   :  { %2635 = vmatpush1.bf16.msra.mxu0 %v8326_v1  ;;  %v8330_v1 = vld [vmem:[%s11729_s6 + $0x40] sm:$0xff]  }
 0x2ae   :  { %2636 = vmatprep.subr.bf16.mxu0 %v11880_v16 }
 0x2b1   :  { %2637 = vmatpush1.bf16.msra.mxu0 %v8327_v36  ;;  %v8331_v36 = vld [vmem:[%s11729_s6 + $0x48] sm:$0xff]  }
 0x2b2   :  { %2638 = vmatprep.subr.bf16.mxu0 %v11880_v16 }
 0x2b5   :  { %2639 = vmatpush1.bf16.msra.mxu0 %v8328_v29  ;;  %v1953_v29 = vsub.s32 2, %v9393_v14 }
 0x2b6   :  { %2640 = vmatprep.subr.bf16.mxu0 %v11880_v16 }
 0x2b9   :  { %2641 = vmatpush1.bf16.msra.mxu0 %v8329_v17  ;;  %v473_v17 = vld [vmem:[%s11736_s10] sm:$0xf] }
 0x2ba   :  { %2642 = vmatprep.subr.bf16.mxu0 %v11880_v16  ;;  %v10197_v28 = vrot.slane %v473_v17, %v1953_v29  ;;  %v10200_v15 = vrot.slane %v473_v17, %v9406_v20  ;;  %v10209_v27 = vrot.slane %v473_v17, %v1974_v46 }
 0x2bc   :  { %11886 = vst [vmem:[#allocation30_spill] sm:$0xff] %v10197_v28  ;;  %11887 = vst [vmem:[#allocation31_spill] sm:$0xff] %v10200_v15 }
 0x2bd   :  { %2643 = vmatpush1.bf16.msra.mxu0 %v8330_v1  ;;  %v10203_v1 = vrot.slane %v473_v17, %v9409_v21  ;;  %11889 = vst [vmem:[#allocation33_spill] sm:$0xff] %v10209_v27 }
 0x2be   :  { %2644 = vmatprep.subr.bf16.mxu0 %v11880_v16 }
 0x2bf   :  { %11888 = vst [vmem:[#allocation32_spill] sm:$0xff] %v10203_v1 }
 0x2c1   :  { %2645 = vmatpush1.bf16.msra.mxu0 %v8331_v36 }
 0x2c2   :  { %3127 = vmatprep.subr.bf16.mxu0 %v9753_v40 }
 0x324   :  { %v1908_v26 = vpop.f32.mrb[32].mxu1 }
 0x325   :  { %v8038_v36 = vpop.f32.mrb[33].mxu1  ;;  %v1955_v40 = vsub.f32 %v1908_v26, %v10197_v28  ;;  %v1916_v16 = vsub.f32 %v1908_v26, %v10200_v15  ;;  %v1934_v34 = vsub.f32 %v1908_v26, %v10203_v1  ;;  %v1976_v14 = vsub.f32 %v1908_v26, %v10209_v27  ;;  %v2005_v27 = vld [vmem:[#allocation2 + $0x28] sm:$0xff] }
 0x327   :  { %v1956_v29 = vmul.f32 %v1955_v40, %v1955_v40  ;;  %v1917_v22 = vmul.f32 %v1916_v16, %v1916_v16  ;;  %v1935_v47 = vmul.f32 %v1934_v34, %v1934_v34  ;;  %v1977_v28 = vmul.f32 %v1976_v14, %v1976_v14 }
 0x329   :  { %v1957_v20 = vsel %vm1918_vm3, %v1956_v29, 0.0  ;;  %v1919_v21 = vsel %vm1918_vm3, %v1917_v22, 0.0  ;;  %v1936_v36 = vsel %vm1918_vm3, %v1935_v47, 0.0  ;;  %v1978_v15 = vsel %vm1918_vm3, %v1977_v28, 0.0  ;;  %v2004_v28 = vld [vmem:[#allocation2 + $0x20] sm:$0xff] }
 0x32a   :  { %1958 = vadd.xlane.f32.xlu1 %v1957_v20  ;;  %1920 = vadd.xlane.f32.xlu0 %v1919_v21 }
 0x32e   :  { %1937 = vadd.xlane.f32.xlu0 %v1936_v36 }
 0x332   :  { %1979 = vadd.xlane.f32.xlu0 %v1978_v15 }
 0x342   :  { %v1814_v46 = vpop.f32.mrb[44].mxu0 }
 0x343   :  { %v1815_v17 = vadd.f32 %v9759_v42, %v1814_v46  ;;  %v1816_v16 = vpop.f32.mrb[45].mxu0 }
 0x344   :  { %v1817_v40 = vpop.f32.mrb[46].mxu0 }
 0x345   :  { %v7276_v29 = vmul.f32 -1.442695, %v1815_v17  ;;  %v1818_v1 = vpop.f32.mrb[47].mxu0 }
 0x347   :  { %8610 = vpow2.f32 %v7276_v29 }
 0x34d   :  { %v2170_v22 = vpop.f32.mrb[36].mxu1 }
 0x34e   :  { %v2172_v34 = vpop.f32.mrb[37].mxu1  ;;  %v2171_v20 = vadd.f32 %v2170_v22, %v9516_v53 }
 0x34f   :  { %v2174_v26 = vpop.f32.mrb[38].mxu1  ;;  %v2173_v14 = vadd.f32 %v2172_v34, %v9519_v56  ;;  %v2010_v56 = vld [vmem:[#allocation2 + $0xa8] sm:$0xff] }
 0x350   :  { %v2175_v21 = vpop.f32.mrb[39].mxu1  ;;  %v2499_v15 = vadd.f32 %v2171_v20, %v2004_v28  ;;  %v7398_v26 = vld [vmem:[%s11735_s1 + $0x8] sm:$0xff]  ;;  %v2009_v28 = vld [vmem:[#allocation2 + $0xa0] sm:$0xff] }
 0x351   :  { %v8611_v47 = vpop.eup %8610  ;;  %v2500_v42 = vadd.f32 %v2173_v14, %v2005_v27 }
 0x352   :  { %v1823_v36 = vadd.f32 1.0, %v8611_v47  ;;  %v7382_v46 = vmul.f32 -1.442695, %v2499_v15 }
 0x353   :  { %v7383_v16 = vmul.f32 -1.442695, %v2500_v42 }
 0x354   :  { %8612 = vrcp.f32 %v1823_v36 }
 0x355   :  { %8614 = vpow2.f32 %v7382_v46 }
 0x356   :  { %8616 = vpow2.f32 %v7383_v16 }
 0x35e   :  { %v10219_v1 = vpop.eup %8612 }
 0x35f   :  { %11890 = vst [vmem:[#allocation34_spill] sm:$0xff] %v10219_v1  ;;  %8618 = vlog2.f32 %v10219_v1  ;;  %v2677_v17 = vsub.f32 1.0, %v10219_v1  ;;  %v8615_v40 = vpop.eup %8614 }
 0x360   :  { %v8617_v29 = vpop.eup %8616  ;;  %v2507_v34 = vadd.f32 1.0, %v8615_v40 }
 0x361   :  { %8620 = vlog2.f32 %v2677_v17  ;;  %v2508_v27 = vadd.f32 1.0, %v8617_v29  ;;  %v2682_v17 = vsub.f32 1.0, %v7398_v26 }
 0x362   :  { %8622 = vrcp.f32 %v2507_v34 }
 0x363   :  { %8624 = vrcp.f32 %v2508_v27 }
 0x369   :  { %v8619_v22 = vpop.eup %8618 }
 0x36a   :  { %v2331_v20 = vpop.f32.mrb[48].mxu0  ;;  %v2675_v21 = vmul.f32 0.6931472, %v8619_v22 }
 0x36b   :  { %v8621_v47 = vpop.eup %8620  ;;  %v2332_v14 = vadd.f32 %v2331_v20, %v9534_v39  ;;  %v2333_v36 = vpop.f32.mrb[49].mxu0 }
 0x36c   :  { %v2334_v15 = vadd.f32 %v2333_v36, %v9537_v41  ;;  %v2335_v42 = vpop.f32.mrb[50].mxu0  ;;  %v2676_v46 = vmax.f32 %v2675_v21, -100.0  ;;  %v2679_v16 = vmul.f32 0.6931472, %v8621_v47  ;;  %v8623_v34 = vpop.eup %8622 }
 0x36d   :  { %v2513_v40 = vadd.f32 %v2332_v14, %v2009_v28  ;;  %v2336_v53 = vpop.f32.mrb[51].mxu0  ;;  %v8625_v27 = vpop.eup %8624 }
 0x36e   :  { %v2514_v1 = vadd.f32 %v2334_v15, %v2010_v56  ;;  %v2680_v29 = vmax.f32 %v2679_v16, -100.0  ;;  %v2681_v11 = vmul.f32 %v7398_v26, %v2676_v46 }
 0x36f   :  { %v7384_v35 = vmul.f32 -1.442695, %v2513_v40 }
 0x370   :  { %v7385_v22 = vmul.f32 -1.442695, %v2514_v1  ;;  %v2683_v10 = vmul.f32 %v2682_v17, %v2680_v29 }
 0x371   :  { %8626 = vpow2.f32 %v7384_v35 }
 0x372   :  { %8628 = vpow2.f32 %v7385_v22  ;;  %v2684_v20 = vadd.f32 %v2683_v10, %v2681_v11  ;;  %v2014_v11 = vld [vmem:[#allocation2 + $0x120] sm:$0xff] }
 0x374   :  { %v2685_v39 = vsub.f32 0.0, %v2684_v20  ;;  %v11911_v20 = vld [vmem:[#allocation26_spill] sm:$0xff] }
 0x375   :  { %v2492_v36 = vpop.f32.mrb[40].mxu1 }
 0x376   :  { %v2493_v21 = vadd.f32 %v2492_v36, %v9546_v55  ;;  %v2494_v47 = vpop.f32.mrb[41].mxu1  ;;  %8044 = vmatmul.mubr.msk.f32.vlgmr.msra.gmra.mrb[34].mxu1 %vm91_vm0, %v2685_v39  ;;  %v2015_v39 = vld [vmem:[#allocation2 + $0x128] sm:$0xff] }
 0x377   :  { %v2495_v53 = vadd.f32 %v2494_v47, %v9549_v57  ;;  %2967 = vmatpush1.bf16.msra.mxu1 %v9780_v59  ;;  %v2496_v56 = vpop.f32.mrb[42].mxu1 }
 0x378   :  { %v2527_v1 = vmul.f32 %v8623_v34, %v2493_v21  ;;  %v2497_v26 = vpop.f32.mrb[43].mxu1  ;;  %2968 = vmatprep.subr.bf16.mxu1 %v9785_v60  ;;  %v11912_v21 = vld [vmem:[#allocation27_spill] sm:$0xff] }
 0x379   :  { %v2528_v35 = vmul.f32 %v8625_v27, %v2495_v53  ;;  %v11913_v53 = vld [vmem:[#allocation28_spill] sm:$0xff]  ;;  %v11914_v27 = vld [vmem:[#allocation29_spill] sm:$0xff] }
 0x37a   :  { %v2529_v15 = vadd.f32 %v2527_v1, %v2014_v11  ;;  %v11915_v1 = vmov 0.0|0.0   ;;  %v11916_v11 = vld [vmem:[#allocation6_spill] sm:$0xff] }
 0x37b   :  { %v8627_v10 = vpop.eup %8626  ;;  %2969 = vmatpush1.bf16.msra.mxu1 %v9792_v61  ;;  %v2530_v46 = vadd.f32 %v2528_v35, %v2015_v39 }
 0x37c   :  { %v8629_v14 = vpop.eup %8628  ;;  %v2521_v28 = vadd.f32 1.0, %v8627_v10  ;;  %2970 = vmatprep.subr.bf16.mxu1 %v9798_v62 }
 0x37d   :  { %v2522_v42 = vadd.f32 1.0, %v8629_v14  ;;  %v11917_v14 = vmov 0.0  }
 0x37e   :  { %8630 = vrcp.f32 %v2521_v28 }
 0x37f   :  { %8632 = vrcp.f32 %v2522_v42  ;;  %2971 = vmatpush1.bf16.msra.mxu1 %v9805_v2 }
 0x380   :  { %8634 = vtanh.f32 %v2529_v15  ;;  %2972 = vmatprep.subr.bf16.mxu1 %v9811_v4 }
 0x381   :  { %8636 = vtanh.f32 %v2530_v46 }
 0x383   :  { %2973 = vmatpush1.bf16.msra.mxu1 %v9817_v43 }
 0x384   :  { %2974 = vmatprep.subr.bf16.mxu1 %v9823_v13 }
 0x387   :  { %2975 = vmatpush1.bf16.msra.mxu1 %v9829_v18 }
 0x388   :  { %v8631_v59 = vpop.eup %8630  ;;  %2976 = vmatprep.subr.bf16.mxu1 %v9835_v19 }
 0x389   :  { %v8633_v60 = vpop.eup %8632  ;;  %v2533_v61 = vsub.f32 1.0, %v8631_v59  ;;  %v2537_v4 = vmul.f32 %v8631_v59, %v9863_v38  ;;  %v11894_v38 = vld [vmem:[#allocation10_spill] sm:$0xff] }
 0x38a   :  { %v8635_v62 = vpop.eup %8634  ;;  %v2534_v16 = vsub.f32 1.0, %v8633_v60  ;;  %v2538_v13 = vmul.f32 %v8633_v60, %v9866_v44  ;;  %v11895_v44 = vld [vmem:[#allocation11_spill] sm:$0xff]  ;;  %v11918_v60 = vld [vmem:[#allocation34_spill] sm:$0xff] }
 0x38b   :  { %v8637_v17 = vpop.eup %8636  ;;  %2977 = vmatpush1.bf16.msra.mxu1 %v9841_v23  ;;  %v2535_v2 = vmul.f32 %v8635_v62, %v2533_v61 }
 0x38c   :  { %2978 = vmatprep.subr.bf16.mxu1 %v9847_v9  ;;  %v2536_v43 = vmul.f32 %v8637_v17, %v2534_v16  ;;  %v11891_v9 = vld [vmem:[#allocation7_spill] sm:$0xff] }
 0x38d   :  { %v10245_v40 = vadd.f32 %v2537_v4, %v2535_v2 }
 0x38e   :  { %v10247_v18 = vadd.f32 %v2538_v13, %v2536_v43 }
 0x38f   :  { %2979 = vmatpush1.bf16.msra.mxu1 %v9853_v12  ;;  %v10255_v23 = vpack.c.bf16 %v10245_v40, %v10245_v40  ;;  %v11892_v12 = vld [vmem:[#allocation8_spill] sm:$0xff] }
 0x390   :  { %v2542_v19 = vpack.c.bf16 %v10247_v18, %v10247_v18  ;;  %2980 = vmatprep.subr.bf16.mxu1 %v9860_v33  ;;  %v11893_v33 = vld [vmem:[#allocation9_spill] sm:$0xff] }
 0x392   :  { %7396 = vmatprep.mubr.msk.bf16.mxu0 %vm178_vm1, %v2542_v19  ;;  %7421 = vmatprep.mubr.msk.bf16.mxu1 %vm178_vm1, %v2542_v19 }
 0x393   :  { %2659 = vmatmul.mubr.bf16.vlgmr.msra.gmra.mrb[52].mxu0 %v10255_v23  ;;  %2981 = vmatpush1.bf16.msra.mxu1 %v9871_v24  ;;  %v11896_v24 = vld [vmem:[#allocation12_spill] sm:$0xff] }
 0x394   :  { %3128 = vmatpush1.bf16.msra.mxu0 %v9879_v25  ;;  %7462 = vmatprep.mubr.msk.bf16.mxu0 %vm178_vm1, %v2542_v19  ;;  %v11897_v25 = vld [vmem:[#allocation13_spill] sm:$0xff] }
 0x395   :  { %2982 = vmatprep.subr.bf16.mxu1 %v9888_v30  ;;  %3129 = vmatprep.subr.bf16.mxu0 %v9893_v48  ;;  %v11898_v30 = vld [vmem:[#allocation14_spill] sm:$0xff]  ;;  %v11899_v48 = vld [vmem:[#allocation15_spill] sm:$0xff] }
 0x397   :  { %2983 = vmatpush1.bf16.msra.mxu1 %v9902_v49  ;;  %v11900_v49 = vld [vmem:[#allocation16_spill] sm:$0xff] }
 0x398   :  { %3130 = vmatpush1.bf16.msra.mxu0 %v9909_v31  ;;  %2984 = vmatprep.subr.bf16.mxu1 %v9914_v51  ;;  %v11901_v31 = vld [vmem:[#allocation17_spill] sm:$0xff]  ;;  %v11902_v51 = vld [vmem:[#allocation18_spill] sm:$0xff] }
 0x399   :  { %3131 = vmatprep.subr.bf16.mxu0 %v9921_v32  ;;  %v11903_v32 = vld [vmem:[#allocation19_spill] sm:$0xff] }
 0x39b   :  { %2985 = vmatpush1.bf16.msra.mxu1 %v9927_v52  ;;  %v11904_v52 = vld [vmem:[#allocation20_spill] sm:$0xff] }
 0x39c   :  { %3132 = vmatpush1.bf16.msra.mxu0 %v9934_v54  ;;  %3288 = vmatprep.subr.bf16.mxu1 %v9939_v58  ;;  %v11905_v54 = vld [vmem:[#allocation21_spill] sm:$0xff]  ;;  %v11906_v58 = vld [vmem:[#allocation22_spill] sm:$0xff] }
 0x39d   :  { %3133 = vmatprep.subr.bf16.mxu0 %v9945_v37 }
 0x39e   :  { %2999 = vmatmul.mubr.bf16.vlgmr.msra.gmra.mrb[44].mxu1 %v10255_v23 }
 0x39f   :  { %3289 = vmatpush1.bf16.msra.mxu1 %v9951_v45  ;;  %7503 = vmatprep.mubr.msk.bf16.mxu1 %vm178_vm1, %v2542_v19 }
 0x3a0   :  { %3134 = vmatpush1.bf16.msra.mxu0 %v9957_v63  ;;  %3290 = vmatprep.subr.bf16.mxu1 %v9963_v0  ;;  %v11907_v63 = vld [vmem:[#allocation23_spill] sm:$0xff] }
 0x3a1   :  { %3135 = vmatprep.subr.bf16.mxu0 %v9969_v3 }
 0x3a3   :  { %3291 = vmatpush1.bf16.msra.mxu1 %v9977_v5  ;;  %v11908_v5 = vld [vmem:[#allocation24_spill] sm:$0xff] }
 0x3a4   :  { %3136 = vmatpush1.bf16.msra.mxu0 %v9983_v6  ;;  %3292 = vmatprep.subr.bf16.mxu1 %v9989_v7  ;;  %v11909_v6 = vmov 0  }
 0x3a5   :  { %3137 = vmatprep.subr.bf16.mxu0 %v9995_v50 }
 0x3a7   :  { %3293 = vmatpush1.bf16.msra.mxu1 %v10001_v8  ;;  %v11910_v8 = vld [vmem:[#allocation25_spill] sm:$0xff] }
 0x3a8   :  { %3138 = vmatpush1.bf16.msra.mxu0 %v11891_v9  ;;  %3294 = vmatprep.subr.bf16.mxu1 %v11892_v12  ;;  %v8333_v9 = vld [vmem:[%s11729_s6 + $0x8] sm:$0xff]   ;;  %v8334_v12 = vld [vmem:[%s11729_s6 + $0x10] sm:$0xff]  }
 0x3a9   :  { %3139 = vmatprep.subr.bf16.mxu0 %v11893_v33  ;;  %v10335_v33 = vld [vmem:[%s11727_s4 + $0x4] ss:$8 sps:$4 sm:$0xff]  }
 0x3ab   :  { %3295 = vmatpush1.bf16.msra.mxu1 %v11894_v38  ;;  %v8338_v38 = vld [vmem:[%s11729_s6 + $0x18] sm:$0xff]  }
 0x3ac   :  { %3140 = vmatpush1.bf16.msra.mxu0 %v11895_v44  ;;  %3296 = vmatprep.subr.bf16.mxu1 %v11896_v24  ;;  %v8342_v44 = vld [vmem:[%s11729_s6 + $0x20] sm:$0xff]   ;;  %v8346_v24 = vld [vmem:[%s11729_s6 + $0x28] sm:$0xff]  }
 0x3ad   :  { %3141 = vmatprep.subr.bf16.mxu0 %v11897_v25  ;;  %v8350_v25 = vld [vmem:[%s11729_s6 + $0x30] sm:$0xff]  }
 0x3af   :  { %3297 = vmatpush1.bf16.msra.mxu1 %v11898_v30  ;;  %v8354_v30 = vld [vmem:[%s11729_s6 + $0x38] sm:$0xff]  }
 0x3b0   :  { %3142 = vmatpush1.bf16.msra.mxu0 %v11899_v48  ;;  %3298 = vmatprep.subr.bf16.mxu1 %v11900_v49  ;;  %v8358_v48 = vld [vmem:[%s11729_s6 + $0x40] sm:$0xff]   ;;  %v8362_v49 = vld [vmem:[%s11729_s6 + $0x48] sm:$0xff]  }
 0x3b1   :  { %3143 = vmatprep.subr.bf16.mxu0 %v11901_v31  ;;  %v10368_v31 = vld [vmem:[%s11727_s4 + $0xa4] ss:$8 sps:$4 sm:$0xff]  }
 0x3b3   :  { %3299 = vmatpush1.bf16.msra.mxu1 %v11902_v51 }
 0x3b4   :  { %3144 = vmatpush1.bf16.msra.mxu0 %v11903_v32  ;;  %3300 = vmatprep.subr.bf16.mxu1 %v11904_v52  ;;  %v11919_v52 = vld [vmem:[#allocation32_spill] sm:$0xff] }
 0x3b5   :  { %3145 = vmatprep.subr.bf16.mxu0 %v11905_v54 }
 0x3b7   :  { %3301 = vmatpush1.bf16.msra.mxu1 %v11906_v58  ;;  %v1959_v37 = vpop.xlane.xlu1 %1958  ;;  %v1921_v45 = vpop.xlane.xlu0 %1920  ;;  %v11920_v58 = vld [vmem:[#allocation31_spill] sm:$0xff] }
 0x3b8   :  { %3146 = vmatpush1.bf16.msra.mxu0 %v11907_v63  ;;  %v1960_v0 = vsub.f32 0.0, %v1959_v37  ;;  %v1922_v3 = vsub.f32 0.0, %v1921_v45  ;;  %3302 = vmatprep.subr.bf16.mxu1 %v11908_v5  ;;  %v11921_v45 = vld [vmem:[#allocation33_spill] sm:$0xff] }
 0x3b9   :  { %3456 = vmatprep.subr.bf16.mxu0 %v11909_v6 }
 0x3ba   :  { %v1961_v7 = vmul.f32 1.442695, %v1960_v0  ;;  %v1923_v50 = vmul.f32 1.442695, %v1922_v3  ;;  %v11922_v0 = vld [vmem:[#allocation30_spill] sm:$0xff] }
 0x3bb   :  { %3160 = vmatmul.mubr.bf16.vlgmr.msra.gmra.mrb[56].mxu0 %v10255_v23  ;;  %3303 = vmatpush1.bf16.msra.mxu1 %v11910_v8  ;;  %v1938_v29 = vpop.xlane.xlu0 %1937 }
 0x3bc   :  { %8638 = vpow2.f32 %v1961_v7  ;;  %v1939_v22 = vsub.f32 0.0, %v1938_v29  ;;  %3304 = vmatprep.subr.bf16.mxu1 %v11911_v20 }
 0x3bd   :  { %8640 = vpow2.f32 %v1923_v50 }
 0x3be   :  { %v1940_v36 = vmul.f32 1.442695, %v1939_v22 }
 0x3bf   :  { %3305 = vmatpush1.bf16.msra.mxu1 %v11912_v21  ;;  %v1980_v47 = vpop.xlane.xlu0 %1979 }
 0x3c0   :  { %8642 = vpow2.f32 %v1940_v36  ;;  %v1981_v34 = vsub.f32 0.0, %v1980_v47  ;;  %3306 = vmatprep.subr.bf16.mxu1 %v11913_v53 }
 0x3c2   :  { %v1982_v56 = vmul.f32 1.442695, %v1981_v34 }
 0x3c3   :  { %3307 = vmatpush1.bf16.msra.mxu1 %v11914_v27 }
 0x3c4   :  { %8644 = vpow2.f32 %v1982_v56  ;;  %8087 = vmatprep.subr.bf16.mxu1 %v11915_v1 }
 0x3c6   :  { %v8639_v26 = vpop.eup %8638  ;;  %3321 = vmatmul.mubr.bf16.vlgmr.msra.gmra.mrb[48].mxu1 %v10255_v23  ;;  %v8332_v23 = vld [vmem:[%s11729_s6] sm:$0xff]  }
 0x3c7   :  { %v8641_v35 = vpop.eup %8640  ;;  %v1963_v10 = vmul.f32 1.442695, %v8639_v26  ;;  %8089 = vmatpush3.bf16.msra.mxu1 %v11916_v11  ;;  %8050 = vmatprep.mubr.msk.f32.mxu1 %vm8954_vm2, %v11917_v14 }
 0x3c8   :  { %v1925_v28 = vmul.f32 1.442695, %v8641_v35  ;;  %3457 = vmatpush1.bf16.msra.mxu0 %v8332_v23  ;;  %3796 = vmatprep.subr.bf16.mxu1 %v10335_v33 }
 0x3c9   :  { %8646 = vpow2.f32 %v1963_v10  ;;  %3458 = vmatprep.subr.bf16.mxu0 %v11909_v6 }
 0x3ca   :  { %v8643_v15 = vpop.eup %8642  ;;  %8648 = vpow2.f32 %v1925_v28 }
 0x3cb   :  { %v1942_v39 = vmul.f32 1.442695, %v8643_v15  ;;  %v10384_v15 = vld [vmem:[%s11733_s7] ss:$0 sm:$0xff] }
 0x3cc   :  { %3459 = vmatpush1.bf16.msra.mxu0 %v8333_v9  ;;  %v2834_v9 = vld [vmem:[#allocation2 + $0x30] sm:$0xff] }
 0x3cd   :  { %8650 = vpow2.f32 %v1942_v39  ;;  %3460 = vmatprep.subr.bf16.mxu0 %v11909_v6 }
 0x3ce   :  { %v8645_v42 = vpop.eup %8644 }
 0x3cf   :  { %v1984_v46 = vmul.f32 1.442695, %v8645_v42 }
 0x3d0   :  { %3461 = vmatpush1.bf16.msra.mxu0 %v8334_v12 }
 0x3d1   :  { %8652 = vpow2.f32 %v1984_v46  ;;  %3462 = vmatprep.subr.bf16.mxu0 %v11909_v6 }
 0x3d3   :  { %v8647_v59 = vpop.eup %8646 }
 0x3d4   :  { %v1966_v61 = vmul.f32 %v8647_v59, %v11918_v60  ;;  %v8649_v62 = vpop.eup %8648  ;;  %3463 = vmatpush1.bf16.msra.mxu0 %v8338_v38  ;;  %v2835_v38 = vld [vmem:[#allocation2 + $0x38] sm:$0xff] }
 0x3d5   :  { %3464 = vmatprep.subr.bf16.mxu0 %v11909_v6  ;;  %v1928_v5 = vmul.f32 %v8649_v62, %v11918_v60 }
 0x3d6   :  { %1968 = vrot.lane.b32.xlu0 %v1966_v61, %s8956_s12 }
 0x3d7   :  { %v8651_v16 = vpop.eup %8650 }
 0x3d8   :  { %v1944_v17 = vadd.f32 %v8651_v16, %v8649_v62  ;;  %v1945_v2 = vmul.f32 %v8651_v16, %v11918_v60  ;;  %3465 = vmatpush1.bf16.msra.mxu0 %v8342_v44 }
 0x3d9   :  { %3466 = vmatprep.subr.bf16.mxu0 %v11909_v6 }
 0x3da   :  { %1947 = vrot.lane.b32.xlu1 %v1945_v2, %s8957_s13  ;;  %v1965_v4 = vadd.f32 %v8647_v59, %v1944_v17  ;;  %v11923_v17 = vld [vmem:[#allocation3_spill] sm:$0xff] }
 0x3db   :  { %v8653_v43 = vpop.eup %8652 }
 0x3dc   :  { %v1987_v13 = vmul.f32 %v8653_v43, %v11918_v60  ;;  %v1986_v19 = vadd.f32 %v8653_v43, %v1965_v4  ;;  %3467 = vmatpush1.bf16.msra.mxu0 %v8346_v24 }
 0x3dd   :  { %3468 = vmatprep.subr.bf16.mxu0 %v11909_v6 }
 0x3de   :  { %1989 = vrot.lane.b32.xlu1 %v1987_v13, %s8958_s14  ;;  %8654 = vrcp.f32 %v1986_v19  ;;  %v11924_v13 = vld [vmem:[#allocation4_spill] sm:$0xff] }
 0x3e0   :  { %3469 = vmatpush1.bf16.msra.mxu0 %v8350_v25 }
 0x3e1   :  { %3470 = vmatprep.subr.bf16.mxu0 %v11909_v6 }
 0x3e4   :  { %3471 = vmatpush1.bf16.msra.mxu0 %v8354_v30 }
 0x3e5   :  { %3472 = vmatprep.subr.bf16.mxu0 %v11909_v6 }
 0x3e8   :  { %3473 = vmatpush1.bf16.msra.mxu0 %v8358_v48  ;;  %v8655_v27 = vpop.eup %8654 }
 0x3e9   :  { %3474 = vmatprep.subr.bf16.mxu0 %v11909_v6 }
 0x3ec   :  { %3475 = vmatpush1.bf16.msra.mxu0 %v8362_v49 }
 0x3ed   :  { %3957 = vmatprep.subr.bf16.mxu0 %v10368_v31 }
 0x448   :  { %v1969_v22 = vpop.permute.xlu0 %1968 }
 0x449   :  { %v2755_v51 = vpop.f32.mrb[34].mxu1 }
 0x44a   :  { %v8045_v32 = vpop.f32.mrb[35].mxu1  ;;  %v2772_v54 = vsub.f32 %v2755_v51, %v11919_v52  ;;  %v2759_v37 = vsub.f32 %v2755_v51, %v11920_v58  ;;  %v2806_v63 = vsub.f32 %v2755_v51, %v11921_v45  ;;  %v2789_v3 = vsub.f32 %v2755_v51, %v11922_v0 }
 0x44c   :  { %v1948_v7 = vpop.permute.xlu1 %1947  ;;  %v2773_v50 = vmul.f32 %v2772_v54, %v2772_v54  ;;  %v2760_v8 = vmul.f32 %v2759_v37, %v2759_v37  ;;  %v2807_v21 = vmul.f32 %v2806_v63, %v2806_v63  ;;  %v2790_v47 = vmul.f32 %v2789_v3, %v2789_v3  ;;  %v7520_v37 = vld [vmem:[%s11735_s1 + $0x10] sm:$0xff] }
 0x44d   :  { %v1950_v29 = vadd.f32 %v1948_v7, %v1928_v5 }
 0x44e   :  { %v2774_v20 = vsel %vm1918_vm3, %v2773_v50, 0.0  ;;  %v2761_v36 = vsel %vm1918_vm3, %v2760_v8, 0.0  ;;  %v2808_v26 = vsel %vm1918_vm3, %v2807_v21, 0.0  ;;  %v2791_v35 = vsel %vm1918_vm3, %v2790_v47, 0.0  ;;  %v11925_v50 = vld [vmem:[#allocation5_spill] sm:$0xff] }
 0x44f   :  { %2775 = vadd.xlane.f32.xlu1 %v2774_v20  ;;  %2762 = vadd.xlane.f32.xlu0 %v2761_v36  ;;  %v1971_v34 = vadd.f32 %v1969_v22, %v1950_v29  ;;  %v2839_v22 = vld [vmem:[#allocation2 + $0xb0] sm:$0xff] }
 0x450   :  { %v1990_v53 = vpop.permute.xlu1 %1989 }
 0x451   :  { %v1992_v56 = vadd.f32 %v1990_v53, %v1971_v34  ;;  %v3512_v34 = vsub.f32 1.0, %v7520_v37 }
 0x453   :  { %v1994_v10 = vmul.f32 %v8655_v27, %v1992_v56  ;;  %2809 = vadd.xlane.f32.xlu1 %v2808_v26  ;;  %2792 = vadd.xlane.f32.xlu0 %v2791_v35  ;;  %v2840_v56 = vld [vmem:[#allocation2 + $0xb8] sm:$0xff] }
 0x464   :  { %1996 = vrot.lane.b32.xlu1 %v1994_v10, %s8957_s13 }
 0x466   :  { %v2660_v28 = vpop.f32.mrb[52].mxu0 }
 0x467   :  { %v2661_v39 = vadd.f32 %v10384_v15, %v2660_v28  ;;  %v2662_v42 = vpop.f32.mrb[53].mxu0 }
 0x468   :  { %v2663_v46 = vpop.f32.mrb[54].mxu0 }
 0x469   :  { %v7397_v59 = vmul.f32 -1.442695, %v2661_v39  ;;  %v2664_v60 = vpop.f32.mrb[55].mxu0 }
 0x46b   :  { %8656 = vpow2.f32 %v7397_v59  ;;  %v10401_v59 = vld [vmem:[%s11727_s4] ss:$8 sps:$4 sm:$0xff]  }
 0x471   :  { %v3000_v61 = vpop.f32.mrb[44].mxu1 }
 0x472   :  { %v3002_v62 = vpop.f32.mrb[45].mxu1  ;;  %v3001_v2 = vadd.f32 %v3000_v61, %v11923_v17  ;;  %v10406_v61 = vld [vmem:[%s11727_s4 + $0x14] ss:$8 sps:$4 sm:$0xff]  }
 0x473   :  { %v3004_v16 = vpop.f32.mrb[46].mxu1  ;;  %v3003_v19 = vadd.f32 %v3002_v62, %v11924_v13 }
 0x474   :  { %v3005_v4 = vpop.f32.mrb[47].mxu1  ;;  %v3329_v12 = vadd.f32 %v3001_v2, %v2834_v9 }
 0x475   :  { %v8657_v43 = vpop.eup %8656  ;;  %v3330_v44 = vadd.f32 %v3003_v19, %v2835_v38 }
 0x476   :  { %v2669_v23 = vadd.f32 1.0, %v8657_v43  ;;  %v7504_v24 = vmul.f32 -1.442695, %v3329_v12 }
 0x477   :  { %v7505_v25 = vmul.f32 -1.442695, %v3330_v44  ;;  %v10421_v44 = vld [vmem:[%s11727_s4 + $0x24] ss:$8 sps:$4 sm:$0xff]  }
 0x478   :  { %8658 = vrcp.f32 %v2669_v23  ;;  %v10415_v23 = vld [vmem:[%s11727_s4 + $0x10] ss:$8 sps:$4 sm:$0xff]  }
 0x479   :  { %8660 = vpow2.f32 %v7504_v24 }
 0x47a   :  { %8662 = vpow2.f32 %v7505_v25 }
 0x482   :  { %v10389_v30 = vpop.eup %8658 }
 0x483   :  { %8664 = vlog2.f32 %v10389_v30  ;;  %v3507_v48 = vsub.f32 1.0, %v10389_v30  ;;  %v8661_v49 = vpop.eup %8660 }
 0x484   :  { %v8663_v51 = vpop.eup %8662  ;;  %v3337_v54 = vadd.f32 1.0, %v8661_v49  ;;  %v10427_v49 = vld [vmem:[%s11727_s4 + $0x20] ss:$8 sps:$4 sm:$0xff]  }
 0x485   :  { %8666 = vlog2.f32 %v3507_v48  ;;  %v3338_v63 = vadd.f32 1.0, %v8663_v51  ;;  %v2844_v48 = vld [vmem:[#allocation2 + $0x130] sm:$0xff] }
 0x486   :  { %8668 = vrcp.f32 %v3337_v54 }
 0x487   :  { %8670 = vrcp.f32 %v3338_v63  ;;  %v10433_v63 = vld [vmem:[%s11727_s4 + $0x34] ss:$8 sps:$4 sm:$0xff]  }
 0x48d   :  { %v8665_v32 = vpop.eup %8664 }
 0x48e   :  { %v3161_v3 = vpop.f32.mrb[56].mxu0  ;;  %v3505_v5 = vmul.f32 0.6931472, %v8665_v32 }
 0x48f   :  { %v8667_v7 = vpop.eup %8666  ;;  %v3162_v8 = vadd.f32 %v3161_v3, %v11925_v50  ;;  %v3163_v29 = vpop.f32.mrb[57].mxu0 }
 0x490   :  { %v3164_v20 = vadd.f32 %v3163_v29, %v9537_v41  ;;  %v3165_v36 = vpop.f32.mrb[58].mxu0  ;;  %v3506_v21 = vmax.f32 %v3505_v5, -100.0  ;;  %v3509_v47 = vmul.f32 0.6931472, %v8667_v7  ;;  %v8669_v4 = vpop.eup %8668  ;;  %v10439_v7 = vld [vmem:[%s11727_s4 + $0x30] ss:$8 sps:$4 sm:$0xff]  }
 0x491   :  { %v3343_v53 = vadd.f32 %v3162_v8, %v2839_v22  ;;  %v3166_v27 = vpop.f32.mrb[59].mxu0  ;;  %v8671_v9 = vpop.eup %8670  ;;  %v10445_v8 = vld [vmem:[%s11727_s4 + $0x44] ss:$8 sps:$4 sm:$0xff]   ;;  %v10451_v29 = vld [vmem:[%s11727_s4 + $0x40] ss:$8 sps:$4 sm:$0xff]  }
 0x492   :  { %v3344_v26 = vadd.f32 %v3164_v20, %v2840_v56  ;;  %v3510_v35 = vmax.f32 %v3509_v47, -100.0  ;;  %v3511_v39 = vmul.f32 %v7520_v37, %v3506_v21  ;;  %v2845_v37 = vld [vmem:[#allocation2 + $0x138] sm:$0xff]  ;;  %v10469_v21 = vld [vmem:[%s11727_s4 + $0x64] ss:$8 sps:$4 sm:$0xff]  }
 0x493   :  { %v7506_v10 = vmul.f32 -1.442695, %v3343_v53  ;;  %v10457_v22 = vld [vmem:[%s11727_s4 + $0x54] ss:$8 sps:$4 sm:$0xff]   ;;  %v10463_v20 = vld [vmem:[%s11727_s4 + $0x50] ss:$8 sps:$4 sm:$0xff]  }
 0x494   :  { %v7507_v28 = vmul.f32 -1.442695, %v3344_v26  ;;  %v3513_v42 = vmul.f32 %v3512_v34, %v3510_v35  ;;  %11926 = vst [vmem:[#allocation7_spill] sm:$0xff] %v10469_v21  ;;  %v10475_v26 = vld [vmem:[%s11727_s4 + $0x60] ss:$8 sps:$4 sm:$0xff]  }
 0x495   :  { %8672 = vpow2.f32 %v7506_v10  ;;  %11927 = vst [vmem:[#allocation8_spill] sm:$0xff] %v10475_v26 }
 0x496   :  { %8674 = vpow2.f32 %v7507_v28  ;;  %v3514_v46 = vadd.f32 %v3513_v42, %v3511_v39  ;;  %v10483_v42 = vld [vmem:[%s11727_s4 + $0x74] ss:$8 sps:$4 sm:$0xff]  }
 0x497   :  { %11928 = vst [vmem:[#allocation9_spill] sm:$0xff] %v10483_v42 }
 0x498   :  { %v3515_v60 = vsub.f32 0.0, %v3514_v46 }
 0x499   :  { %v3322_v62 = vpop.f32.mrb[48].mxu1 }
 0x49a   :  { %v3323_v16 = vadd.f32 %v3322_v62, %v9546_v55  ;;  %v3324_v2 = vpop.f32.mrb[49].mxu1  ;;  %8051 = vmatmul.mubr.msk.f32.vlgmr.msra.gmra.mrb[52].mxu1 %vm91_vm0, %v3515_v60 }
 0x49b   :  { %v3325_v43 = vadd.f32 %v3324_v2, %v9549_v57  ;;  %3797 = vmatpush1.bf16.msra.mxu1 %v10401_v59  ;;  %v3326_v19 = vpop.f32.mrb[50].mxu1  ;;  %v10510_v2 = vld [vmem:[%s11727_s4 + $0x84] ss:$8 sps:$4 sm:$0xff]  }
 0x49c   :  { %v3357_v12 = vmul.f32 %v8669_v4, %v3323_v16  ;;  %v3327_v38 = vpop.f32.mrb[51].mxu1  ;;  %3798 = vmatprep.subr.bf16.mxu1 %v10406_v61  ;;  %11930 = vst [vmem:[#allocation11_spill] sm:$0xff] %v10510_v2  ;;  %v10515_v4 = vld [vmem:[%s11727_s4 + $0xb4] ss:$8 sps:$4 sm:$0xff]   ;;  %v10531_v19 = vld [vmem:[%s11727_s4 + $0xb0] ss:$8 sps:$4 sm:$0xff]  }
 0x49d   :  { %v3358_v24 = vmul.f32 %v8671_v9, %v3325_v43  ;;  %v10524_v43 = vld [vmem:[%s11727_s4 + $0x80] ss:$8 sps:$4 sm:$0xff]   ;;  %v10536_v9 = vld [vmem:[%s11727_s4 + $0x94] ss:$8 sps:$4 sm:$0xff]   ;;  %v10549_v38 = vld [vmem:[%s11727_s4 + $0x90] ss:$8 sps:$4 sm:$0xff]  }
 0x49e   :  { %v3359_v54 = vadd.f32 %v3357_v12, %v2844_v48  ;;  %11931 = vst [vmem:[#allocation12_spill] sm:$0xff] %v10524_v43  ;;  %11932 = vst [vmem:[#allocation13_spill] sm:$0xff] %v10536_v9  ;;  %v10543_v12 = vld [vmem:[%s11727_s4 + $0xc4] ss:$8 sps:$4 sm:$0xff]   ;;  %v10567_v48 = vld [vmem:[%s11727_s4 + $0xd4] ss:$8 sps:$4 sm:$0xff]  }
 0x49f   :  { %v8673_v25 = vpop.eup %8672  ;;  %3799 = vmatpush1.bf16.msra.mxu1 %v10415_v23  ;;  %v3360_v5 = vadd.f32 %v3358_v24, %v2845_v37  ;;  %11933 = vst [vmem:[#allocation14_spill] sm:$0xff] %v10549_v38  ;;  %v10556_v24 = vld [vmem:[%s11727_s4 + $0xc0] ss:$8 sps:$4 sm:$0xff]   ;;  %v10591_v37 = vld [vmem:[%s11727_s4 + $0xe4] ss:$8 sps:$4 sm:$0xff]  }
 0x4a0   :  { %v8675_v51 = vpop.eup %8674  ;;  %v3351_v32 = vadd.f32 1.0, %v8673_v25  ;;  %3800 = vmatprep.subr.bf16.mxu1 %v10421_v44  ;;  %v10561_v25 = vld [vmem:[%s11727_s4 + $0x144] ss:$8 sps:$4 sm:$0xff]  }
 0x4a1   :  { %v3352_v3 = vadd.f32 1.0, %v8675_v51  ;;  %11934 = vst [vmem:[#allocation15_spill] sm:$0xff] %v10561_v25  ;;  %v10573_v51 = vld [vmem:[%s11727_s4 + $0x140] ss:$8 sps:$4 sm:$0xff]  }
 0x4a2   :  { %8676 = vrcp.f32 %v3351_v32  ;;  %11935 = vst [vmem:[#allocation16_spill] sm:$0xff] %v10573_v51  ;;  %v10579_v32 = vld [vmem:[%s11727_s4 + $0xd0] ss:$8 sps:$4 sm:$0xff]  }
 0x4a3   :  { %8678 = vrcp.f32 %v3352_v3  ;;  %3801 = vmatpush1.bf16.msra.mxu1 %v10427_v49  ;;  %v10599_v3 = vld [vmem:[%s11727_s4 + $0x150] ss:$8 sps:$4 sm:$0xff]  }
 0x4a4   :  { %8680 = vtanh.f32 %v3359_v54  ;;  %3802 = vmatprep.subr.bf16.mxu1 %v10433_v63  ;;  %v10585_v54 = vld [vmem:[%s11727_s4 + $0x154] ss:$8 sps:$4 sm:$0xff]   ;;  %11937 = vst [vmem:[#allocation18_spill] sm:$0xff] %v10599_v3 }
 0x4a5   :  { %8682 = vtanh.f32 %v3360_v5  ;;  %11936 = vst [vmem:[#allocation17_spill] sm:$0xff] %v10585_v54  ;;  %v10605_v5 = vld [vmem:[%s11727_s4 + $0xe0] ss:$8 sps:$4 sm:$0xff]  }
 0x4a7   :  { %3803 = vmatpush1.bf16.msra.mxu1 %v10439_v7 }
 0x4a8   :  { %3804 = vmatprep.subr.bf16.mxu1 %v10445_v8 }
 0x4ab   :  { %3805 = vmatpush1.bf16.msra.mxu1 %v10451_v29 }
 0x4ac   :  { %v8677_v36 = vpop.eup %8676  ;;  %3806 = vmatprep.subr.bf16.mxu1 %v10457_v22 }
 0x4ad   :  { %v8679_v47 = vpop.eup %8678  ;;  %v3363_v34 = vsub.f32 1.0, %v8677_v36  ;;  %v3367_v10 = vmul.f32 %v8677_v36, %v10245_v40  ;;  %v10493_v40 = vld [vmem:[%s11727_s4 + $0x70] ss:$8 sps:$4 sm:$0xff]   ;;  %v10611_v36 = vld [vmem:[%s11727_s4 + $0x164] ss:$8 sps:$4 sm:$0xff]  }
 0x4ae   :  { %v8681_v53 = vpop.eup %8680  ;;  %v3364_v56 = vsub.f32 1.0, %v8679_v47  ;;  %v3368_v39 = vmul.f32 %v8679_v47, %v10247_v18  ;;  %11929 = vst [vmem:[#allocation10_spill] sm:$0xff] %v10493_v40  ;;  %v10501_v18 = vld [vmem:[%s11727_s4 + $0xa0] ss:$8 sps:$4 sm:$0xff]   ;;  %11938 = vst [vmem:[#allocation19_spill] sm:$0xff] %v10611_v36 }
 0x4af   :  { %v8683_v27 = vpop.eup %8682  ;;  %3807 = vmatpush1.bf16.msra.mxu1 %v10463_v20  ;;  %v3365_v35 = vmul.f32 %v8681_v53, %v3363_v34  ;;  %v10617_v47 = vld [vmem:[%s11727_s4 + $0xf4] ss:$8 sps:$4 sm:$0xff]   ;;  %v10623_v34 = vld [vmem:[%s11727_s4 + $0x160] ss:$8 sps:$4 sm:$0xff]   ;;  %v10629_v53 = vld [vmem:[%s11727_s4 + $0xf0] ss:$8 sps:$4 sm:$0xff]  }
 0x4b0   :  { %3808 = vmatprep.subr.bf16.mxu1 %v10469_v21  ;;  %v3366_v28 = vmul.f32 %v8683_v27, %v3364_v56  ;;  %11939 = vst [vmem:[#allocation20_spill] sm:$0xff] %v10623_v34  ;;  %v10635_v56 = vld [vmem:[%s11727_s4 + $0x174] ss:$8 sps:$4 sm:$0xff]   ;;  %v10641_v27 = vld [vmem:[%s11727_s4 + $0x104] ss:$8 sps:$4 sm:$0xff]  }
 0x4b1   :  { %v10485_v46 = vadd.f32 %v3367_v10, %v3365_v35  ;;  %11940 = vst [vmem:[#allocation21_spill] sm:$0xff] %v10635_v56  ;;  %v10647_v35 = vld [vmem:[%s11727_s4 + $0x170] ss:$8 sps:$4 sm:$0xff]   ;;  %v10653_v10 = vld [vmem:[%s11727_s4 + $0x100] ss:$8 sps:$4 sm:$0xff]  }
 0x4b2   :  { %v10487_v60 = vadd.f32 %v3368_v39, %v3366_v28  ;;  %11941 = vst [vmem:[#allocation22_spill] sm:$0xff] %v10647_v35  ;;  %v10659_v28 = vld [vmem:[%s11727_s4 + $0x184] ss:$8 sps:$4 sm:$0xff]   ;;  %v10665_v39 = vld [vmem:[%s11727_s4 + $0x114] ss:$8 sps:$4 sm:$0xff]  }
 0x4b3   :  { %3809 = vmatpush1.bf16.msra.mxu1 %v10475_v26  ;;  %v10505_v16 = vpack.c.bf16 %v10485_v46, %v10485_v46  ;;  %11942 = vst [vmem:[#allocation23_spill] sm:$0xff] %v10659_v28  ;;  %v10765_v26 = vld [vmem:[%s11727_s4 + $0x1d0] ss:$8 sps:$4 sm:$0xff]  }
 0x4b4   :  { %v3372_v62 = vpack.c.bf16 %v10487_v60, %v10487_v60  ;;  %3810 = vmatprep.subr.bf16.mxu1 %v10483_v42  ;;  %11951 = vst [vmem:[#allocation36_spill] sm:$0xff] %v10765_v26 }
 0x4b6   :  { %7518 = vmatprep.mubr.msk.bf16.mxu0 %vm178_vm1, %v3372_v62  ;;  %7543 = vmatprep.mubr.msk.bf16.mxu1 %vm178_vm1, %v3372_v62 }
 0x4b7   :  { %3489 = vmatmul.mubr.bf16.vlgmr.msra.gmra.mrb[60].mxu0 %v10505_v16  ;;  %3811 = vmatpush1.bf16.msra.mxu1 %v10493_v40  ;;  %v10753_v40 = vld [vmem:[%s11727_s4 + $0x1c0] ss:$8 sps:$4 sm:$0xff]  }
 0x4b8   :  { %3958 = vmatpush1.bf16.msra.mxu0 %v10501_v18  ;;  %7584 = vmatprep.mubr.msk.bf16.mxu0 %vm178_vm1, %v3372_v62 }
 0x4b9   :  { %3812 = vmatprep.subr.bf16.mxu1 %v10510_v2  ;;  %3959 = vmatprep.subr.bf16.mxu0 %v10515_v4 }
 0x4bb   :  { %3813 = vmatpush1.bf16.msra.mxu1 %v10524_v43 }
 0x4bc   :  { %3960 = vmatpush1.bf16.msra.mxu0 %v10531_v19  ;;  %3814 = vmatprep.subr.bf16.mxu1 %v10536_v9 }
 0x4bd   :  { %3961 = vmatprep.subr.bf16.mxu0 %v10543_v12 }
 0x4bf   :  { %3815 = vmatpush1.bf16.msra.mxu1 %v10549_v38 }
 0x4c0   :  { %3962 = vmatpush1.bf16.msra.mxu0 %v10556_v24  ;;  %4118 = vmatprep.subr.bf16.mxu1 %v10561_v25 }
 0x4c1   :  { %3963 = vmatprep.subr.bf16.mxu0 %v10567_v48 }
 0x4c2   :  { %3829 = vmatmul.mubr.bf16.vlgmr.msra.gmra.mrb[56].mxu1 %v10505_v16 }
 0x4c3   :  { %4119 = vmatpush1.bf16.msra.mxu1 %v10573_v51  ;;  %7625 = vmatprep.mubr.msk.bf16.mxu1 %vm178_vm1, %v3372_v62  ;;  %v10671_v62 = vld [vmem:[%s11727_s4 + $0x180] ss:$8 sps:$4 sm:$0xff]   ;;  %v10731_v51 = vld [vmem:[%s11727_s4 + $0x1b4] ss:$8 sps:$4 sm:$0xff]  }
 0x4c4   :  { %3964 = vmatpush1.bf16.msra.mxu0 %v10579_v32  ;;  %4120 = vmatprep.subr.bf16.mxu1 %v10585_v54  ;;  %11943 = vst [vmem:[#allocation24_spill] sm:$0xff] %v10671_v62  ;;  %v10719_v54 = vld [vmem:[%s11727_s4 + $0x1a0] ss:$8 sps:$4 sm:$0xff]   ;;  %11948 = vst [vmem:[#allocation29_spill] sm:$0xff] %v10731_v51 }
 0x4c5   :  { %3965 = vmatprep.subr.bf16.mxu0 %v10591_v37  ;;  %11947 = vst [vmem:[#allocation28_spill] sm:$0xff] %v10719_v54 }
 0x4c7   :  { %4121 = vmatpush1.bf16.msra.mxu1 %v10599_v3  ;;  %v10707_v3 = vld [vmem:[%s11727_s4 + $0x1a4] ss:$8 sps:$4 sm:$0xff]  }
 0x4c8   :  { %3966 = vmatpush1.bf16.msra.mxu0 %v10605_v5  ;;  %4122 = vmatprep.subr.bf16.mxu1 %v10611_v36  ;;  %v10695_v36 = vld [vmem:[%s11727_s4 + $0x190] ss:$8 sps:$4 sm:$0xff]   ;;  %11946 = vst [vmem:[#allocation27_spill] sm:$0xff] %v10707_v3 }
 0x4c9   :  { %3967 = vmatprep.subr.bf16.mxu0 %v10617_v47  ;;  %11945 = vst [vmem:[#allocation26_spill] sm:$0xff] %v10695_v36 }
 0x4cb   :  { %4123 = vmatpush1.bf16.msra.mxu1 %v10623_v34  ;;  %v10683_v34 = vld [vmem:[%s11727_s4 + $0x194] ss:$8 sps:$4 sm:$0xff]  }
 0x4cc   :  { %3968 = vmatpush1.bf16.msra.mxu0 %v10629_v53  ;;  %4124 = vmatprep.subr.bf16.mxu1 %v10635_v56  ;;  %v10677_v56 = vld [vmem:[%s11727_s4 + $0x110] ss:$8 sps:$4 sm:$0xff]   ;;  %11944 = vst [vmem:[#allocation25_spill] sm:$0xff] %v10683_v34 }
 0x4cd   :  { %3969 = vmatprep.subr.bf16.mxu0 %v10641_v27 }
 0x4cf   :  { %4125 = vmatpush1.bf16.msra.mxu1 %v10647_v35  ;;  %v10689_v35 = vld [vmem:[%s11727_s4 + $0x124] ss:$8 sps:$4 sm:$0xff]  }
 0x4d0   :  { %3970 = vmatpush1.bf16.msra.mxu0 %v10653_v10  ;;  %4126 = vmatprep.subr.bf16.mxu1 %v10659_v28  ;;  %v10701_v28 = vld [vmem:[%s11727_s4 + $0x120] ss:$8 sps:$4 sm:$0xff]  }
 0x4d1   :  { %3971 = vmatprep.subr.bf16.mxu0 %v10665_v39 }
 0x4d3   :  { %4127 = vmatpush1.bf16.msra.mxu1 %v10671_v62  ;;  %v10713_v62 = vld [vmem:[%s11727_s4 + $0x134] ss:$8 sps:$4 sm:$0xff]  }
 0x4d4   :  { %3972 = vmatpush1.bf16.msra.mxu0 %v10677_v56  ;;  %4128 = vmatprep.subr.bf16.mxu1 %v10683_v34  ;;  %v10725_v34 = vld [vmem:[%s11727_s4 + $0x130] ss:$8 sps:$4 sm:$0xff]  }
 0x4d5   :  { %3973 = vmatprep.subr.bf16.mxu0 %v10689_v35 }
 0x4d7   :  { %4129 = vmatpush1.bf16.msra.mxu1 %v10695_v36  ;;  %v10738_v36 = vld [vmem:[%s11727_s4 + $0x1b0] ss:$8 sps:$4 sm:$0xff]  }
 0x4d8   :  { %3974 = vmatpush1.bf16.msra.mxu0 %v10701_v28  ;;  %4130 = vmatprep.subr.bf16.mxu1 %v10707_v3  ;;  %11949 = vst [vmem:[#allocation34_spill] sm:$0xff] %v10738_v36  ;;  %v10745_v3 = vld [vmem:[%s11727_s4 + $0x1c4] ss:$8 sps:$4 sm:$0xff]  }
 0x4d9   :  { %3975 = vmatprep.subr.bf16.mxu0 %v10713_v62 }
 0x4db   :  { %4131 = vmatpush1.bf16.msra.mxu1 %v10719_v54 }
 0x4dc   :  { %3976 = vmatpush1.bf16.msra.mxu0 %v10725_v34  ;;  %v2776_v25 = vpop.xlane.xlu1 %2775  ;;  %v2763_v38 = vpop.xlane.xlu0 %2762  ;;  %4132 = vmatprep.subr.bf16.mxu1 %v10731_v51 }
 0x4dd   :  { %v2777_v9 = vsub.f32 0.0, %v2776_v25  ;;  %v2764_v43 = vsub.f32 0.0, %v2763_v38  ;;  %4286 = vmatprep.subr.bf16.mxu0 %v11909_v6  ;;  %v10759_v38 = vld [vmem:[%s11727_s4 + $0x1d4] ss:$8 sps:$4 sm:$0xff]  }
 0x4de   :  { %11950 = vst [vmem:[#allocation35_spill] sm:$0xff] %v10759_v38 }
 0x4df   :  { %v2778_v54 = vmul.f32 1.442695, %v2777_v9  ;;  %v2765_v2 = vmul.f32 1.442695, %v2764_v43  ;;  %3990 = vmatmul.mubr.bf16.vlgmr.msra.gmra.mrb[64].mxu0 %v10505_v16  ;;  %4133 = vmatpush1.bf16.msra.mxu1 %v10738_v36 }
 0x4e0   :  { %v2810_v51 = vpop.xlane.xlu1 %2809  ;;  %v2793_v42 = vpop.xlane.xlu0 %2792  ;;  %4134 = vmatprep.subr.bf16.mxu1 %v10745_v3 }
 0x4e1   :  { %8684 = vpow2.f32 %v2778_v54  ;;  %v2811_v43 = vsub.f32 0.0, %v2810_v51  ;;  %v2794_v9 = vsub.f32 0.0, %v2793_v42 }
 0x4e2   :  { %8686 = vpow2.f32 %v2765_v2 }
 0x4e3   :  { %v2812_v25 = vmul.f32 1.442695, %v2811_v43  ;;  %v2795_v36 = vmul.f32 1.442695, %v2794_v9  ;;  %4135 = vmatpush1.bf16.msra.mxu1 %v10753_v40 }
 0x4e4   :  { %v1997_v21 = vpop.permute.xlu1 %1996  ;;  %4136 = vmatprep.subr.bf16.mxu1 %v10759_v38 }
 0x4e5   :  { %8688 = vpow2.f32 %v2812_v25  ;;  %7278 = vst.msk [vmem:[%s11734_s11 + $0x8] sm:$0xff] %vm91_vm0, %v1997_v21 }
 0x4e6   :  { %8690 = vpow2.f32 %v2795_v36 }
 0x4e7   :  { %4137 = vmatpush1.bf16.msra.mxu1 %v10765_v26 }
 0x4e8   :  { %8090 = vmatprep.subr.bf16.mxu1 %v11915_v1 }
 0x4ea   :  { %4151 = vmatmul.mubr.bf16.vlgmr.msra.gmra.mrb[60].mxu1 %v10505_v16 }
 0x4eb   :  { %v8685_v42 = vpop.eup %8684  ;;  %8092 = vmatpush3.bf16.msra.mxu1 %v11916_v11  ;;  %8057 = vmatprep.mubr.msk.f32.mxu1 %vm8954_vm2, %v11917_v14 }
 0x4ec   :  { %v8687_v2 = vpop.eup %8686  ;;  %v2780_v51 = vmul.f32 1.442695, %v8685_v42  ;;  %4787 = vmatprep.subr.bf16.mxu1 %v10368_v31 }
 0x4ed   :  { %v2767_v54 = vmul.f32 1.442695, %v8687_v2 }
 0x4ee   :  { %8692 = vpow2.f32 %v2780_v51 }
 0x4ef   :  { %v8689_v21 = vpop.eup %8688  ;;  %8694 = vpow2.f32 %v2767_v54 }
 0x4f0   :  { %v8691_v36 = vpop.eup %8690  ;;  %v2814_v43 = vmul.f32 1.442695, %v8689_v21  ;;  %v8432_v21 = vld [vmem:[%s11729_s6] sm:$0xff]  }
 0x4f1   :  { %v2797_v9 = vmul.f32 1.442695, %v8691_v36  ;;  %4287 = vmatpush1.bf16.msra.mxu0 %v8432_v21  ;;  %v8436_v36 = vld [vmem:[%s11729_s6 + $0x20] sm:$0xff]  }
 0x4f2   :  { %8696 = vpow2.f32 %v2814_v43  ;;  %4288 = vmatprep.subr.bf16.mxu0 %v11909_v6  ;;  %v8437_v43 = vld [vmem:[%s11729_s6 + $0x28] sm:$0xff]  }
 0x4f3   :  { %8698 = vpow2.f32 %v2797_v9  ;;  %v8438_v9 = vld [vmem:[%s11729_s6 + $0x30] sm:$0xff]  }
 0x4f8   :  { %v8693_v16 = vpop.eup %8692 }
 0x4f9   :  { %v8695_v25 = vpop.eup %8694  ;;  %v2783_v11 = vmul.f32 %v8693_v16, %v10389_v30 }
 0x4fa   :  { %v2782_v1 = vadd.f32 %v8695_v25, %v8693_v16  ;;  %v8439_v16 = vld [vmem:[%s11729_s6 + $0x38] sm:$0xff]  }
 0x4fb   :  { %2785 = vrot.lane.b32.xlu0 %v2783_v11, %s8957_s13  ;;  %v8433_v11 = vld [vmem:[%s11729_s6 + $0x8] sm:$0xff]  }
 0x4fc   :  { %v8697_v14 = vpop.eup %8696  ;;  %4289 = vmatpush1.bf16.msra.mxu0 %v8433_v11 }
 0x4fd   :  { %v8699_v42 = vpop.eup %8698  ;;  %v2817_v31 = vmul.f32 %v8697_v14, %v10389_v30  ;;  %4290 = vmatprep.subr.bf16.mxu0 %v11909_v6 }
 0x4fe   :  { %v2799_v2 = vadd.f32 %v8699_v42, %v2782_v1  ;;  %v2800_v51 = vmul.f32 %v8699_v42, %v10389_v30  ;;  %v8434_v1 = vld [vmem:[%s11729_s6 + $0x10] sm:$0xff]   ;;  %v8440_v42 = vld [vmem:[%s11729_s6 + $0x40] sm:$0xff]  }
 0x4ff   :  { %2819 = vrot.lane.b32.xlu0 %v2817_v31, %s8958_s14  ;;  %v8441_v31 = vld [vmem:[%s11729_s6 + $0x48] sm:$0xff]  }
 0x500   :  { %2802 = vrot.lane.b32.xlu1 %v2800_v51, %s8956_s12  ;;  %v2816_v54 = vadd.f32 %v8697_v14, %v2799_v2  ;;  %4291 = vmatpush1.bf16.msra.mxu0 %v8434_v1  ;;  %v8435_v14 = vld [vmem:[%s11729_s6 + $0x18] sm:$0xff]  }
 0x501   :  { %4292 = vmatprep.subr.bf16.mxu0 %v11909_v6 }
 0x502   :  { %8700 = vrcp.f32 %v2816_v54 }
 0x504   :  { %4293 = vmatpush1.bf16.msra.mxu0 %v8435_v14 }
 0x505   :  { %4294 = vmatprep.subr.bf16.mxu0 %v11909_v6 }
 0x508   :  { %4295 = vmatpush1.bf16.msra.mxu0 %v8436_v36  ;;  %v2770_v36 = vmul.f32 %v8695_v25, %v10389_v30 }
 0x509   :  { %4296 = vmatprep.subr.bf16.mxu0 %v11909_v6 }
 0x50c   :  { %4297 = vmatpush1.bf16.msra.mxu0 %v8437_v43 }
 0x50d   :  { %4298 = vmatprep.subr.bf16.mxu0 %v11909_v6 }
 0x510   :  { %4299 = vmatpush1.bf16.msra.mxu0 %v8438_v9 }
 0x511   :  { %4300 = vmatprep.subr.bf16.mxu0 %v11909_v6 }
 0x514   :  { %4301 = vmatpush1.bf16.msra.mxu0 %v8439_v16 }
 0x515   :  { %4302 = vmatprep.subr.bf16.mxu0 %v11909_v6 }
 0x518   :  { %4303 = vmatpush1.bf16.msra.mxu0 %v8440_v42 }
 0x519   :  { %4304 = vmatprep.subr.bf16.mxu0 %v11909_v6 }
 0x51c   :  { %4305 = vmatpush1.bf16.msra.mxu0 %v8441_v31 }
 0x51d   :  { %4626 = vmatprep.subr.bf16.mxu0 %v10335_v33 }
 0x56d   :  { %v3585_v2 = vpop.f32.mrb[52].mxu1  ;;  %v2786_v21 = vpop.permute.xlu0 %2785 }
 0x56e   :  { %v8052_v51 = vpop.f32.mrb[53].mxu1  ;;  %v3602_v11 = vsub.f32 %v3585_v2, %v11919_v52  ;;  %v3589_v1 = vsub.f32 %v3585_v2, %v11920_v58  ;;  %v3619_v14 = vsub.f32 %v3585_v2, %v11922_v0  ;;  %v3636_v43 = vsub.f32 %v3585_v2, %v11921_v45  ;;  %v8701_v0 = vpop.eup %8700 }
 0x56f   :  { %v2788_v42 = vadd.f32 %v2786_v21, %v2770_v36 }
 0x570   :  { %v3603_v9 = vmul.f32 %v3602_v11, %v3602_v11  ;;  %v3590_v16 = vmul.f32 %v3589_v1, %v3589_v1  ;;  %v3620_v51 = vmul.f32 %v3619_v14, %v3619_v14  ;;  %v3637_v26 = vmul.f32 %v3636_v43, %v3636_v43 }
 0x571   :  { %v2820_v58 = vpop.permute.xlu0 %2819 }
 0x572   :  { %v2803_v31 = vpop.permute.xlu1 %2802  ;;  %v3604_v33 = vsel %vm1918_vm3, %v3603_v9, 0.0  ;;  %v3591_v54 = vsel %vm1918_vm3, %v3590_v16, 0.0  ;;  %v3621_v30 = vsel %vm1918_vm3, %v3620_v51, 0.0  ;;  %v3638_v25 = vsel %vm1918_vm3, %v3637_v26, 0.0 }
 0x573   :  { %v2805_v38 = vadd.f32 %v2803_v31, %v2788_v42  ;;  %3605 = vadd.xlane.f32.xlu1 %v3604_v33  ;;  %3592 = vadd.xlane.f32.xlu0 %v3591_v54  ;;  %v3664_v31 = vld [vmem:[#allocation2 + $0x40] sm:$0xff]  ;;  %v3665_v33 = vld [vmem:[#allocation2 + $0x48] sm:$0xff] }
 0x575   :  { %v2822_v52 = vadd.f32 %v2820_v58, %v2805_v38 }
 0x577   :  { %v2824_v2 = vmul.f32 %v8701_v0, %v2822_v52  ;;  %3622 = vadd.xlane.f32.xlu1 %v3621_v30  ;;  %3639 = vadd.xlane.f32.xlu0 %v3638_v25 }
 0x58a   :  { %v3490_v21 = vpop.f32.mrb[60].mxu0 }
 0x58b   :  { %v3491_v11 = vadd.f32 %v10384_v15, %v3490_v21  ;;  %v3492_v1 = vpop.f32.mrb[61].mxu0 }
 0x58c   :  { %v3493_v36 = vpop.f32.mrb[62].mxu0 }
 0x58d   :  { %v7519_v14 = vmul.f32 -1.442695, %v3491_v11  ;;  %v3494_v43 = vpop.f32.mrb[63].mxu0  ;;  %2826 = vrot.lane.b32.xlu0 %v2824_v2, %s8957_s13 }
 0x58f   :  { %8702 = vpow2.f32 %v7519_v14  ;;  %v7642_v14 = vld [vmem:[%s11735_s1 + $0x18] sm:$0xff] }
 0x595   :  { %v3830_v9 = vpop.f32.mrb[56].mxu1 }
 0x596   :  { %v3832_v58 = vpop.f32.mrb[57].mxu1  ;;  %v3831_v16 = vadd.f32 %v3830_v9, %v11923_v17 }
 0x597   :  { %v3834_v38 = vpop.f32.mrb[58].mxu1  ;;  %v3833_v52 = vadd.f32 %v3832_v58, %v11924_v13 }
 0x598   :  { %v3835_v42 = vpop.f32.mrb[59].mxu1  ;;  %v4159_v15 = vadd.f32 %v3831_v16, %v3664_v31 }
 0x599   :  { %v8703_v26 = vpop.eup %8702  ;;  %v4160_v54 = vadd.f32 %v3833_v52, %v3665_v33  ;;  %v4342_v33 = vsub.f32 1.0, %v7642_v14 }
 0x59a   :  { %v3499_v0 = vadd.f32 1.0, %v8703_v26  ;;  %v7626_v51 = vmul.f32 -1.442695, %v4159_v15  ;;  %v3669_v26 = vld [vmem:[#allocation2 + $0xc0] sm:$0xff] }
 0x59b   :  { %v7627_v30 = vmul.f32 -1.442695, %v4160_v54 }
 0x59c   :  { %8704 = vrcp.f32 %v3499_v0 }
 0x59d   :  { %8706 = vpow2.f32 %v7626_v51  ;;  %v3670_v51 = vld [vmem:[#allocation2 + $0xc8] sm:$0xff] }
 0x59e   :  { %8708 = vpow2.f32 %v7627_v30 }
 0x5a6   :  { %v10838_v25 = vpop.eup %8704 }
 0x5a7   :  { %8710 = vlog2.f32 %v10838_v25  ;;  %v4337_v2 = vsub.f32 1.0, %v10838_v25  ;;  %v8707_v21 = vpop.eup %8706 }
 0x5a8   :  { %v8709_v11 = vpop.eup %8708  ;;  %v4167_v36 = vadd.f32 1.0, %v8707_v21 }
 0x5a9   :  { %8712 = vlog2.f32 %v4337_v2  ;;  %v4168_v43 = vadd.f32 1.0, %v8709_v11 }
 0x5aa   :  { %8714 = vrcp.f32 %v4167_v36 }
 0x5ab   :  { %8716 = vrcp.f32 %v4168_v43 }
 0x5b1   :  { %v8711_v1 = vpop.eup %8710 }
 0x5b2   :  { %v3991_v9 = vpop.f32.mrb[64].mxu0  ;;  %v4335_v58 = vmul.f32 0.6931472, %v8711_v1 }
 0x5b3   :  { %v8713_v38 = vpop.eup %8712  ;;  %v3992_v16 = vadd.f32 %v3991_v9, %v11925_v50  ;;  %v3993_v42 = vpop.f32.mrb[65].mxu0 }
 0x5b4   :  { %v3994_v52 = vadd.f32 %v3993_v42, %v9537_v41  ;;  %v3995_v0 = vpop.f32.mrb[66].mxu0  ;;  %v4336_v31 = vmax.f32 %v4335_v58, -100.0  ;;  %v4339_v15 = vmul.f32 0.6931472, %v8713_v38  ;;  %v8715_v36 = vpop.eup %8714 }
 0x5b5   :  { %v4173_v54 = vadd.f32 %v3992_v16, %v3669_v26  ;;  %v3996_v30 = vpop.f32.mrb[67].mxu0  ;;  %v8717_v26 = vpop.eup %8716 }
 0x5b6   :  { %v4174_v2 = vadd.f32 %v3994_v52, %v3670_v51  ;;  %v4340_v21 = vmax.f32 %v4339_v15, -100.0  ;;  %v4341_v13 = vmul.f32 %v7642_v14, %v4336_v31 }
 0x5b7   :  { %v7628_v11 = vmul.f32 -1.442695, %v4173_v54 }
 0x5b8   :  { %v7629_v1 = vmul.f32 -1.442695, %v4174_v2  ;;  %v4343_v17 = vmul.f32 %v4342_v33, %v4340_v21 }
 0x5b9   :  { %8718 = vpow2.f32 %v7628_v11 }
 0x5ba   :  { %8720 = vpow2.f32 %v7629_v1  ;;  %v4344_v9 = vadd.f32 %v4343_v17, %v4341_v13  ;;  %v3674_v13 = vld [vmem:[#allocation2 + $0x140] sm:$0xff] }
 0x5bc   :  { %v4345_v50 = vsub.f32 0.0, %v4344_v9  ;;  %v11963_v9 = vld [vmem:[#allocation18_spill] sm:$0xff] }
 0x5bd   :  { %v4152_v42 = vpop.f32.mrb[60].mxu1 }
 0x5be   :  { %v4153_v58 = vadd.f32 %v4152_v42, %v9546_v55  ;;  %v4154_v38 = vpop.f32.mrb[61].mxu1  ;;  %8058 = vmatmul.mubr.msk.f32.vlgmr.msra.gmra.mrb[54].mxu1 %vm91_vm0, %v4345_v50  ;;  %v3675_v50 = vld [vmem:[#allocation2 + $0x148] sm:$0xff] }
 0x5bf   :  { %v4155_v16 = vadd.f32 %v4154_v38, %v9549_v57  ;;  %4788 = vmatpush1.bf16.msra.mxu1 %v10501_v18  ;;  %v4156_v43 = vpop.f32.mrb[62].mxu1  ;;  %v11965_v38 = vld [vmem:[#allocation20_spill] sm:$0xff] }
 0x5c0   :  { %v4187_v52 = vmul.f32 %v8715_v36, %v4153_v58  ;;  %v4157_v14 = vpop.f32.mrb[63].mxu1  ;;  %4789 = vmatprep.subr.bf16.mxu1 %v10515_v4  ;;  %v11964_v58 = vld [vmem:[#allocation19_spill] sm:$0xff]  ;;  %v11966_v36 = vld [vmem:[#allocation21_spill] sm:$0xff] }
 0x5c1   :  { %v4188_v0 = vmul.f32 %v8717_v26, %v4155_v16 }
 0x5c2   :  { %v4189_v33 = vadd.f32 %v4187_v52, %v3674_v13  ;;  %v11967_v52 = vld [vmem:[#allocation22_spill] sm:$0xff] }
 0x5c3   :  { %v8719_v17 = vpop.eup %8718  ;;  %4790 = vmatpush1.bf16.msra.mxu1 %v10531_v19  ;;  %v4190_v51 = vadd.f32 %v4188_v0, %v3675_v50  ;;  %v11968_v0 = vld [vmem:[#allocation23_spill] sm:$0xff]  ;;  %v11970_v50 = vld [vmem:[#allocation25_spill] sm:$0xff] }
 0x5c4   :  { %v8721_v31 = vpop.eup %8720  ;;  %v4181_v15 = vadd.f32 1.0, %v8719_v17  ;;  %4791 = vmatprep.subr.bf16.mxu1 %v10543_v12 }
 0x5c5   :  { %v4182_v54 = vadd.f32 1.0, %v8721_v31 }
 0x5c6   :  { %8722 = vrcp.f32 %v4181_v15  ;;  %v11969_v15 = vld [vmem:[#allocation24_spill] sm:$0xff] }
 0x5c7   :  { %8724 = vrcp.f32 %v4182_v54  ;;  %4792 = vmatpush1.bf16.msra.mxu1 %v10556_v24  ;;  %v11971_v54 = vld [vmem:[#allocation26_spill] sm:$0xff] }
 0x5c8   :  { %8726 = vtanh.f32 %v4189_v33  ;;  %4793 = vmatprep.subr.bf16.mxu1 %v10567_v48 }
 0x5c9   :  { %8728 = vtanh.f32 %v4190_v51  ;;  %v11972_v51 = vld [vmem:[#allocation27_spill] sm:$0xff] }
 0x5cb   :  { %4794 = vmatpush1.bf16.msra.mxu1 %v10579_v32 }
 0x5cc   :  { %4795 = vmatprep.subr.bf16.mxu1 %v10591_v37 }
 0x5cf   :  { %4796 = vmatpush1.bf16.msra.mxu1 %v10605_v5 }
 0x5d0   :  { %v8723_v18 = vpop.eup %8722  ;;  %4797 = vmatprep.subr.bf16.mxu1 %v10617_v47 }
 0x5d1   :  { %v8725_v4 = vpop.eup %8724  ;;  %v4193_v19 = vsub.f32 1.0, %v8723_v18  ;;  %v4197_v48 = vmul.f32 %v8723_v18, %v10485_v46  ;;  %v11960_v46 = vld [vmem:[#allocation15_spill] sm:$0xff] }
 0x5d2   :  { %v8727_v12 = vpop.eup %8726  ;;  %v4194_v30 = vsub.f32 1.0, %v8725_v4  ;;  %v4198_v37 = vmul.f32 %v8725_v4, %v10487_v60  ;;  %v11973_v4 = vld [vmem:[#allocation28_spill] sm:$0xff] }
 0x5d3   :  { %v8729_v2 = vpop.eup %8728  ;;  %4798 = vmatpush1.bf16.msra.mxu1 %v10629_v53  ;;  %v4195_v24 = vmul.f32 %v8727_v12, %v4193_v19  ;;  %v11974_v12 = vld [vmem:[#allocation29_spill] sm:$0xff] }
 0x5d4   :  { %4799 = vmatprep.subr.bf16.mxu1 %v10641_v27  ;;  %v4196_v32 = vmul.f32 %v8729_v2, %v4194_v30  ;;  %v11961_v27 = vld [vmem:[#allocation16_spill] sm:$0xff] }
 0x5d5   :  { %v10864_v21 = vadd.f32 %v4197_v48, %v4195_v24  ;;  %v11975_v48 = vld [vmem:[#allocation34_spill] sm:$0xff] }
 0x5d6   :  { %v10866_v5 = vadd.f32 %v4198_v37, %v4196_v32 }
 0x5d7   :  { %4800 = vmatpush1.bf16.msra.mxu1 %v10653_v10  ;;  %v10874_v53 = vpack.c.bf16 %v10864_v21, %v10864_v21 }
 0x5d8   :  { %v4202_v47 = vpack.c.bf16 %v10866_v5, %v10866_v5  ;;  %4801 = vmatprep.subr.bf16.mxu1 %v10665_v39 }
 0x5da   :  { %7640 = vmatprep.mubr.msk.bf16.mxu0 %vm178_vm1, %v4202_v47  ;;  %7706 = vmatprep.mubr.msk.bf16.mxu1 %vm178_vm1, %v4202_v47 }
 0x5db   :  { %4319 = vmatmul.mubr.bf16.vlgmr.msra.gmra.mrb[68].mxu0 %v10874_v53  ;;  %4802 = vmatpush1.bf16.msra.mxu1 %v10677_v56 }
 0x5dc   :  { %4627 = vmatpush1.bf16.msra.mxu0 %v10401_v59  ;;  %7665 = vmatprep.mubr.msk.bf16.mxu0 %vm178_vm1, %v4202_v47  ;;  %v11952_v59 = vld [vmem:[#allocation7_spill] sm:$0xff] }
 0x5dd   :  { %4628 = vmatprep.subr.bf16.mxu0 %v10406_v61  ;;  %4803 = vmatprep.subr.bf16.mxu1 %v10689_v35  ;;  %v11953_v61 = vld [vmem:[#allocation8_spill] sm:$0xff] }
 0x5df   :  { %4804 = vmatpush1.bf16.msra.mxu1 %v10701_v28  ;;  %v11962_v28 = vld [vmem:[#allocation17_spill] sm:$0xff] }
 0x5e0   :  { %4629 = vmatpush1.bf16.msra.mxu0 %v10415_v23  ;;  %4805 = vmatprep.subr.bf16.mxu1 %v10713_v62  ;;  %v11954_v23 = vld [vmem:[#allocation9_spill] sm:$0xff] }
 0x5e1   :  { %4630 = vmatprep.subr.bf16.mxu0 %v10421_v44  ;;  %v11955_v44 = vld [vmem:[#allocation10_spill] sm:$0xff] }
 0x5e3   :  { %4806 = vmatpush1.bf16.msra.mxu1 %v10725_v34 }
 0x5e4   :  { %4631 = vmatpush1.bf16.msra.mxu0 %v10427_v49  ;;  %5116 = vmatprep.subr.bf16.mxu1 %v11909_v6  ;;  %v11956_v49 = vld [vmem:[#allocation11_spill] sm:$0xff] }
 0x5e5   :  { %4632 = vmatprep.subr.bf16.mxu0 %v10433_v63  ;;  %v11957_v63 = vld [vmem:[#allocation12_spill] sm:$0xff] }
 0x5e6   :  { %4820 = vmatmul.mubr.bf16.vlgmr.msra.gmra.mrb[64].mxu1 %v10874_v53 }
 0x5e8   :  { %4633 = vmatpush1.bf16.msra.mxu0 %v10439_v7  ;;  %v11958_v7 = vld [vmem:[#allocation13_spill] sm:$0xff] }
 0x5e9   :  { %4634 = vmatprep.subr.bf16.mxu0 %v10445_v8  ;;  %v11959_v8 = vld [vmem:[#allocation14_spill] sm:$0xff] }
 0x5ec   :  { %4635 = vmatpush1.bf16.msra.mxu0 %v10451_v29 }
 0x5ed   :  { %4636 = vmatprep.subr.bf16.mxu0 %v10457_v22 }
 0x5f0   :  { %4637 = vmatpush1.bf16.msra.mxu0 %v10463_v20 }
 0x5f1   :  { %4638 = vmatprep.subr.bf16.mxu0 %v11952_v59 }
 0x5f4   :  { %4639 = vmatpush1.bf16.msra.mxu0 %v11953_v61 }
 0x5f5   :  { %4640 = vmatprep.subr.bf16.mxu0 %v11954_v23  ;;  %v11976_v23 = vld [vmem:[#allocation35_spill] sm:$0xff] }
 0x5f8   :  { %4641 = vmatpush1.bf16.msra.mxu0 %v11955_v44  ;;  %v11977_v44 = vld [vmem:[#allocation36_spill] sm:$0xff] }
 0x5f9   :  { %4642 = vmatprep.subr.bf16.mxu0 %v11956_v49  ;;  %v11978_v49 = vmov 0.0|0.0  }
 0x5fc   :  { %4643 = vmatpush1.bf16.msra.mxu0 %v11957_v63  ;;  %v11980_v63 = vmov 0.0  }
 0x5fd   :  { %4644 = vmatprep.subr.bf16.mxu0 %v11958_v7  ;;  %v8442_v7 = vld [vmem:[%s11729_s6] sm:$0xff]  }
 0x5fe   :  { %5117 = vmatpush1.bf16.msra.mxu1 %v8442_v7  ;;  %v7764_v7 = vld [vmem:[%s11735_s1 + $0x20] sm:$0xff] }
 0x5ff   :  { %5118 = vmatprep.subr.bf16.mxu1 %v11909_v6 }
 0x600   :  { %4645 = vmatpush1.bf16.msra.mxu0 %v11959_v8  ;;  %v3606_v29 = vpop.xlane.xlu1 %3605  ;;  %v3593_v22 = vpop.xlane.xlu0 %3592  ;;  %v8450_v8 = vld [vmem:[%s11729_s6 + $0x10] sm:$0xff]  }
 0x601   :  { %4948 = vmatprep.subr.bf16.mxu0 %v11960_v46  ;;  %v3607_v20 = vsub.f32 0.0, %v3606_v29  ;;  %v3594_v60 = vsub.f32 0.0, %v3593_v22  ;;  %v8454_v29 = vld [vmem:[%s11729_s6 + $0x18] sm:$0xff]   ;;  %v8458_v22 = vld [vmem:[%s11729_s6 + $0x20] sm:$0xff]   ;;  %v8462_v46 = vld [vmem:[%s11729_s6 + $0x28] sm:$0xff]  }
 0x603   :  { %4659 = vmatmul.mubr.bf16.vlgmr.msra.gmra.mrb[72].mxu0 %v10874_v53  ;;  %v3608_v34 = vmul.f32 1.442695, %v3607_v20  ;;  %v3595_v56 = vmul.f32 1.442695, %v3594_v60  ;;  %v8466_v20 = vld [vmem:[%s11729_s6 + $0x30] sm:$0xff]   ;;  %v8470_v60 = vld [vmem:[%s11729_s6 + $0x38] sm:$0xff]  }
 0x604   :  { %4949 = vmatpush1.bf16.msra.mxu0 %v11961_v27  ;;  %7747 = vmatprep.mubr.msk.bf16.mxu0 %vm178_vm1, %v4202_v47  ;;  %v3623_v35 = vpop.xlane.xlu1 %3622  ;;  %v3640_v10 = vpop.xlane.xlu0 %3639 }
 0x605   :  { %8730 = vpow2.f32 %v3608_v34  ;;  %4950 = vmatprep.subr.bf16.mxu0 %v11962_v28  ;;  %v3624_v39 = vsub.f32 0.0, %v3623_v35  ;;  %v3641_v62 = vsub.f32 0.0, %v3640_v10  ;;  %v8474_v34 = vld [vmem:[%s11729_s6 + $0x40] sm:$0xff]  }
 0x606   :  { %8732 = vpow2.f32 %v3595_v56  ;;  %v8478_v56 = vld [vmem:[%s11729_s6 + $0x48] sm:$0xff]  }
 0x607   :  { %v3625_v11 = vmul.f32 1.442695, %v3624_v39  ;;  %v3642_v1 = vmul.f32 1.442695, %v3641_v62  ;;  %v11981_v39 = vld [vmem:[#allocation32_spill] sm:$0xff] }
 0x608   :  { %4951 = vmatpush1.bf16.msra.mxu0 %v11963_v9  ;;  %v2827_v42 = vpop.permute.xlu0 %2826 }
 0x609   :  { %8734 = vpow2.f32 %v3625_v11  ;;  %4952 = vmatprep.subr.bf16.mxu0 %v11964_v58  ;;  %7400 = vst.msk [vmem:[%s11734_s11 + $0x10] sm:$0xff] %vm91_vm0, %v2827_v42  ;;  %v11982_v11 = vld [vmem:[#allocation31_spill] sm:$0xff]  ;;  %v11983_v42 = vld [vmem:[#allocation30_spill] sm:$0xff] }
 0x60a   :  { %8736 = vpow2.f32 %v3642_v1 }
 0x60c   :  { %4953 = vmatpush1.bf16.msra.mxu0 %v11965_v38 }
 0x60d   :  { %4954 = vmatprep.subr.bf16.mxu0 %v11966_v36 }
 0x60f   :  { %v8731_v16 = vpop.eup %8730 }
 0x610   :  { %v8733_v43 = vpop.eup %8732  ;;  %v3610_v26 = vmul.f32 1.442695, %v8731_v16  ;;  %4955 = vmatpush1.bf16.msra.mxu0 %v11967_v52 }
 0x611   :  { %v3597_v14 = vmul.f32 1.442695, %v8733_v43  ;;  %4956 = vmatprep.subr.bf16.mxu0 %v11968_v0 }
 0x612   :  { %8738 = vpow2.f32 %v3610_v26 }
 0x613   :  { %v8735_v17 = vpop.eup %8734  ;;  %8740 = vpow2.f32 %v3597_v14 }
 0x614   :  { %v8737_v13 = vpop.eup %8736  ;;  %v3627_v31 = vmul.f32 1.442695, %v8735_v17  ;;  %4957 = vmatpush1.bf16.msra.mxu0 %v11969_v15  ;;  %v10998_v17 = vld [vmem:[%s11727_s4 + $0x4] ss:$8 sps:$4 sm:$0xff]  }
 0x615   :  { %v3644_v33 = vmul.f32 1.442695, %v8737_v13  ;;  %4958 = vmatprep.subr.bf16.mxu0 %v11970_v50 }
 0x616   :  { %8742 = vpow2.f32 %v3627_v31 }
 0x617   :  { %8744 = vpow2.f32 %v3644_v33 }
 0x618   :  { %4959 = vmatpush1.bf16.msra.mxu0 %v11971_v54 }
 0x619   :  { %4960 = vmatprep.subr.bf16.mxu0 %v11972_v51 }
 0x61c   :  { %v8739_v18 = vpop.eup %8738  ;;  %4961 = vmatpush1.bf16.msra.mxu0 %v11973_v4 }
 0x61d   :  { %v8741_v19 = vpop.eup %8740  ;;  %4962 = vmatprep.subr.bf16.mxu0 %v11974_v12  ;;  %v3613_v30 = vmul.f32 %v8739_v18, %v10838_v25 }
 0x61e   :  { %v3612_v2 = vadd.f32 %v8741_v19, %v8739_v18  ;;  %v3600_v28 = vmul.f32 %v8741_v19, %v10838_v25  ;;  %v11007_v18 = vld [vmem:[%s11733_s7] ss:$0 sm:$0xff] }
 0x61f   :  { %3615 = vrot.lane.b32.xlu1 %v3613_v30, %s8957_s13 }
 0x620   :  { %v8743_v24 = vpop.eup %8742  ;;  %4963 = vmatpush1.bf16.msra.mxu0 %v11975_v48 }
 0x621   :  { %v8745_v32 = vpop.eup %8744  ;;  %v3629_v37 = vadd.f32 %v8743_v24, %v3612_v2  ;;  %4964 = vmatprep.subr.bf16.mxu0 %v10745_v3  ;;  %v3630_v47 = vmul.f32 %v8743_v24, %v10838_v25  ;;  %v11979_v3 = vld [vmem:[#allocation6_spill] sm:$0xff] }
 0x622   :  { %v3647_v59 = vmul.f32 %v8745_v32, %v10838_v25 }
 0x623   :  { %3632 = vrot.lane.b32.xlu0 %v3630_v47, %s8956_s12  ;;  %v3646_v61 = vadd.f32 %v8745_v32, %v3629_v37 }
 0x624   :  { %4965 = vmatpush1.bf16.msra.mxu0 %v10753_v40  ;;  %3649 = vrot.lane.b32.xlu1 %v3647_v59, %s8958_s14  ;;  %v10949_v40 = vld [vmem:[%s11727_s4 + $0xa4] ss:$8 sps:$4 sm:$0xff]  }
 0x625   :  { %4966 = vmatprep.subr.bf16.mxu0 %v11976_v23  ;;  %8746 = vrcp.f32 %v3646_v61 }
 0x628   :  { %4967 = vmatpush1.bf16.msra.mxu0 %v11977_v44 }
 0x629   :  { %8093 = vmatprep.subr.bf16.mxu0 %v11978_v49 }
 0x62b   :  { %4981 = vmatmul.mubr.bf16.vlgmr.msra.gmra.mrb[76].mxu0 %v10874_v53  ;;  %v8446_v53 = vld [vmem:[%s11729_s6 + $0x8] sm:$0xff]  }
 0x62c   :  { %8095 = vmatpush3.bf16.msra.mxu0 %v11979_v3  ;;  %8064 = vmatprep.mubr.msk.f32.mxu0 %vm8954_vm2, %v11980_v63 }
 0x62d   :  { %5617 = vmatprep.subr.bf16.mxu0 %v10949_v40  ;;  %5119 = vmatpush1.bf16.msra.mxu1 %v8446_v53 }
 0x62e   :  { %5120 = vmatprep.subr.bf16.mxu1 %v11909_v6 }
 0x62f   :  { %v8747_v15 = vpop.eup %8746 }
 0x631   :  { %5121 = vmatpush1.bf16.msra.mxu1 %v8450_v8 }
 0x632   :  { %5122 = vmatprep.subr.bf16.mxu1 %v11909_v6 }
 0x635   :  { %5123 = vmatpush1.bf16.msra.mxu1 %v8454_v29 }
 0x636   :  { %5124 = vmatprep.subr.bf16.mxu1 %v11909_v6 }
 0x639   :  { %5125 = vmatpush1.bf16.msra.mxu1 %v8458_v22 }
 0x63a   :  { %5126 = vmatprep.subr.bf16.mxu1 %v11909_v6 }
 0x63d   :  { %5127 = vmatpush1.bf16.msra.mxu1 %v8462_v46 }
 0x63e   :  { %5128 = vmatprep.subr.bf16.mxu1 %v11909_v6 }
 0x641   :  { %5129 = vmatpush1.bf16.msra.mxu1 %v8466_v20 }
 0x642   :  { %5130 = vmatprep.subr.bf16.mxu1 %v11909_v6 }
 0x645   :  { %5131 = vmatpush1.bf16.msra.mxu1 %v8470_v60 }
 0x646   :  { %5132 = vmatprep.subr.bf16.mxu1 %v11909_v6 }
 0x649   :  { %5133 = vmatpush1.bf16.msra.mxu1 %v8474_v34  ;;  %v5172_v34 = vsub.f32 1.0, %v7764_v7 }
 0x64a   :  { %5134 = vmatprep.subr.bf16.mxu1 %v11909_v6 }
 0x64d   :  { %5135 = vmatpush1.bf16.msra.mxu1 %v8478_v56  ;;  %v11984_v56 = vld [vmem:[#allocation3_spill] sm:$0xff] }
 0x64e   :  { %5456 = vmatprep.subr.bf16.mxu1 %v10998_v17 }
 0x691   :  { %v4415_v27 = vpop.f32.mrb[54].mxu1  ;;  %v3616_v35 = vpop.permute.xlu1 %3615 }
 0x692   :  { %v8059_v10 = vpop.f32.mrb[55].mxu1  ;;  %v4432_v62 = vsub.f32 %v4415_v27, %v11981_v39  ;;  %v4419_v1 = vsub.f32 %v4415_v27, %v11982_v11  ;;  %v4466_v9 = vsub.f32 %v4415_v27, %v11921_v45  ;;  %v4449_v58 = vsub.f32 %v4415_v27, %v11983_v42 }
 0x693   :  { %v3618_v38 = vadd.f32 %v3616_v35, %v3600_v28  ;;  %v11985_v10 = vld [vmem:[#allocation4_spill] sm:$0xff] }
 0x694   :  { %v4433_v36 = vmul.f32 %v4432_v62, %v4432_v62  ;;  %v4420_v16 = vmul.f32 %v4419_v1, %v4419_v1  ;;  %v4467_v26 = vmul.f32 %v4466_v9, %v4466_v9  ;;  %v4450_v25 = vmul.f32 %v4449_v58, %v4449_v58  ;;  %v4494_v1 = vld [vmem:[#allocation2 + $0x50] sm:$0xff] }
 0x695   :  { %v3633_v43 = vpop.permute.xlu0 %3632 }
 0x696   :  { %v3635_v52 = vadd.f32 %v3633_v43, %v3618_v38  ;;  %v4434_v14 = vsel %vm1918_vm3, %v4433_v36, 0.0  ;;  %v4421_v0 = vsel %vm1918_vm3, %v4420_v16, 0.0  ;;  %v3650_v13 = vpop.permute.xlu1 %3649  ;;  %v4468_v33 = vsel %vm1918_vm3, %v4467_v26, 0.0  ;;  %v4495_v36 = vld [vmem:[#allocation2 + $0x58] sm:$0xff]  ;;  %v11022_v26 = vld [vmem:[%s11727_s4 + $0xa0] ss:$8 sps:$4 sm:$0xff]  }
 0x697   :  { %4435 = vadd.xlane.f32.xlu1 %v4434_v14  ;;  %4422 = vadd.xlane.f32.xlu0 %v4421_v0  ;;  %v4451_v50 = vsel %vm1918_vm3, %v4450_v25, 0.0  ;;  %v11027_v14 = vld [vmem:[%s11727_s4 + $0xb4] ss:$8 sps:$4 sm:$0xff]  }
 0x698   :  { %v3652_v31 = vadd.f32 %v3650_v13, %v3635_v52  ;;  %v11034_v13 = vld [vmem:[%s11727_s4 + $0xb0] ss:$8 sps:$4 sm:$0xff]  }
 0x69a   :  { %v3654_v54 = vmul.f32 %v8747_v15, %v3652_v31  ;;  %v11986_v31 = vld [vmem:[#allocation5_spill] sm:$0xff] }
 0x69b   :  { %4469 = vadd.xlane.f32.xlu1 %v4468_v33  ;;  %4452 = vadd.xlane.f32.xlu0 %v4451_v50  ;;  %v11041_v33 = vld [vmem:[%s11727_s4 + $0xc4] ss:$8 sps:$4 sm:$0xff]  }
 0x6ac   :  { %3656 = vrot.lane.b32.xlu1 %v3654_v54, %s8957_s13  ;;  %v4499_v54 = vld [vmem:[#allocation2 + $0xd0] sm:$0xff] }
 0x6ae   :  { %v4320_v51 = vpop.f32.mrb[68].mxu0 }
 0x6af   :  { %v4321_v4 = vadd.f32 %v11007_v18, %v4320_v51  ;;  %v4322_v19 = vpop.f32.mrb[69].mxu0  ;;  %v11048_v51 = vld [vmem:[%s11727_s4 + $0xc0] ss:$8 sps:$4 sm:$0xff]  }
 0x6b0   :  { %v4323_v12 = vpop.f32.mrb[70].mxu0  ;;  %v4500_v19 = vld [vmem:[#allocation2 + $0xd8] sm:$0xff] }
 0x6b1   :  { %v7641_v30 = vmul.f32 -1.442695, %v4321_v4  ;;  %v4324_v2 = vpop.f32.mrb[71].mxu0  ;;  %v11054_v12 = vld [vmem:[%s11727_s4 + $0xd4] ss:$8 sps:$4 sm:$0xff]  }
 0x6b2   :  { %v11060_v2 = vld [vmem:[%s11727_s4 + $0xd0] ss:$8 sps:$4 sm:$0xff]  }
 0x6b3   :  { %8748 = vpow2.f32 %v7641_v30 }
 0x6b9   :  { %v4821_v24 = vpop.f32.mrb[64].mxu1 }
 0x6ba   :  { %v4823_v48 = vpop.f32.mrb[65].mxu1  ;;  %v4822_v15 = vadd.f32 %v4821_v24, %v11986_v31 }
 0x6bb   :  { %v4825_v32 = vpop.f32.mrb[66].mxu1  ;;  %v4824_v50 = vadd.f32 %v4823_v48, %v9537_v41  ;;  %v11066_v48 = vld [vmem:[%s11727_s4 + $0xe4] ss:$8 sps:$4 sm:$0xff]  }
 0x6bc   :  { %v4826_v37 = vpop.f32.mrb[67].mxu1  ;;  %v5003_v4 = vadd.f32 %v4822_v15, %v4499_v54  ;;  %v4505_v54 = vld [vmem:[#allocation2 + $0x158] sm:$0xff] }
 0x6bd   :  { %v8749_v47 = vpop.eup %8748  ;;  %v5004_v30 = vadd.f32 %v4824_v50, %v4500_v19 }
 0x6be   :  { %v4329_v59 = vadd.f32 1.0, %v8749_v47  ;;  %v7750_v24 = vmul.f32 -1.442695, %v5003_v4  ;;  %v11072_v47 = vld [vmem:[%s11727_s4 + $0xe0] ss:$8 sps:$4 sm:$0xff]  }
 0x6bf   :  { %v7751_v32 = vmul.f32 -1.442695, %v5004_v30  ;;  %v11134_v4 = vld [vmem:[%s11727_s4 + $0x130] ss:$8 sps:$4 sm:$0xff]  }
 0x6c0   :  { %8750 = vrcp.f32 %v4329_v59 }
 0x6ca   :  { %v11010_v61 = vpop.eup %8750 }
 0x6cb   :  { %8752 = vlog2.f32 %v11010_v61  ;;  %v5167_v23 = vsub.f32 1.0, %v11010_v61 }
 0x6cd   :  { %8754 = vlog2.f32 %v5167_v23  ;;  %v11078_v23 = vld [vmem:[%s11727_s4 + $0xf4] ss:$8 sps:$4 sm:$0xff]  }
 0x6d5   :  { %v8753_v44 = vpop.eup %8752 }
 0x6d6   :  { %v4660_v53 = vpop.f32.mrb[72].mxu0  ;;  %v5165_v8 = vmul.f32 0.6931472, %v8753_v44 }
 0x6d7   :  { %v8755_v29 = vpop.eup %8754  ;;  %v4662_v22 = vpop.f32.mrb[73].mxu0  ;;  %v4661_v27 = vadd.f32 %v4660_v53, %v11984_v56  ;;  %v11084_v53 = vld [vmem:[%s11727_s4 + $0xf0] ss:$8 sps:$4 sm:$0xff]  }
 0x6d8   :  { %v4664_v46 = vpop.f32.mrb[74].mxu0  ;;  %v5166_v20 = vmax.f32 %v5165_v8, -100.0  ;;  %v5169_v60 = vmul.f32 0.6931472, %v8755_v29  ;;  %v4663_v28 = vadd.f32 %v4662_v22, %v11985_v10  ;;  %v11090_v8 = vld [vmem:[%s11727_s4 + $0x104] ss:$8 sps:$4 sm:$0xff]  }
 0x6d9   :  { %v4665_v35 = vpop.f32.mrb[75].mxu0  ;;  %v4989_v38 = vadd.f32 %v4661_v27, %v4494_v1  ;;  %v11096_v29 = vld [vmem:[%s11727_s4 + $0x100] ss:$8 sps:$4 sm:$0xff]   ;;  %v11102_v22 = vld [vmem:[%s11727_s4 + $0x114] ss:$8 sps:$4 sm:$0xff]  }
 0x6da   :  { %v5170_v62 = vmax.f32 %v5169_v60, -100.0  ;;  %v5171_v9 = vmul.f32 %v7764_v7, %v5166_v20  ;;  %v4990_v16 = vadd.f32 %v4663_v28, %v4495_v36  ;;  %v11108_v60 = vld [vmem:[%s11727_s4 + $0x110] ss:$8 sps:$4 sm:$0xff]  }
 0x6db   :  { %v7748_v0 = vmul.f32 -1.442695, %v4989_v38 }
 0x6dc   :  { %v5173_v58 = vmul.f32 %v5172_v34, %v5170_v62  ;;  %v7749_v25 = vmul.f32 -1.442695, %v4990_v16  ;;  %v11114_v34 = vld [vmem:[%s11727_s4 + $0x124] ss:$8 sps:$4 sm:$0xff]   ;;  %v11128_v16 = vld [vmem:[%s11727_s4 + $0x134] ss:$8 sps:$4 sm:$0xff]  }
 0x6dd   :  { %8756 = vpow2.f32 %v7748_v0 }
 0x6de   :  { %v5174_v43 = vadd.f32 %v5173_v58, %v5171_v9  ;;  %8758 = vpow2.f32 %v7749_v25  ;;  %v11121_v9 = vld [vmem:[%s11727_s4 + $0x120] ss:$8 sps:$4 sm:$0xff]   ;;  %v4504_v25 = vld [vmem:[#allocation2 + $0x150] sm:$0xff] }
 0x6df   :  { %8760 = vpow2.f32 %v7750_v24 }
 0x6e0   :  { %v5175_v52 = vsub.f32 0.0, %v5174_v43  ;;  %8762 = vpow2.f32 %v7751_v32 }
 0x6e2   :  { %8065 = vmatmul.mubr.msk.f32.vlgmr.msra.gmra.mrb[80].mxu0 %vm91_vm0, %v5175_v52 }
 0x6e3   :  { %5618 = vmatpush1.bf16.msra.mxu0 %v11022_v26 }
 0x6e4   :  { %5619 = vmatprep.subr.bf16.mxu0 %v11027_v14 }
 0x6e7   :  { %5620 = vmatpush1.bf16.msra.mxu0 %v11034_v13  ;;  %v8757_v37 = vpop.eup %8756 }
 0x6e8   :  { %5621 = vmatprep.subr.bf16.mxu0 %v11041_v33  ;;  %v8759_v59 = vpop.eup %8758  ;;  %v4997_v44 = vadd.f32 1.0, %v8757_v37 }
 0x6e9   :  { %v4998_v7 = vadd.f32 1.0, %v8759_v59  ;;  %v8761_v46 = vpop.eup %8760 }
 0x6ea   :  { %8764 = vrcp.f32 %v4997_v44  ;;  %v8763_v20 = vpop.eup %8762  ;;  %v5011_v27 = vadd.f32 1.0, %v8761_v46 }
 0x6eb   :  { %5622 = vmatpush1.bf16.msra.mxu0 %v11048_v51  ;;  %8766 = vrcp.f32 %v4998_v7  ;;  %v5012_v35 = vadd.f32 1.0, %v8763_v20 }
 0x6ec   :  { %5623 = vmatprep.subr.bf16.mxu0 %v11054_v12  ;;  %8768 = vrcp.f32 %v5011_v27 }
 0x6ed   :  { %8770 = vrcp.f32 %v5012_v35 }
 0x6ef   :  { %5624 = vmatpush1.bf16.msra.mxu0 %v11060_v2 }
 0x6f0   :  { %5625 = vmatprep.subr.bf16.mxu0 %v11066_v48 }
 0x6f3   :  { %5626 = vmatpush1.bf16.msra.mxu0 %v11072_v47 }
 0x6f4   :  { %5627 = vmatprep.subr.bf16.mxu0 %v11078_v23  ;;  %v8765_v58 = vpop.eup %8764 }
 0x6f5   :  { %v8767_v43 = vpop.eup %8766 }
 0x6f6   :  { %v8769_v30 = vpop.eup %8768 }
 0x6f7   :  { %5628 = vmatpush1.bf16.msra.mxu0 %v11084_v53  ;;  %v8771_v24 = vpop.eup %8770  ;;  %v5023_v32 = vsub.f32 1.0, %v8769_v30  ;;  %v5027_v46 = vmul.f32 %v8769_v30, %v10864_v21  ;;  %v11161_v21 = vld [vmem:[%s11727_s4 + $0x14] ss:$8 sps:$4 sm:$0xff]  }
 0x6f8   :  { %5629 = vmatprep.subr.bf16.mxu0 %v11090_v8  ;;  %v5024_v59 = vsub.f32 1.0, %v8771_v24  ;;  %v5028_v27 = vmul.f32 %v8771_v24, %v10866_v5  ;;  %v11175_v5 = vld [vmem:[%s11727_s4 + $0x10] ss:$8 sps:$4 sm:$0xff]   ;;  %v11217_v30 = vld [vmem:[%s11727_s4 + $0x54] ss:$8 sps:$4 sm:$0xff]  }
 0x6fb   :  { %5630 = vmatpush1.bf16.msra.mxu0 %v11096_v29 }
 0x6fc   :  { %5631 = vmatprep.subr.bf16.mxu0 %v11102_v22 }
 0x6fe   :  { %v4982_v28 = vpop.f32.mrb[76].mxu0 }
 0x6ff   :  { %v4983_v62 = vadd.f32 %v4982_v28, %v9546_v55  ;;  %v4984_v1 = vpop.f32.mrb[77].mxu0  ;;  %5632 = vmatpush1.bf16.msra.mxu0 %v11108_v60 }
 0x700   :  { %v4985_v38 = vadd.f32 %v4984_v1, %v9549_v57  ;;  %v4986_v36 = vpop.f32.mrb[78].mxu0  ;;  %5633 = vmatprep.subr.bf16.mxu0 %v11114_v34  ;;  %v11152_v1 = vld [vmem:[%s11727_s4] ss:$8 sps:$4 sm:$0xff]  }
 0x701   :  { %v5017_v52 = vmul.f32 %v8765_v58, %v4983_v62  ;;  %v4987_v0 = vpop.f32.mrb[79].mxu0  ;;  %v11187_v36 = vld [vmem:[%s11727_s4 + $0x20] ss:$8 sps:$4 sm:$0xff]  }
 0x702   :  { %v5018_v15 = vmul.f32 %v8767_v43, %v4985_v38  ;;  %v11181_v38 = vld [vmem:[%s11727_s4 + $0x24] ss:$8 sps:$4 sm:$0xff]   ;;  %v11193_v43 = vld [vmem:[%s11727_s4 + $0x34] ss:$8 sps:$4 sm:$0xff]  }
 0x703   :  { %v5019_v50 = vadd.f32 %v5017_v52, %v4504_v25  ;;  %5634 = vmatpush1.bf16.msra.mxu0 %v11121_v9  ;;  %v11199_v52 = vld [vmem:[%s11727_s4 + $0x30] ss:$8 sps:$4 sm:$0xff]   ;;  %v11205_v0 = vld [vmem:[%s11727_s4 + $0x44] ss:$8 sps:$4 sm:$0xff]  }
 0x704   :  { %v5020_v19 = vadd.f32 %v5018_v15, %v4505_v54  ;;  %5635 = vmatprep.subr.bf16.mxu0 %v11128_v16 }
 0x705   :  { %8772 = vtanh.f32 %v5019_v50 }
 0x706   :  { %8774 = vtanh.f32 %v5020_v19  ;;  %v11211_v19 = vld [vmem:[%s11727_s4 + $0x40] ss:$8 sps:$4 sm:$0xff]  }
 0x707   :  { %5636 = vmatpush1.bf16.msra.mxu0 %v11134_v4 }
 0x708   :  { %5946 = vmatprep.subr.bf16.mxu0 %v11909_v6 }
 0x70f   :  { %v8773_v37 = vpop.eup %8772 }
 0x710   :  { %v8775_v44 = vpop.eup %8774  ;;  %v5025_v7 = vmul.f32 %v8773_v37, %v5023_v32 }
 0x711   :  { %v5026_v20 = vmul.f32 %v8775_v44, %v5024_v59 }
 0x712   :  { %v11141_v35 = vadd.f32 %v5027_v46, %v5025_v7  ;;  %v11223_v46 = vld [vmem:[%s11727_s4 + $0x50] ss:$8 sps:$4 sm:$0xff]  }
 0x713   :  { %v11143_v28 = vadd.f32 %v5028_v27, %v5026_v20  ;;  %11987 = vst [vmem:[#allocation7_spill] sm:$0xff] %v11223_v46  ;;  %v11229_v20 = vld [vmem:[%s11727_s4 + $0x64] ss:$8 sps:$4 sm:$0xff]  }
 0x714   :  { %v11156_v58 = vpack.c.bf16 %v11141_v35, %v11141_v35  ;;  %11988 = vst [vmem:[#allocation8_spill] sm:$0xff] %v11229_v20 }
 0x715   :  { %v11147_v62 = vpack.c.bf16 %v11143_v28, %v11143_v28 }
 0x717   :  { %7762 = vmatprep.mubr.msk.bf16.mxu1 %vm178_vm1, %v11147_v62  ;;  %7828 = vmatprep.mubr.msk.bf16.mxu0 %vm178_vm1, %v11147_v62 }
 0x718   :  { %5149 = vmatmul.mubr.bf16.vlgmr.msra.gmra.mrb[68].mxu1 %v11156_v58  ;;  %5650 = vmatmul.mubr.bf16.vlgmr.msra.gmra.mrb[84].mxu0 %v11156_v58 }
 0x719   :  { %5457 = vmatpush1.bf16.msra.mxu1 %v11152_v1  ;;  %7787 = vmatprep.mubr.msk.bf16.mxu1 %vm178_vm1, %v11147_v62 }
 0x71a   :  { %5458 = vmatprep.subr.bf16.mxu1 %v11161_v21 }
 0x71d   :  { %5459 = vmatpush1.bf16.msra.mxu1 %v11175_v5 }
 0x71e   :  { %5460 = vmatprep.subr.bf16.mxu1 %v11181_v38 }
 0x721   :  { %5461 = vmatpush1.bf16.msra.mxu1 %v11187_v36 }
 0x722   :  { %5462 = vmatprep.subr.bf16.mxu1 %v11193_v43 }
 0x724   :  { %v4436_v25 = vpop.xlane.xlu1 %4435  ;;  %v4423_v15 = vpop.xlane.xlu0 %4422 }
 0x725   :  { %5463 = vmatpush1.bf16.msra.mxu1 %v11199_v52  ;;  %v4437_v50 = vsub.f32 0.0, %v4436_v25  ;;  %v4424_v54 = vsub.f32 0.0, %v4423_v15 }
 0x726   :  { %5464 = vmatprep.subr.bf16.mxu1 %v11205_v0 }
 0x727   :  { %v4438_v24 = vmul.f32 1.442695, %v4437_v50  ;;  %v4425_v32 = vmul.f32 1.442695, %v4424_v54  ;;  %v11239_v50 = vld [vmem:[%s11727_s4 + $0x60] ss:$8 sps:$4 sm:$0xff]  }
 0x728   :  { %v4470_v37 = vpop.xlane.xlu1 %4469  ;;  %v4453_v59 = vpop.xlane.xlu0 %4452  ;;  %11989 = vst [vmem:[#allocation9_spill] sm:$0xff] %v11239_v50  ;;  %v11245_v54 = vld [vmem:[%s11727_s4 + $0x74] ss:$8 sps:$4 sm:$0xff]  }
 0x729   :  { %8776 = vpow2.f32 %v4438_v24  ;;  %5465 = vmatpush1.bf16.msra.mxu1 %v11211_v19  ;;  %v4471_v44 = vsub.f32 0.0, %v4470_v37  ;;  %v4454_v7 = vsub.f32 0.0, %v4453_v59  ;;  %11990 = vst [vmem:[#allocation10_spill] sm:$0xff] %v11245_v54  ;;  %v11251_v24 = vld [vmem:[%s11727_s4 + $0x70] ss:$8 sps:$4 sm:$0xff]  }
 0x72a   :  { %8778 = vpow2.f32 %v4425_v32  ;;  %5466 = vmatprep.subr.bf16.mxu1 %v11217_v30  ;;  %11991 = vst [vmem:[#allocation11_spill] sm:$0xff] %v11251_v24  ;;  %v11257_v32 = vld [vmem:[%s11727_s4 + $0x84] ss:$8 sps:$4 sm:$0xff]  }
 0x72b   :  { %v4472_v27 = vmul.f32 1.442695, %v4471_v44  ;;  %v4455_v25 = vmul.f32 1.442695, %v4454_v7  ;;  %11992 = vst [vmem:[#allocation12_spill] sm:$0xff] %v11257_v32 }
 0x72c   :  { %v3657_v15 = vpop.permute.xlu1 %3656 }
 0x72d   :  { %8780 = vpow2.f32 %v4472_v27  ;;  %5467 = vmatpush1.bf16.msra.mxu1 %v11223_v46  ;;  %7522 = vst.msk [vmem:[%s11734_s11 + $0x18] sm:$0xff] %vm91_vm0, %v3657_v15  ;;  %v11263_v27 = vld [vmem:[%s11727_s4 + $0x80] ss:$8 sps:$4 sm:$0xff]  }
 0x72e   :  { %8782 = vpow2.f32 %v4455_v25  ;;  %5468 = vmatprep.subr.bf16.mxu1 %v11229_v20  ;;  %11993 = vst [vmem:[#allocation13_spill] sm:$0xff] %v11263_v27  ;;  %v11269_v25 = vld [vmem:[%s11727_s4 + $0x94] ss:$8 sps:$4 sm:$0xff]  }
 0x72f   :  { %11994 = vst [vmem:[#allocation14_spill] sm:$0xff] %v11269_v25 }
 0x731   :  { %5469 = vmatpush1.bf16.msra.mxu1 %v11239_v50 }
 0x732   :  { %5470 = vmatprep.subr.bf16.mxu1 %v11245_v54 }
 0x733   :  { %v8777_v37 = vpop.eup %8776 }
 0x734   :  { %v8779_v59 = vpop.eup %8778  ;;  %v4440_v44 = vmul.f32 1.442695, %v8777_v37 }
 0x735   :  { %v4427_v7 = vmul.f32 1.442695, %v8779_v59  ;;  %5471 = vmatpush1.bf16.msra.mxu1 %v11251_v24  ;;  %v11275_v24 = vld [vmem:[%s11727_s4 + $0x90] ss:$8 sps:$4 sm:$0xff]  }
 0x736   :  { %8784 = vpow2.f32 %v4440_v44  ;;  %5472 = vmatprep.subr.bf16.mxu1 %v11257_v32  ;;  %11995 = vst [vmem:[#allocation15_spill] sm:$0xff] %v11275_v24  ;;  %v11281_v44 = vld [vmem:[%s11727_s4 + $0x144] ss:$8 sps:$4 sm:$0xff]  }
 0x737   :  { %v8781_v15 = vpop.eup %8780  ;;  %8786 = vpow2.f32 %v4427_v7  ;;  %11996 = vst [vmem:[#allocation16_spill] sm:$0xff] %v11281_v44  ;;  %v11293_v7 = vld [vmem:[%s11727_s4 + $0x154] ss:$8 sps:$4 sm:$0xff]  }
 0x738   :  { %v8783_v54 = vpop.eup %8782  ;;  %v4474_v37 = vmul.f32 1.442695, %v8781_v15  ;;  %11998 = vst [vmem:[#allocation18_spill] sm:$0xff] %v11293_v7 }
 0x739   :  { %v4457_v59 = vmul.f32 1.442695, %v8783_v54  ;;  %5473 = vmatpush1.bf16.msra.mxu1 %v11263_v27  ;;  %v11287_v54 = vld [vmem:[%s11727_s4 + $0x140] ss:$8 sps:$4 sm:$0xff]  }
 0x73a   :  { %8788 = vpow2.f32 %v4474_v37  ;;  %5474 = vmatprep.subr.bf16.mxu1 %v11269_v25  ;;  %11997 = vst [vmem:[#allocation17_spill] sm:$0xff] %v11287_v54  ;;  %v11312_v25 = vld [vmem:[%s11727_s4 + $0x164] ss:$8 sps:$4 sm:$0xff]   ;;  %v11319_v27 = vld [vmem:[%s11727_s4 + $0x160] ss:$8 sps:$4 sm:$0xff]  }
 0x73b   :  { %8790 = vpow2.f32 %v4457_v59  ;;  %v11304_v59 = vld [vmem:[%s11727_s4 + $0x150] ss:$8 sps:$4 sm:$0xff]   ;;  %12000 = vst [vmem:[#allocation20_spill] sm:$0xff] %v11312_v25  ;;  %12001 = vst [vmem:[#allocation21_spill] sm:$0xff] %v11319_v27 }
 0x73c   :  { %11999 = vst [vmem:[#allocation19_spill] sm:$0xff] %v11304_v59 }
 0x73d   :  { %5475 = vmatpush1.bf16.msra.mxu1 %v11275_v24 }
 0x73e   :  { %5778 = vmatprep.subr.bf16.mxu1 %v11281_v44 }
 0x740   :  { %v8785_v15 = vpop.eup %8784  ;;  %5489 = vmatmul.mubr.bf16.vlgmr.msra.gmra.mrb[72].mxu1 %v11156_v58 }
 0x741   :  { %v11296_v37 = vpop.eup %8786  ;;  %5779 = vmatpush1.bf16.msra.mxu1 %v11287_v54  ;;  %7869 = vmatprep.mubr.msk.bf16.mxu1 %vm178_vm1, %v11147_v62  ;;  %v4443_v44 = vmul.f32 %v8785_v15, %v11010_v61 }
 0x742   :  { %v4442_v24 = vadd.f32 %v11296_v37, %v8785_v15  ;;  %5780 = vmatprep.subr.bf16.mxu1 %v11293_v7 }
 0x743   :  { %4445 = vrot.lane.b32.xlu0 %v4443_v44, %s8957_s13  ;;  %v11327_v44 = vld [vmem:[%s11727_s4 + $0x174] ss:$8 sps:$4 sm:$0xff]  }
 0x744   :  { %v8789_v54 = vpop.eup %8788  ;;  %12002 = vst [vmem:[#allocation22_spill] sm:$0xff] %v11327_v44 }
 0x745   :  { %v8791_v62 = vpop.eup %8790  ;;  %5781 = vmatpush1.bf16.msra.mxu1 %v11304_v59  ;;  %v4477_v15 = vmul.f32 %v8789_v54, %v11010_v61 }
 0x746   :  { %v4459_v32 = vadd.f32 %v8791_v62, %v4442_v24  ;;  %5782 = vmatprep.subr.bf16.mxu1 %v11312_v25  ;;  %v4460_v7 = vmul.f32 %v8791_v62, %v11010_v61  ;;  %v11335_v24 = vld [vmem:[%s11727_s4 + $0x170] ss:$8 sps:$4 sm:$0xff]   ;;  %v11341_v62 = vld [vmem:[%s11727_s4 + $0x184] ss:$8 sps:$4 sm:$0xff]  }
 0x747   :  { %4479 = vrot.lane.b32.xlu0 %v4477_v15, %s8958_s14  ;;  %12003 = vst [vmem:[#allocation23_spill] sm:$0xff] %v11335_v24  ;;  %12004 = vst [vmem:[#allocation24_spill] sm:$0xff] %v11341_v62  ;;  %v11365_v15 = vld [vmem:[%s11727_s4 + $0x1a4] ss:$8 sps:$4 sm:$0xff]  }
 0x748   :  { %4462 = vrot.lane.b32.xlu1 %v4460_v7, %s8956_s12  ;;  %v4476_v59 = vadd.f32 %v8789_v54, %v4459_v32  ;;  %v11347_v32 = vld [vmem:[%s11727_s4 + $0x180] ss:$8 sps:$4 sm:$0xff]   ;;  %v11353_v54 = vld [vmem:[%s11727_s4 + $0x194] ss:$8 sps:$4 sm:$0xff]   ;;  %v11359_v7 = vld [vmem:[%s11727_s4 + $0x190] ss:$8 sps:$4 sm:$0xff]  }
 0x749   :  { %5783 = vmatpush1.bf16.msra.mxu1 %v11319_v27  ;;  %12005 = vst [vmem:[#allocation25_spill] sm:$0xff] %v11347_v32  ;;  %12006 = vst [vmem:[#allocation26_spill] sm:$0xff] %v11353_v54 }
 0x74a   :  { %5784 = vmatprep.subr.bf16.mxu1 %v11327_v44  ;;  %12007 = vst [vmem:[#allocation27_spill] sm:$0xff] %v11359_v7  ;;  %12008 = vst [vmem:[#allocation28_spill] sm:$0xff] %v11365_v15  ;;  %8792 = vrcp.f32 %v4476_v59 }
 0x74d   :  { %5785 = vmatpush1.bf16.msra.mxu1 %v11335_v24 }
 0x74e   :  { %5786 = vmatprep.subr.bf16.mxu1 %v11341_v62  ;;  %v11371_v62 = vld [vmem:[%s11727_s4 + $0x1a0] ss:$8 sps:$4 sm:$0xff]  }
 0x74f   :  { %12009 = vst [vmem:[#allocation29_spill] sm:$0xff] %v11371_v62 }
 0x751   :  { %5787 = vmatpush1.bf16.msra.mxu1 %v11347_v32  ;;  %v11377_v32 = vld [vmem:[%s11727_s4 + $0x1b4] ss:$8 sps:$4 sm:$0xff]  }
 0x752   :  { %5788 = vmatprep.subr.bf16.mxu1 %v11353_v54  ;;  %12010 = vst [vmem:[#allocation34_spill] sm:$0xff] %v11377_v32  ;;  %v11383_v54 = vld [vmem:[%s11727_s4 + $0x1b0] ss:$8 sps:$4 sm:$0xff]  }
 0x753   :  { %12011 = vst [vmem:[#allocation35_spill] sm:$0xff] %v11383_v54 }
 0x755   :  { %5789 = vmatpush1.bf16.msra.mxu1 %v11359_v7  ;;  %v11389_v7 = vld [vmem:[%s11727_s4 + $0x1c4] ss:$8 sps:$4 sm:$0xff]  }
 0x756   :  { %5790 = vmatprep.subr.bf16.mxu1 %v11365_v15  ;;  %12012 = vst [vmem:[#allocation36_spill] sm:$0xff] %v11389_v7  ;;  %v11395_v15 = vld [vmem:[%s11727_s4 + $0x1c0] ss:$8 sps:$4 sm:$0xff]  }
 0x757   :  { %12013 = vst [vmem:[#allocation3_spill] sm:$0xff] %v11395_v15 }
 0x759   :  { %5791 = vmatpush1.bf16.msra.mxu1 %v11371_v62  ;;  %v11401_v62 = vld [vmem:[%s11727_s4 + $0x1d4] ss:$8 sps:$4 sm:$0xff]  }
 0x75a   :  { %5792 = vmatprep.subr.bf16.mxu1 %v11377_v32  ;;  %12014 = vst [vmem:[#allocation4_spill] sm:$0xff] %v11401_v62  ;;  %v11407_v32 = vld [vmem:[%s11727_s4 + $0x1d0] ss:$8 sps:$4 sm:$0xff]  }
 0x75b   :  { %12015 = vst [vmem:[#allocation5_spill] sm:$0xff] %v11407_v32 }
 0x75d   :  { %5793 = vmatpush1.bf16.msra.mxu1 %v11383_v54 }
 0x75e   :  { %5794 = vmatprep.subr.bf16.mxu1 %v11389_v7 }
 0x761   :  { %5795 = vmatpush1.bf16.msra.mxu1 %v11395_v15  ;;  %v8542_v15 = vld [vmem:[%s11729_s6] sm:$0xff]  }
 0x762   :  { %5796 = vmatprep.subr.bf16.mxu1 %v11401_v62  ;;  %5947 = vmatpush1.bf16.msra.mxu0 %v8542_v15 }
 0x763   :  { %5948 = vmatprep.subr.bf16.mxu0 %v11909_v6 }
 0x765   :  { %5797 = vmatpush1.bf16.msra.mxu1 %v11407_v32  ;;  %v8543_v32 = vld [vmem:[%s11729_s6 + $0x8] sm:$0xff]  }
 0x766   :  { %8096 = vmatprep.subr.bf16.mxu1 %v11978_v49  ;;  %5949 = vmatpush1.bf16.msra.mxu0 %v8543_v32 }
 0x767   :  { %5950 = vmatprep.subr.bf16.mxu0 %v11909_v6 }
 0x768   :  { %5811 = vmatmul.mubr.bf16.vlgmr.msra.gmra.mrb[76].mxu1 %v11156_v58  ;;  %v8544_v58 = vld [vmem:[%s11729_s6 + $0x10] sm:$0xff]  }
 0x769   :  { %8098 = vmatpush3.bf16.msra.mxu1 %v11979_v3  ;;  %8071 = vmatprep.mubr.msk.f32.mxu1 %vm8954_vm2, %v11980_v63 }
 0x76a   :  { %6447 = vmatprep.subr.bf16.mxu1 %v10949_v40  ;;  %5951 = vmatpush1.bf16.msra.mxu0 %v8544_v58  ;;  %v8545_v40 = vld [vmem:[%s11729_s6 + $0x18] sm:$0xff]   ;;  %v4430_v58 = vmul.f32 %v11296_v37, %v11010_v61  ;;  %v8546_v61 = vld [vmem:[%s11729_s6 + $0x20] sm:$0xff]  }
 0x76b   :  { %5952 = vmatprep.subr.bf16.mxu0 %v11909_v6 }
 0x76e   :  { %5953 = vmatpush1.bf16.msra.mxu0 %v8545_v40 }
 0x76f   :  { %5954 = vmatprep.subr.bf16.mxu0 %v11909_v6 }
 0x772   :  { %5955 = vmatpush1.bf16.msra.mxu0 %v8546_v61 }
 0x773   :  { %5956 = vmatprep.subr.bf16.mxu0 %v11909_v6 }
 0x7b5   :  { %v5245_v15 = vpop.f32.mrb[80].mxu0  ;;  %v4446_v3 = vpop.permute.xlu0 %4445 }
 0x7b6   :  { %v8066_v63 = vpop.f32.mrb[81].mxu0  ;;  %v5249_v49 = vsub.f32 %v5245_v15, %v11982_v11  ;;  %v5262_v32 = vsub.f32 %v5245_v15, %v11981_v39  ;;  %v5279_v62 = vsub.f32 %v5245_v15, %v11983_v42  ;;  %v4448_v24 = vadd.f32 %v4446_v3, %v4430_v58  ;;  %v5325_v42 = vld [vmem:[#allocation2 + $0x68] sm:$0xff] }
 0x7b7   :  { %v5296_v11 = vsub.f32 %v5245_v15, %v11921_v45 }
 0x7b8   :  { %v5250_v7 = vmul.f32 %v5249_v49, %v5249_v49  ;;  %v5263_v54 = vmul.f32 %v5262_v32, %v5262_v32  ;;  %v5280_v27 = vmul.f32 %v5279_v62, %v5279_v62  ;;  %v8793_v49 = vpop.eup %8792  ;;  %v8551_v62 = vld [vmem:[%s11729_s6 + $0x48] sm:$0xff]  }
 0x7b9   :  { %v4480_v37 = vpop.permute.xlu0 %4479  ;;  %v5297_v32 = vmul.f32 %v5296_v11, %v5296_v11  ;;  %v8549_v11 = vld [vmem:[%s11729_s6 + $0x38] sm:$0xff]  }
 0x7ba   :  { %v4463_v44 = vpop.permute.xlu1 %4462  ;;  %v5251_v59 = vsel %vm1918_vm3, %v5250_v7, 0.0  ;;  %v5264_v63 = vsel %vm1918_vm3, %v5263_v54, 0.0  ;;  %v5281_v3 = vsel %vm1918_vm3, %v5280_v27, 0.0  ;;  %v8550_v27 = vld [vmem:[%s11729_s6 + $0x40] sm:$0xff]  }
 0x7bb   :  { %v4465_v39 = vadd.f32 %v4463_v44, %v4448_v24  ;;  %5252 = vadd.xlane.f32.xlu0 %v5251_v59  ;;  %5265 = vadd.xlane.f32.xlu1 %v5264_v63  ;;  %v8547_v44 = vld [vmem:[%s11729_s6 + $0x28] sm:$0xff]   ;;  %v5298_v24 = vsel %vm1918_vm3, %v5297_v32, 0.0 }
 0x7bc   :  { %5957 = vmatpush1.bf16.msra.mxu0 %v8547_v44 }
 0x7bd   :  { %v4482_v40 = vadd.f32 %v4480_v37, %v4465_v39  ;;  %5958 = vmatprep.subr.bf16.mxu0 %v11909_v6  ;;  %v8548_v39 = vld [vmem:[%s11729_s6 + $0x30] sm:$0xff]  }
 0x7bf   :  { %v4484_v54 = vmul.f32 %v8793_v49, %v4482_v40  ;;  %5282 = vadd.xlane.f32.xlu0 %v5281_v3 }
 0x7c0   :  { %5959 = vmatpush1.bf16.msra.mxu0 %v8548_v39 }
 0x7c1   :  { %5960 = vmatprep.subr.bf16.mxu0 %v11909_v6 }
 0x7c3   :  { %5299 = vadd.xlane.f32.xlu0 %v5298_v24 }
 0x7c4   :  { %5961 = vmatpush1.bf16.msra.mxu0 %v8549_v11 }
 0x7c5   :  { %5962 = vmatprep.subr.bf16.mxu0 %v11909_v6 }
 0x7c8   :  { %5963 = vmatpush1.bf16.msra.mxu0 %v8550_v27 }
 0x7c9   :  { %5964 = vmatprep.subr.bf16.mxu0 %v11909_v6 }
 0x7cc   :  { %5965 = vmatpush1.bf16.msra.mxu0 %v8551_v62 }
 0x7cd   :  { %6286 = vmatprep.subr.bf16.mxu0 %v10998_v17 }
 0x7d9   :  { %4486 = vrot.lane.b32.xlu0 %v4484_v54, %s8957_s13 }
 0x7eb   :  { %v5150_v7 = vpop.f32.mrb[68].mxu1  ;;  %v5651_v15 = vpop.f32.mrb[84].mxu0 }
 0x7ec   :  { %v5151_v58 = vadd.f32 %v11007_v18, %v5150_v7  ;;  %v5152_v59 = vpop.f32.mrb[69].mxu1  ;;  %v5653_v63 = vpop.f32.mrb[85].mxu0  ;;  %v7886_v18 = vld [vmem:[%s11735_s1 + $0x28] sm:$0xff] }
 0x7ed   :  { %v5153_v61 = vpop.f32.mrb[70].mxu1  ;;  %v5655_v37 = vpop.f32.mrb[86].mxu0 }
 0x7ee   :  { %v7763_v40 = vmul.f32 -1.442695, %v5151_v58  ;;  %v5154_v49 = vpop.f32.mrb[71].mxu1  ;;  %v5656_v3 = vpop.f32.mrb[87].mxu0  ;;  %v6002_v61 = vsub.f32 1.0, %v7886_v18 }
 0x7f0   :  { %8794 = vpow2.f32 %v7763_v40 }
 0x7fa   :  { %v8795_v32 = vpop.eup %8794 }
 0x7fb   :  { %v5159_v44 = vadd.f32 1.0, %v8795_v32  ;;  %v5324_v32 = vld [vmem:[#allocation2 + $0x60] sm:$0xff] }
 0x7fd   :  { %8796 = vrcp.f32 %v5159_v44 }
 0x807   :  { %v11469_v24 = vpop.eup %8796 }
 0x808   :  { %8798 = vlog2.f32 %v11469_v24  ;;  %v5997_v17 = vsub.f32 1.0, %v11469_v24 }
 0x80a   :  { %8800 = vlog2.f32 %v5997_v17 }
 0x812   :  { %v8799_v54 = vpop.eup %8798 }
 0x813   :  { %v5490_v39 = vpop.f32.mrb[72].mxu1  ;;  %v5995_v11 = vmul.f32 0.6931472, %v8799_v54 }
 0x814   :  { %v8801_v27 = vpop.eup %8800  ;;  %v5492_v62 = vpop.f32.mrb[73].mxu1  ;;  %v5491_v37 = vadd.f32 %v5490_v39, %v11984_v56  ;;  %v5652_v39 = vadd.f32 %v5651_v15, %v11986_v31 }
 0x815   :  { %v5494_v7 = vpop.f32.mrb[74].mxu1  ;;  %v5996_v58 = vmax.f32 %v5995_v11, -100.0  ;;  %v5999_v59 = vmul.f32 0.6931472, %v8801_v27  ;;  %v5493_v49 = vadd.f32 %v5492_v62, %v11985_v10  ;;  %v5654_v11 = vadd.f32 %v5653_v63, %v9537_v41  ;;  %v5330_v27 = vld [vmem:[#allocation2 + $0xe8] sm:$0xff] }
 0x816   :  { %v5495_v40 = vpop.f32.mrb[75].mxu1  ;;  %v5819_v45 = vadd.f32 %v5491_v37, %v5324_v32 }
 0x817   :  { %v6000_v3 = vmax.f32 %v5999_v59, -100.0  ;;  %v6001_v44 = vmul.f32 %v7886_v18, %v5996_v58  ;;  %v5820_v25 = vadd.f32 %v5493_v49, %v5325_v42  ;;  %v5329_v18 = vld [vmem:[#allocation2 + $0xe0] sm:$0xff]  ;;  %v5335_v58 = vld [vmem:[#allocation2 + $0x168] sm:$0xff] }
 0x818   :  { %v7870_v20 = vmul.f32 -1.442695, %v5819_v45  ;;  %v5833_v42 = vadd.f32 %v5652_v39, %v5329_v18  ;;  %v5834_v45 = vadd.f32 %v5654_v11, %v5330_v27 }
 0x819   :  { %v6003_v17 = vmul.f32 %v6002_v61, %v6000_v3  ;;  %v7871_v46 = vmul.f32 -1.442695, %v5820_v25 }
 0x81a   :  { %8802 = vpow2.f32 %v7870_v20 }
 0x81b   :  { %v6004_v50 = vadd.f32 %v6003_v17, %v6001_v44  ;;  %8804 = vpow2.f32 %v7871_v46 }
 0x81d   :  { %v6005_v54 = vsub.f32 0.0, %v6004_v50  ;;  %v7872_v50 = vmul.f32 -1.442695, %v5833_v42 }
 0x81f   :  { %8072 = vmatmul.mubr.msk.f32.vlgmr.msra.gmra.mrb[80].mxu1 %vm91_vm0, %v6005_v54  ;;  %8806 = vpow2.f32 %v7872_v50 }
 0x820   :  { %6448 = vmatpush1.bf16.msra.mxu1 %v11022_v26  ;;  %v7873_v26 = vmul.f32 -1.442695, %v5834_v45 }
 0x821   :  { %6449 = vmatprep.subr.bf16.mxu1 %v11027_v14 }
 0x822   :  { %8808 = vpow2.f32 %v7873_v26 }
 0x824   :  { %6450 = vmatpush1.bf16.msra.mxu1 %v11034_v13  ;;  %v8803_v25 = vpop.eup %8802 }
 0x825   :  { %6451 = vmatprep.subr.bf16.mxu1 %v11041_v33  ;;  %v8805_v14 = vpop.eup %8804  ;;  %v5827_v13 = vadd.f32 1.0, %v8803_v25 }
 0x826   :  { %v5828_v46 = vadd.f32 1.0, %v8805_v14 }
 0x827   :  { %8810 = vrcp.f32 %v5827_v13 }
 0x828   :  { %6452 = vmatpush1.bf16.msra.mxu1 %v11048_v51  ;;  %8812 = vrcp.f32 %v5828_v46 }
 0x829   :  { %6453 = vmatprep.subr.bf16.mxu1 %v11054_v12  ;;  %v8807_v33 = vpop.eup %8806 }
 0x82a   :  { %v5841_v12 = vadd.f32 1.0, %v8807_v33 }
 0x82c   :  { %6454 = vmatpush1.bf16.msra.mxu1 %v11060_v2  ;;  %v8809_v51 = vpop.eup %8808  ;;  %8814 = vrcp.f32 %v5841_v12 }
 0x82d   :  { %6455 = vmatprep.subr.bf16.mxu1 %v11066_v48  ;;  %v5842_v2 = vadd.f32 1.0, %v8809_v51 }
 0x82f   :  { %8816 = vrcp.f32 %v5842_v2 }
 0x830   :  { %6456 = vmatpush1.bf16.msra.mxu1 %v11072_v47 }
 0x831   :  { %6457 = vmatprep.subr.bf16.mxu1 %v11078_v23  ;;  %v8811_v23 = vpop.eup %8810 }
 0x834   :  { %6458 = vmatpush1.bf16.msra.mxu1 %v11084_v53 }
 0x835   :  { %6459 = vmatprep.subr.bf16.mxu1 %v11090_v8  ;;  %v8813_v8 = vpop.eup %8812 }
 0x838   :  { %6460 = vmatpush1.bf16.msra.mxu1 %v11096_v29 }
 0x839   :  { %6461 = vmatprep.subr.bf16.mxu1 %v11102_v22  ;;  %v5334_v22 = vld [vmem:[#allocation2 + $0x160] sm:$0xff] }
 0x83b   :  { %v5812_v48 = vpop.f32.mrb[76].mxu1 }
 0x83c   :  { %v5813_v20 = vadd.f32 %v5812_v48, %v9546_v55  ;;  %v5814_v47 = vpop.f32.mrb[77].mxu1  ;;  %6462 = vmatpush1.bf16.msra.mxu1 %v11108_v60  ;;  %v8815_v60 = vpop.eup %8814 }
 0x83d   :  { %v5815_v15 = vadd.f32 %v5814_v47, %v9549_v57  ;;  %v5816_v53 = vpop.f32.mrb[78].mxu1  ;;  %6463 = vmatprep.subr.bf16.mxu1 %v11114_v34  ;;  %v8817_v37 = vpop.eup %8816  ;;  %v5853_v44 = vsub.f32 1.0, %v8815_v60 }
 0x83e   :  { %v5847_v63 = vmul.f32 %v8811_v23, %v5813_v20  ;;  %v5817_v29 = vpop.f32.mrb[79].mxu1  ;;  %v5854_v54 = vsub.f32 1.0, %v8817_v37  ;;  %v5858_v42 = vmul.f32 %v8817_v37, %v11143_v28  ;;  %v12018_v53 = vld [vmem:[#allocation9_spill] sm:$0xff]  ;;  %v12032_v37 = vld [vmem:[#allocation23_spill] sm:$0xff] }
 0x83f   :  { %v5848_v62 = vmul.f32 %v8813_v8, %v5815_v15  ;;  %v12021_v8 = vld [vmem:[#allocation12_spill] sm:$0xff]  ;;  %v12023_v29 = vld [vmem:[#allocation14_spill] sm:$0xff] }
 0x840   :  { %v5849_v7 = vadd.f32 %v5847_v63, %v5334_v22  ;;  %6464 = vmatpush1.bf16.msra.mxu1 %v11121_v9  ;;  %v12022_v63 = vld [vmem:[#allocation13_spill] sm:$0xff]  ;;  %v12024_v22 = vld [vmem:[#allocation15_spill] sm:$0xff] }
 0x841   :  { %v5850_v59 = vadd.f32 %v5848_v62, %v5335_v58  ;;  %6465 = vmatprep.subr.bf16.mxu1 %v11128_v16  ;;  %v12025_v62 = vld [vmem:[#allocation16_spill] sm:$0xff]  ;;  %v12027_v58 = vld [vmem:[#allocation18_spill] sm:$0xff] }
 0x842   :  { %8818 = vtanh.f32 %v5849_v7  ;;  %v12026_v7 = vld [vmem:[#allocation17_spill] sm:$0xff] }
 0x843   :  { %8820 = vtanh.f32 %v5850_v59  ;;  %v12028_v59 = vld [vmem:[#allocation19_spill] sm:$0xff] }
 0x844   :  { %6466 = vmatpush1.bf16.msra.mxu1 %v11134_v4  ;;  %v5857_v4 = vmul.f32 %v8815_v60, %v11141_v35  ;;  %v12029_v60 = vld [vmem:[#allocation20_spill] sm:$0xff] }
 0x845   :  { %6776 = vmatprep.subr.bf16.mxu1 %v11909_v6 }
 0x848   :  { %v5266_v34 = vpop.xlane.xlu1 %5265  ;;  %v5253_v61 = vpop.xlane.xlu0 %5252 }
 0x849   :  { %v5267_v40 = vsub.f32 0.0, %v5266_v34  ;;  %v5254_v49 = vsub.f32 0.0, %v5253_v61  ;;  %v12030_v34 = vld [vmem:[#allocation21_spill] sm:$0xff]  ;;  %v12031_v61 = vld [vmem:[#allocation22_spill] sm:$0xff] }
 0x84b   :  { %v5268_v3 = vmul.f32 1.442695, %v5267_v40  ;;  %v5255_v32 = vmul.f32 1.442695, %v5254_v49  ;;  %v12033_v40 = vld [vmem:[#allocation24_spill] sm:$0xff]  ;;  %v12034_v49 = vld [vmem:[#allocation25_spill] sm:$0xff] }
 0x84c   :  { %v8819_v17 = vpop.eup %8818  ;;  %v5283_v9 = vpop.xlane.xlu0 %5282 }
 0x84d   :  { %v8821_v39 = vpop.eup %8820  ;;  %8822 = vpow2.f32 %v5268_v3  ;;  %v5284_v16 = vsub.f32 0.0, %v5283_v9  ;;  %v5855_v11 = vmul.f32 %v8819_v17, %v5853_v44  ;;  %v12035_v3 = vld [vmem:[#allocation26_spill] sm:$0xff]  ;;  %v12037_v44 = vld [vmem:[#allocation28_spill] sm:$0xff]  ;;  %v12038_v17 = vld [vmem:[#allocation29_spill] sm:$0xff] }
 0x84e   :  { %8824 = vpow2.f32 %v5255_v32  ;;  %v5856_v18 = vmul.f32 %v8821_v39, %v5854_v54  ;;  %v12036_v32 = vld [vmem:[#allocation27_spill] sm:$0xff]  ;;  %v12039_v9 = vld [vmem:[#allocation34_spill] sm:$0xff]  ;;  %v12041_v39 = vld [vmem:[#allocation36_spill] sm:$0xff] }
 0x84f   :  { %v5285_v27 = vmul.f32 1.442695, %v5284_v16  ;;  %v11505_v45 = vadd.f32 %v5857_v4, %v5855_v11  ;;  %v12040_v54 = vld [vmem:[#allocation35_spill] sm:$0xff]  ;;  %v12043_v11 = vld [vmem:[#allocation4_spill] sm:$0xff]  ;;  %v12044_v4 = vld [vmem:[#allocation5_spill] sm:$0xff] }
 0x850   :  { %v5300_v50 = vpop.xlane.xlu0 %5299  ;;  %v11507_v26 = vadd.f32 %v5858_v42, %v5856_v18  ;;  %v12042_v16 = vld [vmem:[#allocation3_spill] sm:$0xff]  ;;  %v12045_v18 = vmov 0.0|0.0   ;;  %v12046_v42 = vld [vmem:[#allocation6_spill] sm:$0xff] }
 0x851   :  { %8826 = vpow2.f32 %v5285_v27  ;;  %v5301_v25 = vsub.f32 0.0, %v5300_v50  ;;  %v11513_v46 = vpack.c.bf16 %v11505_v45, %v11505_v45  ;;  %v12047_v27 = vmov 0.0   ;;  %v8552_v50 = vld [vmem:[%s11729_s6] sm:$0xff]  }
 0x852   :  { %v5862_v14 = vpack.c.bf16 %v11507_v26, %v11507_v26 }
 0x853   :  { %v5302_v13 = vmul.f32 1.442695, %v5301_v25  ;;  %v8553_v25 = vld [vmem:[%s11729_s6 + $0x8] sm:$0xff]  }
 0x854   :  { %7884 = vmatprep.mubr.msk.bf16.mxu0 %vm178_vm1, %v5862_v14  ;;  %7950 = vmatprep.mubr.msk.bf16.mxu1 %vm178_vm1, %v5862_v14  ;;  %v4487_v35 = vpop.permute.xlu0 %4486 }
 0x855   :  { %8828 = vpow2.f32 %v5302_v13  ;;  %5979 = vmatmul.mubr.bf16.vlgmr.msra.gmra.mrb[88].mxu0 %v11513_v46  ;;  %6480 = vmatmul.mubr.bf16.vlgmr.msra.gmra.mrb[84].mxu1 %v11513_v46  ;;  %7644 = vst.msk [vmem:[%s11734_s11 + $0x20] sm:$0xff] %vm91_vm0, %v4487_v35  ;;  %v8555_v13 = vld [vmem:[%s11729_s6 + $0x18] sm:$0xff]  }
 0x856   :  { %6287 = vmatpush1.bf16.msra.mxu0 %v11152_v1  ;;  %7909 = vmatprep.mubr.msk.bf16.mxu0 %vm178_vm1, %v5862_v14 }
 0x857   :  { %v8823_v28 = vpop.eup %8822  ;;  %6288 = vmatprep.subr.bf16.mxu0 %v11161_v21  ;;  %6777 = vmatpush1.bf16.msra.mxu1 %v8552_v50 }
 0x858   :  { %v8825_v33 = vpop.eup %8824  ;;  %v5270_v51 = vmul.f32 1.442695, %v8823_v28  ;;  %6778 = vmatprep.subr.bf16.mxu1 %v11909_v6  ;;  %v12048_v28 = vld [vmem:[#allocation32_spill] sm:$0xff] }
 0x859   :  { %v5257_v12 = vmul.f32 1.442695, %v8825_v33 }
 0x85a   :  { %8830 = vpow2.f32 %v5270_v51  ;;  %6289 = vmatpush1.bf16.msra.mxu0 %v11175_v5  ;;  %v12049_v51 = vld [vmem:[#allocation30_spill] sm:$0xff] }
 0x85b   :  { %v8827_v2 = vpop.eup %8826  ;;  %8832 = vpow2.f32 %v5257_v12  ;;  %6290 = vmatprep.subr.bf16.mxu0 %v11181_v38  ;;  %6779 = vmatpush1.bf16.msra.mxu1 %v8553_v25 }
 0x85c   :  { %v5287_v48 = vmul.f32 1.442695, %v8827_v2  ;;  %6780 = vmatprep.subr.bf16.mxu1 %v11909_v6  ;;  %v12050_v2 = vld [vmem:[#allocation33_spill] sm:$0xff] }
 0x85e   :  { %8834 = vpow2.f32 %v5287_v48  ;;  %6291 = vmatpush1.bf16.msra.mxu0 %v11187_v36 }
 0x85f   :  { %v8829_v1 = vpop.eup %8828  ;;  %6292 = vmatprep.subr.bf16.mxu0 %v11193_v43 }
 0x860   :  { %v5304_v20 = vmul.f32 1.442695, %v8829_v1 }
 0x862   :  { %8836 = vpow2.f32 %v5304_v20  ;;  %6293 = vmatpush1.bf16.msra.mxu0 %v11199_v52  ;;  %v12016_v52 = vld [vmem:[#allocation7_spill] sm:$0xff] }
 0x863   :  { %6294 = vmatprep.subr.bf16.mxu0 %v11205_v0  ;;  %v12017_v0 = vld [vmem:[#allocation8_spill] sm:$0xff] }
 0x864   :  { %v8831_v21 = vpop.eup %8830 }
 0x865   :  { %v11532_v47 = vpop.eup %8832  ;;  %v5273_v5 = vmul.f32 %v8831_v21, %v11469_v24 }
 0x866   :  { %v5272_v38 = vadd.f32 %v11532_v47, %v8831_v21  ;;  %6295 = vmatpush1.bf16.msra.mxu0 %v11211_v19  ;;  %v12019_v19 = vld [vmem:[#allocation10_spill] sm:$0xff] }
 0x867   :  { %6296 = vmatprep.subr.bf16.mxu0 %v11217_v30  ;;  %5275 = vrot.lane.b32.xlu1 %v5273_v5, %s8957_s13  ;;  %v12020_v30 = vld [vmem:[#allocation11_spill] sm:$0xff] }
 0x868   :  { %v11539_v36 = vpop.eup %8834 }
 0x869   :  { %v5289_v43 = vadd.f32 %v11539_v36, %v5272_v38 }
 0x86a   :  { %6297 = vmatpush1.bf16.msra.mxu0 %v12016_v52 }
 0x86b   :  { %6298 = vmatprep.subr.bf16.mxu0 %v12017_v0  ;;  %v8557_v0 = vld [vmem:[%s11729_s6 + $0x28] sm:$0xff]  }
 0x86c   :  { %v11544_v23 = vpop.eup %8836 }
 0x86d   :  { %v11547_v15 = vadd.f32 %v11544_v23, %v5289_v43  ;;  %v8556_v43 = vld [vmem:[%s11729_s6 + $0x20] sm:$0xff]  }
 0x86e   :  { %6299 = vmatpush1.bf16.msra.mxu0 %v12018_v53  ;;  %v8558_v53 = vld [vmem:[%s11729_s6 + $0x30] sm:$0xff]  }
 0x86f   :  { %6300 = vmatprep.subr.bf16.mxu0 %v12019_v19  ;;  %v8559_v19 = vld [vmem:[%s11729_s6 + $0x38] sm:$0xff]  }
 0x872   :  { %6301 = vmatpush1.bf16.msra.mxu0 %v12020_v30  ;;  %v5307_v30 = vmul.f32 %v11544_v23, %v11469_v24  ;;  %v11639_v23 = vld [vmem:[%s11733_s7] ss:$0 sm:$0xff] }
 0x873   :  { %6302 = vmatprep.subr.bf16.mxu0 %v12021_v8  ;;  %v8560_v8 = vld [vmem:[%s11729_s6 + $0x40] sm:$0xff]  }
 0x876   :  { %6303 = vmatpush1.bf16.msra.mxu0 %v12022_v63  ;;  %v8561_v63 = vld [vmem:[%s11729_s6 + $0x48] sm:$0xff]  }
 0x877   :  { %6304 = vmatprep.subr.bf16.mxu0 %v12023_v29 }
 0x87a   :  { %6305 = vmatpush1.bf16.msra.mxu0 %v12024_v22 }
 0x87b   :  { %6608 = vmatprep.subr.bf16.mxu0 %v12025_v62 }
 0x87d   :  { %6319 = vmatmul.mubr.bf16.vlgmr.msra.gmra.mrb[92].mxu0 %v11513_v46 }
 0x87e   :  { %6609 = vmatpush1.bf16.msra.mxu0 %v12026_v7  ;;  %7991 = vmatprep.mubr.msk.bf16.mxu0 %vm178_vm1, %v5862_v14  ;;  %v8554_v14 = vld [vmem:[%s11729_s6 + $0x10] sm:$0xff]  }
 0x87f   :  { %6610 = vmatprep.subr.bf16.mxu0 %v12027_v58  ;;  %6781 = vmatpush1.bf16.msra.mxu1 %v8554_v14  ;;  %v6154_v14 = vld [vmem:[#allocation2 + $0x70] sm:$0xff] }
 0x880   :  { %6782 = vmatprep.subr.bf16.mxu1 %v11909_v6 }
 0x882   :  { %6611 = vmatpush1.bf16.msra.mxu0 %v12028_v59 }
 0x883   :  { %6612 = vmatprep.subr.bf16.mxu0 %v12029_v60  ;;  %6783 = vmatpush1.bf16.msra.mxu1 %v8555_v13 }
 0x884   :  { %6784 = vmatprep.subr.bf16.mxu1 %v11909_v6 }
 0x886   :  { %6613 = vmatpush1.bf16.msra.mxu0 %v12030_v34 }
 0x887   :  { %6614 = vmatprep.subr.bf16.mxu0 %v12031_v61  ;;  %6785 = vmatpush1.bf16.msra.mxu1 %v8556_v43 }
 0x888   :  { %6786 = vmatprep.subr.bf16.mxu1 %v11909_v6 }
 0x88a   :  { %6615 = vmatpush1.bf16.msra.mxu0 %v12032_v37 }
 0x88b   :  { %6616 = vmatprep.subr.bf16.mxu0 %v12033_v40  ;;  %6787 = vmatpush1.bf16.msra.mxu1 %v8557_v0 }
 0x88c   :  { %6788 = vmatprep.subr.bf16.mxu1 %v11909_v6 }
 0x88e   :  { %6617 = vmatpush1.bf16.msra.mxu0 %v12034_v49 }
 0x88f   :  { %6618 = vmatprep.subr.bf16.mxu0 %v12035_v3  ;;  %6789 = vmatpush1.bf16.msra.mxu1 %v8558_v53 }
 0x890   :  { %6790 = vmatprep.subr.bf16.mxu1 %v11909_v6 }
 0x892   :  { %6619 = vmatpush1.bf16.msra.mxu0 %v12036_v32 }
 0x893   :  { %6620 = vmatprep.subr.bf16.mxu0 %v12037_v44  ;;  %6791 = vmatpush1.bf16.msra.mxu1 %v8559_v19  ;;  %v8008_v44 = vld [vmem:[%s11735_s1 + $0x30] sm:$0xff] }
 0x894   :  { %6792 = vmatprep.subr.bf16.mxu1 %v11909_v6 }
 0x896   :  { %6621 = vmatpush1.bf16.msra.mxu0 %v12038_v17 }
 0x897   :  { %6622 = vmatprep.subr.bf16.mxu0 %v12039_v9  ;;  %6793 = vmatpush1.bf16.msra.mxu1 %v8560_v8 }
 0x898   :  { %6794 = vmatprep.subr.bf16.mxu1 %v11909_v6 }
 0x89a   :  { %6623 = vmatpush1.bf16.msra.mxu0 %v12040_v54 }
 0x89b   :  { %6624 = vmatprep.subr.bf16.mxu0 %v12041_v39  ;;  %6795 = vmatpush1.bf16.msra.mxu1 %v8561_v63 }
 0x89e   :  { %6625 = vmatpush1.bf16.msra.mxu0 %v12042_v16 }
 0x89f   :  { %6626 = vmatprep.subr.bf16.mxu0 %v12043_v11 }
 0x8a2   :  { %6627 = vmatpush1.bf16.msra.mxu0 %v12044_v4 }
 0x8a3   :  { %8099 = vmatprep.subr.bf16.mxu0 %v12045_v18  ;;  %v6832_v18 = vsub.f32 1.0, %v8008_v44 }
 0x8a5   :  { %6641 = vmatmul.mubr.bf16.vlgmr.msra.gmra.mrb[96].mxu0 %v11513_v46 }
 0x8a6   :  { %8101 = vmatpush3.bf16.msra.mxu0 %v12046_v42  ;;  %8078 = vmatprep.mubr.msk.f32.mxu0 %vm8954_vm2, %v12047_v27 }
 0x8f2   :  { %v11598_v46 = vpop.f32.mrb[80].mxu1 }
 0x8f3   :  { %v8073_v35 = vpop.f32.mrb[81].mxu1  ;;  %v6092_v33 = vsub.f32 %v11598_v46, %v12048_v28  ;;  %v6109_v12 = vsub.f32 %v11598_v46, %v12049_v51  ;;  %v6126_v48 = vsub.f32 %v11598_v46, %v12050_v2 }
 0x8f5   :  { %v6093_v1 = vmul.f32 %v6092_v33, %v6092_v33  ;;  %v6110_v20 = vmul.f32 %v6109_v12, %v6109_v12  ;;  %v6127_v38 = vmul.f32 %v6126_v48, %v6126_v48  ;;  %v6155_v12 = vld [vmem:[#allocation2 + $0x78] sm:$0xff] }
 0x8f7   :  { %v6094_v21 = vsel %vm1918_vm3, %v6093_v1, 0.0  ;;  %v6111_v5 = vsel %vm1918_vm3, %v6110_v20, 0.0  ;;  %v6128_v52 = vsel %vm1918_vm3, %v6127_v38, 0.0 }
 0x8f8   :  { %6095 = vadd.xlane.f32.xlu1 %v6094_v21  ;;  %6112 = vadd.xlane.f32.xlu0 %v6111_v5 }
 0x8fc   :  { %6129 = vadd.xlane.f32.xlu0 %v6128_v52  ;;  %v6160_v52 = vld [vmem:[#allocation2 + $0xf8] sm:$0xff] }
 0x909   :  { %5309 = vrot.lane.b32.xlu1 %v5307_v30, %s8958_s14 }
 0x928   :  { %v5980_v29 = vpop.f32.mrb[88].mxu0  ;;  %v6481_v22 = vpop.f32.mrb[84].mxu1 }
 0x929   :  { %v5981_v62 = vadd.f32 %v11639_v23, %v5980_v29  ;;  %v5982_v7 = vpop.f32.mrb[89].mxu0  ;;  %v6483_v58 = vpop.f32.mrb[85].mxu1  ;;  %v6482_v38 = vadd.f32 %v6481_v22, %v11986_v31 }
 0x92a   :  { %v5983_v59 = vpop.f32.mrb[90].mxu0  ;;  %v6485_v60 = vpop.f32.mrb[86].mxu1 }
 0x92b   :  { %v7885_v34 = vmul.f32 -1.442695, %v5981_v62  ;;  %v5984_v6 = vpop.f32.mrb[91].mxu0  ;;  %v6486_v61 = vpop.f32.mrb[87].mxu1 }
 0x92d   :  { %8838 = vpow2.f32 %v7885_v34 }
 0x937   :  { %v8839_v37 = vpop.eup %8838 }
 0x938   :  { %v5989_v40 = vadd.f32 1.0, %v8839_v37 }
 0x93a   :  { %8840 = vrcp.f32 %v5989_v40 }
 0x944   :  { %v11642_v49 = vpop.eup %8840 }
 0x945   :  { %8842 = vlog2.f32 %v11642_v49  ;;  %v6827_v3 = vsub.f32 1.0, %v11642_v49 }
 0x947   :  { %8844 = vlog2.f32 %v6827_v3  ;;  %v6164_v3 = vld [vmem:[#allocation2 + $0x170] sm:$0xff] }
 0x94f   :  { %v8843_v32 = vpop.eup %8842 }
 0x950   :  { %v6320_v17 = vpop.f32.mrb[92].mxu0  ;;  %v6825_v9 = vmul.f32 0.6931472, %v8843_v32 }
 0x951   :  { %v8845_v54 = vpop.eup %8844  ;;  %v6322_v39 = vpop.f32.mrb[93].mxu0  ;;  %v6321_v42 = vadd.f32 %v6320_v17, %v11984_v56  ;;  %v6484_v56 = vadd.f32 %v6483_v58, %v9537_v41  ;;  %v6165_v17 = vld [vmem:[#allocation2 + $0x178] sm:$0xff] }
 0x952   :  { %v6324_v16 = vpop.f32.mrb[94].mxu0  ;;  %v6826_v11 = vmax.f32 %v6825_v9, -100.0  ;;  %v6829_v4 = vmul.f32 0.6931472, %v8845_v54  ;;  %v6323_v50 = vadd.f32 %v6322_v39, %v11985_v10  ;;  %v6159_v10 = vld [vmem:[#allocation2 + $0xf0] sm:$0xff] }
 0x953   :  { %v6325_v27 = vpop.f32.mrb[95].mxu0  ;;  %v6649_v33 = vadd.f32 %v6321_v42, %v6154_v14  ;;  %v6663_v43 = vadd.f32 %v6482_v38, %v6159_v10  ;;  %v6664_v0 = vadd.f32 %v6484_v56, %v6160_v52 }
 0x954   :  { %v6830_v25 = vmax.f32 %v6829_v4, -100.0  ;;  %v6831_v13 = vmul.f32 %v8008_v44, %v6826_v11  ;;  %v6650_v48 = vadd.f32 %v6323_v50, %v6155_v12 }
 0x955   :  { %v7992_v21 = vmul.f32 -1.442695, %v6649_v33  ;;  %v7994_v53 = vmul.f32 -1.442695, %v6663_v43  ;;  %v7995_v19 = vmul.f32 -1.442695, %v6664_v0 }
 0x956   :  { %v6833_v35 = vmul.f32 %v6832_v18, %v6830_v25  ;;  %v7993_v5 = vmul.f32 -1.442695, %v6650_v48 }
 0x957   :  { %8846 = vpow2.f32 %v7992_v21 }
 0x958   :  { %v6834_v1 = vadd.f32 %v6833_v35, %v6831_v13  ;;  %8848 = vpow2.f32 %v7993_v5 }
 0x959   :  { %8850 = vpow2.f32 %v7994_v53 }
 0x95a   :  { %v6835_v20 = vsub.f32 0.0, %v6834_v1  ;;  %8852 = vpow2.f32 %v7995_v19 }
 0x95c   :  { %8079 = vmatmul.mubr.msk.f32.vlgmr.msra.gmra.mrb[82].mxu0 %vm91_vm0, %v6835_v20 }
 0x961   :  { %v8847_v30 = vpop.eup %8846 }
 0x962   :  { %v8849_v8 = vpop.eup %8848  ;;  %v6657_v63 = vadd.f32 1.0, %v8847_v30 }
 0x963   :  { %v6658_v29 = vadd.f32 1.0, %v8849_v8  ;;  %v8851_v62 = vpop.eup %8850 }
 0x964   :  { %8854 = vrcp.f32 %v6657_v63  ;;  %v8853_v31 = vpop.eup %8852  ;;  %v6671_v22 = vadd.f32 1.0, %v8851_v62 }
 0x965   :  { %8856 = vrcp.f32 %v6658_v29  ;;  %v6672_v41 = vadd.f32 1.0, %v8853_v31  ;;  %v12051_v29 = vld [vmem:[#allocation31_spill] sm:$0xff] }
 0x966   :  { %8858 = vrcp.f32 %v6671_v22  ;;  %v6079_v62 = vsub.f32 %v11598_v46, %v12051_v29 }
 0x967   :  { %8860 = vrcp.f32 %v6672_v41 }
 0x96e   :  { %v8855_v60 = vpop.eup %8854 }
 0x96f   :  { %v8857_v61 = vpop.eup %8856 }
 0x970   :  { %v8859_v54 = vpop.eup %8858 }
 0x971   :  { %v8861_v39 = vpop.eup %8860  ;;  %v6687_v18 = vmul.f32 %v8859_v54, %v11505_v45 }
 0x972   :  { %v6684_v11 = vsub.f32 1.0, %v8861_v39  ;;  %v6688_v27 = vmul.f32 %v8861_v39, %v11507_v26 }
 0x978   :  { %v6642_v7 = vpop.f32.mrb[96].mxu0 }
 0x979   :  { %v6643_v58 = vadd.f32 %v6642_v7, %v9546_v55  ;;  %v6644_v59 = vpop.f32.mrb[97].mxu0  ;;  %v6683_v55 = vsub.f32 1.0, %v8859_v54 }
 0x97a   :  { %v6645_v34 = vadd.f32 %v6644_v59, %v9549_v57  ;;  %v6646_v6 = vpop.f32.mrb[98].mxu0 }
 0x97b   :  { %v6677_v37 = vmul.f32 %v8855_v60, %v6643_v58  ;;  %v6647_v40 = vpop.f32.mrb[99].mxu0 }
 0x97c   :  { %v6678_v32 = vmul.f32 %v8857_v61, %v6645_v34 }
 0x97d   :  { %v6679_v44 = vadd.f32 %v6677_v37, %v6164_v3 }
 0x97e   :  { %v6680_v9 = vadd.f32 %v6678_v32, %v6165_v17  ;;  %v5260_v17 = vmul.f32 %v11532_v47, %v11469_v24 }
 0x97f   :  { %8862 = vtanh.f32 %v6679_v44 }
 0x980   :  { %8864 = vtanh.f32 %v6680_v9 }
 0x985   :  { %v11673_v56 = vpop.xlane.xlu0 %6112 }
 0x989   :  { %v8863_v16 = vpop.eup %8862  ;;  %v6130_v52 = vpop.xlane.xlu0 %6129 }
 0x98a   :  { %v8865_v4 = vpop.eup %8864  ;;  %v6685_v57 = vmul.f32 %v8863_v16, %v6683_v55  ;;  %v6131_v0 = vsub.f32 0.0, %v6130_v52 }
 0x98b   :  { %v6686_v42 = vmul.f32 %v8865_v4, %v6684_v11 }
 0x98c   :  { %v6689_v50 = vadd.f32 %v6687_v18, %v6685_v57  ;;  %v6132_v8 = vmul.f32 1.442695, %v6131_v0 }
 0x98d   :  { %v6690_v25 = vadd.f32 %v6688_v27, %v6686_v42 }
 0x98e   :  { %v6691_v13 = vpack.c.bf16 %v6689_v50, %v6689_v50 }
 0x98f   :  { %v6692_v14 = vpack.c.bf16 %v6690_v25, %v6690_v25 }
 0x991   :  { %8006 = vmatprep.mubr.msk.bf16.mxu1 %vm178_vm1, %v6692_v14 }
 0x992   :  { %6809 = vmatmul.mubr.bf16.vlgmr.msra.gmra.mrb[88].mxu1 %v6691_v13  ;;  %v6114_v13 = vsub.f32 0.0, %v11673_v56 }
 0xa2f   :  { %v11659_v35 = vpop.f32.mrb[82].mxu0 }
 0xa30   :  { %v8080_v33 = vpop.f32.mrb[83].mxu0  ;;  %v6922_v12 = vsub.f32 %v11659_v35, %v12048_v28  ;;  %v6939_v48 = vsub.f32 %v11659_v35, %v12049_v51  ;;  %v6956_v20 = vsub.f32 %v11659_v35, %v12050_v2  ;;  %v5290_v28 = vmul.f32 %v11539_v36, %v11469_v24  ;;  %v5276_v51 = vpop.permute.xlu1 %5275 }
 0xa31   :  { %v6080_v36 = vmul.f32 %v6079_v62, %v6079_v62  ;;  %v5278_v39 = vadd.f32 %v5276_v51, %v5260_v17 }
 0xa32   :  { %v6923_v45 = vmul.f32 %v6922_v12, %v6922_v12  ;;  %v6940_v26 = vmul.f32 %v6939_v48, %v6939_v48  ;;  %v6957_v5 = vmul.f32 %v6956_v20, %v6956_v20  ;;  %v6115_v12 = vmul.f32 1.442695, %v6114_v13 }
 0xa33   :  { %v6081_v31 = vsel %vm1918_vm3, %v6080_v36, 0.0 }
 0xa34   :  { %v6924_v1 = vsel %vm1918_vm3, %v6923_v45, 0.0  ;;  %v6941_v21 = vsel %vm1918_vm3, %v6940_v26, 0.0  ;;  %v6958_v38 = vsel %vm1918_vm3, %v6957_v5, 0.0  ;;  %v6096_v10 = vpop.xlane.xlu1 %6095  ;;  %v6909_v45 = vsub.f32 %v11659_v35, %v12051_v29 }
 0xa35   :  { %6925 = vadd.xlane.f32.xlu0 %v6924_v1  ;;  %v6097_v43 = vsub.f32 0.0, %v6096_v10 }
 0xa36   :  { %v6910_v26 = vmul.f32 %v6909_v45, %v6909_v45 }
 0xa37   :  { %v6098_v2 = vmul.f32 1.442695, %v6097_v43 }
 0xa38   :  { %v5310_v4 = vpop.permute.xlu1 %5309 }
 0xa39   :  { %6942 = vadd.xlane.f32.xlu0 %v6941_v21  ;;  %8866 = vpow2.f32 %v6098_v2  ;;  %v6911_v21 = vsel %vm1918_vm3, %v6910_v26, 0.0 }
 0xa3a   :  { %8868 = vpow2.f32 %v6132_v8 }
 0xa3d   :  { %6959 = vadd.xlane.f32.xlu0 %v6958_v38 }
 0xa43   :  { %v8867_v22 = vpop.eup %8866 }
 0xa44   :  { %v6100_v41 = vmul.f32 1.442695, %v8867_v22  ;;  %v8869_v7 = vpop.eup %8868 }
 0xa45   :  { %v6134_v58 = vmul.f32 1.442695, %v8869_v7 }
 0xa46   :  { %8870 = vpow2.f32 %v6100_v41 }
 0xa47   :  { %8872 = vpow2.f32 %v6134_v58 }
 0xa50   :  { %v11678_v59 = vpop.eup %8870 }
 0xa51   :  { %v6103_v60 = vmul.f32 %v11678_v59, %v11642_v49  ;;  %v11682_v34 = vpop.eup %8872 }
 0xa52   :  { %v6137_v46 = vmul.f32 %v11682_v34, %v11642_v49 }
 0xa53   :  { %5292 = vrot.lane.b32.xlu0 %v5290_v28, %s8956_s12 }
 0xa65   :  { %v6810_v53 = vpop.f32.mrb[88].mxu1 }
 0xa66   :  { %v6812_v19 = vpop.f32.mrb[89].mxu1  ;;  %v6811_v6 = vadd.f32 %v11639_v23, %v6810_v53 }
 0xa67   :  { %v6813_v30 = vpop.f32.mrb[90].mxu1 }
 0xa68   :  { %v6814_v63 = vpop.f32.mrb[91].mxu1  ;;  %v8007_v61 = vmul.f32 -1.442695, %v6811_v6 }
 0xa6a   :  { %8874 = vpow2.f32 %v8007_v61 }
 0xa72   :  { %6082 = vadd.xlane.f32.xlu0 %v6081_v31 }
 0xa74   :  { %v8875_v54 = vpop.eup %8874 }
 0xa75   :  { %v6819_v11 = vadd.f32 1.0, %v8875_v54 }
 0xa88   :  { %6105 = vrot.lane.b32.xlu0 %v6103_v60, %s8957_s13 }
 0xa8c   :  { %6139 = vrot.lane.b32.xlu0 %v6137_v46, %s8958_s14 }
 0xac2   :  { %v6926_v37 = vpop.xlane.xlu0 %6925 }
 0xac3   :  { %v6927_v40 = vsub.f32 0.0, %v6926_v37 }
 0xac5   :  { %v6928_v3 = vmul.f32 1.442695, %v6927_v40 }
 0xac6   :  { %v6943_v32 = vpop.xlane.xlu0 %6942 }
 0xac7   :  { %8876 = vpow2.f32 %v6928_v3  ;;  %v6944_v52 = vsub.f32 0.0, %v6943_v32 }
 0xac8   :  { %8878 = vrcp.f32 %v11547_v15 }
 0xac9   :  { %v6945_v2 = vmul.f32 1.442695, %v6944_v52 }
 0xaca   :  { %v6960_v44 = vpop.xlane.xlu0 %6959 }
 0xacb   :  { %v6961_v9 = vsub.f32 0.0, %v6960_v44 }
 0xacd   :  { %v6962_v55 = vmul.f32 1.442695, %v6961_v9 }
 0xace   :  { %v5293_v16 = vpop.permute.xlu0 %5292 }
 0xacf   :  { %8880 = vpow2.f32 %v6962_v55  ;;  %v5295_v23 = vadd.f32 %v5293_v16, %v5278_v39 }
 0xad0   :  { %8882 = vrcp.f32 %v6819_v11 }
 0xad1   :  { %v8877_v57 = vpop.eup %8876  ;;  %v5312_v18 = vadd.f32 %v5310_v4, %v5295_v23 }
 0xad2   :  { %v8879_v42 = vpop.eup %8878  ;;  %v6930_v27 = vmul.f32 1.442695, %v8877_v57 }
 0xad3   :  { %v5314_v50 = vmul.f32 %v8879_v42, %v5312_v18 }
 0xad4   :  { %8884 = vpow2.f32 %v6930_v27 }
 0xad5   :  { %5316 = vrot.lane.b32.xlu1 %v5314_v50, %s8957_s13 }
 0xad9   :  { %v8881_v15 = vpop.eup %8880 }
 0xada   :  { %v6964_v24 = vmul.f32 1.442695, %v8881_v15  ;;  %v11693_v47 = vpop.eup %8882 }
 0xadc   :  { %8886 = vpow2.f32 %v6964_v24 }
 0xadd   :  { %8888 = vpow2.f32 %v6115_v12 }
 0xade   :  { %v8885_v25 = vpop.eup %8884 }
 0xadf   :  { %v6933_v14 = vmul.f32 %v8885_v25, %v11693_v47 }
 0xae1   :  { %6935 = vrot.lane.b32.xlu0 %v6933_v14, %s8957_s13 }
 0xae6   :  { %v8887_v33 = vpop.eup %8886 }
 0xae7   :  { %v6967_v48 = vmul.f32 %v8887_v33, %v11693_v47  ;;  %v8889_v1 = vpop.eup %8888 }
 0xae8   :  { %v6117_v20 = vmul.f32 1.442695, %v8889_v1 }
 0xae9   :  { %6969 = vrot.lane.b32.xlu0 %v6967_v48, %s8958_s14 }
 0xaea   :  { %8890 = vpow2.f32 %v6117_v20 }
 0xaf4   :  { %v8891_v5 = vpop.eup %8890 }
 0xaf5   :  { %v6120_v38 = vmul.f32 %v8891_v5, %v11642_v49 }
 0xaf9   :  { %6912 = vadd.xlane.f32.xlu1 %v6911_v21 }
 0xaff   :  { %v6083_v51 = vpop.xlane.xlu0 %6082 }
 0xb00   :  { %v6084_v35 = vsub.f32 0.0, %v6083_v51 }
 0xb02   :  { %v6085_v56 = vmul.f32 1.442695, %v6084_v35 }
 0xb03   :  { %v6106_v62 = vpop.permute.xlu0 %6105 }
 0xb04   :  { %8892 = vpow2.f32 %v6085_v56 }
 0xb07   :  { %v6140_v7 = vpop.permute.xlu0 %6139 }
 0xb0a   :  { %6122 = vrot.lane.b32.xlu1 %v6120_v38, %s8956_s12 }
 0xb0e   :  { %v8893_v10 = vpop.eup %8892 }
 0xb0f   :  { %v6087_v43 = vmul.f32 1.442695, %v8893_v10 }
 0xb11   :  { %8894 = vpow2.f32 %v6087_v43 }
 0xb12   :  { %8896 = vpow2.f32 %v6945_v2 }
 0xb1b   :  { %v8895_v0 = vpop.eup %8894 }
 0xb1c   :  { %v6102_v53 = vadd.f32 %v8895_v0, %v11678_v59  ;;  %v8897_v30 = vpop.eup %8896  ;;  %v6090_v29 = vmul.f32 %v8895_v0, %v11642_v49 }
 0xb1d   :  { %v6947_v63 = vmul.f32 1.442695, %v8897_v30 }
 0xb1e   :  { %v6119_v19 = vadd.f32 %v8891_v5, %v6102_v53  ;;  %v6108_v31 = vadd.f32 %v6106_v62, %v6090_v29 }
 0xb20   :  { %v6136_v8 = vadd.f32 %v11682_v34, %v6119_v19 }
 0xb22   :  { %8898 = vrcp.f32 %v6136_v8 }
 0xb23   :  { %8900 = vpow2.f32 %v6947_v63 }
 0xb2c   :  { %v8899_v60 = vpop.eup %8898 }
 0xb2d   :  { %v8901_v6 = vpop.eup %8900 }
 0xb2e   :  { %v6950_v59 = vmul.f32 %v8901_v6, %v11693_v47 }
 0xb47   :  { %v5317_v28 = vpop.permute.xlu1 %5316 }
 0xb48   :  { %7766 = vst.msk [vmem:[%s11734_s11 + $0x28] sm:$0xff] %vm91_vm0, %v5317_v28 }
 0xb53   :  { %v6936_v54 = vpop.permute.xlu0 %6935 }
 0xb5b   :  { %v6970_v11 = vpop.permute.xlu0 %6969 }
 0xb86   :  { %v6913_v36 = vpop.xlane.xlu1 %6912 }
 0xb87   :  { %v6914_v34 = vsub.f32 0.0, %v6913_v36 }
 0xb89   :  { %v6915_v61 = vmul.f32 1.442695, %v6914_v34 }
 0xb8a   :  { %v6123_v22 = vpop.permute.xlu1 %6122 }
 0xb8b   :  { %v6125_v41 = vadd.f32 %v6123_v22, %v6108_v31  ;;  %8902 = vpow2.f32 %v6915_v61 }
 0xb8d   :  { %v6142_v58 = vadd.f32 %v6140_v7, %v6125_v41 }
 0xb8f   :  { %v6144_v46 = vmul.f32 %v8899_v60, %v6142_v58 }
 0xb91   :  { %6146 = vrot.lane.b32.xlu1 %v6144_v46, %s8957_s13 }
 0xb95   :  { %6952 = vrot.lane.b32.xlu1 %v6950_v59, %s8956_s12  ;;  %v8903_v49 = vpop.eup %8902 }
 0xb96   :  { %v6917_v37 = vmul.f32 1.442695, %v8903_v49 }
 0xb98   :  { %8904 = vpow2.f32 %v6917_v37 }
 0xba2   :  { %v8905_v40 = vpop.eup %8904 }
 0xba3   :  { %v6932_v3 = vadd.f32 %v8905_v40, %v8885_v25  ;;  %v6920_v17 = vmul.f32 %v8905_v40, %v11693_v47 }
 0xba5   :  { %v6949_v32 = vadd.f32 %v8901_v6, %v6932_v3  ;;  %v6938_v39 = vadd.f32 %v6936_v54, %v6920_v17 }
 0xba7   :  { %v6966_v44 = vadd.f32 %v8887_v33, %v6949_v32 }
 0xba9   :  { %8906 = vrcp.f32 %v6966_v44 }
 0xbb3   :  { %v8907_v4 = vpop.eup %8906 }
 0xc03   :  { %v6147_v9 = vpop.permute.xlu1 %6146 }
 0xc04   :  { %7888 = vst.msk [vmem:[%s11734_s11 + $0x30] sm:$0xff] %vm91_vm0, %v6147_v9 }
 0xc07   :  { %v6953_v55 = vpop.permute.xlu1 %6952 }
 0xc08   :  { %v6955_v16 = vadd.f32 %v6953_v55, %v6938_v39 }
 0xc0a   :  { %v6972_v23 = vadd.f32 %v6970_v11, %v6955_v16 }
 0xc0c   :  { %v6974_v57 = vmul.f32 %v8907_v4, %v6972_v23 }
 0xc0e   :  { %6976 = vrot.lane.b32.xlu1 %v6974_v57, %s8957_s13 }
 0xc80   :  { %v6977_v18 = vpop.permute.xlu1 %6976 }
 0xc81   :  { %8010 = vst.msk [vmem:[%s11734_s11 + $0x38] sm:$0xff] %vm91_vm0, %v6977_v18 }

</bundles_post_ra>
